<compile_context>
chip_gen: v7x
topology: tpu7x:2x2x1
jax: 0.10.0
libtpu: 0.0.40
codegen_flags: <defaults>
</compile_context>

<pallas_src>
import math
from functools import partial
from typing import List

import jax
import jax.numpy as jnp
from jax.experimental import pallas as pl
from jax.experimental.pallas import tpu as pltpu


# ---------------------------------------------------------------------------
# Parameter init (deterministic, mirrors siren_uniform_ + default bias init)
# ---------------------------------------------------------------------------
def init_siren_params(key, layers: List[int], c: float = 6.0):
    """Returns list of (W, b); W in PyTorch (out_features, in_features) layout."""
    params = []
    for li in range(len(layers) - 1):
        fan_in, fan_out = layers[li], layers[li + 1]
        key, kw, kb = jax.random.split(key, 3)
        # siren_uniform_: U(-sqrt(c)/sqrt(fan_in), +sqrt(c)/sqrt(fan_in))
        w_bound = math.sqrt(c) / math.sqrt(fan_in)
        W = jax.random.uniform(kw, (fan_out, fan_in), jnp.float32,
                               minval=-w_bound, maxval=w_bound)
        # nn.Linear default bias init: U(-1/sqrt(fan_in), +1/sqrt(fan_in))
        b_bound = 1.0 / math.sqrt(fan_in)
        b = jax.random.uniform(kb, (fan_out,), jnp.float32,
                               minval=-b_bound, maxval=b_bound)
        params.append((W, b))
    return params


# ---------------------------------------------------------------------------
# Pallas kernel: full MLP on a (features, tile_m) rows-on-lanes tile
# ---------------------------------------------------------------------------
def _siren_mlp_kernel(x_ref, z_ref, *refs, num_layers, return_density):
    """refs = [W1x, W1z, b1, W2, b2, ..., Wk, bk, out_ref].

    Activations are (features, tile_m): tile_m rows ride the 128-lane axis, so
    sin/sigmoid are lane-dense and the final store is an unmasked wide store.
    Frequencies (w0_initial / w0) are already folded into W/b by the wrapper.
    """
    out_ref = refs[-1]
    p = refs[:-1]

    # Layer 0: W1 split across the x / z halves of the (virtual) concat input.
    h = (jnp.dot(p[0][...], x_ref[...], preferred_element_type=jnp.float32)
         + jnp.dot(p[1][...], z_ref[...], preferred_element_type=jnp.float32)
         + p[2][...])
    if num_layers > 1:
        h = jnp.sin(h)

    # Hidden + final layers.
    idx = 3
    for li in range(1, num_layers):
        w_ref, b_ref = p[idx], p[idx + 1]
        idx += 2
        h = jnp.dot(w_ref[...], h, preferred_element_type=jnp.float32) + b_ref[...]
        if li < num_layers - 1:
            h = jnp.sin(h)

    if return_density:
        h = jax.nn.sigmoid(h)

    out_ref[...] = h.astype(out_ref.dtype)


# ---------------------------------------------------------------------------
# Wrapper
# ---------------------------------------------------------------------------
def conditional_siren_forward(x, z, params, *, w0_initial, w0,
                              return_density, tile_m=1024):
    """x: (N, dx), z: (N, dz). params in PyTorch (out, in) layout.

    Returns (N, layers[-1]), matching the PyTorch module's forward().
    tile_m should be a multiple of 128; keep N // tile_m >= 2 on v7x so the
    'parallel' grid axis can shard across both TensorCores.
    """
    N, dx = x.shape
    Nz, dz = z.shape
    assert N == Nz
    num_layers = len(params)
    d_out = params[-1][0].shape[0]

    tile_m = min(tile_m, N)
    assert tile_m % 128 == 0, "tile_m must be a multiple of 128 lanes"
    assert N % tile_m == 0, "example keeps N a multiple of tile_m"

    # Fold sine frequencies into the (tiny) weights/biases once, outside the
    # hot loop:  sin(f * (W h + b)) == sin((f W) h + (f b)).
    prepped = []
    for li, (W, b) in enumerate(params):
        if li < num_layers - 1:              # this layer feeds a sine
            freq = w0_initial if li == 0 else w0
            W = W * freq
            b = b * freq
        prepped.append((W, b.reshape(-1, 1)))

    # Split layer-0 weight across the x / z halves (no concat anywhere).
    W1, b1 = prepped[0]
    W1x = W1[:, :dx]
    W1z = W1[:, dx:]

    # Rows-on-lanes layout: kernel sees (features, rows) tiles.
    xT = x.T  # (dx, N)
    zT = z.T  # (dz, N)

    kernel = partial(
        _siren_mlp_kernel,
        num_layers=num_layers,
        return_density=return_density,
    )

    in_specs = [
        pl.BlockSpec((dx, tile_m), lambda i: (0, i)),
        pl.BlockSpec((dz, tile_m), lambda i: (0, i)),
        pl.BlockSpec(W1x.shape, lambda i: (0, 0)),
        pl.BlockSpec(W1z.shape, lambda i: (0, 0)),
        pl.BlockSpec(b1.shape, lambda i: (0, 0)),
    ]
    flat_args = [xT, zT, W1x, W1z, b1]
    for (W, b) in prepped[1:]:
        in_specs.append(pl.BlockSpec(W.shape, lambda i: (0, 0)))
        in_specs.append(pl.BlockSpec(b.shape, lambda i: (0, 0)))
        flat_args.extend([W, b])

    out_spec = pl.BlockSpec((d_out, tile_m), lambda i: (0, i))

    outT = pl.pallas_call(
        kernel,
        out_shape=jax.ShapeDtypeStruct((d_out, N), jnp.float32),
        grid_spec=pltpu.PrefetchScalarGridSpec(
            num_scalar_prefetch=0,
            grid=(N // tile_m,),
            in_specs=in_specs,
            out_specs=out_spec,
        ),
        compiler_params=pltpu.CompilerParams(
            dimension_semantics=("parallel",)),
    )(*flat_args)

    # Layout plumbing back to the PyTorch-convention (N, d_out) output.
    return outT.T


# ---------------------------------------------------------------------------
# Pure-JAX reference (mirrors the PyTorch module exactly; no folding/transpose)
# ---------------------------------------------------------------------------
def reference_forward(x, z, params, *, w0_initial, w0, return_density):
    h = jnp.concatenate([x, z], axis=-1)
    n = len(params)
    for li, (W, b) in enumerate(params):
        h = h @ W.T + b
        if li < n - 1:
            freq = w0_initial if li == 0 else w0
            h = jnp.sin(freq * h)
        elif return_density:
            h = jax.nn.sigmoid(h)
    return h


if __name__ == "__main__":
    # Shapes consistent with the module:
    #   layers = [8, 32, 32, 4]  -> x dim 4 + z dim 4 = 8 input features
    layers = [8, 32, 32, 4]
    return_density = True
    w0_initial = 30.0
    w0 = 1.0

    N = 4096          # number of query points (rows); small, grid = 4 steps
    tile_m = 1024     # sweepable (1024-4096); keeps >= 2 grid steps for v7x

    key = jax.random.PRNGKey(0)
    kx, kz, kp = jax.random.split(key, 3)
    x = jax.random.normal(kx, (N, 4), jnp.float32)
    z = jax.random.normal(kz, (N, 4), jnp.float32)

    params = init_siren_params(kp, layers, c=6.0)

    out = conditional_siren_forward(
        x, z, params,
        w0_initial=w0_initial, w0=w0, return_density=return_density,
        tile_m=tile_m,
    )
    out = jax.block_until_ready(out)

    ref = reference_forward(
        x, z, params,
        w0_initial=w0_initial, w0=w0, return_density=return_density,
    )
    ref = jax.block_until_ready(ref)

    assert out.shape == (N, layers[-1])
    assert jnp.allclose(out, ref, atol=1e-4, rtol=1e-4), "mismatch vs reference"
    print("KERNEL_OK")
</pallas_src>

<mosaic_0001>
module attributes {stable_mosaic.version = 11 : i64} {
  func.func @_siren_mlp_kernel(%arg0: i32, %arg1: memref<4x1024xf32, #tpu.memory_space<vmem>>, %arg2: memref<4x1024xf32, #tpu.memory_space<vmem>>, %arg3: memref<32x4xf32, #tpu.memory_space<vmem>>, %arg4: memref<32x4xf32, #tpu.memory_space<vmem>>, %arg5: memref<32x1xf32, #tpu.memory_space<vmem>>, %arg6: memref<32x32xf32, #tpu.memory_space<vmem>>, %arg7: memref<32x1xf32, #tpu.memory_space<vmem>>, %arg8: memref<4x32xf32, #tpu.memory_space<vmem>>, %arg9: memref<4x1xf32, #tpu.memory_space<vmem>>, %arg10: memref<4x1024xf32, #tpu.memory_space<vmem>>) attributes {dimension_semantics = [#tpu.dimension_semantics<parallel>], iteration_bounds = array<i64: 4>, scalar_prefetch = 0 : i64, scratch_operands = 0 : i64, tpu.core_type = #tpu.core_type<tc>, window_params = [{transform_indices = @transform_0, window_bounds = array<i64: 4, 1024>}, {transform_indices = @transform_1, window_bounds = array<i64: 4, 1024>}, {pipeline_mode = #tpu.pipeline_mode<synchronous>, transform_indices = @transform_2, window_bounds = array<i64: 32, 4>}, {pipeline_mode = #tpu.pipeline_mode<synchronous>, transform_indices = @transform_3, window_bounds = array<i64: 32, 4>}, {pipeline_mode = #tpu.pipeline_mode<synchronous>, transform_indices = @transform_4, window_bounds = array<i64: 32, 1>}, {pipeline_mode = #tpu.pipeline_mode<synchronous>, transform_indices = @transform_5, window_bounds = array<i64: 32, 32>}, {pipeline_mode = #tpu.pipeline_mode<synchronous>, transform_indices = @transform_6, window_bounds = array<i64: 32, 1>}, {pipeline_mode = #tpu.pipeline_mode<synchronous>, transform_indices = @transform_7, window_bounds = array<i64: 4, 32>}, {pipeline_mode = #tpu.pipeline_mode<synchronous>, transform_indices = @transform_8, window_bounds = array<i64: 4, 1>}, {transform_indices = @transform_9, window_bounds = array<i64: 4, 1024>}]} {
    %c0 = arith.constant 0 : index
    %c0_0 = arith.constant 0 : index
    %0 = vector.load %arg3[%c0, %c0_0] : memref<32x4xf32, #tpu.memory_space<vmem>>, vector<32x4xf32>
    %c0_1 = arith.constant 0 : index
    %c0_2 = arith.constant 0 : index
    %1 = vector.load %arg1[%c0_1, %c0_2] : memref<4x1024xf32, #tpu.memory_space<vmem>>, vector<4x1024xf32>
    %cst = arith.constant dense<0.000000e+00> : vector<32x1024xf32>
    %2 = tpu.matmul %0, %1, %cst {dimension_numbers = #tpu.dot_dimension_numbers<[1], [0], [0], [1], [0, 0, 1, 1], [], []>} : vector<32x4xf32>, vector<4x1024xf32>, vector<32x1024xf32> -> vector<32x1024xf32>
    %c0_3 = arith.constant 0 : index
    %c0_4 = arith.constant 0 : index
    %3 = vector.load %arg4[%c0_3, %c0_4] : memref<32x4xf32, #tpu.memory_space<vmem>>, vector<32x4xf32>
    %c0_5 = arith.constant 0 : index
    %c0_6 = arith.constant 0 : index
    %4 = vector.load %arg2[%c0_5, %c0_6] : memref<4x1024xf32, #tpu.memory_space<vmem>>, vector<4x1024xf32>
    %cst_7 = arith.constant dense<0.000000e+00> : vector<32x1024xf32>
    %5 = tpu.matmul %3, %4, %cst_7 {dimension_numbers = #tpu.dot_dimension_numbers<[1], [0], [0], [1], [0, 0, 1, 1], [], []>} : vector<32x4xf32>, vector<4x1024xf32>, vector<32x1024xf32> -> vector<32x1024xf32>
    %6 = arith.addf %2, %5 : vector<32x1024xf32>
    %c0_8 = arith.constant 0 : index
    %c0_9 = arith.constant 0 : index
    %7 = vector.load %arg5[%c0_8, %c0_9] : memref<32x1xf32, #tpu.memory_space<vmem>>, vector<32x1xf32>
    %8 = vector.broadcast %7 : vector<32x1xf32> to vector<32x1024xf32>
    %9 = arith.addf %6, %8 : vector<32x1024xf32>
    %10 = math.sin %9 : vector<32x1024xf32>
    %c0_10 = arith.constant 0 : index
    %c0_11 = arith.constant 0 : index
    %11 = vector.load %arg6[%c0_10, %c0_11] : memref<32x32xf32, #tpu.memory_space<vmem>>, vector<32x32xf32>
    %cst_12 = arith.constant dense<0.000000e+00> : vector<32x1024xf32>
    %12 = tpu.matmul %11, %10, %cst_12 {dimension_numbers = #tpu.dot_dimension_numbers<[1], [0], [0], [1], [0, 0, 1, 1], [], []>} : vector<32x32xf32>, vector<32x1024xf32>, vector<32x1024xf32> -> vector<32x1024xf32>
    %c0_13 = arith.constant 0 : index
    %c0_14 = arith.constant 0 : index
    %13 = vector.load %arg7[%c0_13, %c0_14] : memref<32x1xf32, #tpu.memory_space<vmem>>, vector<32x1xf32>
    %14 = vector.broadcast %13 : vector<32x1xf32> to vector<32x1024xf32>
    %15 = arith.addf %12, %14 : vector<32x1024xf32>
    %16 = math.sin %15 : vector<32x1024xf32>
    %c0_15 = arith.constant 0 : index
    %c0_16 = arith.constant 0 : index
    %17 = vector.load %arg8[%c0_15, %c0_16] : memref<4x32xf32, #tpu.memory_space<vmem>>, vector<4x32xf32>
    %cst_17 = arith.constant dense<0.000000e+00> : vector<4x1024xf32>
    %18 = tpu.matmul %17, %16, %cst_17 {dimension_numbers = #tpu.dot_dimension_numbers<[1], [0], [0], [1], [0, 0, 1, 1], [], []>} : vector<4x32xf32>, vector<32x1024xf32>, vector<4x1024xf32> -> vector<4x1024xf32>
    %c0_18 = arith.constant 0 : index
    %c0_19 = arith.constant 0 : index
    %19 = vector.load %arg9[%c0_18, %c0_19] : memref<4x1xf32, #tpu.memory_space<vmem>>, vector<4x1xf32>
    %20 = vector.broadcast %19 : vector<4x1xf32> to vector<4x1024xf32>
    %21 = arith.addf %18, %20 : vector<4x1024xf32>
    %22 = arith.negf %21 : vector<4x1024xf32>
    %23 = math.exp %22 : vector<4x1024xf32>
    %cst_20 = arith.constant 1.000000e+00 : f32
    %24 = vector.broadcast %cst_20 : f32 to vector<4x1024xf32>
    %25 = arith.addf %24, %23 : vector<4x1024xf32>
    %26 = arith.divf %24, %25 : vector<4x1024xf32>
    %c0_21 = arith.constant 0 : index
    %c0_22 = arith.constant 0 : index
    %27 = vector.load %arg10[%c0_21, %c0_22] : memref<4x1024xf32, #tpu.memory_space<vmem>>, vector<4x1024xf32>
    tpu.vector_store %arg10[%c0_21, %c0_22], %26 {strides = array<i32>} : memref<4x1024xf32, #tpu.memory_space<vmem>>, vector<4x1024xf32>,
    return
  }
  func.func @transform_0(%arg0: i32) -> (i32, i32) {
    %c0_i32 = arith.constant 0 : i32
    %c0_i32_0 = arith.constant 0 : i32
    return %c0_i32, %arg0 : i32, i32
  }
  func.func @transform_1(%arg0: i32) -> (i32, i32) {
    %c0_i32 = arith.constant 0 : i32
    %c0_i32_0 = arith.constant 0 : i32
    return %c0_i32, %arg0 : i32, i32
  }
  func.func @transform_2(%arg0: i32) -> (i32, i32) {
    %c0_i32 = arith.constant 0 : i32
    %c0_i32_0 = arith.constant 0 : i32
    %c0_i32_1 = arith.constant 0 : i32
    return %c0_i32, %c0_i32_0 : i32, i32
  }
  func.func @transform_3(%arg0: i32) -> (i32, i32) {
    %c0_i32 = arith.constant 0 : i32
    %c0_i32_0 = arith.constant 0 : i32
    %c0_i32_1 = arith.constant 0 : i32
    return %c0_i32, %c0_i32_0 : i32, i32
  }
  func.func @transform_4(%arg0: i32) -> (i32, i32) {
    %c0_i32 = arith.constant 0 : i32
    %c0_i32_0 = arith.constant 0 : i32
    %c0_i32_1 = arith.constant 0 : i32
    return %c0_i32, %c0_i32_0 : i32, i32
  }
  func.func @transform_5(%arg0: i32) -> (i32, i32) {
    %c0_i32 = arith.constant 0 : i32
    %c0_i32_0 = arith.constant 0 : i32
    %c0_i32_1 = arith.constant 0 : i32
    return %c0_i32, %c0_i32_0 : i32, i32
  }
  func.func @transform_6(%arg0: i32) -> (i32, i32) {
    %c0_i32 = arith.constant 0 : i32
    %c0_i32_0 = arith.constant 0 : i32
    %c0_i32_1 = arith.constant 0 : i32
    return %c0_i32, %c0_i32_0 : i32, i32
  }
  func.func @transform_7(%arg0: i32) -> (i32, i32) {
    %c0_i32 = arith.constant 0 : i32
    %c0_i32_0 = arith.constant 0 : i32
    %c0_i32_1 = arith.constant 0 : i32
    return %c0_i32, %c0_i32_0 : i32, i32
  }
  func.func @transform_8(%arg0: i32) -> (i32, i32) {
    %c0_i32 = arith.constant 0 : i32
    %c0_i32_0 = arith.constant 0 : i32
    %c0_i32_1 = arith.constant 0 : i32
    return %c0_i32, %c0_i32_0 : i32, i32
  }
  func.func @transform_9(%arg0: i32) -> (i32, i32) {
    %c0_i32 = arith.constant 0 : i32
    %c0_i32_0 = arith.constant 0 : i32
    return %c0_i32, %arg0 : i32, i32
  }
}

</mosaic_0001>

<bundles_post_ra>
// kernel: tpu_custom_call.1
= control target key start
LH: loop header
LB: loop body
LE: loop exit
PB: predicated region body
PF: predicated region fallthrough
CT: control target
= control target key end

     0   :  { %14 = vsyncpa [#allocation3], 0  ;;  %s16567_s0 = inlined_call_operand.vmem [shape: f32[4,4096], index: 0, kind: input, shape index: {}]   ;;  %s16568_s1 = inlined_call_operand.hbm [shape: f32[4,4096], index: 1, kind: input, shape index: {}]   ;;  %s16569_s2 = inlined_call_operand.vmem [shape: f32[32,4], index: 2, kind: input, shape index: {}]   ;;  %s16570_s3 = inlined_call_operand.vmem [shape: f32[32,4], index: 3, kind: input, shape index: {}]   ;;  %s16571_s4 = inlined_call_operand.vmem [shape: f32[32,1], index: 4, kind: input, shape index: {}]   ;;  %s16572_s5 = inlined_call_operand.vmem [shape: f32[32,32], index: 5, kind: input, shape index: {}]   ;;  %s16573_s6 = inlined_call_operand.vmem [shape: f32[32,1], index: 6, kind: input, shape index: {}]   ;;  %s16574_s7 = inlined_call_operand.vmem [shape: f32[4,32], index: 7, kind: input, shape index: {}]   ;;  %s16575_s8 = inlined_call_operand.vmem [shape: f32[4,1], index: 8, kind: input, shape index: {}]   ;;  %s16576_s9 = inlined_call_operand.hbm [shape: f32[4,4096], index: 9, kind: output, shape index: {}]  }
   0x1   :  { %16 = vsyncpa [#allocation3 + $0x1], 0 }
   0x2   :  { %17 = vsyncpa [#allocation4], 0 }
   0x3   :  { %19 = vsyncpa [#allocation4 + $0x1], 0  ;;  %s9955_s30 = smov 0   ;;  %s9957_s10 = smov 0  }
   0x4   :  { %s9959_s11 = smov 0   ;;  %s9961_s12 = smov 0  }
   0x5 LB: > { %s9976_s13 = sadd.s32 4294967295, %s9893_s12   ;;  %s8743_s14 = sadd.s32 4294967294, %s9893_s12   ;;  %s9893_s12 = sphi %s9961_s12, %s17757_s12   ;;  %s9889_s11 = sphi %s9959_s11, %s17756_s11   ;;  %s9885_s10 = sphi %s9957_s10, %s17755_s10   ;;  %s9881_s30 = sphi %s9955_s30, %s17754_s30  }
   0x6   : > { %s9980_s15 = sadd.s32 1, %s9893_s12   ;;  %s58_s16 = sadd.s32 1, %s9889_s11 }
   0x7   : > { %s55_s17 = ssub.s32 %s9893_s12, %s9980_s15  ;;  %p65_p0 = scmp.ne.s32.totalorder %s9889_s11, %s9885_s10 }
   0x8   : > { %p56_p1 = scmp.eq.s32.totalorder %s55_s17, 0  ;;  %p66_p2 = scmp.eq.s32.totalorder %s9893_s12, 0 }
   0x9   : > { %p71_p3 = scmp.ne.s32.totalorder %s9885_s10, %s9881_s30  ;;  %p72_p4 = scmp.eq.s32.totalorder %s9976_s13, 0 }
   0xa   : > { %s9992_s18 = scalar_select %p56_p1, %s9889_s11, %s58_s16  }
   0xb   : > { %p9994_p5 = por %p66_p2, %p65_p0  ;;  %p9998_p6 = por %p72_p4, %p71_p3 }
   0xc   : > { %p242_p7 = scmp.eq.s32.totalorder %s9976_s13, 3  ;;  %p248_p8 = scmp.eq.s32.totalorder %s8743_s14, 3 }
   0xd   : > { %p9457_p9 = scmp.lt.s32.totalorder %s9893_s12, 4  ;;  %s298_s23 = sand.u32 1, %s9889_s11  }
   0xe   : > { %p10004_p10 = por %p242_p7, %p65_p0  ;;  %p10008_p11 = por %p248_p8, %p71_p3 }
   0xf   : > { %s9091_s24 = sshll.u32 %s9893_s12, 9  ;;  %s8746_s25 = sshll.u32 %s298_s23, 5 }
  0x10   : > { %s16942_s21 = scalar_select %p10004_p10, 1, 0 }
  0x11   : > { %s16943_s22 = scalar_select %p10008_p11, 1, 0 }
  0x12   : > { %s10017_s28 = scalar_lea.hbm %s16568_s1, %s9091_s24  ;;  %s302_s29 = scalar_lea.vmem [#allocation2], %s8746_s25 }
  0x13   : > { %s310_s14 = sshll.u32 %s302_s29, 4  ;;  %p10021_p12 = pnand %p9457_p9, %p9994_p5  ;;  %s10025_s14 = int_to_ptr.vmem [resolvable:$true] %s310_s14 }
  0x14   : > { %s299_s17 = scalar_lea.sflag [#allocation3], %s298_s23  ;;  %s9797_s24 = scalar_lea.hbm %s10017_s28, 512 }
  0x15   : > { %p9798_p1 = scmp.ne.s32.totalorder %s10017_s28, %s9797_s24  ;;  %p9799_p2 = pneg %p10021_p12 }
  0x16   : > { %s9802_s26 = scalar_lea.hbm %s16568_s1, 2048  ;;  %p9803_p5 = scmp.lt.u32.totalorder %s10017_s28, %s16568_s1 }
  0x17   : > { %p9800_p3 = pnand %p9799_p2, %p9798_p1  ;;  %p9804_p7 = scmp.lt.u32.totalorder %s9802_s26, %s9797_s24 }
  0x18   : > { %p9806_p9 = scmp.lt.u32.totalorder %s9797_s24, %s10017_s28 }
  0x19   : > { %p9801_p4 = pneg %p9800_p3  ;;  %p9805_p8 = por %p9804_p7, %p9803_p5 }
  0x1b   : > { %p9807_p13 = por %p9806_p9, %p9805_p8 }
  0x1d   : > { %p9808_p0 = pnand %p9807_p13, %p9801_p4 }
  0x1f   : > { %9811 = shalt.err (!%p9808_p0)
}
  0x20   : > { %s9812_s23 = scalar_lea.vmem %s10025_s14, 512  ;;  %s9895_s19 = smov [#allocation2]  }
  0x21   : > { %p9813_p1 = scmp.ne.s32.totalorder %s10025_s14, %s9812_s23  ;;  %s9817_s25 = sshll.u32 %s9895_s19, 4  ;;  %s9818_s25 = int_to_ptr.vmem [resolvable:$false] %s9817_s25 }
  0x22   : > { %s9819_s27 = scalar_lea.vmem %s9818_s25, 1024  ;;  %p9820_p10 = scmp.lt.s32.totalorder %s10025_s14, %s9818_s25 }
  0x23   : > { %p9815_p3 = pnand %p9813_p1, %p9799_p2  ;;  %p9821_p5 = scmp.lt.s32.totalorder %s9819_s27, %s9812_s23 }
  0x25   : > { %p9816_p11 = pneg %p9815_p3  ;;  %p9822_p7 = por %p9821_p5, %p9820_p10 }
  0x27   : > { %p9823_p8 = pnand %p9822_p7, %p9816_p11 }
  0x29   : > { %9826 = shalt.err (!%p9823_p8)
}
  0x2a   : > { %9452 = dma.hbm_to_vmem [thread:$0]  (!%p10021_p12), %s10017_s28, 512, %s10025_s14, %s299_s17  }
  0x2b   : > { %p16945_p13 = scmp.lt.s32.totalorder %s9893_s12, 5  ;;  %p16946_p0 = scmp.ge.s32.totalorder %s9893_s12, 1 }
  0x2d   : > { %p316_p2 = pnand %p16946_p0, %p16945_p13 }
  0x2f   : > { %319 = sbr.rel (%p316_p2) target bundleno = 2376 (0x948), region = 56 }
  0x36   : > { %s10059_s24 = sand.u32 1, %s9885_s10  }
  0x37   : > { %s8750_s26 = sshll.u32 %s10059_s24, 5  ;;  %s322_s29 = scalar_lea.sflag [#allocation3], %s10059_s24 }
  0x38   : > { %s325_s16 = scalar_lea.vmem [#allocation2], %s8750_s26 }
  0x39   : > { %9872 = dma.done.wait (%p9998_p6), %s322_s29, 512  }
  0x3a   : > { %9874 = vsyncadd (%p9998_p6), %s322_s29, 4294966784  ;;  %s8752_s28 = sshll.u32 %s9976_s13, 3  ;;  %v16578_v0 = vmov 0.0   ;;  %v9897_v1 = vmov 0   ;;  %v385_v2 = vld [vmem:[%s325_s16] sm:$0xff]  ;;  %vm410_vm0 = vcmask 1043456  }
  0x3b   : > { %491 = vmatprep.mubr.f32.mxu0 %v16578_v0  ;;  %580 = vmatprep.mubr.f32.mxu1 %v16578_v0  ;;  %p366_p10 = scmp.lt.s32.totalorder %s8752_s28, 31  ;;  %v386_v3 = vld [vmem:[%s325_s16 + $0x8] sm:$0xff]  ;;  %v393_v4 = vcombine.high %v385_v2, %v385_v2  ;;  %v387_v6 = vld [vmem:[%s325_s16 + $0x10] sm:$0xff]  ;;  %v388_v7 = vld [vmem:[%s325_s16 + $0x18] sm:$0xff]  ;;  %vm397_vm1 = vcmask 31744   ;;  %s8647_s25 = scalar_lea.sflag [#allocation4], %s10059_s24 }
  0x3c   : > { %9499 = vset.pattern.permute.xlu0 %v9897_v1  ;;  %9500 = vset.pattern.permute.xlu1 %v9897_v1  ;;  %v394_v5 = vcombine.high %v386_v3, %v386_v3  ;;  %v381_v8 = vld [vmem:[%s16570_s3] sm:$0xff]  ;;  %v395_v9 = vcombine.high %v387_v6, %v387_v6  ;;  %v396_v10 = vcombine.high %v388_v7, %v388_v7  ;;  %v382_v13 = vld [vmem:[%s16570_s3 + $0x8] sm:$0xff]  ;;  %v1177_v17 = vld [vmem:[%s16571_s4 + $0x10] sm:$0xff]  ;;  %p17752_p11 = scmp.ne.s32.totalorder %s16942_s21, 0 }
  0x3d   : > { %s17759_s28 = smov (!%p366_p10, %s8752_s28), 31  ;;  %8754 = vmatprep.subr.msk.mxu0 %vm410_vm0, %v393_v4  ;;  %v1175_v16 = vld [vmem:[%s16571_s4] sm:$0xff]  ;;  %v383_v18 = vld [vmem:[%s16570_s3 + $0x10] sm:$0xff]  ;;  %1191 = vperm.xlu1 %9500, %v1177_v17   ;;  %v1176_v19 = vld [vmem:[%s16571_s4 + $0x8] sm:$0xff]  ;;  %v16585_v17 = vmov 2131351028  }
  0x3e   : > { %s8753_s14 = sshll.u32 %s17759_s28, 2  ;;  %8760 = vmatprep.subr.msk.mxu1 %vm410_vm0, %v394_v5  ;;  %8755 = vmatpush1.msk.msra.mxu0 %vm410_vm0, %v385_v2  ;;  %v1178_v20 = vld [vmem:[%s16571_s4 + $0x18] sm:$0xff]  ;;  %v4563_v24 = vld [vmem:[%s16573_s6] sm:$0xff]  ;;  %v4564_v25 = vld [vmem:[%s16573_s6 + $0x8] sm:$0xff]  ;;  %s16513_s28 = scalar_lea.vmem [#allocation5], %s8750_s26 }
  0x3f   : > { %s10075_s23 = scalar_lea.vmem %s16567_s0, %s8753_s14  ;;  %8761 = vmatpush1.msk.msra.mxu1 %vm410_vm0, %v386_v3  ;;  %8756 = vmatmul.mubr.msk.f32.vlgmr.msra.gmra.mrb[0].mxu0 %vm397_vm1, %v381_v8  ;;  %v384_v21 = vld [vmem:[%s16570_s3 + $0x18] sm:$0xff]  ;;  %v4565_v28 = vld [vmem:[%s16573_s6 + $0x10] sm:$0xff]  ;;  %v8285_v30 = vld [vmem:[%s16575_s8] sm:$0xf]  ;;  %s9092_s26 = sshll.u32 %s9976_s13, 9 }
  0x40   : > { %v377_v11 = vld [vmem:[%s10075_s23] sm:$0xff]  ;;  %v378_v12 = vld [vmem:[%s10075_s23 + $0x8] sm:$0xff]  ;;  %8762 = vmatmul.mubr.msk.f32.vlgmr.msra.gmra.mrb[0].mxu1 %vm397_vm1, %v381_v8  ;;  %497 = vmatprep.mubr.f32.mxu0 %v16578_v0  ;;  %v379_v22 = vld [vmem:[%s10075_s23 + $0x10] sm:$0xff]  ;;  %s8661_s14 = sshll.u32 %s16513_s28, 4  ;;  %s16523_s19 = scalar_lea.hbm %s16576_s9, %s9092_s26  ;;  %s16525_s14 = int_to_ptr.vmem [resolvable:$true] %s8661_s14 }
  0x41   : > { %586 = vmatprep.mubr.f32.mxu1 %v16578_v0  ;;  %8766 = vmatprep.subr.msk.mxu0 %vm410_vm0, %v395_v9  ;;  %v787_v14 = vcombine.high %v377_v11, %v377_v11  ;;  %v788_v15 = vcombine.high %v378_v12, %v378_v12  ;;  %v380_v23 = vld [vmem:[%s10075_s23 + $0x18] sm:$0xff]  ;;  %v789_v26 = vcombine.high %v379_v22, %v379_v22  ;;  %v373_v31 = vld [vmem:[%s16569_s2] sm:$0xff]  ;;  %v374_v32 = vld [vmem:[%s16569_s2 + $0x8] sm:$0xff]  ;;  %s9827_s23 = scalar_lea.vmem %s16525_s14, 512  ;;  %s9904_s13 = smov [#allocation5]  }
  0x42   : > { %8772 = vmatprep.subr.msk.mxu1 %vm410_vm0, %v396_v10  ;;  %8767 = vmatpush1.msk.msra.mxu0 %vm410_vm0, %v387_v6  ;;  %v790_v27 = vcombine.high %v380_v23, %v380_v23  ;;  %v4566_v29 = vld [vmem:[%s16573_s6 + $0x18] sm:$0xff]  ;;  %v375_v33 = vld [vmem:[%s16569_s2 + $0x10] sm:$0xff]  ;;  %p9828_p6 = scmp.ne.s32.totalorder %s16525_s14, %s9827_s23  ;;  %s9831_s27 = sshll.u32 %s9904_s13, 4  ;;  %s9832_s27 = int_to_ptr.vmem [resolvable:$false] %s9831_s27 }
  0x43   : > { %8773 = vmatpush1.msk.msra.mxu1 %vm410_vm0, %v388_v7  ;;  %8757 = vmatmul.mubr.msk.f32.gmra.mrb[2].mxu0 %vm397_vm1, %v382_v13  ;;  %v376_v34 = vld [vmem:[%s16569_s2 + $0x18] sm:$0xff]  ;;  %s9833_s29 = scalar_lea.vmem %s9832_s27, 1024  ;;  %p9834_p9 = scmp.lt.s32.totalorder %s16525_s14, %s9832_s27 }
  0x44   : > { %8763 = vmatmul.mubr.msk.f32.gmra.mrb[2].mxu1 %vm397_vm1, %v382_v13  ;;  %503 = vmatprep.mubr.f32.mxu0 %v16578_v0  ;;  %p9829_p12 = pnand %p9828_p6, %p17752_p11  ;;  %p9835_p1 = scmp.lt.s32.totalorder %s9833_s29, %s9827_s23 }
  0x45   : > { %592 = vmatprep.mubr.f32.mxu1 %v16578_v0  ;;  %8778 = vmatprep.subr.msk.mxu0 %vm410_vm0, %v787_v14 }
  0x46   : > { %8784 = vmatprep.subr.msk.mxu1 %vm410_vm0, %v788_v15  ;;  %1181 = vperm.xlu0 %9499, %v1175_v16   ;;  %v16591_v15 = vmov 2475754826   ;;  %p9830_p4 = pneg %p9829_p12  ;;  %p9836_p3 = por %p9835_p1, %p9834_p9 }
  0x47   : > { %8758 = vmatmul.mubr.msk.f32.gmra.mrb[4].mxu0 %vm397_vm1, %v383_v18  ;;  %1196 = vperm.xlu1 %9500, %v1178_v20  }
  0x48   : > { %8764 = vmatmul.mubr.msk.f32.gmra.mrb[4].mxu1 %vm397_vm1, %v383_v18  ;;  %509 = vmatprep.mubr.f32.mxu0 %v16578_v0  ;;  %p9837_p5 = pnand %p9836_p3, %p9830_p4 }
  0x49   : > { %598 = vmatprep.mubr.f32.mxu1 %v16578_v0 }
  0x4a   : > { %1186 = vperm.xlu0 %9499, %v1176_v19   ;;  %v16583_v19 = vmov 2102212464  }
  0x4b   : > { %8759 = vmatmul.mubr.msk.f32.gmra.mrb[6].mxu0 %vm397_vm1, %v384_v21  ;;  %4574 = vperm.xlu1 %9500, %v4564_v25  }
  0x4c   : > { %8765 = vmatmul.mubr.msk.f32.gmra.mrb[6].mxu1 %vm397_vm1, %v384_v21  ;;  %669 = vmatprep.mubr.f32.mxu0 %v16578_v0 }
  0x4d   : > { %758 = vmatprep.mubr.f32.mxu1 %v16578_v0 }
  0x4e   : > { %4569 = vperm.xlu0 %9499, %v4563_v24  }
  0x4f   : > { %8768 = vmatmul.mubr.msk.f32.vlgmr.msra.gmra.mrb[8].mxu0 %vm397_vm1, %v381_v8  ;;  %4584 = vperm.xlu1 %9500, %v4566_v29   ;;  %v16587_v29 = vmov 1326507024  }
  0x50   : > { %8774 = vmatmul.mubr.msk.f32.vlgmr.msra.gmra.mrb[8].mxu1 %vm397_vm1, %v381_v8  ;;  %675 = vmatprep.mubr.f32.mxu0 %v16578_v0 }
  0x51   : > { %764 = vmatprep.mubr.f32.mxu1 %v16578_v0  ;;  %8779 = vmatpush1.msk.msra.mxu0 %vm410_vm0, %v377_v11  ;;  %v16595_v11 = vmov 683565275  }
  0x52   : > { %8785 = vmatpush1.msk.msra.mxu1 %vm410_vm0, %v378_v12  ;;  %8790 = vmatprep.subr.msk.mxu0 %vm410_vm0, %v789_v26 }
  0x53   : > { %8796 = vmatprep.subr.msk.mxu1 %vm410_vm0, %v790_v27  ;;  %8769 = vmatmul.mubr.msk.f32.gmra.mrb[10].mxu0 %vm397_vm1, %v382_v13 }
  0x54   : > { %8775 = vmatmul.mubr.msk.f32.gmra.mrb[10].mxu1 %vm397_vm1, %v382_v13  ;;  %681 = vmatprep.mubr.f32.mxu0 %v16578_v0 }
  0x55   : > { %770 = vmatprep.mubr.f32.mxu1 %v16578_v0  ;;  %4579 = vperm.xlu0 %9499, %v4565_v28  }
  0x57   : > { %8770 = vmatmul.mubr.msk.f32.gmra.mrb[12].mxu0 %vm397_vm1, %v383_v18 }
  0x58   : > { %8776 = vmatmul.mubr.msk.f32.gmra.mrb[12].mxu1 %vm397_vm1, %v383_v18  ;;  %687 = vmatprep.mubr.f32.mxu0 %v16578_v0 }
  0x59   : > { %776 = vmatprep.mubr.f32.mxu1 %v16578_v0  ;;  %8288 = vperm.xlu0 %9499, %v8285_v30  }
  0x5b   : > { %8771 = vmatmul.mubr.msk.f32.gmra.mrb[14].mxu0 %vm397_vm1, %v384_v21 }
  0x5c   : > { %8777 = vmatmul.mubr.msk.f32.gmra.mrb[14].mxu1 %vm397_vm1, %v384_v21  ;;  %883 = vmatprep.mubr.f32.mxu0 %v16578_v0  ;;  %v16589_v21 = vmov 920167782  }
  0x5d   : > { %972 = vmatprep.mubr.f32.mxu1 %v16578_v0 }
  0x5f   : > { %8780 = vmatmul.mubr.msk.f32.vlgmr.msra.gmra.mrb[0].mxu0 %vm397_vm1, %v373_v31 }
  0x60   : > { %8786 = vmatmul.mubr.msk.f32.vlgmr.msra.gmra.mrb[0].mxu1 %vm397_vm1, %v373_v31  ;;  %889 = vmatprep.mubr.f32.mxu0 %v16578_v0 }
  0x61   : > { %978 = vmatprep.mubr.f32.mxu1 %v16578_v0  ;;  %8791 = vmatpush1.msk.msra.mxu0 %vm410_vm0, %v379_v22 }
  0x62   : > { %8797 = vmatpush1.msk.msra.mxu1 %vm410_vm0, %v380_v23 }
  0x63   : > { %8781 = vmatmul.mubr.msk.f32.gmra.mrb[2].mxu0 %vm397_vm1, %v374_v32 }
  0x64   : > { %8787 = vmatmul.mubr.msk.f32.gmra.mrb[2].mxu1 %vm397_vm1, %v374_v32  ;;  %895 = vmatprep.mubr.f32.mxu0 %v16578_v0 }
  0x65   : > { %984 = vmatprep.mubr.f32.mxu1 %v16578_v0 }
  0x67   : > { %8782 = vmatmul.mubr.msk.f32.gmra.mrb[4].mxu0 %vm397_vm1, %v375_v33 }
  0x68   : > { %8788 = vmatmul.mubr.msk.f32.gmra.mrb[4].mxu1 %vm397_vm1, %v375_v33  ;;  %901 = vmatprep.mubr.f32.mxu0 %v16578_v0 }
  0x69   : > { %990 = vmatprep.mubr.f32.mxu1 %v16578_v0 }
  0x6b   : > { %8783 = vmatmul.mubr.msk.f32.gmra.mrb[6].mxu0 %vm397_vm1, %v376_v34 }
  0x6c   : > { %8789 = vmatmul.mubr.msk.f32.gmra.mrb[6].mxu1 %vm397_vm1, %v376_v34  ;;  %1061 = vmatprep.mubr.f32.mxu0 %v16578_v0 }
  0x6d   : > { %1150 = vmatprep.mubr.f32.mxu1 %v16578_v0 }
  0x6f   : > { %8792 = vmatmul.mubr.msk.f32.vlgmr.msra.gmra.mrb[8].mxu0 %vm397_vm1, %v373_v31 }
  0x70   : > { %8798 = vmatmul.mubr.msk.f32.vlgmr.msra.gmra.mrb[8].mxu1 %vm397_vm1, %v373_v31  ;;  %1067 = vmatprep.mubr.f32.mxu0 %v16578_v0 }
  0x71   : > { %1156 = vmatprep.mubr.f32.mxu1 %v16578_v0 }
  0x73   : > { %8793 = vmatmul.mubr.msk.f32.gmra.mrb[10].mxu0 %vm397_vm1, %v374_v32 }
  0x74   : > { %8799 = vmatmul.mubr.msk.f32.gmra.mrb[10].mxu1 %vm397_vm1, %v374_v32  ;;  %1073 = vmatprep.mubr.f32.mxu0 %v16578_v0 }
  0x75   : > { %1162 = vmatprep.mubr.f32.mxu1 %v16578_v0 }
  0x77   : > { %8794 = vmatmul.mubr.msk.f32.gmra.mrb[12].mxu0 %vm397_vm1, %v375_v33 }
  0x78   : > { %8800 = vmatmul.mubr.msk.f32.gmra.mrb[12].mxu1 %vm397_vm1, %v375_v33  ;;  %1079 = vmatprep.mubr.f32.mxu0 %v16578_v0 }
  0x79   : > { %1168 = vmatprep.mubr.f32.mxu1 %v16578_v0 }
  0x7b   : > { %8795 = vmatmul.mubr.msk.f32.gmra.mrb[14].mxu0 %vm397_vm1, %v376_v34 }
  0x7c   : > { %8801 = vmatmul.mubr.msk.f32.gmra.mrb[14].mxu1 %vm397_vm1, %v376_v34  ;;  %4664 = vmatprep.mubr.f32.mxu0 %v16578_v0 }
  0x7d   : > { %4753 = vmatprep.mubr.f32.mxu1 %v16578_v0 }
  0xc5   : > { %v10212_v35 = vpop.permute.xlu0 %1181 }
  0xc6   : > { %16947 = vst [vmem:[#allocation8_spill] sm:$0xff] %v10212_v35 }
 0x132   : > { %v885_v36 = vpop.f32.mrb[0].mxu0 }
 0x133   : > { %v974_v37 = vpop.f32.mrb[0].mxu1  ;;  %v10215_v38 = vadd.f32 %v10212_v35, %v885_v36  ;;  %v887_v40 = vpop.f32.mrb[1].mxu0 }
 0x134   : > { %v10218_v39 = vadd.f32 %v10212_v35, %v974_v37  ;;  %v976_v41 = vpop.f32.mrb[1].mxu1  ;;  %v10221_v42 = vadd.f32 %v10212_v35, %v887_v40 }
 0x135   : > { %16948 = vst [vmem:[#allocation9_spill] sm:$0xff] %v10215_v38  ;;  %v1231_v43 = vand.u32 2147483647, %v10215_v38  ;;  %v1234_v44 = vand.u32 2139095040, %v10215_v38  ;;  %v10248_v9 = vadd.f32 %v10212_v35, %v976_v41 }
 0x136   : > { %16949 = vst [vmem:[#allocation10_spill] sm:$0xff] %v10218_v39  ;;  %16950 = vst [vmem:[#allocation11_spill] sm:$0xff] %v10221_v42  ;;  %v16593_v45 = vand.u32 2147483647, %v10218_v39  ;;  %v1442_v46 = vand.u32 2139095040, %v10218_v39  ;;  %v10227_v47 = vpop.f32.mrb[2].mxu0 }
 0x137   : > { %v1235_v48 = vshrl.u32 %v1234_v44, 23  ;;  %v1338_v49 = vand.u32 2139095040, %v10221_v42  ;;  %v1238_v50 = vand.u32 8388607, %v1231_v43  ;;  %v10234_v55 = vpop.f32.mrb[2].mxu1  ;;  %v10236_v59 = vpop.f32.mrb[3].mxu0 }
 0x138   : > { %v1443_v51 = vshrl.u32 %v1442_v46, 23  ;;  %v1446_v52 = vand.u32 8388607, %v16593_v45  ;;  %v10238_v60 = vpop.f32.mrb[3].mxu1  ;;  %v16582_v8 = vand.u32 2147483647, %v10221_v42 }
 0x139   : > { %v8802_v53 = vadd.s32 4294967169, %v1235_v48  ;;  %v1339_v54 = vshrl.u32 %v1338_v49, 23  ;;  %v1239_v61 = vor.u32 8388608, %v1238_v50  ;;  %16951 = vst [vmem:[#allocation12_spill] sm:$0xff] %v10248_v9 }
 0x13a   : > { %v8810_v56 = vadd.s32 4294967169, %v1443_v51  ;;  %v1447_v62 = vor.u32 8388608, %v1446_v52  ;;  %v10258_v23 = vpop.f32.mrb[4].mxu0 }
 0x13b   : > { %v1241_v57 = vadd.s32 1, %v8802_v53  ;;  %v8806_v58 = vadd.s32 4294967169, %v1339_v54  ;;  %v10242_v6 = vshll.u32 %v1239_v61, 8 }
 0x13c   : > { %v1449_v63 = vadd.s32 1, %v8810_v56  ;;  %v10244_v7 = vshll.u32 %v1447_v62, 8 }
 0x13d   : > { %vm1242_vm2 = vcmp.gt.s32.totalorder %v1241_v57, 0  ;;  %v10240_v2 = vadd.s32 1, %v8806_v58 }
 0x13e   : > { %v1243_v1 = vsel %vm1242_vm2, %v1241_v57, 0  ;;  %vm1450_vm3 = vcmp.gt.s32.totalorder %v1449_v63, 0 }
 0x13f   : > { %v1244_v3 = vshrl.u32 %v1243_v1, 5  ;;  %v1245_v4 = vand.u32 31, %v1243_v1  ;;  %v1451_v5 = vsel %vm1450_vm3, %v1449_v63, 0  ;;  %vm1346_vm4 = vcmp.gt.s32.totalorder %v10240_v2, 0 }
 0x140   : > { %v10251_v13 = vshrl.u32 %v1451_v5, 5  ;;  %v1453_v14 = vand.u32 31, %v1451_v5 }
 0x141   : > { %v1246_v10 = vsub.s32 32, %v1245_v4  ;;  %v1248_v12 = vshll.u32 %v16595_v11, %v1245_v4  ;;  %v1251_v16 = vshll.u32 %v16591_v15, %v1245_v4  ;;  %v1254_v18 = vshll.u32 %v16585_v17, %v1245_v4 }
 0x142   : > { %v1257_v20 = vshll.u32 %v16583_v19, %v1245_v4  ;;  %v1260_v22 = vshll.u32 %v16589_v21, %v1245_v4  ;;  %vm1263_vm5 = vcmp.lt.s32.totalorder %v1244_v3, 1  ;;  %vm1264_vm6 = vcmp.lt.s32.totalorder %v1244_v3, 2 }
 0x143   : > { %v1249_v24 = vshrl.u32 %v16591_v15, %v1246_v10  ;;  %v1252_v25 = vshrl.u32 %v16585_v17, %v1246_v10  ;;  %v1255_v26 = vshrl.u32 %v16583_v19, %v1246_v10  ;;  %v1247_v27 = vshrl.u32 %v16595_v11, %v1246_v10 }
 0x144   : > { %v1258_v28 = vshrl.u32 %v16589_v21, %v1246_v10  ;;  %v1261_v30 = vshrl.u32 %v16587_v29, %v1246_v10  ;;  %v1454_v34 = vsub.s32 32, %v1453_v14  ;;  %vm1265_vm7 = vcmp.lt.s32.totalorder %v1244_v3, 3 }
 0x145   : > { %v1250_v31 = vor.u32 %v1249_v24, %v1248_v12  ;;  %v1253_v32 = vor.u32 %v1252_v25, %v1251_v16  ;;  %v1256_v33 = vor.u32 %v1255_v26, %v1254_v18  ;;  %vm1266_vm8 = vcmp.lt.s32.totalorder %v1244_v3, 4 }
 0x146   : > { %v1259_v36 = vor.u32 %v1258_v28, %v1257_v20  ;;  %v1262_v37 = vor.u32 %v1261_v30, %v1260_v22  ;;  %v1456_v51 = vshll.u32 %v16595_v11, %v1453_v14  ;;  %v1457_v54 = vshrl.u32 %v16591_v15, %v1454_v34 }
 0x147   : > { %v1267_v40 = vsel %vm1263_vm5, %v1247_v27, %v1250_v31  ;;  %v1268_v41 = vsel %vm1266_vm8, %v1256_v33, 2102212464  ;;  %v1271_v44 = vsel %vm1263_vm5, %v1250_v31, %v1253_v32  ;;  %v1275_v46 = vsel %vm1263_vm5, %v1253_v32, %v1256_v33 }
 0x148   : > { %v1269_v48 = vsel %vm1265_vm7, %v1253_v32, %v1268_v41  ;;  %v1272_v49 = vsel %vm1266_vm8, %v1259_v36, 920167782  ;;  %v1276_v50 = vsel %vm1266_vm8, %v1262_v37, 1326507024  ;;  %v1459_v56 = vshll.u32 %v16591_v15, %v1453_v14 }
 0x149   : > { %v1273_v52 = vsel %vm1265_vm7, %v1256_v33, %v1272_v49  ;;  %v1277_v53 = vsel %vm1265_vm7, %v1259_v36, %v1276_v50  ;;  %v1270_v57 = vsel %vm1264_vm6, %v1267_v40, %v1269_v48  ;;  %v1460_v62 = vshrl.u32 %v16585_v17, %v1454_v34 }
 0x14a   : > { %v1274_v58 = vsel %vm1264_vm6, %v1271_v44, %v1273_v52  ;;  %v1278_v61 = vsel %vm1264_vm6, %v1275_v46, %v1277_v53  ;;  %v1458_v10 = vor.u32 %v1457_v54, %v1456_v51  ;;  %v1462_v16 = vshll.u32 %v16585_v17, %v1453_v14 }
 0x14b   : > { %v10277_v63 = vmul.u32.u64.low %v10242_v6, %v1278_v61  ;;  %v10278_v1 = vmul.u32.u64.high %v10242_v6, %v1278_v61, %v10277_v63  ;;  %v10281_v4 = vmul.u32.u64.low %v10242_v6, %v1274_v58  ;;  %v10282_v5 = vmul.u32.u64.high %v10242_v6, %v1274_v58, %v10281_v4  ;;  %v10320_v61 = vpop.f32.mrb[4].mxu1 }
 0x14c   : > { %v1461_v12 = vor.u32 %v1460_v62, %v1459_v56  ;;  %v1463_v18 = vshrl.u32 %v16583_v19, %v1454_v34  ;;  %v1465_v3 = vshll.u32 %v16583_v19, %v1453_v14  ;;  %v1466_v20 = vshrl.u32 %v16589_v21, %v1454_v34 }
 0x14d   : > { %v1469_v22 = vshrl.u32 %v16587_v29, %v1454_v34  ;;  %v1347_v24 = vsel %vm1346_vm4, %v10240_v2, 0  ;;  %v1286_v25 = vmul.u32 %v10242_v6, %v1270_v57  ;;  %v1455_v26 = vshrl.u32 %v16595_v11, %v1454_v34 }
 0x14e   : > { %v1464_v27 = vor.u32 %v1463_v18, %v1462_v16  ;;  %v1468_v28 = vshll.u32 %v16589_v21, %v1453_v14  ;;  %vm1288_vm9 = vc.u32 %v10278_v1, %v10281_v4  ;;  %v1289_v30 = vadd.s32 1, %v10282_v5 }
 0x14f   : > { %v1467_v31 = vor.u32 %v1466_v20, %v1465_v3  ;;  %vm1471_vm10 = vcmp.lt.s32.totalorder %v10251_v13, 1  ;;  %vm1473_vm11 = vcmp.lt.s32.totalorder %v10251_v13, 3  ;;  %vm1474_vm12 = vcmp.lt.s32.totalorder %v10251_v13, 4 }
 0x150   : > { %v1470_v32 = vor.u32 %v1469_v22, %v1468_v28  ;;  %v1479_v2 = vsel %vm1471_vm10, %v1458_v10, %v1461_v12  ;;  %v1290_v6 = vsel %vm1288_vm9, %v1289_v30, %v10282_v5  ;;  %v1476_v33 = vsel %vm1474_vm12, %v1464_v27, 2102212464 }
 0x151   : > { %v1480_v34 = vsel %vm1474_vm12, %v1467_v31, 920167782  ;;  %v1483_v36 = vsel %vm1471_vm10, %v1461_v12, %v1464_v27  ;;  %v1291_v14 = vadd.s32 %v1290_v6, %v1286_v25  ;;  %vm1472_vm13 = vcmp.lt.s32.totalorder %v10251_v13, 2 }
 0x152   : > { %v1481_v37 = vsel %vm1473_vm11, %v1464_v27, %v1480_v34  ;;  %v1484_v40 = vsel %vm1474_vm12, %v1470_v32, 1326507024  ;;  %v1475_v41 = vsel %vm1471_vm10, %v1455_v26, %v1458_v10  ;;  %v1477_v44 = vsel %vm1473_vm11, %v1461_v12, %v1476_v33 }
 0x153   : > { %v1482_v46 = vsel %vm1472_vm13, %v1479_v2, %v1481_v37  ;;  %v1485_v48 = vsel %vm1473_vm11, %v1467_v31, %v1484_v40  ;;  %v1292_v49 = vadd.s32 536870912, %v1291_v14  ;;  %v1349_v56 = vand.u32 31, %v1347_v24 }
 0x154   : > { %v1486_v50 = vsel %vm1472_vm13, %v1483_v36, %v1485_v48  ;;  %v10309_v51 = vmul.u32.u64.low %v10244_v7, %v1482_v46  ;;  %v10310_v52 = vmul.u32.u64.high %v10244_v7, %v1482_v46, %v10309_v51  ;;  %v1546_v57 = vand.u32 2139095040, %v10248_v9 }
 0x155   : > { %v10314_v53 = vmul.u32.u64.low %v10244_v7, %v1486_v50  ;;  %v10315_v54 = vmul.u32.u64.high %v10244_v7, %v1486_v50, %v10314_v53  ;;  %v10318_v58 = vshrl.u32 %v1292_v49, 30  ;;  %v1478_v62 = vsel %vm1472_vm13, %v1475_v41, %v1477_v44 }
 0x156   : > { %v1350_v63 = vsub.s32 32, %v1349_v56  ;;  %v1497_v10 = vadd.s32 1, %v10310_v52  ;;  %v1342_v12 = vand.u32 8388607, %v16582_v8  ;;  %v1547_v16 = vshrl.u32 %v1546_v57, 23 }
 0x157   : > { %v1294_v5 = vshll.u32 %v10318_v58, 30  ;;  %vm1496_vm14 = vc.u32 %v10315_v54, %v10309_v51  ;;  %v1494_v18 = vmul.u32 %v10244_v7, %v1478_v62  ;;  %v1348_v3 = vshrl.u32 %v1347_v24, 5 }
 0x158   : > { %v1353_v20 = vshrl.u32 %v16591_v15, %v1350_v63  ;;  %v1356_v13 = vshrl.u32 %v16585_v17, %v1350_v63  ;;  %v1498_v22 = vsel %vm1496_vm14, %v1497_v10, %v10310_v52  ;;  %v1355_v25 = vshll.u32 %v16591_v15, %v1349_v56 }
 0x159   : > { %v1358_v26 = vshll.u32 %v16585_v17, %v1349_v56  ;;  %v1359_v27 = vshrl.u32 %v16583_v19, %v1350_v63  ;;  %v10337_v28 = vsub.s32 %v1291_v14, %v1294_v5  ;;  %v1352_v30 = vshll.u32 %v16595_v11, %v1349_v56 }
 0x15a   : > { %v1361_v31 = vshll.u32 %v16583_v19, %v1349_v56  ;;  %v1362_v7 = vshrl.u32 %v16589_v21, %v1350_v63  ;;  %v1357_v24 = vor.u32 %v1356_v13, %v1355_v25  ;;  %v1364_v2 = vshll.u32 %v16589_v21, %v1349_v56 }
 0x15b   : > { %v1360_v32 = vor.u32 %v1359_v27, %v1358_v26  ;;  %v1365_v6 = vshrl.u32 %v16587_v29, %v1350_v63  ;;  %v1499_v33 = vadd.s32 %v1498_v22, %v1494_v18  ;;  %v1354_v34 = vor.u32 %v1353_v20, %v1352_v30 }
 0x15c   : > { %v1363_v36 = vor.u32 %v1362_v7, %v1361_v31  ;;  %vm1370_vm15 = vcmp.lt.s32.totalorder %v1348_v3, 4  ;;  %v1297_v14 = vsub.s32 0, %v10337_v28  ;;  %vm1367_vm0 = vcmp.lt.s32.totalorder %v1348_v3, 1 }
 0x15d   : > { %v1366_v37 = vor.u32 %v1365_v6, %v1364_v2  ;;  %v8814_v41 = vadd.s32 4294967169, %v1547_v16  ;;  %v1343_v44 = vor.u32 8388608, %v1342_v12  ;;  %vm1369_vm1 = vcmp.lt.s32.totalorder %v1348_v3, 3 }
 0x15e   : > { %v1376_v40 = vsel %vm1370_vm15, %v1363_v36, 920167782  ;;  %v1379_v46 = vsel %vm1367_vm0, %v1357_v24, %v1360_v32  ;;  %v1500_v48 = vadd.s32 536870912, %v1499_v33  ;;  %v1375_v49 = vsel %vm1367_vm0, %v1354_v34, %v1357_v24 }
 0x15f   : > { %v1377_v50 = vsel %vm1369_vm1, %v1360_v32, %v1376_v40  ;;  %v1380_v52 = vsel %vm1370_vm15, %v1366_v37, 1326507024  ;;  %v1351_v53 = vshrl.u32 %v16595_v11, %v1350_v63  ;;  %vm1368_vm2 = vcmp.lt.s32.totalorder %v1348_v3, 2 }
 0x160   : > { %v1381_v56 = vsel %vm1369_vm1, %v1363_v36, %v1380_v52  ;;  %v8803_v57 = vmin.u32 %v1297_v14, %v10337_v28  ;;  %v1372_v62 = vsel %vm1370_vm15, %v1360_v32, 2102212464  ;;  %v1553_v10 = vadd.s32 1, %v8814_v41  ;;  %v10368_v32 = vpop.f32.mrb[5].mxu0 }
 0x161   : > { %v1382_v5 = vsel %vm1368_vm2, %v1379_v46, %v1381_v56  ;;  %v1378_v12 = vsel %vm1368_vm2, %v1375_v49, %v1377_v50  ;;  %v1383_v16 = vshll.u32 %v1343_v44, 8  ;;  %v10356_v18 = vshrl.u32 %v1500_v48, 30 }
 0x162   : > { %v1371_v20 = vsel %vm1367_vm0, %v1351_v53, %v1354_v34  ;;  %vm1554_vm3 = vcmp.gt.s32.totalorder %v1553_v10, 0  ;;  %v1373_v63 = vsel %vm1369_vm1, %v1357_v24, %v1372_v62  ;;  %v1299_v26 = vclz %v8803_v57 }
 0x163   : > { %v10360_v13 = vmul.u32.u64.low %v1383_v16, %v1382_v5  ;;  %v10361_v22 = vmul.u32.u64.high %v1383_v16, %v1382_v5, %v10360_v13  ;;  %v1555_v25 = vsel %vm1554_vm3, %v1553_v10, 0  ;;  %v16581_v31 = vand.u32 2147483647, %v10248_v9 }
 0x164   : > { %v10363_v27 = vmul.u32.u64.low %v1383_v16, %v1378_v12  ;;  %v10364_v30 = vmul.u32.u64.high %v1383_v16, %v1378_v12, %v10363_v27  ;;  %v1557_v7 = vand.u32 31, %v1555_v25  ;;  %v1502_v2 = vshll.u32 %v10356_v18, 30 }
 0x165   : > { %v1374_v6 = vsel %vm1368_vm2, %v1371_v20, %v1373_v63  ;;  %v8804_v34 = vadd.s32 4294967294, %v1299_v26  ;;  %v1550_v37 = vand.u32 8388607, %v16581_v31  ;;  %v1556_v10 = vshrl.u32 %v1555_v25, 5 }
 0x166   : > { %vm1392_vm4 = vc.u32 %v10361_v22, %v10363_v27  ;;  %v1558_v24 = vsub.s32 32, %v1557_v7  ;;  %v1393_v36 = vadd.s32 1, %v10364_v30  ;;  %v1390_v14 = vmul.u32 %v1383_v16, %v1374_v6 }
 0x167   : > { %v10377_v40 = vsub.s32 %v1499_v33, %v1502_v2  ;;  %vm8805_vm5 = vcmp.lt.s32.totalorder %v8804_v34, 0  ;;  %v1551_v48 = vor.u32 8388608, %v1550_v37  ;;  %v1560_v50 = vshll.u32 %v16595_v11, %v1557_v7 }
 0x168   : > { %v1394_v41 = vsel %vm1392_vm4, %v1393_v36, %v10364_v30  ;;  %v1561_v46 = vshrl.u32 %v16591_v15, %v1558_v24  ;;  %v1564_v3 = vshrl.u32 %v16585_v17, %v1558_v24  ;;  %v1563_v52 = vshll.u32 %v16591_v15, %v1557_v7  ;;  %v10393_v30 = vpop.permute.xlu0 %1186 }
 0x169   : > { %v1395_v44 = vadd.s32 %v1394_v41, %v1390_v14  ;;  %v1567_v53 = vshrl.u32 %v16583_v19, %v1558_v24  ;;  %v1505_v56 = vsub.s32 0, %v10377_v40  ;;  %v1566_v33 = vshll.u32 %v16585_v17, %v1557_v7 }
 0x16a   : > { %v1569_v57 = vshll.u32 %v16583_v19, %v1557_v7  ;;  %v1570_v62 = vshrl.u32 %v16589_v21, %v1558_v24  ;;  %v1562_v12 = vor.u32 %v1561_v46, %v1560_v50  ;;  %v1565_v16 = vor.u32 %v1564_v3, %v1563_v52 }
 0x16b   : > { %v1396_v49 = vadd.s32 536870912, %v1395_v44  ;;  %v1568_v20 = vor.u32 %v1567_v53, %v1566_v33  ;;  %v1572_v13 = vshll.u32 %v16589_v21, %v1557_v7  ;;  %v1573_v26 = vshrl.u32 %v16587_v29, %v1558_v24 }
 0x16c   : > { %v1571_v63 = vor.u32 %v1570_v62, %v1569_v57  ;;  %v1302_v6 = vsel %vm8805_vm5, 0, %v8804_v34  ;;  %v1591_v37 = vshll.u32 %v1551_v48, 8  ;;  %v10399_v14 = vadd.f32 %v10393_v30, %v10227_v47 }
 0x16d   : > { %v10389_v5 = vshrl.u32 %v1396_v49, 30  ;;  %v1574_v36 = vor.u32 %v1573_v26, %v1572_v13  ;;  %v8811_v25 = vmin.u32 %v1505_v56, %v10377_v40  ;;  %vm1575_vm6 = vcmp.lt.s32.totalorder %v1556_v10, 1 }
 0x16e   : > { %16953 = vst [vmem:[#allocation14_spill] sm:$0xff] %v10399_v14  ;;  %vm1578_vm7 = vcmp.lt.s32.totalorder %v1556_v10, 4  ;;  %vm1577_vm8 = vcmp.lt.s32.totalorder %v1556_v10, 3  ;;  %v1583_v46 = vsel %vm1575_vm6, %v1562_v12, %v1565_v16  ;;  %v1559_v34 = vshrl.u32 %v16595_v11, %v1558_v24 }
 0x16f   : > { %16952 = vst [vmem:[#allocation13_spill] sm:$0xff] %v10389_v5  ;;  %v1398_v2 = vshll.u32 %v10389_v5, 30  ;;  %v1580_v7 = vsel %vm1578_vm7, %v1568_v20, 2102212464  ;;  %v1584_v3 = vsel %vm1578_vm7, %v1571_v63, 920167782  ;;  %v1587_v52 = vsel %vm1575_vm6, %v1565_v16, %v1568_v20 }
 0x170   : > { %vm1576_vm9 = vcmp.lt.s32.totalorder %v1556_v10, 2  ;;  %v1585_v48 = vsel %vm1577_vm8, %v1568_v20, %v1584_v3  ;;  %v1588_v47 = vsel %vm1578_vm7, %v1574_v36, 1326507024  ;;  %v2066_v53 = vand.u32 2139095040, %v10399_v14 }
 0x171   : > { %v10402_v41 = vsub.s32 %v1395_v44, %v1398_v2  ;;  %v1586_v50 = vsel %vm1576_vm9, %v1583_v46, %v1585_v48  ;;  %v1307_v56 = vsub.s32 4294967266, %v1302_v6  ;;  %v1579_v44 = vsel %vm1575_vm6, %v1559_v34, %v1562_v12 }
 0x172   : > { %v1581_v33 = vsel %vm1577_vm8, %v1565_v16, %v1580_v7  ;;  %v1589_v57 = vsel %vm1577_vm8, %v1571_v63, %v1588_v47  ;;  %v10408_v26 = vmul.u32.u64.low %v1591_v37, %v1586_v50  ;;  %v10409_v2 = vmul.u32.u64.high %v1591_v37, %v1586_v50, %v10408_v26  ;;  %v10421_v50 = vpop.f32.mrb[5].mxu1 }
 0x173   : > { %v1401_v49 = vsub.s32 0, %v10402_v41  ;;  %v1590_v13 = vsel %vm1576_vm9, %v1587_v52, %v1589_v57  ;;  %v1507_v0 = vclz %v8811_v25  ;;  %v1582_v46 = vsel %vm1576_vm9, %v1579_v44, %v1581_v33  ;;  %16954 = vst [vmem:[#allocation15_spill] sm:$0xff] %v10421_v50 }
 0x174   : > { %v10412_v24 = vmul.u32.u64.low %v1591_v37, %v1590_v13  ;;  %v10413_v10 = vmul.u32.u64.high %v1591_v37, %v1590_v13, %v10412_v24  ;;  %v2067_v20 = vshrl.u32 %v2066_v53, 23  ;;  %v1303_v36 = vsub.s32 32, %v1302_v6 }
 0x175   : > { %v8807_v62 = vmin.u32 %v1401_v49, %v10402_v41  ;;  %v1308_v3 = vadd.s32 127, %v1307_v56  ;;  %v1601_v12 = vadd.s32 1, %v10409_v2  ;;  %v1287_v63 = vadd.s32 %v10281_v4, %v10278_v1 }
 0x176   : > { %v8834_v16 = vadd.s32 4294967169, %v2067_v20  ;;  %v8812_v7 = vadd.s32 4294967294, %v1507_v0  ;;  %v1598_v49 = vmul.u32 %v1591_v37, %v1582_v46  ;;  %vm1600_vm10 = vc.u32 %v10413_v10, %v10408_v26 }
 0x177   : > { %v1403_v48 = vclz %v8807_v62  ;;  %v1602_v25 = vsel %vm1600_vm10, %v1601_v12, %v10409_v2  ;;  %v1305_v52 = vshrl.u32 %v1287_v63, %v1303_v36  ;;  %v1309_v47 = vshll.u32 %v1308_v3, 23 }
 0x178   : > { %v2073_v34 = vadd.s32 1, %v8834_v16  ;;  %v1317_v53 = vsub.s32 4, %v10318_v58  ;;  %v1603_v56 = vadd.s32 %v1602_v25, %v1598_v49  ;;  %v1304_v44 = vshll.u32 %v10337_v28, %v1302_v6 }
 0x179   : > { %v8808_v33 = vadd.s32 4294967294, %v1403_v48  ;;  %v16580_v1 = vand.u32 2147483647, %v10399_v14  ;;  %vm8813_vm12 = vcmp.lt.s32.totalorder %v8812_v7, 0  ;;  %v10428_v37 = vadd.f32 %v10393_v30, %v10234_v55 }
 0x17a   : > { %vm2074_vm11 = vcmp.gt.s32.totalorder %v2073_v34, 0  ;;  %v1604_v0 = vadd.s32 536870912, %v1603_v56  ;;  %vm1233_vm13 = vcmp.lt.s32.totalorder %v10215_v38, 0  ;;  %v1306_v62 = vor.u32 %v1305_v52, %v1304_v44 }
 0x17b   : > { %v2075_v4 = vsel %vm2074_vm11, %v2073_v34, 0  ;;  %16955 = vst [vmem:[#allocation16_spill] sm:$0xff] %v10428_v37  ;;  %v1310_v13 = vor.u32 4788187, %v1309_v47  ;;  %v10434_v28 = vsel %vm1233_vm13, %v1317_v53, %v10318_v58  ;;  %v1525_v6 = vsub.s32 4, %v10356_v18 }
 0x17c   : > { %v2077_v57 = vand.u32 31, %v2075_v4  ;;  %v10437_v2 = vsel %vm8813_vm12, 0, %v8812_v7  ;;  %vm8809_vm14 = vcmp.lt.s32.totalorder %v8808_v33, 0  ;;  %v2070_v24 = vand.u32 8388607, %v16580_v1 }
 0x17d   : > { %v10441_v46 = vshrl.u32 %v1604_v0, 30  ;;  %v2274_v3 = vand.u32 2139095040, %v10428_v37  ;;  %v2076_v63 = vshrl.u32 %v2075_v4, 5  ;;  %v1311_v44 = vand.u32 2147483647, %v1310_v13 }
 0x17e   : > { %v2078_v55 = vsub.s32 32, %v2077_v57  ;;  %v2080_v20 = vshll.u32 %v16595_v11, %v2077_v57  ;;  %v2083_v36 = vshll.u32 %v16591_v15, %v2077_v57  ;;  %v2086_v12 = vshll.u32 %v16585_v17, %v2077_v57 }
 0x17f   : > { %16956 = vst [vmem:[#allocation17_spill] sm:$0xff] %v10441_v46  ;;  %v2089_v7 = vshll.u32 %v16583_v19, %v2077_v57  ;;  %v2092_v25 = vshll.u32 %v16589_v21, %v2077_v57  ;;  %v1313_v0 = vcvt.s32.f32 %v1306_v62  ;;  %v1511_v1 = vsub.s32 32, %v10437_v2 }
 0x180   : > { %v2081_v58 = vshrl.u32 %v16591_v15, %v2078_v55  ;;  %v2084_v48 = vshrl.u32 %v16585_v17, %v2078_v55  ;;  %v2087_v16 = vshrl.u32 %v16583_v19, %v2078_v55  ;;  %v2090_v49 = vshrl.u32 %v16589_v21, %v2078_v55 }
 0x181   : > { %v2093_v53 = vshrl.u32 %v16587_v29, %v2078_v55  ;;  %vm1441_vm15 = vcmp.lt.s32.totalorder %v10218_v39, 0  ;;  %v1515_v4 = vsub.s32 4294967266, %v10437_v2  ;;  %v1606_v8 = vshll.u32 %v10441_v46, 30 }
 0x182   : > { %v2082_v34 = vor.u32 %v2081_v58, %v2080_v20  ;;  %v2085_v52 = vor.u32 %v2084_v48, %v2083_v36  ;;  %v2088_v47 = vor.u32 %v2087_v16, %v2086_v12  ;;  %v2091_v31 = vor.u32 %v2090_v49, %v2089_v7 }
 0x183   : > { %v2071_v19 = vor.u32 8388608, %v2070_v24  ;;  %v2094_v17 = vor.u32 %v2093_v53, %v2092_v25  ;;  %v10459_v57 = vsel %vm8809_vm14, 0, %v8808_v33  ;;  %vm2095_vm0 = vcmp.lt.s32.totalorder %v2076_v63, 1 }
 0x184   : > { %vm2098_vm1 = vcmp.lt.s32.totalorder %v2076_v63, 4  ;;  %v2275_v20 = vshrl.u32 %v2274_v3, 23  ;;  %vm2097_vm2 = vcmp.lt.s32.totalorder %v2076_v63, 3  ;;  %v2103_v62 = vsel %vm2095_vm0, %v2082_v34, %v2085_v52 }
 0x185   : > { %v2100_v13 = vsel %vm2098_vm1, %v2088_v47, 2102212464  ;;  %v2104_v36 = vsel %vm2098_vm1, %v2091_v31, 920167782  ;;  %v2079_v58 = vshrl.u32 %v16595_v11, %v2078_v55  ;;  %vm2096_vm3 = vcmp.lt.s32.totalorder %v2076_v63, 2 }
 0x186   : > { %v2105_v48 = vsel %vm2097_vm2, %v2088_v47, %v2104_v36  ;;  %v2107_v12 = vsel %vm2095_vm0, %v2085_v52, %v2088_v47  ;;  %v10462_v16 = vsub.s32 %v1603_v56, %v1606_v8  ;;  %v2108_v7 = vsel %vm2098_vm1, %v2094_v17, 1326507024 }
 0x187   : > { %v2106_v24 = vsel %vm2096_vm3, %v2103_v62, %v2105_v48  ;;  %v2111_v49 = vshll.u32 %v2071_v19, 8  ;;  %v2099_v33 = vsel %vm2095_vm0, %v2079_v58, %v2082_v34  ;;  %v2101_v25 = vsel %vm2097_vm2, %v2085_v52, %v2100_v13 }
 0x188   : > { %v2109_v53 = vsel %vm2097_vm2, %v2091_v31, %v2108_v7  ;;  %v8842_v29 = vadd.s32 4294967169, %v2275_v20  ;;  %v1314_v3 = vmul.f32 %v1313_v0, %v1311_v44  ;;  %vm10472_vm4 = vcmp.le.f32.partialorder %v1231_v43, 0.7853982 }
 0x189   : > { %v2110_v21 = vsel %vm2096_vm3, %v2107_v12, %v2109_v53  ;;  %v10466_v15 = vmul.u32.u64.low %v2111_v49, %v2106_v24  ;;  %v10467_v45 = vmul.u32.u64.high %v2111_v49, %v2106_v24, %v10466_v15  ;;  %v1516_v56 = vadd.s32 127, %v1515_v4  ;;  %v10505_v4 = vpop.f32.mrb[6].mxu0 }
 0x18a   : > { %v10476_v17 = vmul.u32.u64.low %v2111_v49, %v2110_v21  ;;  %v10477_v19 = vmul.u32.u64.high %v2111_v49, %v2110_v21, %v10476_v17  ;;  %v1495_v31 = vadd.s32 %v10309_v51, %v10315_v54  ;;  %v1411_v55 = vsub.s32 4294967266, %v10459_v57  ;;  %16960 = vst [vmem:[#allocation19_spill] sm:$0xff] %v10505_v4 }
 0x18b   : > { %v2102_v34 = vsel %vm2096_vm3, %v2099_v33, %v2101_v25  ;;  %v2281_v52 = vadd.s32 1, %v8842_v29  ;;  %v1320_v47 = vsel %vm10472_vm4, 0, %v10434_v28  ;;  %v1512_v43 = vshll.u32 %v10377_v40, %v10437_v2 }
 0x18c   : > { %v10493_v21 = vsel %vm1441_vm15, %v1525_v6, %v10356_v18  ;;  %v1609_v51 = vsub.s32 0, %v10462_v16  ;;  %v1315_v54 = vxor.u32 2147483648, %v1314_v3  ;;  %v1513_v63 = vshrl.u32 %v1495_v31, %v1511_v1 }
 0x18d   : > { %v2121_v29 = vadd.s32 1, %v10467_v45  ;;  %vm2282_vm5 = vcmp.gt.s32.totalorder %v2281_v52, 0  ;;  %v1517_v44 = vshll.u32 %v1516_v56, 23  ;;  %v2118_v0 = vmul.u32 %v2111_v49, %v2102_v34 }
 0x18e   : > { %vm2120_vm6 = vc.u32 %v10477_v19, %v10466_v15  ;;  %v10501_v40 = vadd.f32 %v10393_v30, %v10236_v59  ;;  %v1412_v28 = vadd.s32 127, %v1411_v55  ;;  %v16594_v6 = vand.u32 2147483647, %v10428_v37 }
 0x18f   : > { %v2122_v18 = vsel %vm2120_vm6, %v2121_v29, %v10467_v45  ;;  %v2283_v2 = vsel %vm2282_vm5, %v2281_v52, 0  ;;  %v10507_v1 = vadd.s32 3, %v1320_v47  ;;  %v16962_v20 = vand.u32 2147483647, %v10218_v39 }
 0x190   : > { %16959 = vst [vmem:[#allocation18_spill] sm:$0xff] %v10501_v40  ;;  %v8815_v62 = vmin.u32 %v1609_v51, %v10462_v16  ;;  %v2123_v59 = vadd.s32 %v2122_v18, %v2118_v0  ;;  %v1514_v36 = vor.u32 %v1513_v63, %v1512_v43  ;;  %v1391_v58 = vadd.s32 %v10363_v27, %v10361_v22 }
 0x191   : > { %16961 = vst [vmem:[#allocation20_spill] sm:$0xff] %v10507_v1  ;;  %vm10511_vm7 = vcmp.le.f32.partialorder %v16962_v20, 0.7853982  ;;  %v2285_v48 = vand.u32 31, %v2283_v2  ;;  %v10523_v12 = vsel %vm1233_vm13, %v1315_v54, %v1314_v3  ;;  %v1518_v24 = vor.u32 4788187, %v1517_v44 }
 0x192   : > { %v2124_v7 = vadd.s32 536870912, %v2123_v59  ;;  %v2170_v49 = vand.u32 2139095040, %v10501_v40  ;;  %v1407_v33 = vsub.s32 32, %v10459_v57  ;;  %v1413_v25 = vshll.u32 %v1412_v28, 23 }
 0x193   : > { %v2278_v53 = vand.u32 8388607, %v16594_v6  ;;  %v2286_v56 = vsub.s32 32, %v2285_v48  ;;  %v1611_v17 = vclz %v8815_v62  ;;  %v2288_v31 = vshll.u32 %v16595_v11, %v2285_v48 }
 0x194   : > { %v16965_v22 = vmov 2475754826   ;;  %v16966_v55 = vmov 2131351028   ;;  %v10532_v3 = vshrl.u32 %v2124_v7, 30  ;;  %v2284_v54 = vshrl.u32 %v2283_v2, 5 }
 0x195   : > { %v2291_v27 = vshll.u32 %v16965_v22, %v2285_v48  ;;  %v2294_v34 = vshll.u32 %v16966_v55, %v2285_v48  ;;  %v2289_v52 = vshrl.u32 %v16965_v22, %v2286_v56  ;;  %v2292_v47 = vshrl.u32 %v16966_v55, %v2286_v56 }
 0x196   : > { %v16967_v43 = vmov 2102212464   ;;  %v16968_v29 = vmov 920167782   ;;  %v2171_v0 = vshrl.u32 %v2170_v49, 23  ;;  %v1521_v45 = vcvt.s32.f32 %v1514_v36 }
 0x197   : > { %v2295_v51 = vshrl.u32 %v16967_v43, %v2286_v56  ;;  %v2297_v63 = vshll.u32 %v16967_v43, %v2285_v48  ;;  %v2298_v44 = vshrl.u32 %v16968_v29, %v2286_v56  ;;  %v2290_v28 = vor.u32 %v2289_v52, %v2288_v31 }
 0x198   : > { %v2293_v18 = vor.u32 %v2292_v47, %v2291_v27  ;;  %v16969_v62 = vmov 1326507024   ;;  %v2279_v7 = vor.u32 8388608, %v2278_v53  ;;  %v2300_v1 = vshll.u32 %v16968_v29, %v2285_v48 }
 0x199   : > { %v2296_v20 = vor.u32 %v2295_v51, %v2294_v34  ;;  %v2301_v6 = vshrl.u32 %v16969_v62, %v2286_v56  ;;  %v2299_v11 = vor.u32 %v2298_v44, %v2297_v63  ;;  %v1519_v46 = vand.u32 2147483647, %v1518_v24 }
 0x19a   : > { %v1408_v5 = vshll.u32 %v10402_v41, %v10459_v57  ;;  %v1409_v2 = vshrl.u32 %v1391_v58, %v1407_v33  ;;  %v2126_v35 = vshll.u32 %v10532_v3, 30  ;;  %v1414_v4 = vor.u32 4788187, %v1413_v25  ;;  %v10551_v25 = vpop.f32.mrb[6].mxu1 }
 0x19b   : > { %v2302_v50 = vor.u32 %v2301_v6, %v2300_v1  ;;  %vm2303_vm8 = vcmp.lt.s32.totalorder %v2284_v54, 1  ;;  %vm2306_vm9 = vcmp.lt.s32.totalorder %v2284_v54, 4  ;;  %v8816_v49 = vadd.s32 4294967294, %v1611_v17 }
 0x19c   : > { %v2308_v31 = vsel %vm2306_vm9, %v2296_v20, 2102212464  ;;  %v2311_v27 = vsel %vm2303_vm8, %v2290_v28, %v2293_v18  ;;  %v8838_v36 = vadd.s32 4294967169, %v2171_v0  ;;  %v16970_v53 = vmov 683565275  }
 0x19d   : > { %v2287_v34 = vshrl.u32 %v16970_v53, %v2286_v56  ;;  %vm2305_vm10 = vcmp.lt.s32.totalorder %v2284_v54, 3  ;;  %v2312_v48 = vsel %vm2306_vm9, %v2299_v11, 920167782  ;;  %v2319_v24 = vshll.u32 %v2279_v7, 8 }
 0x19e   : > { %v10547_v52 = vsub.s32 %v2123_v59, %v2126_v35  ;;  %vm2304_vm11 = vcmp.lt.s32.totalorder %v2284_v54, 2  ;;  %v2313_v41 = vsel %vm2305_vm10, %v2296_v20, %v2312_v48  ;;  %v2315_v57 = vsel %vm2303_vm8, %v2293_v18, %v2296_v20 }
 0x19f   : > { %v2307_v58 = vsel %vm2303_vm8, %v2287_v34, %v2290_v28  ;;  %v2309_v6 = vsel %vm2305_vm10, %v2293_v18, %v2308_v31  ;;  %v2314_v1 = vsel %vm2304_vm11, %v2311_v27, %v2313_v41  ;;  %v2316_v33 = vsel %vm2306_vm9, %v2302_v50, 1326507024 }
 0x1a0   : > { %v2317_v17 = vsel %vm2305_vm10, %v2299_v11, %v2316_v33  ;;  %v10553_v47 = vmul.u32.u64.low %v2319_v24, %v2314_v1  ;;  %v10554_v56 = vmul.u32.u64.high %v2319_v24, %v2314_v1, %v10553_v47  ;;  %v2177_v51 = vadd.s32 1, %v8838_v36 }
 0x1a1   : > { %v10557_v63 = vmul.f32 %v1521_v45, %v1519_v46  ;;  %v1410_v35 = vor.u32 %v1409_v2, %v1408_v5  ;;  %vm8817_vm12 = vcmp.lt.s32.totalorder %v8816_v49, 0  ;;  %v2318_v59 = vsel %vm2304_vm11, %v2315_v57, %v2317_v17 }
 0x1a2   : > { %v2129_v44 = vsub.s32 0, %v10547_v52  ;;  %v10561_v0 = vmul.u32.u64.low %v2319_v24, %v2318_v59  ;;  %v10562_v28 = vmul.u32.u64.high %v2319_v24, %v2318_v59, %v10561_v0  ;;  %vm2178_vm13 = vcmp.gt.s32.totalorder %v2177_v51, 0 }
 0x1a3   : > { %v16971_v11 = vsel %vm10511_vm7, 0, %v10493_v21  ;;  %v1415_v18 = vand.u32 2147483647, %v1414_v4  ;;  %v2310_v46 = vsel %vm2304_vm11, %v2307_v58, %v2309_v6  ;;  %v2179_v45 = vsel %vm2178_vm13, %v2177_v51, 0 }
 0x1a4   : > { %v10568_v50 = vadd.s32 3, %v16971_v11  ;;  %v10571_v5 = vsel %vm8817_vm12, 0, %v8816_v49  ;;  %v2329_v20 = vadd.s32 1, %v10554_v56  ;;  %v16604_v7 = vand.u32 2147483647, %v10501_v40 }
 0x1a5   : > { %v2181_v2 = vand.u32 31, %v2179_v45  ;;  %v10579_v31 = vsel %vm10472_vm4, %v10215_v38, %v10523_v12  ;;  %v1523_v21 = vxor.u32 2147483648, %v10557_v63  ;;  %v1417_v27 = vcvt.s32.f32 %v1410_v35 }
 0x1a6   : > { %16972 = vst [vmem:[#allocation21_spill] sm:$0xff] %v10568_v50  ;;  %v10584_v4 = vadd.f32 %v10393_v30, %v10238_v60  ;;  %v8835_v54 = vmin.u32 %v2129_v44, %v10547_v52  ;;  %v2326_v49 = vmul.u32 %v2319_v24, %v2310_v46  ;;  %vm2328_vm14 = vc.u32 %v10562_v28, %v10553_v47 }
 0x1a7   : > { %v2182_v36 = vsub.s32 32, %v2181_v2  ;;  %v10589_v34 = vmul.f32 %v1417_v27, %v1415_v18  ;;  %v1599_v8 = vadd.s32 %v10408_v26, %v10413_v10  ;;  %v1619_v12 = vsub.s32 4294967266, %v10571_v5 }
 0x1a8   : > { %16973 = vst [vmem:[#allocation22_spill] sm:$0xff] %v10584_v4  ;;  %v2330_v48 = vsel %vm2328_vm14, %v2329_v20, %v10554_v56  ;;  %v2174_v60 = vand.u32 8388607, %v16604_v7  ;;  %v1615_v58 = vsub.s32 32, %v10571_v5  ;;  %v2184_v6 = vshll.u32 %v16970_v53, %v2181_v2 }
 0x1a9   : > { %v2331_v41 = vadd.s32 %v2330_v48, %v2326_v49  ;;  %v2185_v57 = vshrl.u32 %v16965_v22, %v2182_v36  ;;  %v2188_v24 = vshrl.u32 %v16966_v55, %v2182_v36  ;;  %v2187_v1 = vshll.u32 %v16965_v22, %v2181_v2 }
 0x1aa   : > { %v2191_v26 = vshrl.u32 %v16967_v43, %v2182_v36  ;;  %v2131_v10 = vclz %v8835_v54  ;;  %v2180_v17 = vshrl.u32 %v2179_v45, 5  ;;  %v2190_v56 = vshll.u32 %v16966_v55, %v2181_v2 }
 0x1ab   : > { %v2332_v33 = vadd.s32 536870912, %v2331_v41  ;;  %v2186_v51 = vor.u32 %v2185_v57, %v2184_v6  ;;  %v2189_v35 = vor.u32 %v2188_v24, %v2187_v1  ;;  %v2193_v59 = vshll.u32 %v16967_v43, %v2181_v2 }
 0x1ac   : > { %v2194_v44 = vshrl.u32 %v16968_v29, %v2182_v36  ;;  %v1620_v0 = vadd.s32 127, %v1619_v12  ;;  %v2175_v18 = vor.u32 8388608, %v2174_v60  ;;  %v2197_v46 = vshrl.u32 %v16969_v62, %v2182_v36 }
 0x1ad   : > { %v10606_v11 = vshrl.u32 %v2332_v33, 30  ;;  %v2192_v20 = vor.u32 %v2191_v26, %v2190_v56  ;;  %v2196_v54 = vshll.u32 %v16968_v29, %v2181_v2  ;;  %v2378_v45 = vand.u32 2139095040, %v10584_v4 }
 0x1ae   : > { %v2195_v27 = vor.u32 %v2194_v44, %v2193_v59  ;;  %v1616_v49 = vshll.u32 %v10462_v16, %v10571_v5  ;;  %v1617_v48 = vshrl.u32 %v1599_v8, %v1615_v58  ;;  %vm2199_vm0 = vcmp.lt.s32.totalorder %v2180_v17, 1 }
 0x1af   : > { %v2334_v57 = vshll.u32 %v10606_v11, 30  ;;  %v8836_v24 = vadd.s32 4294967294, %v2131_v10  ;;  %v2198_v12 = vor.u32 %v2197_v46, %v2196_v54  ;;  %vm2202_vm1 = vcmp.lt.s32.totalorder %v2180_v17, 4 }
 0x1b0   : > { %v2207_v60 = vsel %vm2199_vm0, %v2186_v51, %v2189_v35  ;;  %v1621_v6 = vshll.u32 %v1620_v0, 23  ;;  %vm2201_vm2 = vcmp.lt.s32.totalorder %v2180_v17, 3  ;;  %v2208_v1 = vsel %vm2202_vm1, %v2195_v27, 920167782 }
 0x1b1   : > { %v2215_v26 = vshll.u32 %v2175_v18, 8  ;;  %vm2200_vm3 = vcmp.lt.s32.totalorder %v2180_v17, 2  ;;  %v2204_v2 = vsel %vm2202_vm1, %v2192_v20, 2102212464  ;;  %v2209_v33 = vsel %vm2201_vm2, %v2192_v20, %v2208_v1 }
 0x1b2   : > { %v2379_v16 = vshrl.u32 %v2378_v45, 23  ;;  %vm16697_vm4 = vcmp.lt.s32.totalorder %v10221_v42, 0  ;;  %v10619_v5 = vsub.s32 %v2331_v41, %v2334_v57  ;;  %v2183_v8 = vshrl.u32 %v16970_v53, %v2182_v36 }
 0x1b3   : > { %v2210_v58 = vsel %vm2200_vm3, %v2207_v60, %v2209_v33  ;;  %v2211_v10 = vsel %vm2199_vm0, %v2189_v35, %v2192_v20  ;;  %vm8837_vm5 = vcmp.lt.s32.totalorder %v8836_v24, 0  ;;  %v2212_v56 = vsel %vm2202_vm1, %v2198_v12, 1326507024 }
 0x1b4   : > { %v10625_v59 = vmul.u32.u64.low %v2215_v26, %v2210_v58  ;;  %v10626_v44 = vmul.u32.u64.high %v2215_v26, %v2210_v58, %v10625_v59  ;;  %v1622_v0 = vor.u32 4788187, %v1621_v6  ;;  %v2203_v18 = vsel %vm2199_vm0, %v2183_v8, %v2186_v51  ;;  %v10668_v58 = vpop.permute.xlu1 %1191 }
 0x1b5   : > { %v2205_v46 = vsel %vm2201_vm2, %v2189_v35, %v2204_v2  ;;  %v2213_v41 = vsel %vm2201_vm2, %v2195_v27, %v2212_v56  ;;  %v1524_v36 = vsel %vm1441_vm15, %v1523_v21, %v10557_v63  ;;  %v1618_v20 = vor.u32 %v1617_v48, %v1616_v49  ;;  %v10647_v2 = vpop.f32.mrb[7].mxu0 }
 0x1b6   : > { %v2214_v54 = vsel %vm2200_vm3, %v2211_v10, %v2213_v41  ;;  %v8846_v45 = vadd.s32 4294967169, %v2379_v16  ;;  %v10638_v57 = vsel %vm8837_vm5, 0, %v8836_v24  ;;  %v2337_v12 = vsub.s32 0, %v10619_v5 }
 0x1b7   : > { %v10641_v60 = vmul.u32.u64.low %v2215_v26, %v2214_v54  ;;  %v10642_v51 = vmul.u32.u64.high %v2215_v26, %v2214_v54, %v10641_v60  ;;  %v1419_v35 = vxor.u32 2147483648, %v10589_v34  ;;  %v2206_v27 = vsel %vm2200_vm3, %v2203_v18, %v2205_v46 }
 0x1b8   : > { %v2225_v6 = vadd.s32 1, %v10626_v44  ;;  %v2385_v1 = vadd.s32 1, %v8846_v45  ;;  %9509 = vcosq.f32 %v10579_v31  ;;  %v10653_v63 = vsel %vm10511_vm7, %v10218_v39, %v1524_v36 }
 0x1b9   : > { %v1623_v21 = vand.u32 2147483647, %v1622_v0  ;;  %v16603_v49 = vand.u32 2147483647, %v10584_v4  ;;  %9511 = vsinq.f32 %v10579_v31  ;;  %v1625_v48 = vcvt.s32.f32 %v1618_v20 }
 0x1ba   : > { %v2139_v17 = vsub.s32 4294967266, %v10638_v57  ;;  %vm2386_vm15 = vcmp.gt.s32.totalorder %v2385_v1, 0  ;;  %v8843_v24 = vmin.u32 %v2337_v12, %v10619_v5  ;;  %v2222_v33 = vmul.u32 %v2215_v26, %v2206_v27 }
 0x1bb   : > { %vm2224_vm6 = vc.u32 %v10642_v51, %v10625_v59  ;;  %v2387_v16 = vsel %vm2386_vm15, %v2385_v1, 0  ;;  %9513 = vcosq.f32 %v10653_v63  ;;  %v10665_v13 = vsel %vm16697_vm4, %v1419_v35, %v10589_v34 }
 0x1bc   : > { %v2226_v31 = vsel %vm2224_vm6, %v2225_v6, %v10626_v44  ;;  %v2389_v8 = vand.u32 31, %v2387_v16  ;;  %v10670_v10 = vmul.f32 %v1625_v48, %v1623_v21  ;;  %v2119_v26 = vadd.s32 %v10466_v15, %v10477_v19 }
 0x1bd   : > { %v2227_v56 = vadd.s32 %v2226_v31, %v2222_v33  ;;  %v2382_v0 = vand.u32 8388607, %v16603_v49  ;;  %v2135_v18 = vsub.s32 32, %v10638_v57  ;;  %v10677_v46 = vadd.s32 127, %v2139_v17 }
 0x1be   : > { %v2390_v34 = vsub.s32 32, %v2389_v8  ;;  %v10681_v44 = vadd.f32 %v10668_v58, %v10258_v23  ;;  %v2339_v41 = vclz %v8843_v24  ;;  %v2392_v20 = vshll.u32 %v16970_v53, %v2389_v8 }
 0x1bf   : > { %v2228_v36 = vadd.s32 536870912, %v2227_v56  ;;  %v2395_v54 = vshll.u32 %v16965_v22, %v2389_v8  ;;  %v2398_v45 = vshll.u32 %v16966_v55, %v2389_v8  ;;  %v2388_v35 = vshrl.u32 %v2387_v16, 5 }
 0x1c0   : > { %16974 = vst [vmem:[#allocation23_spill] sm:$0xff] %v10681_v44  ;;  %v2393_v15 = vshrl.u32 %v16965_v22, %v2390_v34  ;;  %v2396_v19 = vshrl.u32 %v16966_v55, %v2390_v34  ;;  %v2399_v12 = vshrl.u32 %v16967_v43, %v2390_v34  ;;  %v2401_v23 = vshll.u32 %v16967_v43, %v2389_v8 }
 0x1c1   : > { %v10689_v60 = vshrl.u32 %v2228_v36, 30  ;;  %v2402_v27 = vshrl.u32 %v16968_v29, %v2390_v34  ;;  %v2137_v6 = vshrl.u32 %v2119_v26, %v2135_v18  ;;  %v2141_v24 = vshll.u32 %v10677_v46, 23 }
 0x1c2   : > { %v2394_v1 = vor.u32 %v2393_v15, %v2392_v20  ;;  %v2397_v21 = vor.u32 %v2396_v19, %v2395_v54  ;;  %v2400_v48 = vor.u32 %v2399_v12, %v2398_v45  ;;  %v10693_v17 = vpop.eup %9509  ;;  %v2383_v31 = vor.u32 8388608, %v2382_v0 }
 0x1c3   : > { %16975 = vst [vmem:[#allocation24_spill] sm:$0xff] %v10689_v60  ;;  %16976 = vst [vmem:[#allocation25_spill] sm:$0xff] %v10693_v17  ;;  %v2230_v33 = vshll.u32 %v10689_v60, 30  ;;  %v2403_v49 = vor.u32 %v2402_v27, %v2401_v23  ;;  %v10697_v7 = vpop.eup %9511  ;;  %v16978_v16 = vand.u32 2147483647, %v10221_v42  ;;  %v16979_v36 = vmov 0 }
 0x1c4   : > { %16977 = vst [vmem:[#allocation26_spill] sm:$0xff] %v10697_v7  ;;  %v8844_v26 = vadd.s32 4294967294, %v2339_v41  ;;  %v2404_v18 = vshll.u32 %v16968_v29, %v2389_v8  ;;  %v2405_v20 = vshrl.u32 %v16969_v62, %v2390_v34  ;;  %v2898_v54 = vand.u32 2139095040, %v10681_v44 }
 0x1c5   : > { %vm10701_vm7 = vcmp.le.f32.partialorder %v16978_v16, 0.7853982  ;;  %v10708_v46 = vsub.s32 %v2227_v56, %v2230_v33  ;;  %vm2407_vm8 = vcmp.lt.s32.totalorder %v2388_v35, 1  ;;  %vm2409_vm9 = vcmp.lt.s32.totalorder %v2388_v35, 3  ;;  %v10710_v0 = vpop.eup %9513 }
 0x1c6   : > { %v16980_v36 = vsel %vm10701_vm7, 4294967295, %v16979_v36  ;;  %vm2410_vm10 = vcmp.lt.s32.totalorder %v2388_v35, 4  ;;  %16982 = vst [vmem:[#allocation28_spill] sm:$0xff] %v10710_v0  ;;  %v2406_v15 = vor.u32 %v2405_v20, %v2404_v18  ;;  %v2415_v45 = vsel %vm2407_vm8, %v2394_v1, %v2397_v21 }
 0x1c7   : > { %16981 = vst [vmem:[#allocation27_spill] sm:$0xff] %v16980_v36  ;;  %v2412_v19 = vsel %vm2410_vm10, %v2400_v48, 2102212464  ;;  %v2416_v12 = vsel %vm2410_vm10, %v2403_v49, 920167782  ;;  %vm2065_vm11 = vcmp.lt.s32.totalorder %v10399_v14, 0  ;;  %v2391_v8 = vshrl.u32 %v16970_v53, %v2390_v34 }
 0x1c8   : > { %vm2408_vm12 = vcmp.lt.s32.totalorder %v2388_v35, 2  ;;  %v2417_v41 = vsel %vm2409_vm9, %v2400_v48, %v2416_v12  ;;  %v2423_v23 = vshll.u32 %v2383_v31, 8  ;;  %vm16673_vm13 = vcmp.lt.s32.totalorder %v10248_v9, 0 }
 0x1c9   : > { %vm8845_vm14 = vcmp.lt.s32.totalorder %v8844_v26, 0  ;;  %v2418_v56 = vsel %vm2408_vm12, %v2415_v45, %v2417_v41  ;;  %v2419_v27 = vsel %vm2407_vm8, %v2397_v21, %v2400_v48  ;;  %v2420_v33 = vsel %vm2410_vm10, %v2406_v15, 1326507024 }
 0x1ca   : > { %v2233_v16 = vsub.s32 0, %v10708_v46  ;;  %v2411_v18 = vsel %vm2407_vm8, %v2391_v8, %v2394_v1  ;;  %v2413_v20 = vsel %vm2409_vm9, %v2397_v21, %v2412_v19  ;;  %v2421_v34 = vsel %vm2409_vm9, %v2403_v49, %v2420_v33 }
 0x1cb   : > { %v2422_v39 = vsel %vm2408_vm12, %v2419_v27, %v2421_v34  ;;  %v10724_v12 = vmul.u32.u64.low %v2423_v23, %v2418_v56  ;;  %v10725_v31 = vmul.u32.u64.high %v2423_v23, %v2418_v56, %v10724_v12  ;;  %v2899_v0 = vshrl.u32 %v2898_v54, 23 }
 0x1cc   : > { %v16983_v45 = vand.u32 2147483647, %v10248_v9  ;;  %v16984_v48 = vmov 0  ;;  %v16987_v15 = vand.u32 2147483647, %v10399_v14  ;;  %v10740_v49 = vsel %vm8845_vm14, 0, %v8844_v26 }
 0x1cd   : > { %v10742_v21 = vmul.u32.u64.low %v2423_v23, %v2422_v39  ;;  %v10743_v19 = vmul.u32.u64.high %v2423_v23, %v2422_v39, %v10742_v21  ;;  %v10747_v54 = vadd.f32 %v10668_v58, %v10320_v61  ;;  %9515 = vsinq.f32 %v10653_v63 }
 0x1ce   : > { %vm10730_vm0 = vcmp.le.f32.partialorder %v16983_v45, 0.7853982  ;;  %vm10736_vm1 = vcmp.le.f32.partialorder %v16987_v15, 0.7853982  ;;  %v2149_v8 = vsub.s32 4, %v10532_v3  ;;  %v2414_v41 = vsel %vm2408_vm12, %v2411_v18, %v2413_v20  ;;  %v10765_v20 = vpop.f32.mrb[7].mxu1 }
 0x1cf   : > { %v16985_v48 = vsel %vm10730_vm0, 4294967295, %v16984_v48  ;;  %16990 = vst [vmem:[#allocation30_spill] sm:$0xff] %v10747_v54  ;;  %v8866_v56 = vadd.s32 4294967169, %v2899_v0  ;;  %v1423_v26 = vsel %vm10701_vm7, %v10221_v42, %v10665_v13  ;;  %v1627_v27 = vxor.u32 2147483648, %v10670_v10 }
 0x1d0   : > { %16986 = vst [vmem:[#allocation29_spill] sm:$0xff] %v16985_v48  ;;  %v2136_v39 = vshll.u32 %v10547_v52, %v10638_v57  ;;  %v2142_v33 = vor.u32 4788187, %v2141_v24  ;;  %v2347_v61 = vsub.s32 4294967266, %v10740_v49  ;;  %v8839_v63 = vmin.u32 %v2233_v16, %v10708_v46 }
 0x1d1   : > { %v2433_v34 = vadd.s32 1, %v10725_v31  ;;  %v2905_v35 = vadd.s32 1, %v8866_v56  ;;  %v2430_v0 = vmul.u32 %v2423_v23, %v2414_v41  ;;  %vm2432_vm2 = vc.u32 %v10743_v19, %v10724_v12 }
 0x1d2   : > { %v2138_v18 = vor.u32 %v2137_v6, %v2136_v39  ;;  %v3106_v13 = vand.u32 2139095040, %v10747_v54  ;;  %9517 = vcosq.f32 %v1423_v26  ;;  %v10770_v52 = vsel %vm2065_vm11, %v2149_v8, %v10532_v3 }
 0x1d3   : > { %v2434_v57 = vsel %vm2432_vm2, %v2433_v34, %v10725_v31  ;;  %vm2906_vm3 = vcmp.gt.s32.totalorder %v2905_v35, 0  ;;  %v1628_v6 = vsel %vm16673_vm13, %v1627_v27, %v10670_v10  ;;  %v2143_v24 = vand.u32 2147483647, %v2142_v33 }
 0x1d4   : > { %v2435_v23 = vadd.s32 %v2434_v57, %v2430_v0  ;;  %v16607_v16 = vand.u32 2147483647, %v10681_v44  ;;  %v2343_v45 = vsub.s32 32, %v10740_v49  ;;  %v2348_v15 = vadd.s32 127, %v2347_v61 }
 0x1d5   : > { %v2235_v21 = vclz %v8839_v63  ;;  %v2907_v41 = vsel %vm2906_vm3, %v2905_v35, 0  ;;  %9519 = vsinq.f32 %v1423_v26  ;;  %v2145_v56 = vcvt.s32.f32 %v2138_v18 }
 0x1d6   : > { %v2436_v3 = vadd.s32 536870912, %v2435_v23  ;;  %v3107_v8 = vshrl.u32 %v3106_v13, 23  ;;  %v10781_v31 = vsel %vm10730_vm0, %v10248_v9, %v1628_v6  ;;  %v2327_v27 = vadd.s32 %v10553_v47, %v10562_v28 }
 0x1d7   : > { %v2909_v39 = vand.u32 31, %v2907_v41  ;;  %v10788_v33 = vmul.f32 %v2145_v56, %v2143_v24  ;;  %v2344_v26 = vshll.u32 %v10619_v5, %v10740_v49  ;;  %v2902_v63 = vand.u32 8388607, %v16607_v16  ;;  %v10796_v34 = vpop.eup %9515 }
 0x1d8   : > { %v10792_v61 = vshrl.u32 %v2436_v3, 30  ;;  %16992 = vst [vmem:[#allocation32_spill] sm:$0xff] %v10796_v34  ;;  %v2345_v35 = vshrl.u32 %v2327_v27, %v2343_v45  ;;  %v2349_v18 = vshll.u32 %v2348_v15, 23  ;;  %v8840_v0 = vadd.s32 4294967294, %v2235_v21 }
 0x1d9   : > { %v2910_v13 = vsub.s32 32, %v2909_v39  ;;  %v2908_v57 = vshrl.u32 %v2907_v41, 5  ;;  %v2912_v47 = vshll.u32 %v16970_v53, %v2909_v39  ;;  %v2915_v28 = vshll.u32 %v16965_v22, %v2909_v39 }
 0x1da   : > { %16991 = vst [vmem:[#allocation31_spill] sm:$0xff] %v10792_v61  ;;  %v8874_v6 = vadd.s32 4294967169, %v3107_v8  ;;  %v2918_v49 = vshll.u32 %v16966_v55, %v2909_v39  ;;  %v2438_v3 = vshll.u32 %v10792_v61, 30  ;;  %v2921_v45 = vshll.u32 %v16967_v43, %v2909_v39 }
 0x1db   : > { %v2913_v24 = vshrl.u32 %v16965_v22, %v2910_v13  ;;  %v2916_v5 = vshrl.u32 %v16966_v55, %v2910_v13  ;;  %v2919_v56 = vshrl.u32 %v16967_v43, %v2910_v13  ;;  %v2922_v15 = vshrl.u32 %v16968_v29, %v2910_v13 }
 0x1dc   : > { %v2924_v21 = vshll.u32 %v16968_v29, %v2909_v39  ;;  %v10808_v41 = vpop.eup %9517  ;;  %v2925_v10 = vshrl.u32 %v16969_v62, %v2910_v13  ;;  %v2147_v34 = vxor.u32 2147483648, %v10788_v33  ;;  %v2346_v50 = vor.u32 %v2345_v35, %v2344_v26 }
 0x1dd   : > { %16993 = vst [vmem:[#allocation33_spill] sm:$0xff] %v10808_v41  ;;  %v2914_v27 = vor.u32 %v2913_v24, %v2912_v47  ;;  %v2917_v8 = vor.u32 %v2916_v5, %v2915_v28  ;;  %v2920_v16 = vor.u32 %v2919_v56, %v2918_v49  ;;  %v2350_v38 = vor.u32 4788187, %v2349_v18 }
 0x1de   : > { %v2923_v17 = vor.u32 %v2922_v15, %v2921_v45  ;;  %vm8841_vm5 = vcmp.lt.s32.totalorder %v8840_v0, 0  ;;  %v2903_v7 = vor.u32 8388608, %v2902_v63  ;;  %v2926_v61 = vor.u32 %v2925_v10, %v2924_v21 }
 0x1df   : > { %vm2927_vm15 = vcmp.lt.s32.totalorder %v2908_v57, 1  ;;  %v10812_v48 = vpop.eup %9519  ;;  %v10814_v9 = vsub.s32 %v2435_v23, %v2438_v3  ;;  %vm2930_vm6 = vcmp.lt.s32.totalorder %v2908_v57, 4  ;;  %v3113_v47 = vadd.s32 1, %v8874_v6 }
 0x1e0   : > { %16994 = vst [vmem:[#allocation34_spill] sm:$0xff] %v10812_v48  ;;  %v2935_v39 = vsel %vm2927_vm15, %v2914_v27, %v2917_v8  ;;  %vm2929_vm8 = vcmp.lt.s32.totalorder %v2908_v57, 3  ;;  %v2936_v28 = vsel %vm2930_vm6, %v2923_v17, 920167782  ;;  %v2939_v24 = vsel %vm2927_vm15, %v2917_v8, %v2920_v16 }
 0x1e1   : > { %v2940_v5 = vsel %vm2930_vm6, %v2926_v61, 1326507024  ;;  %v2911_v26 = vshrl.u32 %v16970_v53, %v2910_v13  ;;  %vm2928_vm9 = vcmp.lt.s32.totalorder %v2908_v57, 2  ;;  %v2932_v35 = vsel %vm2930_vm6, %v2920_v16, 2102212464 }
 0x1e2   : > { %v2937_v10 = vsel %vm2929_vm8, %v2920_v16, %v2936_v28  ;;  %v10821_v63 = vsel %vm8841_vm5, 0, %v8840_v0  ;;  %v2941_v18 = vsel %vm2929_vm8, %v2923_v17, %v2940_v5  ;;  %v2943_v49 = vshll.u32 %v2903_v7, 8 }
 0x1e3   : > { %v2938_v23 = vsel %vm2928_vm9, %v2935_v39, %v2937_v10  ;;  %v2441_v6 = vsub.s32 0, %v10814_v9  ;;  %v2931_v56 = vsel %vm2927_vm15, %v2911_v26, %v2914_v27  ;;  %v2942_v61 = vsel %vm2928_vm9, %v2939_v24, %v2941_v18  ;;  %v10850_v24 = vpop.f32.mrb[8].mxu0 }
 0x1e4   : > { %vm3114_vm10 = vcmp.gt.s32.totalorder %v3113_v47, 0  ;;  %v2933_v13 = vsel %vm2929_vm8, %v2917_v8, %v2932_v35  ;;  %v10829_v3 = vmul.u32.u64.low %v2943_v49, %v2942_v61  ;;  %v10830_v45 = vmul.u32.u64.high %v2943_v49, %v2942_v61, %v10829_v3 }
 0x1e5   : > { %v3115_v16 = vsel %vm3114_vm10, %v3113_v47, 0  ;;  %v2351_v0 = vand.u32 2147483647, %v2350_v38  ;;  %v10832_v15 = vmul.u32.u64.low %v2943_v49, %v2938_v23  ;;  %v10833_v21 = vmul.u32.u64.high %v2943_v49, %v2938_v23, %v10832_v15 }
 0x1e6   : > { %v16618_v7 = vand.u32 2147483647, %v10747_v54  ;;  %9521 = vcosq.f32 %v10781_v31  ;;  %v2243_v27 = vsub.s32 4294967266, %v10821_v63  ;;  %v3117_v39 = vand.u32 31, %v3115_v16 }
 0x1e7   : > { %v10843_v8 = vsel %vm2065_vm11, %v2147_v34, %v10788_v33  ;;  %v2353_v47 = vcvt.s32.f32 %v2346_v50  ;;  %v2934_v38 = vsel %vm2928_vm9, %v2931_v56, %v2933_v13  ;;  %v10848_v28 = vadd.f32 %v10668_v58, %v10368_v32 }
 0x1e8   : > { %v2223_v5 = vadd.s32 %v10625_v59, %v10642_v51  ;;  %v8847_v26 = vmin.u32 %v2441_v6, %v10814_v9  ;;  %vm2952_vm12 = vc.u32 %v10830_v45, %v10832_v15  ;;  %v3118_v35 = vsub.s32 32, %v3117_v39 }
 0x1e9   : > { %16995 = vst [vmem:[#allocation35_spill] sm:$0xff] %v10848_v28  ;;  %v10857_v33 = vmul.f32 %v2353_v47, %v2351_v0  ;;  %v2239_v50 = vsub.s32 32, %v10821_v63  ;;  %v2953_v34 = vadd.s32 1, %v10833_v21  ;;  %v3110_v32 = vand.u32 8388607, %v16618_v7 }
 0x1ea   : > { %v2244_v57 = vadd.s32 127, %v2243_v27  ;;  %v2950_v10 = vmul.u32 %v2943_v49, %v2934_v38  ;;  %v3121_v23 = vshrl.u32 %v16965_v22, %v3118_v35  ;;  %v3124_v59 = vshrl.u32 %v16966_v55, %v3118_v35 }
 0x1eb   : > { %v2954_v51 = vsel %vm2952_vm12, %v2953_v34, %v10833_v21  ;;  %v3120_v18 = vshll.u32 %v16970_v53, %v3117_v39  ;;  %v3123_v6 = vshll.u32 %v16965_v22, %v3117_v39  ;;  %v3127_v56 = vshrl.u32 %v16967_v43, %v3118_v35 }
 0x1ec   : > { %v2443_v61 = vclz %v8847_v26  ;;  %v2955_v13 = vadd.s32 %v2954_v51, %v2950_v10  ;;  %v3116_v3 = vshrl.u32 %v3115_v16, 5  ;;  %v3126_v0 = vshll.u32 %v16966_v55, %v3117_v39 }
 0x1ed   : > { %v3122_v47 = vor.u32 %v3121_v23, %v3120_v18  ;;  %v3125_v27 = vor.u32 %v3124_v59, %v3123_v6  ;;  %v3129_v49 = vshll.u32 %v16967_v43, %v3117_v39  ;;  %v3130_v38 = vshrl.u32 %v16968_v29, %v3118_v35 }
 0x1ee   : > { %v2956_v7 = vadd.s32 536870912, %v2955_v13  ;;  %v3128_v17 = vor.u32 %v3127_v56, %v3126_v0  ;;  %v3132_v21 = vshll.u32 %v16968_v29, %v3117_v39  ;;  %v3133_v34 = vshrl.u32 %v16969_v62, %v3118_v35 }
 0x1ef   : > { %v2355_v60 = vxor.u32 2147483648, %v10857_v33  ;;  %v2240_v26 = vshll.u32 %v10708_v46, %v10821_v63  ;;  %v2245_v16 = vshll.u32 %v2244_v57, 23  ;;  %v3131_v10 = vor.u32 %v3130_v38, %v3129_v49 }
 0x1f0   : > { %v10877_v51 = vpop.eup %9521  ;;  %vm2273_vm11 = vcmp.lt.s32.totalorder %v10428_v37, 0  ;;  %v2241_v23 = vshrl.u32 %v2223_v5, %v2239_v50  ;;  %v10880_v59 = vshrl.u32 %v2956_v7, 30  ;;  %v3134_v18 = vor.u32 %v3133_v34, %v3132_v21 }
 0x1f1   : > { %16996 = vst [vmem:[#allocation36_spill] sm:$0xff] %v10877_v51  ;;  %vm3138_vm14 = vcmp.lt.s32.totalorder %v3116_v3, 4  ;;  %v3111_v6 = vor.u32 8388608, %v3110_v32  ;;  %vm3135_vm2 = vcmp.lt.s32.totalorder %v3116_v3, 1  ;;  %vm3137_vm3 = vcmp.lt.s32.totalorder %v3116_v3, 3 }
 0x1f2   : > { %v3144_v39 = vsel %vm3138_vm14, %v3131_v10, 920167782  ;;  %v8848_v56 = vadd.s32 4294967294, %v2443_v61  ;;  %v2958_v0 = vshll.u32 %v10880_v59, 30  ;;  %v3143_v46 = vsel %vm3135_vm2, %v3122_v47, %v3125_v27 }
 0x1f3   : > { %v3145_v63 = vsel %vm3137_vm3, %v3128_v17, %v3144_v39  ;;  %v16997_v57 = vand.u32 2147483647, %v10428_v37  ;;  %v2246_v7 = vor.u32 4788187, %v2245_v16  ;;  %v3119_v50 = vshrl.u32 %v16970_v53, %v3118_v35 }
 0x1f4   : > { %v3147_v32 = vsel %vm3135_vm2, %v3125_v27, %v3128_v17  ;;  %v3148_v49 = vsel %vm3138_vm14, %v3134_v18, 1326507024  ;;  %v10895_v61 = vsub.s32 %v2955_v13, %v2958_v0  ;;  %vm3136_vm15 = vcmp.lt.s32.totalorder %v3116_v3, 2 }
 0x1f5   : > { %vm10888_vm5 = vcmp.le.f32.partialorder %v16997_v57, 0.7853982  ;;  %v3140_v38 = vsel %vm3138_vm14, %v3128_v17, 2102212464  ;;  %v3149_v21 = vsel %vm3137_vm3, %v3131_v10, %v3148_v49  ;;  %v3146_v34 = vsel %vm3136_vm15, %v3143_v46, %v3145_v63  ;;  %v10925_v63 = vpop.f32.mrb[8].mxu1 }
 0x1f6   : > { %v3150_v39 = vsel %vm3136_vm15, %v3147_v32, %v3149_v21  ;;  %v3151_v57 = vshll.u32 %v3111_v6, 8  ;;  %v3002_v16 = vand.u32 2139095040, %v10848_v28  ;;  %v2242_v51 = vor.u32 %v2241_v23, %v2240_v26 }
 0x1f7   : > { %vm8849_vm6 = vcmp.lt.s32.totalorder %v8848_v56, 0  ;;  %v2961_v35 = vsub.s32 0, %v10895_v61  ;;  %v3139_v18 = vsel %vm3135_vm2, %v3119_v50, %v3122_v47  ;;  %v3141_v13 = vsel %vm3137_vm3, %v3125_v27, %v3140_v38 }
 0x1f8   : > { %v10905_v0 = vmul.u32.u64.low %v3151_v57, %v3150_v39  ;;  %v10906_v41 = vmul.u32.u64.high %v3151_v57, %v3150_v39, %v10905_v0  ;;  %v3003_v17 = vshrl.u32 %v3002_v16, 23  ;;  %9523 = vsinq.f32 %v10781_v31 }
 0x1f9   : > { %v2151_v10 = vsel %vm10736_vm1, %v10399_v14, %v10843_v8  ;;  %v10913_v6 = vmul.u32.u64.low %v3151_v57, %v3146_v34  ;;  %v10914_v26 = vmul.u32.u64.high %v3151_v57, %v3146_v34, %v10913_v6  ;;  %v2356_v47 = vsel %vm2273_vm11, %v2355_v60, %v10857_v33 }
 0x1fa   : > { %v17000_v27 = vsub.s32 4, %v10606_v11  ;;  %v2247_v31 = vand.u32 2147483647, %v2246_v7  ;;  %v8870_v46 = vadd.s32 4294967169, %v3003_v17  ;;  %v10927_v50 = vsel %vm8849_vm6, 0, %v8848_v56 }
 0x1fb   : > { %v8867_v8 = vmin.u32 %v2961_v35, %v10895_v61  ;;  %v3142_v32 = vsel %vm3136_vm15, %v3139_v18, %v3141_v13  ;;  %v16623_v49 = vand.u32 2147483647, %v10848_v28  ;;  %9525 = vcosq.f32 %v2151_v10 }
 0x1fc   : > { %v2358_v23 = vsel %vm2273_vm11, %v17000_v27, %v10606_v11  ;;  %v2249_v60 = vcvt.s32.f32 %v2242_v51  ;;  %vm3160_vm8 = vc.u32 %v10906_v41, %v10913_v6  ;;  %v3009_v33 = vadd.s32 1, %v8870_v46 }
 0x1fd   : > { %9527 = vsinq.f32 %v2151_v10  ;;  %v2359_v11 = vsel %vm10888_vm5, %v10428_v37, %v2356_v47  ;;  %v2360_v56 = vsel %vm10888_vm5, 0, %v2358_v23  ;;  %v3161_v7 = vadd.s32 1, %v10914_v26 }
 0x1fe   : > { %v2250_v3 = vmul.f32 %v2249_v60, %v2247_v31  ;;  %v2451_v38 = vsub.s32 4294967266, %v10927_v50  ;;  %v3158_v21 = vmul.u32 %v3151_v57, %v3142_v32  ;;  %vm3010_vm9 = vcmp.gt.s32.totalorder %v3009_v33, 0 }
 0x1ff   : > { %v2963_v51 = vclz %v8867_v8  ;;  %v3162_v34 = vsel %vm3160_vm8, %v3161_v7, %v10914_v26  ;;  %v3006_v39 = vand.u32 8388607, %v16623_v49  ;;  %v3011_v16 = vsel %vm3010_vm9, %v3009_v33, 0 }
 0x200   : > { %9529 = vcosq.f32 %v2359_v11  ;;  %vm16696_vm10 = vcmp.lt.s32.totalorder %v10501_v40, 0  ;;  %v3163_v35 = vadd.s32 %v3162_v34, %v3158_v21  ;;  %v3013_v5 = vand.u32 31, %v3011_v16 }
 0x201   : > { %v17001_v18 = vsel %vm10736_vm1, 0, %v10770_v52  ;;  %9531 = vsinq.f32 %v2359_v11  ;;  %v10951_v57 = vadd.s32 3, %v2360_v56  ;;  %v2431_v0 = vadd.s32 %v10724_v12, %v10743_v19  ;;  %v17005_v52 = vld [vmem:[#allocation15_spill] sm:$0xff] }
 0x202   : > { %v10949_v13 = vadd.s32 3, %v17001_v18  ;;  %v2251_v17 = vxor.u32 2147483648, %v2250_v3  ;;  %v2447_v10 = vsub.s32 32, %v10927_v50  ;;  %v3164_v26 = vadd.s32 536870912, %v3163_v35  ;;  %v10956_v27 = vpop.eup %9523 }
 0x203   : > { %17003 = vst [vmem:[#allocation38_spill] sm:$0xff] %v10951_v57  ;;  %v3014_v47 = vsub.s32 32, %v3013_v5  ;;  %17004 = vst [vmem:[#allocation39_spill] sm:$0xff] %v10956_v27  ;;  %v10958_v23 = vadd.s32 127, %v2451_v38  ;;  %v8868_v1 = vadd.s32 4294967294, %v2963_v51  ;;  %v3007_v31 = vor.u32 8388608, %v3006_v39 }
 0x204   : > { %17002 = vst [vmem:[#allocation37_spill] sm:$0xff] %v10949_v13  ;;  %v10962_v46 = vadd.f32 %v10668_v58, %v17005_v52  ;;  %v10964_v8 = vshrl.u32 %v3164_v26, 30  ;;  %v3016_v32 = vshll.u32 %v16970_v53, %v3013_v5  ;;  %v3019_v60 = vshll.u32 %v16965_v22, %v3013_v5 }
 0x205   : > { %v3017_v12 = vshrl.u32 %v16965_v22, %v3014_v47  ;;  %v3020_v19 = vshrl.u32 %v16966_v55, %v3014_v47  ;;  %v3022_v33 = vshll.u32 %v16966_v55, %v3013_v5  ;;  %v3023_v11 = vshrl.u32 %v16967_v43, %v3014_v47  ;;  %v10973_v7 = vpop.eup %9525 }
 0x206   : > { %17006 = vst [vmem:[#allocation15_spill] sm:$0xff] %v10962_v46  ;;  %v3026_v56 = vshrl.u32 %v16968_v29, %v3014_v47  ;;  %17007 = vst [vmem:[#allocation40_spill] sm:$0xff] %v10973_v7  ;;  %v2252_v38 = vsel %vm16696_vm10, %v2251_v17, %v2250_v3  ;;  %v3166_v21 = vshll.u32 %v10964_v8, 30  ;;  %v3012_v51 = vshrl.u32 %v3011_v16, 5 }
 0x207   : > { %v3025_v34 = vshll.u32 %v16967_v43, %v3013_v5  ;;  %v10979_v39 = vpop.eup %9527  ;;  %vm8869_vm1 = vcmp.lt.s32.totalorder %v8868_v1, 0  ;;  %v3018_v18 = vor.u32 %v3017_v12, %v3016_v32  ;;  %v3021_v26 = vor.u32 %v3020_v19, %v3019_v60 }
 0x208   : > { %17008 = vst [vmem:[#allocation41_spill] sm:$0xff] %v10979_v39  ;;  %v3024_v52 = vor.u32 %v3023_v11, %v3022_v33  ;;  %v17009_v49 = vand.u32 2147483647, %v10501_v40  ;;  %v17010_v37 = vmov 0  ;;  %v10987_v57 = vsub.s32 %v3163_v35, %v3166_v21 }
 0x209   : > { %v3027_v3 = vor.u32 %v3026_v56, %v3025_v34  ;;  %v3028_v17 = vshll.u32 %v16968_v29, %v3013_v5  ;;  %v3029_v16 = vshrl.u32 %v16969_v62, %v3014_v47  ;;  %v2449_v7 = vshrl.u32 %v2431_v0, %v2447_v10 }
 0x20a   : > { %vm10983_vm12 = vcmp.le.f32.partialorder %v17009_v49, 0.7853982  ;;  %v2453_v14 = vshll.u32 %v10958_v23, 23  ;;  %v3047_v39 = vshll.u32 %v3007_v31, 8  ;;  %v3210_v32 = vand.u32 2139095040, %v10962_v46  ;;  %v10993_v12 = vpop.eup %9529 }
 0x20b   : > { %v17011_v37 = vsel %vm10983_vm12, 4294967295, %v17010_v37  ;;  %17013 = vst [vmem:[#allocation43_spill] sm:$0xff] %v10993_v12  ;;  %v2966_v19 = vsel %vm8869_vm1, 0, %v8868_v1  ;;  %v3169_v49 = vsub.s32 0, %v10987_v57  ;;  %v3030_v60 = vor.u32 %v3029_v16, %v3028_v17  ;;  %v10996_v35 = vpop.eup %9531 }
 0x20c   : > { %17012 = vst [vmem:[#allocation42_spill] sm:$0xff] %v17011_v37  ;;  %vm3031_vm11 = vcmp.lt.s32.totalorder %v3012_v51, 1  ;;  %17014 = vst [vmem:[#allocation44_spill] sm:$0xff] %v10996_v35  ;;  %v3015_v33 = vshrl.u32 %v16970_v53, %v3014_v47  ;;  %vm3033_vm14 = vcmp.lt.s32.totalorder %v3012_v51, 3  ;;  %vm3034_vm2 = vcmp.lt.s32.totalorder %v3012_v51, 4 }
 0x20d   : > { %v3039_v5 = vsel %vm3031_vm11, %v3018_v18, %v3021_v26  ;;  %v8875_v0 = vmin.u32 %v3169_v49, %v10987_v57  ;;  %v3036_v10 = vsel %vm3034_vm2, %v3024_v52, 2102212464  ;;  %v3040_v23 = vsel %vm3034_vm2, %v3027_v3, 920167782 }
 0x20e   : > { %v3043_v31 = vsel %vm3031_vm11, %v3021_v26, %v3024_v52  ;;  %vm3032_vm3 = vcmp.lt.s32.totalorder %v3012_v51, 2  ;;  %v3041_v11 = vsel %vm3033_vm14, %v3024_v52, %v3040_v23  ;;  %v3044_v56 = vsel %vm3034_vm2, %v3030_v60, 1326507024  ;;  %v11009_v52 = vpop.permute.xlu1 %1196  ;;  %v11019_v60 = vpop.f32.mrb[9].mxu0 }
 0x20f   : > { %v3211_v1 = vshrl.u32 %v3210_v32, 23  ;;  %v3171_v21 = vclz %v8875_v0  ;;  %v3035_v34 = vsel %vm3031_vm11, %v3015_v33, %v3018_v18  ;;  %v3042_v17 = vsel %vm3032_vm3, %v3039_v5, %v3041_v11  ;;  %17015 = vst [vmem:[#allocation45_spill] sm:$0xff] %v11009_v52  ;;  %v17016_v0 = vld [vmem:[#allocation19_spill] sm:$0xff] }
 0x210   : > { %v3045_v16 = vsel %vm3033_vm14, %v3027_v3, %v3044_v56  ;;  %v3037_v12 = vsel %vm3033_vm14, %v3021_v26, %v3036_v10  ;;  %v11002_v35 = vmul.u32.u64.low %v3047_v39, %v3042_v17  ;;  %v11003_v13 = vmul.u32.u64.high %v3047_v39, %v3042_v17, %v11002_v35 }
 0x211   : > { %v3046_v47 = vsel %vm3032_vm3, %v3043_v31, %v3045_v16  ;;  %v2967_v49 = vsub.s32 32, %v2966_v19  ;;  %v2971_v27 = vsub.s32 4294967266, %v2966_v19  ;;  %v11014_v18 = vsel %vm10983_vm12, %v10501_v40, %v2252_v38 }
 0x212   : > { %v11006_v48 = vmul.u32.u64.low %v3047_v39, %v3046_v47  ;;  %v11007_v36 = vmul.u32.u64.high %v3047_v39, %v3046_v47, %v11006_v48  ;;  %v2448_v26 = vshll.u32 %v10814_v9, %v10927_v50  ;;  %v16634_v3 = vand.u32 2147483647, %v10962_v46 }
 0x213   : > { %v8878_v32 = vadd.s32 4294967169, %v3211_v1  ;;  %v2951_v33 = vadd.s32 %v10832_v15, %v10830_v45  ;;  %v8876_v5 = vadd.s32 4294967294, %v3171_v21  ;;  %v3038_v48 = vsel %vm3032_vm3, %v3035_v34, %v3037_v12 }
 0x214   : > { %v11026_v10 = vadd.f32 %v11009_v52, %v17016_v0  ;;  %v11028_v38 = vor.u32 %v2449_v7, %v2448_v26  ;;  %v11030_v23 = vor.u32 4788187, %v2453_v14  ;;  %v3057_v9 = vadd.s32 1, %v11003_v13 }
 0x215   : > { %v3217_v50 = vadd.s32 1, %v8878_v32  ;;  %9533 = vcosq.f32 %v11014_v18  ;;  %v2968_v31 = vshll.u32 %v10895_v61, %v2966_v19  ;;  %v2969_v11 = vshrl.u32 %v2951_v33, %v2967_v49 }
 0x216   : > { %17017 = vst [vmem:[#allocation19_spill] sm:$0xff] %v11026_v10  ;;  %v2972_v45 = vadd.s32 127, %v2971_v27  ;;  %v3054_v15 = vmul.u32 %v3047_v39, %v3038_v48  ;;  %vm3056_vm5 = vc.u32 %v11007_v36, %v11002_v35  ;;  %v3214_v51 = vand.u32 8388607, %v16634_v3 }
 0x217   : > { %vm3218_vm15 = vcmp.gt.s32.totalorder %v3217_v50, 0  ;;  %vm8877_vm6 = vcmp.lt.s32.totalorder %v8876_v5, 0  ;;  %v3058_v14 = vsel %vm3056_vm5, %v3057_v9, %v11003_v13  ;;  %v3730_v12 = vand.u32 2139095040, %v11026_v10 }
 0x218   : > { %v3219_v7 = vsel %vm3218_vm15, %v3217_v50, 0  ;;  %v3059_v19 = vadd.s32 %v3058_v14, %v3054_v15  ;;  %v11043_v39 = vor.u32 %v2969_v11, %v2968_v31  ;;  %v2973_v1 = vshll.u32 %v2972_v45, 23 }
 0x219   : > { %v3221_v27 = vand.u32 31, %v3219_v7  ;;  %v11048_v34 = vadd.f32 %v11009_v52, %v10551_v25  ;;  %v11050_v17 = vsel %vm8877_vm6, 0, %v8876_v5  ;;  %v3215_v16 = vor.u32 8388608, %v3214_v51 }
 0x21a   : > { %v3060_v13 = vadd.s32 536870912, %v3059_v19  ;;  %v3220_v49 = vshrl.u32 %v3219_v7, 5  ;;  %v3731_v33 = vshrl.u32 %v3730_v12, 23  ;;  %v2974_v12 = vor.u32 4788187, %v2973_v1 }
 0x21b   : > { %17018 = vst [vmem:[#allocation46_spill] sm:$0xff] %v11048_v34  ;;  %v3222_v47 = vsub.s32 32, %v3221_v27  ;;  %v3224_v26 = vshll.u32 %v16970_v53, %v3221_v27  ;;  %v3227_v32 = vshll.u32 %v16965_v22, %v3221_v27  ;;  %v3230_v25 = vshll.u32 %v16966_v55, %v3221_v27 }
 0x21c   : > { %v11054_v48 = vshrl.u32 %v3060_v13, 30  ;;  %v3233_v50 = vshll.u32 %v16967_v43, %v3221_v27  ;;  %v3236_v11 = vshll.u32 %v16968_v29, %v3221_v27  ;;  %v3179_v13 = vsub.s32 4294967266, %v11050_v17 }
 0x21d   : > { %v3225_v0 = vshrl.u32 %v16965_v22, %v3222_v47  ;;  %v3228_v9 = vshrl.u32 %v16966_v55, %v3222_v47  ;;  %v3231_v5 = vshrl.u32 %v16967_v43, %v3222_v47  ;;  %v3234_v31 = vshrl.u32 %v16968_v29, %v3222_v47 }
 0x21e   : > { %17019 = vst [vmem:[#allocation47_spill] sm:$0xff] %v11054_v48  ;;  %v3062_v45 = vshll.u32 %v11054_v48, 30  ;;  %v3237_v14 = vshrl.u32 %v16969_v62, %v3222_v47  ;;  %vm3239_vm8 = vcmp.lt.s32.totalorder %v3220_v49, 1  ;;  %v3255_v37 = vshll.u32 %v3215_v16, 8 }
 0x21f   : > { %v3226_v15 = vor.u32 %v3225_v0, %v3224_v26  ;;  %v3229_v51 = vor.u32 %v3228_v9, %v3227_v32  ;;  %v11065_v7 = vpop.eup %9533  ;;  %v3232_v3 = vor.u32 %v3231_v5, %v3230_v25  ;;  %v3235_v61 = vor.u32 %v3234_v31, %v3233_v50 }
 0x220   : > { %17020 = vst [vmem:[#allocation48_spill] sm:$0xff] %v11065_v7  ;;  %v11068_v56 = vsub.s32 %v3059_v19, %v3062_v45  ;;  %v3238_v21 = vor.u32 %v3237_v14, %v3236_v11  ;;  %v3223_v27 = vshrl.u32 %v16970_v53, %v3222_v47  ;;  %vm3242_vm9 = vcmp.lt.s32.totalorder %v3220_v49, 4  ;;  %v11082_v14 = vpop.f32.mrb[9].mxu1 }
 0x221   : > { %v3247_v26 = vsel %vm3239_vm8, %v3226_v15, %v3229_v51  ;;  %v8898_v32 = vadd.s32 4294967169, %v3731_v33  ;;  %vm3241_vm1 = vcmp.lt.s32.totalorder %v3220_v49, 3  ;;  %v3244_v9 = vsel %vm3242_vm9, %v3232_v3, 2102212464 }
 0x222   : > { %v3065_v0 = vsub.s32 0, %v11068_v56  ;;  %v3248_v1 = vsel %vm3242_vm9, %v3235_v61, 920167782  ;;  %vm3240_vm11 = vcmp.lt.s32.totalorder %v3220_v49, 2  ;;  %v3251_v25 = vsel %vm3239_vm8, %v3229_v51, %v3232_v3 }
 0x223   : > { %v3249_v48 = vsel %vm3241_vm1, %v3232_v3, %v3248_v1  ;;  %v3252_v19 = vsel %vm3242_vm9, %v3238_v21, 1326507024  ;;  %v2975_v5 = vand.u32 2147483647, %v2974_v12  ;;  %v3243_v16 = vsel %vm3239_vm8, %v3223_v27, %v3226_v15 }
 0x224   : > { %v8871_v50 = vmin.u32 %v3065_v0, %v11068_v56  ;;  %v3250_v47 = vsel %vm3240_vm11, %v3247_v26, %v3249_v48  ;;  %vm2897_vm14 = vcmp.lt.s32.totalorder %v10681_v44, 0  ;;  %v3245_v33 = vsel %vm3241_vm1, %v3229_v51, %v3244_v9 }
 0x225   : > { %v3253_v31 = vsel %vm3241_vm1, %v3235_v61, %v3252_v19  ;;  %v11078_v11 = vmul.u32.u64.low %v3255_v37, %v3250_v47  ;;  %v11079_v45 = vmul.u32.u64.high %v3255_v37, %v3250_v47, %v11078_v11  ;;  %v3175_v3 = vsub.s32 32, %v11050_v17 }
 0x226   : > { %v3180_v21 = vadd.s32 127, %v3179_v13  ;;  %v3067_v12 = vclz %v8871_v50  ;;  %v3254_v0 = vsel %vm3240_vm11, %v3251_v25, %v3253_v31  ;;  %v17021_v48 = vand.u32 2147483647, %v11026_v10 }
 0x227   : > { %v11086_v1 = vmul.u32.u64.low %v3255_v37, %v3254_v0  ;;  %v11087_v15 = vmul.u32.u64.high %v3255_v37, %v3254_v0, %v11086_v1  ;;  %v3737_v51 = vadd.s32 1, %v8898_v32  ;;  %v2977_v61 = vcvt.s32.f32 %v11043_v39 }
 0x228   : > { %v3734_v27 = vand.u32 8388607, %v17021_v48  ;;  %v3159_v26 = vadd.s32 %v10913_v6, %v10906_v41  ;;  %v8872_v9 = vadd.s32 4294967294, %v3067_v12  ;;  %v3246_v19 = vsel %vm3240_vm11, %v3243_v16, %v3245_v33 }
 0x229   : > { %v17022_v13 = vand.u32 2147483647, %v11030_v23  ;;  %v17023_v50 = vcvt.s32.f32 %v11028_v38  ;;  %v2981_v47 = vsub.s32 4, %v10880_v59  ;;  %v3265_v31 = vadd.s32 1, %v11079_v45 }
 0x22a   : > { %vm3738_vm2 = vcmp.gt.s32.totalorder %v3737_v51, 0  ;;  %v11103_v32 = vmul.f32 %v2977_v61, %v2975_v5  ;;  %v3177_v39 = vshrl.u32 %v3159_v26, %v3175_v3  ;;  %vm8873_vm3 = vcmp.lt.s32.totalorder %v8872_v9, 0 }
 0x22b   : > { %v11099_v25 = vmul.f32 %v17023_v50, %v17022_v13  ;;  %v3739_v0 = vsel %vm3738_vm2, %v3737_v51, 0  ;;  %v3181_v41 = vshll.u32 %v3180_v21, 23  ;;  %v3262_v6 = vmul.u32 %v3255_v37, %v3246_v19 }
 0x22c   : > { %vm3264_vm5 = vc.u32 %v11087_v15, %v11078_v11  ;;  %v3735_v23 = vor.u32 8388608, %v3734_v27  ;;  %v3176_v38 = vshll.u32 %v10987_v57, %v11050_v17  ;;  %v11110_v16 = vshrl.u32 %v3739_v0, 5 }
 0x22d   : > { %v3266_v49 = vsel %vm3264_vm5, %v3265_v31, %v11079_v45  ;;  %v3938_v33 = vand.u32 2139095040, %v11048_v34  ;;  %9535 = vsinq.f32 %v11014_v18  ;;  %v11114_v5 = vsel %vm8873_vm3, 0, %v8872_v9 }
 0x22e   : > { %v3267_v3 = vadd.s32 %v3266_v49, %v3262_v6  ;;  %v3741_v21 = vand.u32 31, %v3739_v0  ;;  %v2459_v37 = vxor.u32 2147483648, %v11099_v25  ;;  %v11121_v57 = vsel %vm2897_vm14, %v2981_v47, %v10880_v59 }
 0x22f   : > { %v11123_v17 = vor.u32 %v3177_v39, %v3176_v38  ;;  %v11125_v45 = vor.u32 4788187, %v3181_v41  ;;  %v11127_v18 = vshll.u32 %v3735_v23, 8  ;;  %v3075_v27 = vsub.s32 4294967266, %v11114_v5 }
 0x230   : > { %v3268_v1 = vadd.s32 536870912, %v3267_v3  ;;  %v3742_v48 = vsub.s32 32, %v3741_v21  ;;  %v3744_v51 = vshll.u32 %v16970_v53, %v3741_v21  ;;  %vm3759_vm15 = vcmp.lt.s32.totalorder %v11110_v16, 1 }
 0x231   : > { %v3939_v61 = vshrl.u32 %v3938_v33, 23  ;;  %vm16672_vm6 = vcmp.lt.s32.totalorder %v10584_v4, 0  ;;  %v3747_v9 = vshll.u32 %v16965_v22, %v3741_v21  ;;  %v17025_v13 = vand.u32 2147483647, %v10681_v44 }
 0x232   : > { %v11133_v26 = vshrl.u32 %v3268_v1, 30  ;;  %v3745_v59 = vshrl.u32 %v16965_v22, %v3742_v48  ;;  %v3748_v19 = vshrl.u32 %v16966_v55, %v3742_v48  ;;  %v3750_v47 = vshll.u32 %v16966_v55, %v3741_v21 }
 0x233   : > { %vm11140_vm8 = vcmp.le.f32.partialorder %v17025_v13, 0.7853982  ;;  %v3751_v31 = vshrl.u32 %v16967_v43, %v3742_v48  ;;  %v3753_v39 = vshll.u32 %v16967_v43, %v3741_v21  ;;  %v3754_v0 = vshrl.u32 %v16968_v29, %v3742_v48 }
 0x234   : > { %17024 = vst [vmem:[#allocation49_spill] sm:$0xff] %v11133_v26  ;;  %v3270_v41 = vshll.u32 %v11133_v26, 30  ;;  %v3746_v6 = vor.u32 %v3745_v59, %v3744_v51  ;;  %v3749_v23 = vor.u32 %v3748_v19, %v3747_v9  ;;  %vm3760_vm9 = vcmp.lt.s32.totalorder %v11110_v16, 2 }
 0x235   : > { %v17028_v38 = vand.u32 2147483647, %v10584_v4  ;;  %v17029_v49 = vmov 0  ;;  %v3752_v33 = vor.u32 %v3751_v31, %v3750_v47  ;;  %v3755_v1 = vor.u32 %v3754_v0, %v3753_v39 }
 0x236   : > { %v3756_v13 = vshll.u32 %v16968_v29, %v3741_v21  ;;  %v3757_v12 = vshrl.u32 %v16969_v62, %v3742_v48  ;;  %v11158_v7 = vsub.s32 %v3267_v3, %v3270_v41  ;;  %vm3761_vm11 = vcmp.lt.s32.totalorder %v11110_v16, 3 }
 0x237   : > { %vm11152_vm1 = vcmp.le.f32.partialorder %v17028_v38, 0.7853982  ;;  %vm3762_vm2 = vcmp.lt.s32.totalorder %v11110_v16, 4  ;;  %v3767_v51 = vsel %vm3759_vm15, %v3746_v6, %v3749_v23  ;;  %v3743_v59 = vshrl.u32 %v16970_v53, %v3742_v48  ;;  %v11165_v47 = vpop.eup %9535 }
 0x238   : > { %v17030_v49 = vsel %vm11152_vm1, 4294967295, %v17029_v49  ;;  %v3758_v9 = vor.u32 %v3757_v12, %v3756_v13  ;;  %v3764_v19 = vsel %vm3762_vm2, %v3752_v33, 2102212464  ;;  %v3768_v38 = vsel %vm3762_vm2, %v3755_v1, 920167782  ;;  %17032 = vst [vmem:[#allocation51_spill] sm:$0xff] %v11165_v47 }
 0x239   : > { %17031 = vst [vmem:[#allocation50_spill] sm:$0xff] %v17030_v49  ;;  %v3076_v31 = vadd.s32 127, %v3075_v27  ;;  %v3273_v21 = vsub.s32 0, %v11158_v7  ;;  %v3769_v3 = vsel %vm3761_vm11, %v3752_v33, %v3768_v38  ;;  %v3771_v39 = vsel %vm3759_vm15, %v3749_v23, %v3752_v33 }
 0x23a   : > { %v3763_v0 = vsel %vm3759_vm15, %v3743_v59, %v3746_v6  ;;  %v3770_v48 = vsel %vm3760_vm9, %v3767_v51, %v3769_v3  ;;  %v3772_v12 = vsel %vm3762_vm2, %v3758_v9, 1326507024  ;;  %v8906_v41 = vadd.s32 4294967169, %v3939_v61 }
 0x23b   : > { %v3765_v13 = vsel %vm3761_vm11, %v3749_v23, %v3764_v19  ;;  %v3773_v27 = vsel %vm3761_vm11, %v3755_v1, %v3772_v12  ;;  %v11181_v26 = vmul.u32.u64.low %v11127_v18, %v3770_v48  ;;  %v11182_v38 = vmul.u32.u64.high %v11127_v18, %v3770_v48, %v11181_v26 }
 0x23c   : > { %v2460_v6 = vsel %vm16672_vm6, %v2459_v37, %v11099_v25  ;;  %v3071_v33 = vsub.s32 32, %v11114_v5  ;;  %v8879_v51 = vmin.u32 %v3273_v21, %v11158_v7  ;;  %v3774_v61 = vsel %vm3760_vm9, %v3771_v39, %v3773_v27 }
 0x23d   : > { %v2984_v23 = vsel %vm11140_vm8, 0, %v11121_v57  ;;  %v3183_v1 = vand.u32 2147483647, %v11125_v45  ;;  %v11197_v59 = vmul.u32.u64.low %v11127_v18, %v3774_v61  ;;  %v11198_v9 = vmul.u32.u64.high %v11127_v18, %v3774_v61, %v11197_v59 }
 0x23e   : > { %v3055_v25 = vadd.s32 %v11002_v35, %v11007_v36  ;;  %v3077_v37 = vshll.u32 %v3076_v31, 23  ;;  %v3766_v19 = vsel %vm3760_vm9, %v3763_v0, %v3765_v13  ;;  %v3945_v21 = vadd.s32 1, %v8906_v41  ;;  %v11218_v41 = vpop.f32.mrb[10].mxu0 }
 0x23f   : > { %v2463_v3 = vsel %vm11152_vm1, %v10584_v4, %v2460_v6  ;;  %v17033_v57 = vxor.u32 2147483648, %v11103_v32  ;;  %v3185_v39 = vcvt.s32.f32 %v11123_v17  ;;  %v3785_v48 = vadd.s32 1, %v11182_v38 }
 0x240   : > { %v3073_v36 = vshrl.u32 %v3055_v25, %v3071_v33  ;;  %v3275_v35 = vclz %v8879_v51  ;;  %v16641_v16 = vand.u32 2147483647, %v11048_v34  ;;  %vm3946_vm3 = vcmp.gt.s32.totalorder %v3945_v21, 0 }
 0x241   : > { %v2980_v45 = vsel %vm2897_vm14, %v17033_v57, %v11103_v32  ;;  %v3186_v31 = vmul.f32 %v3185_v39, %v3183_v1  ;;  %v3782_v0 = vmul.u32 %v11127_v18, %v3766_v19  ;;  %vm3784_vm5 = vc.u32 %v11198_v9, %v11181_v26 }
 0x242   : > { %v3947_v12 = vsel %vm3946_vm3, %v3945_v21, 0  ;;  %v3072_v32 = vshll.u32 %v11068_v56, %v11114_v5  ;;  %v3078_v17 = vor.u32 4788187, %v3077_v37  ;;  %v3786_v13 = vsel %vm3784_vm5, %v3785_v48, %v11182_v38 }
 0x243   : > { %v3949_v27 = vand.u32 31, %v3947_v12  ;;  %9537 = vcosq.f32 %v2463_v3  ;;  %v11223_v6 = vadd.s32 3, %v2984_v23  ;;  %vm3105_vm14 = vcmp.lt.s32.totalorder %v10747_v54, 0 }
 0x244   : > { %v3787_v33 = vadd.s32 %v3786_v13, %v3782_v0  ;;  %9539 = vsinq.f32 %v2463_v3  ;;  %v3074_v18 = vor.u32 %v3073_v36, %v3072_v32  ;;  %v8880_v51 = vadd.s32 4294967294, %v3275_v35 }
 0x245   : > { %17034 = vst [vmem:[#allocation52_spill] sm:$0xff] %v11223_v6  ;;  %v3950_v61 = vsub.s32 32, %v3949_v27  ;;  %v11229_v1 = vsel %vm11140_vm8, %v10681_v44, %v2980_v45  ;;  %v3187_v56 = vxor.u32 2147483648, %v3186_v31  ;;  %v11233_v38 = vadd.f32 %v11009_v52, %v10647_v2 }
 0x246   : > { %v3788_v5 = vadd.s32 536870912, %v3787_v33  ;;  %v3079_v23 = vand.u32 2147483647, %v3078_v17  ;;  %v3942_v59 = vand.u32 8388607, %v16641_v16  ;;  %v3952_v50 = vshll.u32 %v16970_v53, %v3949_v27 }
 0x247   : > { %v3953_v25 = vshrl.u32 %v16965_v22, %v3950_v61  ;;  %v3956_v37 = vshrl.u32 %v16966_v55, %v3950_v61  ;;  %v3959_v21 = vshrl.u32 %v16967_v43, %v3950_v61  ;;  %v3962_v3 = vshrl.u32 %v16968_v29, %v3950_v61 }
 0x248   : > { %v11239_v19 = vshrl.u32 %v3788_v5, 30  ;;  %v3081_v57 = vcvt.s32.f32 %v3074_v18  ;;  %vm8881_vm15 = vcmp.lt.s32.totalorder %v8880_v51, 0  ;;  %v3955_v2 = vshll.u32 %v16965_v22, %v3949_v27 }
 0x249   : > { %v3961_v45 = vshll.u32 %v16967_v43, %v3949_v27  ;;  %v3948_v48 = vshrl.u32 %v3947_v12, 5  ;;  %v3954_v36 = vor.u32 %v3953_v25, %v3952_v50  ;;  %v3958_v35 = vshll.u32 %v16966_v55, %v3949_v27 }
 0x24a   : > { %v3790_v39 = vshll.u32 %v11239_v19, 30  ;;  %v3957_v0 = vor.u32 %v3956_v37, %v3955_v2  ;;  %v3964_v17 = vshll.u32 %v16968_v29, %v3949_v27  ;;  %v3965_v13 = vshrl.u32 %v16969_v62, %v3950_v61 }
 0x24b   : > { %v3963_v32 = vor.u32 %v3962_v3, %v3961_v45  ;;  %v17035_v5 = vand.u32 2147483647, %v10747_v54  ;;  %v3188_v16 = vsel %vm3105_vm14, %v3187_v56, %v3186_v31  ;;  %v3082_v44 = vmul.f32 %v3081_v57, %v3079_v23 }
 0x24c   : > { %v11258_v12 = vsub.s32 %v3787_v33, %v3790_v39  ;;  %v3960_v25 = vor.u32 %v3959_v21, %v3958_v35  ;;  %v11261_v37 = vsel %vm8881_vm15, 0, %v8880_v51  ;;  %v3943_v50 = vor.u32 8388608, %v3942_v59 }
 0x24d   : > { %vm11252_vm8 = vcmp.le.f32.partialorder %v17035_v5, 0.7853982  ;;  %v3966_v27 = vor.u32 %v3965_v13, %v3964_v17  ;;  %v3834_v3 = vand.u32 2139095040, %v11233_v38  ;;  %v11264_v2 = vpop.eup %9537  ;;  %v3951_v5 = vshrl.u32 %v16970_v53, %v3950_v61 }
 0x24e   : > { %17038 = vst [vmem:[#allocation53_spill] sm:$0xff] %v11264_v2  ;;  %v3793_v45 = vsub.s32 0, %v11258_v12  ;;  %vm3967_vm9 = vcmp.lt.s32.totalorder %v3948_v48, 1  ;;  %vm3970_vm11 = vcmp.lt.s32.totalorder %v3948_v48, 4  ;;  %v11268_v31 = vpop.eup %9539  ;;  %vm16671_vm2 = vcmp.lt.s32.totalorder %v10848_v28, 0 }
 0x24f   : > { %17039 = vst [vmem:[#allocation54_spill] sm:$0xff] %v11268_v31  ;;  %vm3968_vm3 = vcmp.lt.s32.totalorder %v3948_v48, 2  ;;  %vm3969_vm5 = vcmp.lt.s32.totalorder %v3948_v48, 3  ;;  %v3975_v33 = vsel %vm3967_vm9, %v3954_v36, %v3957_v0  ;;  %v3976_v51 = vsel %vm3970_vm11, %v3963_v32, 920167782 }
 0x250   : > { %v8899_v56 = vmin.u32 %v3793_v45, %v11258_v12  ;;  %v3972_v23 = vsel %vm3970_vm11, %v3960_v25, 2102212464  ;;  %v3977_v59 = vsel %vm3969_vm5, %v3960_v25, %v3976_v51  ;;  %v3979_v21 = vsel %vm3967_vm9, %v3957_v0, %v3960_v25 }
 0x251   : > { %v3978_v61 = vsel %vm3968_vm3, %v3975_v33, %v3977_v59  ;;  %v3980_v57 = vsel %vm3970_vm11, %v3966_v27, 1326507024  ;;  %v3983_v39 = vshll.u32 %v3943_v50, 8  ;;  %v3835_v35 = vshrl.u32 %v3834_v3, 23 }
 0x252   : > { %v3283_v17 = vsub.s32 4294967266, %v11261_v37  ;;  %v3795_v13 = vclz %v8899_v56  ;;  %v3971_v6 = vsel %vm3967_vm9, %v3951_v5, %v3954_v36  ;;  %v3981_v2 = vsel %vm3969_vm5, %v3963_v32, %v3980_v57  ;;  %v11294_v32 = vpop.f32.mrb[10].mxu1 }
 0x253   : > { %v17040_v31 = vand.u32 2147483647, %v10848_v28  ;;  %v17041_v45 = vmov 0  ;;  %v3973_v25 = vsel %vm3969_vm5, %v3957_v0, %v3972_v23  ;;  %v3982_v33 = vsel %vm3968_vm3, %v3979_v21, %v3981_v2 }
 0x254   : > { %v11287_v27 = vmul.u32.u64.low %v3983_v39, %v3978_v61  ;;  %v11288_v50 = vmul.u32.u64.high %v3983_v39, %v3978_v61, %v11287_v27  ;;  %v3083_v3 = vxor.u32 2147483648, %v3082_v44  ;;  %v8900_v51 = vadd.s32 4294967294, %v3795_v13 }
 0x255   : > { %vm11281_vm15 = vcmp.le.f32.partialorder %v17040_v31, 0.7853982  ;;  %v11291_v56 = vmul.u32.u64.low %v3983_v39, %v3982_v33  ;;  %v11292_v36 = vmul.u32.u64.high %v3983_v39, %v3982_v33, %v11291_v56  ;;  %v3191_v5 = vsel %vm11252_vm8, %v10747_v54, %v3188_v16 }
 0x256   : > { %v17042_v45 = vsel %vm11281_vm15, 4294967295, %v17041_v45  ;;  %v3279_v31 = vsub.s32 32, %v11261_v37  ;;  %v8902_v0 = vadd.s32 4294967169, %v3835_v35  ;;  %v11302_v2 = vadd.f32 %v11009_v52, %v10765_v20 }
 0x257   : > { %17043 = vst [vmem:[#allocation55_spill] sm:$0xff] %v17042_v45  ;;  %9541 = vcosq.f32 %v11229_v1  ;;  %v3189_v23 = vsub.s32 4, %v10964_v8  ;;  %v3284_v59 = vadd.s32 127, %v3283_v17  ;;  %v3974_v21 = vsel %vm3968_vm3, %v3971_v6, %v3973_v25 }
 0x258   : > { %17044 = vst [vmem:[#allocation56_spill] sm:$0xff] %v11302_v2  ;;  %9543 = vsinq.f32 %v11229_v1  ;;  %v3263_v61 = vadd.s32 %v11078_v11, %v11087_v15  ;;  %v3993_v16 = vadd.s32 1, %v11288_v50  ;;  %v3841_v57 = vadd.s32 1, %v8902_v0 }
 0x259   : > { %9545 = vcosq.f32 %v3191_v5  ;;  %v3084_v20 = vsel %vm16671_vm2, %v3083_v3, %v3082_v44  ;;  %vm8901_vm9 = vcmp.lt.s32.totalorder %v8900_v51, 0  ;;  %v16646_v35 = vand.u32 2147483647, %v11233_v38 }
 0x25a   : > { %v3281_v13 = vshrl.u32 %v3263_v61, %v3279_v31  ;;  %v3990_v33 = vmul.u32 %v3983_v39, %v3974_v21  ;;  %vm3992_vm11 = vc.u32 %v11292_v36, %v11287_v27  ;;  %vm3842_vm3 = vcmp.gt.s32.totalorder %v3841_v57, 0 }
 0x25b   : > { %v3285_v6 = vshll.u32 %v3284_v59, 23  ;;  %v3994_v1 = vsel %vm3992_vm11, %v3993_v16, %v11288_v50  ;;  %v3843_v11 = vsel %vm3842_vm3, %v3841_v57, 0  ;;  %v4042_v15 = vand.u32 2139095040, %v11302_v2 }
 0x25c   : > { %v3280_v48 = vshll.u32 %v11158_v7, %v11261_v37  ;;  %v11320_v17 = vsel %vm8901_vm9, 0, %v8900_v51  ;;  %v3995_v44 = vadd.s32 %v3994_v1, %v3990_v33  ;;  %v3845_v25 = vand.u32 31, %v3843_v11 }
 0x25d   : > { %v11325_v39 = vsel %vm3105_vm14, %v3189_v23, %v10964_v8  ;;  %9547 = vsinq.f32 %v3191_v5  ;;  %v11330_v50 = vsel %vm11281_vm15, %v10848_v28, %v3084_v20  ;;  %v3838_v3 = vand.u32 8388607, %v16646_v35 }
 0x25e   : > { %v11334_v56 = vor.u32 %v3281_v13, %v3280_v48  ;;  %v3996_v7 = vadd.s32 536870912, %v3995_v44  ;;  %v3846_v37 = vsub.s32 32, %v3845_v25  ;;  %v11337_v31 = vor.u32 4788187, %v3285_v6 }
 0x25f   : > { %v3803_v8 = vsub.s32 4294967266, %v11320_v17  ;;  %v3848_v5 = vshll.u32 %v16970_v53, %v3845_v25  ;;  %v4043_v0 = vshrl.u32 %v4042_v15, 23  ;;  %v3851_v21 = vshll.u32 %v16965_v22, %v3845_v25 }
 0x260   : > { %v11341_v23 = vshrl.u32 %v3996_v7, 30  ;;  %v3849_v59 = vshrl.u32 %v16965_v22, %v3846_v37  ;;  %v3852_v61 = vshrl.u32 %v16966_v55, %v3846_v37  ;;  %v3854_v57 = vshll.u32 %v16966_v55, %v3845_v25 }
 0x261   : > { %v11346_v16 = vpop.eup %9541  ;;  %v3855_v20 = vshrl.u32 %v16967_v43, %v3846_v37  ;;  %v3857_v13 = vshll.u32 %v16967_v43, %v3845_v25  ;;  %v3858_v33 = vshrl.u32 %v16968_v29, %v3846_v37  ;;  %v3783_v1 = vadd.s32 %v11181_v26, %v11198_v9 }
 0x262   : > { %17045 = vst [vmem:[#allocation57_spill] sm:$0xff] %v11346_v16  ;;  %v11352_v6 = vpop.eup %9543  ;;  %v3998_v15 = vshll.u32 %v11341_v23, 30  ;;  %v3844_v48 = vshrl.u32 %v3843_v11, 5  ;;  %v3850_v7 = vor.u32 %v3849_v59, %v3848_v5  ;;  %v3853_v51 = vor.u32 %v3852_v61, %v3851_v21 }
 0x263   : > { %17046 = vst [vmem:[#allocation58_spill] sm:$0xff] %v11352_v6  ;;  %v11357_v35 = vpop.eup %9545  ;;  %v3856_v54 = vor.u32 %v3855_v20, %v3854_v57  ;;  %v3859_v16 = vor.u32 %v3858_v33, %v3857_v13  ;;  %v3861_v45 = vshrl.u32 %v16969_v62, %v3846_v37  ;;  %v3287_v28 = vand.u32 2147483647, %v11337_v31 }
 0x264   : > { %17047 = vst [vmem:[#allocation59_spill] sm:$0xff] %v11357_v35  ;;  %v3289_v49 = vcvt.s32.f32 %v11334_v56  ;;  %v11362_v4 = vsub.s32 %v3995_v44, %v3998_v15  ;;  %v3860_v6 = vshll.u32 %v16968_v29, %v3845_v25  ;;  %v3799_v26 = vsub.s32 32, %v11320_v17 }
 0x265   : > { %v3804_v9 = vadd.s32 127, %v3803_v8  ;;  %v3839_v11 = vor.u32 8388608, %v3838_v3  ;;  %v8910_v5 = vadd.s32 4294967169, %v4043_v0  ;;  %vm3863_vm14 = vcmp.lt.s32.totalorder %v3844_v48, 1 }
 0x266   : > { %v4001_v59 = vsub.s32 0, %v11362_v4  ;;  %v3862_v21 = vor.u32 %v3861_v45, %v3860_v6  ;;  %vm3866_vm5 = vcmp.lt.s32.totalorder %v3844_v48, 4  ;;  %vm3865_vm9 = vcmp.lt.s32.totalorder %v3844_v48, 3 }
 0x267   : > { %v11367_v61 = vpop.eup %9547  ;;  %v3868_v31 = vsel %vm3866_vm5, %v3856_v54, 2102212464  ;;  %v3871_v44 = vsel %vm3863_vm14, %v3850_v7, %v3853_v51  ;;  %v3872_v56 = vsel %vm3866_vm5, %v3859_v16, 920167782  ;;  %v3847_v8 = vshrl.u32 %v16970_v53, %v3846_v37 }
 0x268   : > { %17048 = vst [vmem:[#allocation60_spill] sm:$0xff] %v11367_v61  ;;  %v8907_v25 = vmin.u32 %v4001_v59, %v11362_v4  ;;  %vm3864_vm11 = vcmp.lt.s32.totalorder %v3844_v48, 2  ;;  %v3873_v3 = vsel %vm3865_vm9, %v3856_v54, %v3872_v56  ;;  %v3875_v0 = vsel %vm3863_vm14, %v3853_v51, %v3856_v54 }
 0x269   : > { %v3874_v45 = vsel %vm3864_vm11, %v3871_v44, %v3873_v3  ;;  %v3879_v57 = vshll.u32 %v3839_v11, 8  ;;  %v17049_v20 = vand.u32 2147483647, %v11302_v2  ;;  %v3867_v6 = vsel %vm3863_vm14, %v3847_v8, %v3850_v7  ;;  %v17050_v3 = vld [vmem:[#allocation8_spill] sm:$0xff] }
 0x26a   : > { %v4003_v33 = vclz %v8907_v25  ;;  %v3869_v15 = vsel %vm3865_vm9, %v3853_v51, %v3868_v31  ;;  %v3876_v59 = vsel %vm3866_vm5, %v3862_v21, 1326507024  ;;  %v4049_v44 = vadd.s32 1, %v8910_v5 }
 0x26b   : > { %v4046_v13 = vand.u32 8388607, %v17049_v20  ;;  %v3877_v37 = vsel %vm3865_vm9, %v3859_v16, %v3876_v59  ;;  %v11383_v35 = vmul.u32.u64.low %v3879_v57, %v3874_v45  ;;  %v11384_v61 = vmul.u32.u64.high %v3879_v57, %v3874_v45, %v11383_v35 }
 0x26c   : > { %v3801_v56 = vshrl.u32 %v3783_v1, %v3799_v26  ;;  %v3805_v54 = vshll.u32 %v3804_v9, 23  ;;  %v3878_v11 = vsel %vm3864_vm11, %v3875_v0, %v3877_v37  ;;  %v11390_v25 = vadd.f32 %v17050_v3, %v10850_v24  ;;  %v11403_v9 = vpop.f32.mrb[11].mxu0 }
 0x26d   : > { %v8908_v7 = vadd.s32 4294967294, %v4003_v33  ;;  %v11392_v8 = vmul.u32.u64.low %v3879_v57, %v3878_v11  ;;  %v11393_v51 = vmul.u32.u64.high %v3879_v57, %v3878_v11, %v11392_v8  ;;  %vm4050_vm3 = vcmp.gt.s32.totalorder %v4049_v44, 0 }
 0x26e   : > { %17051 = vst [vmem:[#allocation8_spill] sm:$0xff] %v11390_v25  ;;  %v3800_v16 = vshll.u32 %v11258_v12, %v11320_v17  ;;  %v3870_v21 = vsel %vm3864_vm11, %v3867_v6, %v3869_v15  ;;  %v4047_v31 = vor.u32 8388608, %v4046_v13  ;;  %v4051_v5 = vsel %vm4050_vm3, %v4049_v44, 0 }
 0x26f   : > { %9549 = vcosq.f32 %v11330_v50  ;;  %v3889_v24 = vadd.s32 1, %v11384_v61  ;;  %v4053_v26 = vand.u32 31, %v4051_v5  ;;  %v11405_v45 = vmul.f32 %v3289_v49, %v3287_v28 }
 0x270   : > { %v11407_v0 = vor.u32 %v3801_v56, %v3800_v16  ;;  %v11409_v12 = vor.u32 4788187, %v3805_v54  ;;  %v3991_v17 = vadd.s32 %v11287_v27, %v11292_v36  ;;  %vm8909_vm14 = vcmp.lt.s32.totalorder %v8908_v7, 0 }
 0x271   : > { %v3886_v48 = vmul.u32 %v3879_v57, %v3870_v21  ;;  %vm3888_vm5 = vc.u32 %v11393_v51, %v11383_v35  ;;  %v4054_v20 = vsub.s32 32, %v4053_v26  ;;  %v11416_v33 = vshll.u32 %v4047_v31, 8 }
 0x272   : > { %v3890_v13 = vsel %vm3888_vm5, %v3889_v24, %v11384_v61  ;;  %v1650_v49 = vand.u32 2139095040, %v11390_v25  ;;  %v4056_v15 = vshll.u32 %v16970_v53, %v4053_v26  ;;  %v4006_v36 = vsel %vm8909_vm14, 0, %v8908_v7 }
 0x273   : > { %v3891_v6 = vadd.s32 %v3890_v13, %v3886_v48  ;;  %v4057_v59 = vshrl.u32 %v16965_v22, %v4054_v20  ;;  %v4060_v27 = vshrl.u32 %v16966_v55, %v4054_v20  ;;  %v4059_v57 = vshll.u32 %v16965_v22, %v4053_v26 }
 0x274   : > { %v4062_v37 = vshll.u32 %v16966_v55, %v4053_v26  ;;  %v4063_v61 = vshrl.u32 %v16967_v43, %v4054_v20  ;;  %v3807_v44 = vand.u32 2147483647, %v11409_v12  ;;  %v4052_v54 = vshrl.u32 %v4051_v5, 5 }
 0x275   : > { %v3892_v56 = vadd.s32 536870912, %v3891_v6  ;;  %v4058_v11 = vor.u32 %v4057_v59, %v4056_v15  ;;  %v4061_v8 = vor.u32 %v4060_v27, %v4059_v57  ;;  %v4065_v21 = vshll.u32 %v16967_v43, %v4053_v26 }
 0x276   : > { %v4064_v16 = vor.u32 %v4063_v61, %v4062_v37  ;;  %v4066_v31 = vshrl.u32 %v16968_v29, %v4054_v20  ;;  %v4007_v24 = vsub.s32 32, %v4006_v36  ;;  %v4068_v7 = vshll.u32 %v16968_v29, %v4053_v26 }
 0x277   : > { %v11429_v48 = vshrl.u32 %v3892_v56, 30  ;;  %v4069_v13 = vshrl.u32 %v16969_v62, %v4054_v20  ;;  %v4011_v1 = vsub.s32 4294967266, %v4006_v36  ;;  %v4055_v28 = vshrl.u32 %v16970_v53, %v4054_v20 }
 0x278   : > { %v4067_v12 = vor.u32 %v4066_v31, %v4065_v21  ;;  %v1651_v40 = vshrl.u32 %v1650_v49, 23  ;;  %vm4071_vm9 = vcmp.lt.s32.totalorder %v4052_v54, 1  ;;  %vm4074_vm11 = vcmp.lt.s32.totalorder %v4052_v54, 4 }
 0x279   : > { %17052 = vst [vmem:[#allocation61_spill] sm:$0xff] %v11429_v48  ;;  %v11434_v5 = vpop.eup %9549  ;;  %v3894_v15 = vshll.u32 %v11429_v48, 30  ;;  %v4070_v59 = vor.u32 %v4069_v13, %v4068_v7  ;;  %vm4073_vm3 = vcmp.lt.s32.totalorder %v4052_v54, 3  ;;  %v4076_v27 = vsel %vm4074_vm11, %v4064_v16, 2102212464 }
 0x27a   : > { %17053 = vst [vmem:[#allocation62_spill] sm:$0xff] %v11434_v5  ;;  %v4079_v57 = vsel %vm4071_vm9, %v4058_v11, %v4061_v8  ;;  %v4080_v37 = vsel %vm4074_vm11, %v4067_v12, 920167782  ;;  %vm16670_vm14 = vcmp.lt.s32.totalorder %v10962_v46, 0  ;;  %vm4072_vm5 = vcmp.lt.s32.totalorder %v4052_v54, 2 }
 0x27b   : > { %v11438_v26 = vsub.s32 %v3891_v6, %v3894_v15  ;;  %v4081_v61 = vsel %vm4073_vm3, %v4064_v16, %v4080_v37  ;;  %v4083_v20 = vsel %vm4071_vm9, %v4061_v8, %v4064_v16  ;;  %v4075_v56 = vsel %vm4071_vm9, %v4055_v28, %v4058_v11 }
 0x27c   : > { %v4077_v49 = vsel %vm4073_vm3, %v4061_v8, %v4076_v27  ;;  %v4082_v21 = vsel %vm4072_vm5, %v4079_v57, %v4081_v61  ;;  %v4084_v31 = vsel %vm4074_vm11, %v4070_v59, 1326507024  ;;  %v4009_v47 = vshrl.u32 %v3991_v17, %v4007_v24  ;;  %v11454_v59 = vpop.f32.mrb[11].mxu1 }
 0x27d   : > { %v3897_v7 = vsub.s32 0, %v11438_v26  ;;  %v4085_v13 = vsel %vm4073_vm3, %v4067_v12, %v4084_v31  ;;  %v11443_v5 = vmul.u32.u64.low %v11416_v33, %v4082_v21  ;;  %v11444_v48 = vmul.u32.u64.high %v11416_v33, %v4082_v21, %v11443_v5 }
 0x27e   : > { %v4012_v42 = vadd.s32 127, %v4011_v1  ;;  %v4086_v6 = vsel %vm4072_vm5, %v4083_v20, %v4085_v13  ;;  %v8818_v15 = vadd.s32 4294967169, %v1651_v40  ;;  %v3809_v16 = vcvt.s32.f32 %v11407_v0 }
 0x27f   : > { %v8903_v28 = vmin.u32 %v3897_v7, %v11438_v26  ;;  %v11451_v11 = vmul.u32.u64.low %v11416_v33, %v4086_v6  ;;  %v11452_v8 = vmul.u32.u64.high %v11416_v33, %v4086_v6, %v11451_v11  ;;  %v3291_v12 = vxor.u32 2147483648, %v11405_v45 }
 0x280   : > { %v4008_v27 = vshll.u32 %v11362_v4, %v4006_v36  ;;  %v4078_v17 = vsel %vm4072_vm5, %v4075_v56, %v4077_v49  ;;  %v1657_v1 = vadd.s32 1, %v8818_v15  ;;  %v11459_v24 = vmul.f32 %v3809_v16, %v3807_v44 }
 0x281   : > { %v3899_v40 = vclz %v8903_v28  ;;  %v4097_v0 = vadd.s32 1, %v11444_v48  ;;  %v17054_v57 = vand.u32 2147483647, %v11390_v25  ;;  %v4013_v20 = vshll.u32 %v4012_v42, 23 }
 0x282   : > { %v11464_v61 = vor.u32 %v4009_v47, %v4008_v27  ;;  %vm1658_vm9 = vcmp.gt.s32.totalorder %v1657_v1, 0  ;;  %v11468_v21 = vadd.f32 %v17050_v3, %v10925_v63  ;;  %v4094_v36 = vmul.u32 %v11416_v33, %v4078_v17 }
 0x283   : > { %v1654_v37 = vand.u32 8388607, %v17054_v57  ;;  %v8904_v4 = vadd.s32 4294967294, %v3899_v40  ;;  %vm4096_vm11 = vc.u32 %v11452_v8, %v11443_v5  ;;  %v1659_v44 = vsel %vm1658_vm9, %v1657_v1, 0 }
 0x284   : > { %17055 = vst [vmem:[#allocation63_spill] sm:$0xff] %v11468_v21  ;;  %v11476_v54 = vsel %vm16670_vm14, %v3291_v12, %v11405_v45  ;;  %v4098_v42 = vsel %vm4096_vm11, %v4097_v0, %v11444_v48  ;;  %v1661_v56 = vand.u32 31, %v1659_v44  ;;  %v3887_v49 = vadd.s32 %v11383_v35, %v11393_v51 }
 0x285   : > { %vm8905_vm3 = vcmp.lt.s32.totalorder %v8904_v4, 0  ;;  %v4099_v33 = vadd.s32 %v4098_v42, %v4094_v36  ;;  %v11483_v31 = vor.u32 4788187, %v4013_v20  ;;  %v1655_v16 = vor.u32 8388608, %v1654_v37 }
 0x286   : > { %v3902_v13 = vsel %vm8905_vm3, 0, %v8904_v4  ;;  %v1662_v6 = vsub.s32 32, %v1661_v56  ;;  %v1858_v28 = vand.u32 2139095040, %v11468_v21  ;;  %v11487_v48 = vshrl.u32 %v1659_v44, 5 }
 0x287   : > { %v3907_v45 = vsub.s32 4294967266, %v3902_v13  ;;  %v4100_v15 = vadd.s32 536870912, %v4099_v33  ;;  %v1664_v11 = vshll.u32 %v16970_v53, %v1661_v56  ;;  %v3903_v51 = vsub.s32 32, %v3902_v13 }
 0x288   : > { %v1665_v12 = vshrl.u32 %v16965_v22, %v1662_v6  ;;  %v1668_v35 = vshrl.u32 %v16966_v55, %v1662_v6  ;;  %v1667_v17 = vshll.u32 %v16965_v22, %v1661_v56  ;;  %v1671_v1 = vshrl.u32 %v16967_v43, %v1662_v6 }
 0x289   : > { %v11492_v27 = vshrl.u32 %v4100_v15, 30  ;;  %v3908_v40 = vadd.s32 127, %v3907_v45  ;;  %v1670_v0 = vshll.u32 %v16966_v55, %v1661_v56  ;;  %v1673_v57 = vshll.u32 %v16967_v43, %v1661_v56 }
 0x28a   : > { %v1674_v37 = vshrl.u32 %v16968_v29, %v1662_v6  ;;  %v4015_v20 = vand.u32 2147483647, %v11483_v31  ;;  %v1666_v36 = vor.u32 %v1665_v12, %v1664_v11  ;;  %v1669_v44 = vor.u32 %v1668_v35, %v1667_v17 }
 0x28b   : > { %17056 = vst [vmem:[#allocation64_spill] sm:$0xff] %v11492_v27  ;;  %v4102_v4 = vshll.u32 %v11492_v27, 30  ;;  %v17057_v42 = vand.u32 2147483647, %v10962_v46  ;;  %v17058_v15 = vmov 0  ;;  %v1672_v47 = vor.u32 %v1671_v1, %v1670_v0 }
 0x28c   : > { %v1675_v45 = vor.u32 %v1674_v37, %v1673_v57  ;;  %v1676_v63 = vshll.u32 %v16968_v29, %v1661_v56  ;;  %v1677_v7 = vshrl.u32 %v16969_v62, %v1662_v6  ;;  %vm3729_vm9 = vcmp.lt.s32.totalorder %v11026_v10, 0 }
 0x28d   : > { %vm11503_vm5 = vcmp.le.f32.partialorder %v17057_v42, 0.7853982  ;;  %v3905_v52 = vshrl.u32 %v3887_v49, %v3903_v51  ;;  %v11510_v31 = vsub.s32 %v4099_v33, %v4102_v4  ;;  %v11512_v27 = vshll.u32 %v1655_v16, 8 }
 0x28e   : > { %v17059_v15 = vsel %vm11503_vm5, 4294967295, %v17058_v15  ;;  %v1859_v11 = vshrl.u32 %v1858_v28, 23  ;;  %v3904_v12 = vshll.u32 %v11438_v26, %v3902_v13  ;;  %v3909_v35 = vshll.u32 %v3908_v40, 23 }
 0x28f   : > { %17060 = vst [vmem:[#allocation65_spill] sm:$0xff] %v17059_v15  ;;  %v1678_v17 = vor.u32 %v1677_v7, %v1676_v63  ;;  %vm1679_vm11 = vcmp.lt.s32.totalorder %v11487_v48, 1  ;;  %v4105_v1 = vsub.s32 0, %v11510_v31  ;;  %vm1681_vm3 = vcmp.lt.s32.totalorder %v11487_v48, 3 }
 0x290   : > { %vm1682_vm14 = vcmp.lt.s32.totalorder %v11487_v48, 4  ;;  %v1687_v56 = vsel %vm1679_vm11, %v1666_v36, %v1669_v44  ;;  %v17061_v49 = vand.u32 2147483647, %v11026_v10  ;;  %v1691_v63 = vsel %vm1679_vm11, %v1669_v44, %v1672_v47 }
 0x291   : > { %v1684_v26 = vsel %vm1682_vm14, %v1672_v47, 2102212464  ;;  %v1688_v13 = vsel %vm1682_vm14, %v1675_v45, 920167782  ;;  %v1692_v7 = vsel %vm1682_vm14, %v1678_v17, 1326507024  ;;  %v3906_v16 = vor.u32 %v3905_v52, %v3904_v12 }
 0x292   : > { %vm11523_vm2 = vcmp.le.f32.partialorder %v17061_v49, 0.7853982  ;;  %v1663_v28 = vshrl.u32 %v16970_v53, %v1662_v6  ;;  %vm1680_vm6 = vcmp.lt.s32.totalorder %v11487_v48, 2  ;;  %v1689_v51 = vsel %vm1681_vm3, %v1672_v47, %v1688_v13 }
 0x293   : > { %v3910_v40 = vor.u32 4788187, %v3909_v35  ;;  %v1690_v0 = vsel %vm1680_vm6, %v1687_v56, %v1689_v51  ;;  %v1693_v57 = vsel %vm1681_vm3, %v1675_v45, %v1692_v7  ;;  %v8826_v37 = vadd.s32 4294967169, %v1859_v11 }
 0x294   : > { %v8911_v4 = vmin.u32 %v4105_v1, %v11510_v31  ;;  %v1683_v52 = vsel %vm1679_vm11, %v1663_v28, %v1666_v36  ;;  %v1685_v6 = vsel %vm1681_vm3, %v1669_v44, %v1684_v26  ;;  %v1694_v42 = vsel %vm1680_vm6, %v1691_v63, %v1693_v57 }
 0x295   : > { %v17064_v47 = vand.u32 2147483647, %v11048_v34  ;;  %v11551_v45 = vmul.u32.u64.low %v11512_v27, %v1694_v42  ;;  %v11552_v11 = vmul.u32.u64.high %v11512_v27, %v1694_v42, %v11551_v45  ;;  %v3295_v36 = vsel %vm11503_vm5, %v10962_v46, %v11476_v54 }
 0x296   : > { %v11555_v35 = vmul.u32.u64.low %v11512_v27, %v1690_v0  ;;  %v11556_v17 = vmul.u32.u64.high %v11512_v27, %v1690_v0, %v11555_v35  ;;  %v17067_v44 = vcvt.s32.f32 %v11464_v61  ;;  %v4021_v56 = vsub.s32 4, %v11341_v23  ;;  %v11594_v0 = vpop.f32.mrb[12].mxu0 }
 0x297   : > { %vm11546_vm14 = vcmp.le.f32.partialorder %v17064_v47, 0.7853982  ;;  %v1865_v49 = vadd.s32 1, %v8826_v37  ;;  %9551 = vsinq.f32 %v11330_v50  ;;  %v17068_v26 = vxor.u32 2147483648, %v11459_v24 }
 0x298   : > { %v4018_v1 = vmul.f32 %v17067_v44, %v4015_v20  ;;  %vm3937_vm11 = vcmp.lt.s32.totalorder %v11048_v34, 0  ;;  %v3911_v63 = vand.u32 2147483647, %v3910_v40  ;;  %v4107_v7 = vclz %v8911_v4 }
 0x299   : > { %v3812_v13 = vsel %vm3729_vm9, %v17068_v26, %v11459_v24  ;;  %v1686_v54 = vsel %vm1680_vm6, %v1683_v52, %v1685_v6  ;;  %v16674_v61 = vand.u32 2147483647, %v11468_v21  ;;  %vm1866_vm3 = vcmp.gt.s32.totalorder %v1865_v49, 0 }
 0x29a   : > { %9553 = vcosq.f32 %v3295_v36  ;;  %v17069_v50 = vsub.s32 4, %v11239_v19  ;;  %v3913_v28 = vcvt.s32.f32 %v3906_v16  ;;  %vm1704_vm13 = vc.u32 %v11552_v11, %v11555_v35 }
 0x29b   : > { %v3815_v24 = vsel %vm11523_vm2, %v11026_v10, %v3812_v13  ;;  %v4019_v48 = vxor.u32 2147483648, %v4018_v1  ;;  %v11591_v51 = vsel %vm3937_vm11, %v4021_v56, %v11341_v23  ;;  %v1705_v40 = vadd.s32 1, %v11556_v17 }
 0x29c   : > { %v11581_v20 = vsel %vm3729_vm9, %v17069_v50, %v11239_v19  ;;  %v3914_v19 = vmul.f32 %v3913_v28, %v3911_v63  ;;  %v1702_v16 = vmul.u32 %v11512_v27, %v1686_v54  ;;  %v1867_v57 = vsel %vm1866_vm3, %v1865_v49, 0 }
 0x29d   : > { %v11599_v37 = vadd.f32 %v17050_v3, %v11019_v60  ;;  %9555 = vsinq.f32 %v3295_v36  ;;  %v8912_v4 = vadd.s32 4294967294, %v4107_v7  ;;  %v1706_v52 = vsel %vm1704_vm13, %v1705_v40, %v11556_v17 }
 0x29e   : > { %v1862_v23 = vand.u32 8388607, %v16674_v61  ;;  %9557 = vcosq.f32 %v3815_v24  ;;  %vm16680_vm6 = vcmp.lt.s32.totalorder %v11233_v38, 0  ;;  %v1707_v6 = vadd.s32 %v1706_v52, %v1702_v16 }
 0x29f   : > { %17070 = vst [vmem:[#allocation66_spill] sm:$0xff] %v11599_v37  ;;  %v1869_v42 = vand.u32 31, %v1867_v57  ;;  %9559 = vsinq.f32 %v3815_v24  ;;  %v4020_v60 = vsel %vm3937_vm11, %v4019_v48, %v4018_v1  ;;  %v3915_v45 = vxor.u32 2147483648, %v3914_v19 }
 0x2a0   : > { %v1708_v17 = vadd.s32 536870912, %v1707_v6  ;;  %v1754_v44 = vand.u32 2139095040, %v11599_v37  ;;  %vm8913_vm13 = vcmp.lt.s32.totalorder %v8912_v4, 0  ;;  %v1863_v56 = vor.u32 8388608, %v1862_v23 }
 0x2a1   : > { %v1870_v36 = vsub.s32 32, %v1869_v42  ;;  %v11614_v49 = vshrl.u32 %v1867_v57, 5  ;;  %v1872_v26 = vshll.u32 %v16970_v53, %v1869_v42  ;;  %v11617_v13 = vpop.eup %9551  ;;  %v1875_v7 = vshll.u32 %v16965_v22, %v1869_v42 }
 0x2a2   : > { %v11619_v63 = vshrl.u32 %v1708_v17, 30  ;;  %v1878_v50 = vshll.u32 %v16966_v55, %v1869_v42  ;;  %v1881_v24 = vshll.u32 %v16967_v43, %v1869_v42  ;;  %v1755_v23 = vshrl.u32 %v1754_v44, 23 }
 0x2a3   : > { %v1873_v1 = vshrl.u32 %v16965_v22, %v1870_v36  ;;  %v1876_v54 = vshrl.u32 %v16966_v55, %v1870_v36  ;;  %v1879_v28 = vshrl.u32 %v16967_v43, %v1870_v36  ;;  %v1882_v48 = vshrl.u32 %v16968_v29, %v1870_v36 }
 0x2a4   : > { %v11628_v40 = vpop.eup %9553  ;;  %v1710_v16 = vshll.u32 %v11619_v63, 30  ;;  %v1884_v47 = vshll.u32 %v16968_v29, %v1869_v42  ;;  %v1885_v27 = vshrl.u32 %v16969_v62, %v1870_v36  ;;  %v4023_v10 = vsel %vm11546_vm14, %v11048_v34, %v4020_v60 }
 0x2a5   : > { %17071 = vst [vmem:[#allocation67_spill] sm:$0xff] %v11628_v40  ;;  %v1874_v57 = vor.u32 %v1873_v1, %v1872_v26  ;;  %v1877_v52 = vor.u32 %v1876_v54, %v1875_v7  ;;  %v1880_v17 = vor.u32 %v1879_v28, %v1878_v50  ;;  %v1883_v61 = vor.u32 %v1882_v48, %v1881_v24 }
 0x2a6   : > { %v17072_v15 = vand.u32 2147483647, %v11233_v38  ;;  %v3916_v26 = vsel %vm16680_vm6, %v3915_v45, %v3914_v19  ;;  %v11644_v44 = vsub.s32 %v1707_v6, %v1710_v16  ;;  %v11646_v1 = vshll.u32 %v1863_v56, 8 }
 0x2a7   : > { %v11648_v42 = vpop.eup %9555  ;;  %v4110_v7 = vsel %vm8913_vm13, 0, %v8912_v4  ;;  %v1886_v54 = vor.u32 %v1885_v27, %v1884_v47  ;;  %vm1887_vm11 = vcmp.lt.s32.totalorder %v11614_v49, 1  ;;  %vm1890_vm3 = vcmp.lt.s32.totalorder %v11614_v49, 4 }
 0x2a8   : > { %vm11638_vm9 = vcmp.le.f32.partialorder %v17072_v15, 0.7853982  ;;  %17075 = vst [vmem:[#allocation68_spill] sm:$0xff] %v11648_v42  ;;  %v11653_v15 = vpop.eup %9557  ;;  %v1713_v50 = vsub.s32 0, %v11644_v44  ;;  %v1895_v19 = vsel %vm1887_vm11, %v1874_v57, %v1877_v52  ;;  %v8822_v6 = vadd.s32 4294967169, %v1755_v23 }
 0x2a9   : > { %17076 = vst [vmem:[#allocation69_spill] sm:$0xff] %v11653_v15  ;;  %v11659_v45 = vpop.eup %9559  ;;  %vm1888_vm6 = vcmp.lt.s32.totalorder %v11614_v49, 2  ;;  %vm1889_vm13 = vcmp.lt.s32.totalorder %v11614_v49, 3  ;;  %v1892_v4 = vsel %vm1890_vm3, %v1880_v17, 2102212464  ;;  %v1871_v56 = vshrl.u32 %v16970_v53, %v1870_v36 }
 0x2aa   : > { %17077 = vst [vmem:[#allocation70_spill] sm:$0xff] %v11659_v45  ;;  %v1896_v27 = vsel %vm1890_vm3, %v1883_v61, 920167782  ;;  %v8819_v47 = vmin.u32 %v1713_v50, %v11644_v44  ;;  %v1899_v24 = vsel %vm1887_vm11, %v1877_v52, %v1880_v17  ;;  %v4111_v48 = vsub.s32 32, %v4110_v7 }
 0x2ab   : > { %v1897_v28 = vsel %vm1889_vm13, %v1880_v17, %v1896_v27  ;;  %v4115_v16 = vsub.s32 4294967266, %v4110_v7  ;;  %v1900_v60 = vsel %vm1890_vm3, %v1886_v54, 1326507024  ;;  %v1891_v34 = vsel %vm1887_vm11, %v1871_v56, %v1874_v57 }
 0x2ac   : > { %v1898_v23 = vsel %vm1888_vm6, %v1895_v19, %v1897_v28  ;;  %v1893_v15 = vsel %vm1889_vm13, %v1877_v52, %v1892_v4  ;;  %v1901_v45 = vsel %vm1889_vm13, %v1883_v61, %v1900_v60  ;;  %v1761_v40 = vadd.s32 1, %v8822_v6  ;;  %v11691_v6 = vpop.f32.mrb[12].mxu1 }
 0x2ad   : > { %v1715_v42 = vclz %v8819_v47  ;;  %v1902_v36 = vsel %vm1888_vm6, %v1899_v24, %v1901_v45  ;;  %v11674_v50 = vmul.u32.u64.low %v11646_v1, %v1898_v23  ;;  %v11675_v27 = vmul.u32.u64.high %v11646_v1, %v1898_v23, %v11674_v50 }
 0x2ae   : > { %v4095_v17 = vadd.s32 %v11443_v5, %v11452_v8  ;;  %v11681_v54 = vmul.u32.u64.low %v11646_v1, %v1902_v36  ;;  %v11682_v19 = vmul.u32.u64.high %v11646_v1, %v1902_v36, %v11681_v54  ;;  %vm1762_vm11 = vcmp.gt.s32.totalorder %v1761_v40, 0 }
 0x2af   : > { %9561 = vcosq.f32 %v4023_v10  ;;  %v11687_v61 = vsel %vm11638_vm9, %v11233_v38, %v3916_v26  ;;  %v17078_v57 = vand.u32 2147483647, %v11599_v37  ;;  %v1763_v60 = vsel %vm1762_vm11, %v1761_v40, 0 }
 0x2b0   : > { %v4113_v45 = vshrl.u32 %v4095_v17, %v4111_v48  ;;  %v4116_v4 = vadd.s32 127, %v4115_v16  ;;  %v1894_v5 = vsel %vm1888_vm6, %v1891_v34, %v1893_v15  ;;  %v1765_v8 = vand.u32 31, %v1763_v60 }
 0x2b1   : > { %v1758_v52 = vand.u32 8388607, %v17078_v57  ;;  %v17079_v47 = vsel %vm11252_vm8, 0, %v11325_v39  ;;  %9563 = vsinq.f32 %v4023_v10  ;;  %v8820_v26 = vadd.s32 4294967294, %v1715_v42 }
 0x2b2   : > { %v11699_v56 = vadd.s32 3, %v17079_v47  ;;  %v1913_v28 = vadd.s32 1, %v11675_v27  ;;  %v17081_v40 = vsel %vm11523_vm2, 0, %v11581_v20  ;;  %v17083_v34 = vsel %vm11546_vm14, 0, %v11591_v51 }
 0x2b3   : > { %v11706_v24 = vadd.s32 3, %v17081_v40  ;;  %v11712_v49 = vadd.s32 3, %v17083_v34  ;;  %9565 = vcosq.f32 %v11687_v61  ;;  %v4112_v18 = vshll.u32 %v11510_v31, %v4110_v7 }
 0x2b4   : > { %17080 = vst [vmem:[#allocation71_spill] sm:$0xff] %v11699_v56  ;;  %v1910_v10 = vmul.u32 %v11646_v1, %v1894_v5  ;;  %vm1912_vm8 = vc.u32 %v11682_v19, %v11674_v50  ;;  %v1766_v39 = vsub.s32 32, %v1765_v8  ;;  %v11721_v33 = vadd.f32 %v17050_v3, %v11082_v14 }
 0x2b5   : > { %17082 = vst [vmem:[#allocation72_spill] sm:$0xff] %v11706_v24  ;;  %17084 = vst [vmem:[#allocation73_spill] sm:$0xff] %v11712_v49  ;;  %v11723_v20 = vor.u32 %v4113_v45, %v4112_v18  ;;  %v4117_v12 = vshll.u32 %v4116_v4, 23  ;;  %v1914_v51 = vsel %vm1912_vm8, %v1913_v28, %v11675_v27  ;;  %v1759_v42 = vor.u32 8388608, %v1758_v52 }
 0x2b6   : > { %17085 = vst [vmem:[#allocation74_spill] sm:$0xff] %v11721_v33  ;;  %vm8821_vm2 = vcmp.lt.s32.totalorder %v8820_v26, 0  ;;  %v1915_v15 = vadd.s32 %v1914_v51, %v1910_v10  ;;  %v1769_v31 = vshrl.u32 %v16965_v22, %v1766_v39  ;;  %v1772_v1 = vshrl.u32 %v16966_v55, %v1766_v39 }
 0x2b7   : > { %v1768_v7 = vshll.u32 %v16970_v53, %v1765_v8  ;;  %v1771_v48 = vshll.u32 %v16965_v22, %v1765_v8  ;;  %v1774_v16 = vshll.u32 %v16966_v55, %v1765_v8  ;;  %v1775_v14 = vshrl.u32 %v16967_v43, %v1766_v39 }
 0x2b8   : > { %v1916_v3 = vadd.s32 536870912, %v1915_v15  ;;  %v1764_v23 = vshrl.u32 %v1763_v60, 5  ;;  %v1777_v36 = vshll.u32 %v16967_v43, %v1765_v8  ;;  %v1778_v27 = vshrl.u32 %v16968_v29, %v1766_v39 }
 0x2b9   : > { %v11734_v17 = vor.u32 4788187, %v4117_v12  ;;  %v1770_v54 = vor.u32 %v1769_v31, %v1768_v7  ;;  %v1773_v57 = vor.u32 %v1772_v1, %v1771_v48  ;;  %v1776_v52 = vor.u32 %v1775_v14, %v1774_v16  ;;  %v11736_v45 = vpop.eup %9561 }
 0x2ba   : > { %17086 = vst [vmem:[#allocation75_spill] sm:$0xff] %v11736_v45  ;;  %v11738_v4 = vshrl.u32 %v1916_v3, 30  ;;  %v1779_v5 = vor.u32 %v1778_v27, %v1777_v36  ;;  %v1780_v47 = vshll.u32 %v16968_v29, %v1765_v8  ;;  %v1781_v28 = vshrl.u32 %v16969_v62, %v1766_v39 }
 0x2bb   : > { %v11743_v60 = vsel %vm8821_vm2, 0, %v8820_v26  ;;  %v1767_v40 = vshrl.u32 %v16970_v53, %v1766_v39  ;;  %v1799_v34 = vshll.u32 %v1759_v42, 8  ;;  %v1962_v18 = vand.u32 2139095040, %v11721_v33  ;;  %v11747_v10 = vpop.eup %9563 }
 0x2bc   : > { %17087 = vst [vmem:[#allocation76_spill] sm:$0xff] %v11747_v10  ;;  %v1918_v12 = vshll.u32 %v11738_v4, 30  ;;  %v1782_v51 = vor.u32 %v1781_v28, %v1780_v47  ;;  %vm1783_vm14 = vcmp.lt.s32.totalorder %v1764_v23, 1  ;;  %vm1786_vm6 = vcmp.lt.s32.totalorder %v1764_v23, 4 }
 0x2bd   : > { %v11750_v31 = vpop.eup %9565  ;;  %vm1785_vm3 = vcmp.lt.s32.totalorder %v1764_v23, 3  ;;  %v1788_v8 = vsel %vm1786_vm6, %v1776_v52, 2102212464  ;;  %v1791_v26 = vsel %vm1783_vm14, %v1770_v54, %v1773_v57  ;;  %v1792_v1 = vsel %vm1786_vm6, %v1779_v5, 920167782 }
 0x2be   : > { %17088 = vst [vmem:[#allocation77_spill] sm:$0xff] %v11750_v31  ;;  %v1723_v39 = vsub.s32 4294967266, %v11743_v60  ;;  %v11756_v42 = vsub.s32 %v1915_v15, %v1918_v12  ;;  %vm1784_vm13 = vcmp.lt.s32.totalorder %v1764_v23, 2  ;;  %v1793_v7 = vsel %vm1785_vm3, %v1776_v52, %v1792_v1 }
 0x2bf   : > { %v1787_v48 = vsel %vm1783_vm14, %v1767_v40, %v1770_v54  ;;  %v1794_v16 = vsel %vm1784_vm13, %v1791_v26, %v1793_v7  ;;  %v16688_v14 = vand.u32 2147483647, %v11721_v33  ;;  %v1963_v3 = vshrl.u32 %v1962_v18, 23 }
 0x2c0   : > { %v1921_v36 = vsub.s32 0, %v11756_v42  ;;  %v1789_v27 = vsel %vm1785_vm3, %v1773_v57, %v1788_v8  ;;  %v1795_v47 = vsel %vm1783_vm14, %v1773_v57, %v1776_v52  ;;  %v1796_v28 = vsel %vm1786_vm6, %v1782_v51, 1326507024 }
 0x2c1   : > { %v1797_v15 = vsel %vm1785_vm3, %v1779_v5, %v1796_v28  ;;  %v11767_v12 = vmul.u32.u64.low %v1799_v34, %v1794_v16  ;;  %v11768_v45 = vmul.u32.u64.high %v1799_v34, %v1794_v16, %v11767_v12  ;;  %v11773_v54 = vadd.f32 %v10393_v30, %v11218_v41 }
 0x2c2   : > { %v1719_v40 = vsub.s32 32, %v11743_v60  ;;  %v1724_v18 = vadd.s32 127, %v1723_v39  ;;  %v8827_v26 = vmin.u32 %v1921_v36, %v11756_v42  ;;  %v1798_v8 = vsel %vm1784_vm13, %v1795_v47, %v1797_v15  ;;  %v11790_v36 = vpop.f32.mrb[13].mxu0 }
 0x2c3   : > { %17089 = vst [vmem:[#allocation78_spill] sm:$0xff] %v11773_v54  ;;  %v1790_v57 = vsel %vm1784_vm13, %v1787_v48, %v1789_v27  ;;  %v11779_v52 = vmul.u32.u64.low %v1799_v34, %v1798_v8  ;;  %v11780_v51 = vmul.u32.u64.high %v1799_v34, %v1798_v8, %v11779_v52  ;;  %v8830_v5 = vadd.s32 4294967169, %v1963_v3 }
 0x2c4   : > { %9567 = vsinq.f32 %v11687_v61  ;;  %v4121_v1 = vcvt.s32.f32 %v11723_v20  ;;  %v1703_v41 = vadd.s32 %v11555_v35, %v11552_v11  ;;  %v1923_v7 = vclz %v8827_v26 }
 0x2c5   : > { %v4119_v39 = vand.u32 2147483647, %v11734_v17  ;;  %v1720_v16 = vshll.u32 %v11644_v44, %v11743_v60  ;;  %v1809_v23 = vadd.s32 1, %v11768_v45  ;;  %v1969_v48 = vadd.s32 1, %v8830_v5 }
 0x2c6   : > { %v1721_v27 = vshrl.u32 %v1703_v41, %v1719_v40  ;;  %v1725_v3 = vshll.u32 %v1724_v18, 23  ;;  %v8828_v47 = vadd.s32 4294967294, %v1923_v7  ;;  %v1806_v61 = vmul.u32 %v1799_v34, %v1790_v57 }
 0x2c7   : > { %vm1808_vm11 = vc.u32 %v11780_v51, %v11767_v12  ;;  %v1966_v11 = vand.u32 8388607, %v16688_v14  ;;  %vm1970_vm8 = vcmp.gt.s32.totalorder %v1969_v48, 0  ;;  %v16689_v35 = vand.u32 2147483647, %v11773_v54 }
 0x2c8   : > { %vm8829_vm2 = vcmp.lt.s32.totalorder %v8828_v47, 0  ;;  %v1810_v44 = vsel %vm1808_vm11, %v1809_v23, %v11768_v45  ;;  %v1971_v20 = vsel %vm1970_vm8, %v1969_v48, 0  ;;  %v2482_v17 = vand.u32 2139095040, %v11773_v54 }
 0x2c9   : > { %v11800_v28 = vsel %vm8829_vm2, 0, %v8828_v47  ;;  %v1811_v34 = vadd.s32 %v1810_v44, %v1806_v61  ;;  %v1973_v15 = vand.u32 31, %v1971_v20  ;;  %v11802_v40 = vmul.f32 %v4121_v1, %v4119_v39 }
 0x2ca   : > { %v11804_v18 = vor.u32 %v1721_v27, %v1720_v16  ;;  %v11806_v26 = vor.u32 4788187, %v1725_v3  ;;  %v1911_v8 = vadd.s32 %v11674_v50, %v11682_v19  ;;  %v1967_v45 = vor.u32 8388608, %v1966_v11 }
 0x2cb   : > { %v1812_v57 = vadd.s32 536870912, %v1811_v34  ;;  %v1974_v52 = vsub.s32 32, %v1973_v15  ;;  %v11812_v5 = vand.u32 8388607, %v16689_v35  ;;  %v1931_v41 = vsub.s32 4294967266, %v11800_v28 }
 0x2cc   : > { %v1972_v7 = vshrl.u32 %v1971_v20, 5  ;;  %v1976_v1 = vshll.u32 %v16970_v53, %v1973_v15  ;;  %v2483_v39 = vshrl.u32 %v2482_v17, 23  ;;  %v1979_v48 = vshll.u32 %v16965_v22, %v1973_v15 }
 0x2cd   : > { %v11816_v16 = vshrl.u32 %v1812_v57, 30  ;;  %v1977_v23 = vshrl.u32 %v16965_v22, %v1974_v52  ;;  %v1980_v50 = vshrl.u32 %v16966_v55, %v1974_v52  ;;  %v1982_v27 = vshll.u32 %v16966_v55, %v1973_v15 }
 0x2ce   : > { %v11821_v19 = vpop.eup %9567  ;;  %v1983_v3 = vshrl.u32 %v16967_v43, %v1974_v52  ;;  %v1985_v47 = vshll.u32 %v16967_v43, %v1973_v15  ;;  %v1986_v61 = vshrl.u32 %v16968_v29, %v1974_v52  ;;  %v11828_v17 = vshll.u32 %v1967_v45, 8 }
 0x2cf   : > { %17090 = vst [vmem:[#allocation79_spill] sm:$0xff] %v11816_v16  ;;  %17091 = vst [vmem:[#allocation80_spill] sm:$0xff] %v11821_v19  ;;  %v1814_v11 = vshll.u32 %v11816_v16, 30  ;;  %v1978_v44 = vor.u32 %v1977_v23, %v1976_v1  ;;  %v1981_v20 = vor.u32 %v1980_v50, %v1979_v48  ;;  %vm1649_vm14 = vcmp.lt.s32.totalorder %v11390_v25, 0 }
 0x2d0   : > { %v1927_v57 = vsub.s32 32, %v11800_v28  ;;  %v1984_v14 = vor.u32 %v1983_v3, %v1982_v27  ;;  %v1987_v35 = vor.u32 %v1986_v61, %v1985_v47  ;;  %v8850_v60 = vadd.s32 4294967169, %v2483_v39 }
 0x2d1   : > { %v1932_v10 = vadd.s32 127, %v1931_v41  ;;  %v11832_v49 = vsub.s32 %v1811_v34, %v1814_v11  ;;  %v1988_v56 = vshll.u32 %v16968_v29, %v1973_v15  ;;  %v1989_v24 = vshrl.u32 %v16969_v62, %v1974_v52 }
 0x2d2   : > { %v1975_v16 = vshrl.u32 %v16970_v53, %v1974_v52  ;;  %vm1991_vm6 = vcmp.lt.s32.totalorder %v1972_v7, 1  ;;  %vm1992_vm3 = vcmp.lt.s32.totalorder %v1972_v7, 2  ;;  %vm1994_vm13 = vcmp.lt.s32.totalorder %v1972_v7, 4 }
 0x2d3   : > { %v1817_v45 = vsub.s32 0, %v11832_v49  ;;  %v1990_v1 = vor.u32 %v1989_v24, %v1988_v56  ;;  %v1996_v23 = vsel %vm1994_vm13, %v1984_v14, 2102212464  ;;  %v1999_v48 = vsel %vm1991_vm6, %v1978_v44, %v1981_v20 }
 0x2d4   : > { %v17092_v50 = vand.u32 2147483647, %v11390_v25  ;;  %vm1993_vm8 = vcmp.lt.s32.totalorder %v1972_v7, 3  ;;  %v1995_v34 = vsel %vm1991_vm6, %v1975_v16, %v1978_v44  ;;  %v2000_v15 = vsel %vm1994_vm13, %v1987_v35, 920167782 }
 0x2d5   : > { %v2003_v39 = vsel %vm1991_vm6, %v1981_v20, %v1984_v14  ;;  %vm16695_vm2 = vcmp.lt.s32.totalorder %v11302_v2, 0  ;;  %v8823_v52 = vmin.u32 %v1817_v45, %v11832_v49  ;;  %v1997_v27 = vsel %vm1993_vm8, %v1981_v20, %v1996_v23 }
 0x2d6   : > { %vm11840_vm11 = vcmp.le.f32.partialorder %v17092_v50, 0.7853982  ;;  %v2001_v3 = vsel %vm1993_vm8, %v1984_v14, %v2000_v15  ;;  %v2004_v47 = vsel %vm1994_vm13, %v1990_v1, 1326507024  ;;  %v1929_v56 = vshrl.u32 %v1911_v8, %v1927_v57 }
 0x2d7   : > { %v1933_v24 = vshll.u32 %v1932_v10, 23  ;;  %v2002_v61 = vsel %vm1992_vm3, %v1999_v48, %v2001_v3  ;;  %v2005_v11 = vsel %vm1993_vm8, %v1987_v35, %v2004_v47  ;;  %v1819_v50 = vclz %v8823_v52  ;;  %v11883_v52 = vpop.f32.mrb[13].mxu1 }
 0x2d8   : > { %v2006_v31 = vsel %vm1992_vm3, %v2003_v39, %v2005_v11  ;;  %v11849_v19 = vmul.u32.u64.low %v11828_v17, %v2002_v61  ;;  %v11850_v16 = vmul.u32.u64.high %v11828_v17, %v2002_v61, %v11849_v19  ;;  %v1928_v44 = vshll.u32 %v11756_v42, %v11800_v28 }
 0x2d9   : > { %v1998_v20 = vsel %vm1992_vm3, %v1995_v34, %v1997_v27  ;;  %v11857_v14 = vmul.u32.u64.low %v11828_v17, %v2006_v31  ;;  %v11858_v8 = vmul.u32.u64.high %v11828_v17, %v2006_v31, %v11857_v14  ;;  %v4123_v10 = vxor.u32 2147483648, %v11802_v40 }
 0x2da   : > { %v17095_v35 = vsub.s32 4, %v11619_v63  ;;  %v8824_v45 = vadd.s32 4294967294, %v1819_v50  ;;  %v2489_v1 = vadd.s32 1, %v8850_v60  ;;  %v1727_v23 = vand.u32 2147483647, %v11806_v26 }
 0x2db   : > { %v1729_v42 = vcvt.s32.f32 %v11804_v18  ;;  %v11870_v28 = vor.u32 %v1929_v56, %v1928_v44  ;;  %v11872_v7 = vor.u32 4788187, %v1933_v24  ;;  %v2014_v31 = vmul.u32 %v11828_v17, %v1998_v20 }
 0x2dc   : > { %v11866_v57 = vsel %vm1649_vm14, %v17095_v35, %v11619_v63  ;;  %vm8825_vm6 = vcmp.lt.s32.totalorder %v8824_v45, 0  ;;  %v2017_v48 = vadd.s32 1, %v11850_v16  ;;  %vm2490_vm3 = vcmp.gt.s32.totalorder %v2489_v1, 0 }
 0x2dd   : > { %v1822_v34 = vsel %vm8825_vm6, 0, %v8824_v45  ;;  %vm2016_vm13 = vc.u32 %v11858_v8, %v11849_v19  ;;  %v2487_v63 = vor.u32 8388608, %v11812_v5  ;;  %v2491_v60 = vsel %vm2490_vm3, %v2489_v1, 0 }
 0x2de   : > { %v1736_v18 = vsel %vm11840_vm11, 0, %v11866_v57  ;;  %v1823_v26 = vsub.s32 32, %v1822_v34  ;;  %v1827_v15 = vsub.s32 4294967266, %v1822_v34  ;;  %v2018_v39 = vsel %vm2016_vm13, %v2017_v48, %v11850_v16 }
 0x2df   : > { %v11888_v17 = vsel %vm16695_vm2, %v4123_v10, %v11802_v40  ;;  %v11890_v27 = vmul.f32 %v1729_v42, %v1727_v23  ;;  %v2019_v3 = vadd.s32 %v2018_v39, %v2014_v31  ;;  %v2493_v5 = vand.u32 31, %v2491_v60 }
 0x2e0   : > { %v1935_v47 = vand.u32 2147483647, %v11872_v7  ;;  %v1937_v56 = vcvt.s32.f32 %v11870_v28  ;;  %v1807_v24 = vadd.s32 %v11767_v12, %v11780_v51  ;;  %v11898_v61 = vadd.f32 %v10393_v30, %v11294_v32 }
 0x2e1   : > { %v1828_v11 = vadd.s32 127, %v1827_v15  ;;  %v2020_v50 = vadd.s32 536870912, %v2019_v3  ;;  %v2494_v16 = vsub.s32 32, %v2493_v5  ;;  %v11900_v40 = vshll.u32 %v2487_v63, 8 }
 0x2e2   : > { %17096 = vst [vmem:[#allocation81_spill] sm:$0xff] %v11898_v61  ;;  %v1824_v44 = vshll.u32 %v11832_v49, %v1822_v34  ;;  %v1825_v20 = vshrl.u32 %v1807_v24, %v1823_v26  ;;  %v2492_v14 = vshrl.u32 %v2491_v60, 5  ;;  %v2496_v10 = vshll.u32 %v16970_v53, %v2493_v5 }
 0x2e3   : > { %v11904_v35 = vshrl.u32 %v2020_v50, 30  ;;  %v2497_v45 = vshrl.u32 %v16965_v22, %v2494_v16  ;;  %v2499_v12 = vshll.u32 %v16965_v22, %v2493_v5  ;;  %v2500_v32 = vshrl.u32 %v16966_v55, %v2494_v16 }
 0x2e4   : > { %v2502_v51 = vshll.u32 %v16966_v55, %v2493_v5  ;;  %v2503_v1 = vshrl.u32 %v16967_v43, %v2494_v16  ;;  %v2505_v23 = vshll.u32 %v16967_v43, %v2493_v5  ;;  %v2506_v49 = vshrl.u32 %v16968_v29, %v2494_v16 }
 0x2e5   : > { %17097 = vst [vmem:[#allocation82_spill] sm:$0xff] %v11904_v35  ;;  %v1829_v42 = vshll.u32 %v1828_v11, 23  ;;  %v2022_v28 = vshll.u32 %v11904_v35, 30  ;;  %v2498_v7 = vor.u32 %v2497_v45, %v2496_v10  ;;  %v2501_v31 = vor.u32 %v2500_v32, %v2499_v12 }
 0x2e6   : > { %v2504_v48 = vor.u32 %v2503_v1, %v2502_v51  ;;  %v2507_v34 = vor.u32 %v2506_v49, %v2505_v23  ;;  %v2508_v63 = vshll.u32 %v16968_v29, %v2493_v5  ;;  %v2509_v60 = vshrl.u32 %v16969_v62, %v2494_v16 }
 0x2e7   : > { %v17098_v26 = vand.u32 2147483647, %v11302_v2  ;;  %v17099_v15 = vmov 0  ;;  %v1826_v39 = vor.u32 %v1825_v20, %v1824_v44  ;;  %v11922_v24 = vsub.s32 %v2019_v3, %v2022_v28 }
 0x2e8   : > { %v2495_v11 = vshrl.u32 %v16970_v53, %v2494_v16  ;;  %v2690_v50 = vand.u32 2139095040, %v11898_v61  ;;  %vm1857_vm6 = vcmp.lt.s32.totalorder %v11468_v21, 0  ;;  %v2510_v10 = vor.u32 %v2509_v60, %v2508_v63 }
 0x2e9   : > { %vm11918_vm8 = vcmp.le.f32.partialorder %v17098_v26, 0.7853982  ;;  %vm2511_vm3 = vcmp.lt.s32.totalorder %v2492_v14, 1  ;;  %vm2513_vm13 = vcmp.lt.s32.totalorder %v2492_v14, 3  ;;  %vm2514_vm2 = vcmp.lt.s32.totalorder %v2492_v14, 4 }
 0x2ea   : > { %v17100_v15 = vsel %vm11918_vm8, 4294967295, %v17099_v15  ;;  %v2025_v5 = vsub.s32 0, %v11922_v24  ;;  %v2516_v45 = vsel %vm2514_vm2, %v2504_v48, 2102212464  ;;  %v2519_v12 = vsel %vm2511_vm3, %v2498_v7, %v2501_v31 }
 0x2eb   : > { %17101 = vst [vmem:[#allocation83_spill] sm:$0xff] %v17100_v15  ;;  %v2520_v32 = vsel %vm2514_vm2, %v2507_v34, 920167782  ;;  %v1830_v51 = vor.u32 4788187, %v1829_v42  ;;  %vm2512_vm10 = vcmp.lt.s32.totalorder %v2492_v14, 2  ;;  %v2523_v44 = vsel %vm2511_vm3, %v2501_v31, %v2504_v48 }
 0x2ec   : > { %v2521_v3 = vsel %vm2513_vm13, %v2504_v48, %v2520_v32  ;;  %v8831_v16 = vmin.u32 %v2025_v5, %v11922_v24  ;;  %v2515_v20 = vsel %vm2511_vm3, %v2495_v11, %v2498_v7  ;;  %v2524_v23 = vsel %vm2514_vm2, %v2510_v10, 1326507024 }
 0x2ed   : > { %v2522_v1 = vsel %vm2512_vm10, %v2519_v12, %v2521_v3  ;;  %v17102_v49 = vand.u32 2147483647, %v11468_v21  ;;  %v2517_v63 = vsel %vm2513_vm13, %v2501_v31, %v2516_v45  ;;  %v2525_v42 = vsel %vm2513_vm13, %v2507_v34, %v2524_v23 }
 0x2ee   : > { %v11940_v60 = vmul.u32.u64.low %v11900_v40, %v2522_v1  ;;  %v11941_v26 = vmul.u32.u64.high %v11900_v40, %v2522_v1, %v11940_v60  ;;  %v1731_v7 = vxor.u32 2147483648, %v11890_v27  ;;  %v1941_v48 = vsub.s32 4, %v11738_v4 }
 0x2ef   : > { %vm11933_vm4 = vcmp.le.f32.partialorder %v17102_v49, 0.7853982  ;;  %v2027_v11 = vclz %v8831_v16  ;;  %v2526_v10 = vsel %vm2512_vm10, %v2523_v44, %v2525_v42  ;;  %v1938_v5 = vmul.f32 %v1937_v56, %v1935_v47 }
 0x2f0   : > { %v1831_v12 = vand.u32 2147483647, %v1830_v51  ;;  %v11948_v32 = vmul.u32.u64.low %v11900_v40, %v2526_v10  ;;  %v11949_v3 = vmul.u32.u64.high %v11900_v40, %v2526_v10, %v11948_v32  ;;  %v2518_v34 = vsel %vm2512_vm10, %v2515_v20, %v2517_v63  ;;  %v11977_v20 = vpop.f32.mrb[14].mxu0 }
 0x2f1   : > { %v8832_v31 = vadd.s32 4294967294, %v2027_v11  ;;  %v16698_v45 = vand.u32 2147483647, %v11898_v61  ;;  %v2691_v1 = vshrl.u32 %v2690_v50, 23  ;;  %v4127_v23 = vsel %vm11918_vm8, %v11302_v2, %v11888_v17 }
 0x2f2   : > { %v1833_v16 = vcvt.s32.f32 %v1826_v39  ;;  %v2537_v44 = vadd.s32 1, %v11941_v26  ;;  %v11960_v47 = vadd.f32 %v10393_v30, %v11403_v9  ;;  %v1732_v56 = vsel %vm1649_vm14, %v1731_v7, %v11890_v27 }
 0x2f3   : > { %v11968_v14 = vsel %vm1857_vm6, %v1941_v48, %v11738_v4  ;;  %vm8833_vm10 = vcmp.lt.s32.totalorder %v8832_v31, 0  ;;  %v8858_v50 = vadd.s32 4294967169, %v2691_v1  ;;  %v1939_v51 = vxor.u32 2147483648, %v1938_v5 }
 0x2f4   : > { %v1834_v17 = vmul.f32 %v1833_v16, %v1831_v12  ;;  %v2534_v39 = vmul.u32 %v11900_v40, %v2518_v34  ;;  %vm2536_vm2 = vc.u32 %v11949_v3, %v11940_v60  ;;  %9569 = vcosq.f32 %v4127_v23 }
 0x2f5   : > { %vm16705_vm3 = vcmp.lt.s32.totalorder %v11599_v37, 0  ;;  %v2538_v9 = vsel %vm2536_vm2, %v2537_v44, %v11941_v26  ;;  %v2694_v27 = vand.u32 8388607, %v16698_v45  ;;  %v2030_v4 = vsel %vm8833_vm10, 0, %v8832_v31 }
 0x2f6   : > { %v2539_v49 = vadd.s32 %v2538_v9, %v2534_v39  ;;  %v2697_v63 = vadd.s32 1, %v8858_v50  ;;  %v2586_v42 = vand.u32 2139095040, %v11960_v47  ;;  %9571 = vsinq.f32 %v4127_v23 }
 0x2f7   : > { %v1735_v40 = vsel %vm11840_vm11, %v11390_v25, %v1732_v56  ;;  %v11987_v26 = vadd.s32 3, %v1736_v18  ;;  %v1940_v48 = vsel %vm1857_vm6, %v1939_v51, %v1938_v5  ;;  %v1835_v11 = vxor.u32 2147483648, %v1834_v17 }
 0x2f8   : > { %v2540_v10 = vadd.s32 536870912, %v2539_v49  ;;  %vm2698_vm14 = vcmp.gt.s32.totalorder %v2697_v63, 0  ;;  %v2031_v12 = vsub.s32 32, %v2030_v4  ;;  %v2035_v32 = vsub.s32 4294967266, %v2030_v4 }
 0x2f9   : > { %17105 = vst [vmem:[#allocation84_spill] sm:$0xff] %v11987_v26  ;;  %v2695_v31 = vor.u32 8388608, %v2694_v27  ;;  %v2699_v34 = vsel %vm2698_vm14, %v2697_v63, 0  ;;  %9573 = vcosq.f32 %v1735_v40  ;;  %v2587_v18 = vshrl.u32 %v2586_v42, 23 }
 0x2fa   : > { %v11994_v41 = vshrl.u32 %v2540_v10, 30  ;;  %v2701_v57 = vand.u32 31, %v2699_v34  ;;  %9575 = vsinq.f32 %v1735_v40  ;;  %v11999_v1 = vsel %vm11933_vm4, %v11468_v21, %v1940_v48 }
 0x2fb   : > { %v2015_v5 = vadd.s32 %v11849_v19, %v11858_v8  ;;  %v12005_v23 = vadd.f32 %v10393_v30, %v11454_v59  ;;  %v12009_v16 = vsel %vm16705_vm3, %v1835_v11, %v1834_v17  ;;  %v16702_v50 = vand.u32 2147483647, %v11960_v47 }
 0x2fc   : > { %v2542_v44 = vshll.u32 %v11994_v41, 30  ;;  %v2702_v56 = vsub.s32 32, %v2701_v57  ;;  %v2032_v51 = vshll.u32 %v11922_v24, %v2030_v4  ;;  %v2036_v9 = vadd.s32 127, %v2035_v32 }
 0x2fd   : > { %v2033_v39 = vshrl.u32 %v2015_v5, %v2031_v12  ;;  %v12014_v27 = vshll.u32 %v2695_v31, 8  ;;  %v2704_v30 = vshll.u32 %v16970_v53, %v2701_v57  ;;  %v8854_v8 = vadd.s32 4294967169, %v2587_v18 }
 0x2fe   : > { %v12016_v19 = vsub.s32 %v2539_v49, %v2542_v44  ;;  %v2705_v59 = vshrl.u32 %v16965_v22, %v2702_v56  ;;  %v12020_v17 = vpop.eup %9569  ;;  %v2707_v63 = vshll.u32 %v16965_v22, %v2701_v57  ;;  %v2708_v42 = vshrl.u32 %v16966_v55, %v2702_v56 }
 0x2ff   : > { %17106 = vst [vmem:[#allocation85_spill] sm:$0xff] %v12020_v17  ;;  %v2710_v40 = vshll.u32 %v16966_v55, %v2701_v57  ;;  %v2711_v24 = vshrl.u32 %v16967_v43, %v2702_v56  ;;  %v2700_v48 = vshrl.u32 %v2699_v34, 5  ;;  %v2713_v49 = vshll.u32 %v16967_v43, %v2701_v57 }
 0x300   : > { %v2545_v4 = vsub.s32 0, %v12016_v19  ;;  %v2714_v11 = vshrl.u32 %v16968_v29, %v2702_v56  ;;  %v12029_v10 = vpop.eup %9571  ;;  %v2706_v12 = vor.u32 %v2705_v59, %v2704_v30  ;;  %v2709_v32 = vor.u32 %v2708_v42, %v2707_v63 }
 0x301   : > { %v2712_v31 = vor.u32 %v2711_v24, %v2710_v40  ;;  %v2590_v18 = vand.u32 8388607, %v16702_v50  ;;  %v2716_v45 = vshll.u32 %v16968_v29, %v2701_v57  ;;  %v2717_v7 = vshrl.u32 %v16969_v62, %v2702_v56 }
 0x302   : > { %v8851_v5 = vmin.u32 %v2545_v4, %v12016_v19  ;;  %v2715_v44 = vor.u32 %v2714_v11, %v2713_v49  ;;  %v17107_v34 = vand.u32 2147483647, %v11599_v37  ;;  %v17108_v21 = vmov 0 }
 0x303   : > { %v12042_v25 = vor.u32 %v2033_v39, %v2032_v51  ;;  %v2037_v30 = vshll.u32 %v2036_v9, 23  ;;  %v2703_v59 = vshrl.u32 %v16970_v53, %v2702_v56  ;;  %v2593_v63 = vadd.s32 1, %v8854_v8  ;;  %v12045_v42 = vpop.eup %9573  ;;  %v12049_v9 = vpop.f32.mrb[14].mxu1 }
 0x304   : > { %vm12038_vm11 = vcmp.le.f32.partialorder %v17107_v34, 0.7853982  ;;  %17111 = vst [vmem:[#allocation87_spill] sm:$0xff] %v12045_v42  ;;  %v2547_v40 = vclz %v8851_v5  ;;  %v2718_v24 = vor.u32 %v2717_v7, %v2716_v45  ;;  %vm2719_vm6 = vcmp.lt.s32.totalorder %v2700_v48, 1  ;;  %v12047_v57 = vpop.eup %9575 }
 0x305   : > { %v17109_v21 = vsel %vm12038_vm11, 4294967295, %v17108_v21  ;;  %vm2722_vm13 = vcmp.lt.s32.totalorder %v2700_v48, 4  ;;  %17112 = vst [vmem:[#allocation88_spill] sm:$0xff] %v12047_v57  ;;  %vm2721_vm10 = vcmp.lt.s32.totalorder %v2700_v48, 3  ;;  %v2727_v49 = vsel %vm2719_vm6, %v2706_v12, %v2709_v32 }
 0x306   : > { %17110 = vst [vmem:[#allocation86_spill] sm:$0xff] %v17109_v21  ;;  %v2724_v4 = vsel %vm2722_vm13, %v2712_v31, 2102212464  ;;  %v2728_v11 = vsel %vm2722_vm13, %v2715_v44, 920167782  ;;  %v8852_v34 = vadd.s32 4294967294, %v2547_v40  ;;  %v2723_v51 = vsel %vm2719_vm6, %v2703_v59, %v2706_v12 }
 0x307   : > { %vm2720_vm2 = vcmp.lt.s32.totalorder %v2700_v48, 2  ;;  %v2729_v39 = vsel %vm2721_vm10, %v2712_v31, %v2728_v11  ;;  %v2725_v56 = vsel %vm2721_vm10, %v2709_v32, %v2724_v4  ;;  %v2731_v50 = vsel %vm2719_vm6, %v2709_v32, %v2712_v31 }
 0x308   : > { %v2730_v8 = vsel %vm2720_vm2, %v2727_v49, %v2729_v39  ;;  %v2732_v5 = vsel %vm2722_vm13, %v2718_v24, 1326507024  ;;  %vm8853_vm14 = vcmp.lt.s32.totalorder %v8852_v34, 0  ;;  %v2591_v12 = vor.u32 8388608, %v2590_v18 }
 0x309   : > { %v2733_v45 = vsel %vm2721_vm10, %v2715_v44, %v2732_v5  ;;  %v12053_v7 = vmul.u32.u64.low %v12014_v27, %v2730_v8  ;;  %v12054_v42 = vmul.u32.u64.high %v12014_v27, %v2730_v8, %v12053_v7  ;;  %v12057_v57 = vsel %vm8853_vm14, 0, %v8852_v34 }
 0x30a   : > { %v2734_v40 = vsel %vm2720_vm2, %v2731_v50, %v2733_v45  ;;  %vm2594_vm3 = vcmp.gt.s32.totalorder %v2593_v63, 0  ;;  %9577 = vcosq.f32 %v11999_v1  ;;  %v2038_v59 = vor.u32 4788187, %v2037_v30 }
 0x30b   : > { %v2726_v4 = vsel %vm2720_vm2, %v2723_v51, %v2725_v56  ;;  %v2595_v32 = vsel %vm2594_vm3, %v2593_v63, 0  ;;  %v2555_v31 = vsub.s32 4294967266, %v12057_v57  ;;  %v12071_v50 = vsel %vm12038_vm11, %v11599_v37, %v12009_v16 }
 0x30c   : > { %v12064_v44 = vmul.u32.u64.low %v12014_v27, %v2734_v40  ;;  %v12065_v24 = vmul.u32.u64.high %v12014_v27, %v2734_v40, %v12064_v44  ;;  %v2597_v49 = vand.u32 31, %v2595_v32  ;;  %v2535_v18 = vadd.s32 %v11940_v60, %v11949_v3 }
 0x30d   : > { %v2745_v48 = vadd.s32 1, %v12054_v42  ;;  %v2041_v63 = vcvt.s32.f32 %v12042_v25  ;;  %v12078_v34 = vshll.u32 %v2591_v12, 8  ;;  %v2794_v51 = vand.u32 2139095040, %v12005_v23 }
 0x30e   : > { %v2598_v11 = vsub.s32 32, %v2597_v49  ;;  %v2039_v39 = vand.u32 2147483647, %v2038_v59  ;;  %v2551_v56 = vsub.s32 32, %v12057_v57  ;;  %v2742_v16 = vmul.u32 %v12014_v27, %v2726_v4 }
 0x30f   : > { %v12083_v8 = vshrl.u32 %v2595_v32, 5  ;;  %v2556_v5 = vadd.s32 127, %v2555_v31  ;;  %vm2744_vm3 = vc.u32 %v12065_v24, %v12053_v7  ;;  %v2600_v60 = vshll.u32 %v16970_v53, %v2597_v49 }
 0x310   : > { %v2601_v25 = vshrl.u32 %v16965_v22, %v2598_v11  ;;  %v2746_v3 = vsel %vm2744_vm3, %v2745_v48, %v12054_v42  ;;  %v2603_v45 = vshll.u32 %v16965_v22, %v2597_v49  ;;  %v2604_v40 = vshrl.u32 %v16966_v55, %v2598_v11 }
 0x311   : > { %v2606_v12 = vshll.u32 %v16966_v55, %v2597_v49  ;;  %v2747_v27 = vadd.s32 %v2746_v3, %v2742_v16  ;;  %v2607_v59 = vshrl.u32 %v16967_v43, %v2598_v11  ;;  %v2609_v4 = vshll.u32 %v16967_v43, %v2597_v49 }
 0x312   : > { %v2610_v32 = vshrl.u32 %v16968_v29, %v2598_v11  ;;  %v2602_v31 = vor.u32 %v2601_v25, %v2600_v60  ;;  %v2605_v44 = vor.u32 %v2604_v40, %v2603_v45  ;;  %v2612_v30 = vshll.u32 %v16968_v29, %v2597_v49 }
 0x313   : > { %v2613_v42 = vshrl.u32 %v16969_v62, %v2598_v11  ;;  %v2557_v48 = vshll.u32 %v2556_v5, 23  ;;  %v2748_v26 = vadd.s32 536870912, %v2747_v27  ;;  %v2608_v35 = vor.u32 %v2607_v59, %v2606_v12 }
 0x314   : > { %v2611_v21 = vor.u32 %v2610_v32, %v2609_v4  ;;  %v12099_v37 = vpop.eup %9577  ;;  %v2042_v17 = vmul.f32 %v2041_v63, %v2039_v39  ;;  %v2553_v16 = vshrl.u32 %v2535_v18, %v2551_v56  ;;  %v2565_v3 = vsub.s32 4, %v11994_v41 }
 0x315   : > { %17113 = vst [vmem:[#allocation89_spill] sm:$0xff] %v12099_v37  ;;  %v2614_v15 = vor.u32 %v2613_v42, %v2612_v30  ;;  %v17114_v2 = vand.u32 2147483647, %v11773_v54  ;;  %v2552_v49 = vshll.u32 %v12016_v19, %v12057_v57  ;;  %v12110_v5 = vshrl.u32 %v2748_v26, 30 }
 0x316   : > { %vm2615_vm10 = vcmp.lt.s32.totalorder %v12083_v8, 1  ;;  %vm2618_vm2 = vcmp.lt.s32.totalorder %v12083_v8, 4  ;;  %vm2617_vm3 = vcmp.lt.s32.totalorder %v12083_v8, 3  ;;  %v2795_v30 = vshrl.u32 %v2794_v51, 23 }
 0x317   : > { %vm12104_vm13 = vcmp.le.f32.partialorder %v17114_v2, 0.7853982  ;;  %v2623_v18 = vsel %vm2615_vm10, %v2602_v31, %v2605_v44  ;;  %v2624_v2 = vsel %vm2618_vm2, %v2611_v21, 920167782  ;;  %v2558_v63 = vor.u32 4788187, %v2557_v48 }
 0x318   : > { %v2750_v39 = vshll.u32 %v12110_v5, 30  ;;  %v2625_v26 = vsel %vm2617_vm3, %v2608_v35, %v2624_v2  ;;  %v2627_v19 = vsel %vm2615_vm10, %v2605_v44, %v2608_v35  ;;  %v2554_v57 = vor.u32 %v2553_v16, %v2552_v49 }
 0x319   : > { %vm2616_vm6 = vcmp.lt.s32.totalorder %v12083_v8, 2  ;;  %v2620_v56 = vsel %vm2618_vm2, %v2608_v35, 2102212464  ;;  %v2628_v25 = vsel %vm2618_vm2, %v2614_v15, 1326507024  ;;  %v17118_v40 = vmov 0 }
 0x31a   : > { %v17117_v45 = vand.u32 2147483647, %v11721_v33  ;;  %v12130_v51 = vsub.s32 %v2747_v27, %v2750_v39  ;;  %v2599_v12 = vshrl.u32 %v16970_v53, %v2598_v11  ;;  %v2626_v59 = vsel %vm2616_vm6, %v2623_v18, %v2625_v26 }
 0x31b   : > { %v2629_v4 = vsel %vm2617_vm3, %v2611_v21, %v2628_v25  ;;  %v2043_v32 = vxor.u32 2147483648, %v2042_v17  ;;  %vm17121_vm2 = vcmp.lt.s32.totalorder %v11773_v54, 0  ;;  %v8862_v42 = vadd.s32 4294967169, %v2795_v30  ;;  %v12176_v25 = vpop.f32.mrb[15].mxu0 }
 0x31c   : > { %vm12126_vm14 = vcmp.le.f32.partialorder %v17117_v45, 0.7853982  ;;  %v2566_v35 = vsel %vm17121_vm2, %v2565_v3, %v11994_v41  ;;  %v2630_v15 = vsel %vm2616_vm6, %v2627_v19, %v2629_v4  ;;  %v2559_v48 = vand.u32 2147483647, %v2558_v63 }
 0x31d   : > { %v17119_v40 = vsel %vm12126_vm14, 4294967295, %v17118_v40  ;;  %v2753_v27 = vsub.s32 0, %v12130_v51  ;;  %v2619_v11 = vsel %vm2615_vm10, %v2599_v12, %v2602_v31  ;;  %v2621_v16 = vsel %vm2617_vm3, %v2605_v44, %v2620_v56 }
 0x31e   : > { %17120 = vst [vmem:[#allocation90_spill] sm:$0xff] %v17119_v40  ;;  %v12148_v21 = vmul.u32.u64.low %v12078_v34, %v2630_v15  ;;  %v12149_v49 = vmul.u32.u64.high %v12078_v34, %v2630_v15, %v12148_v21  ;;  %v12152_v18 = vmul.u32.u64.low %v12078_v34, %v2626_v59  ;;  %v12153_v41 = vmul.u32.u64.high %v12078_v34, %v2626_v59, %v12152_v18 }
 0x31f   : > { %9579 = vsinq.f32 %v11999_v1  ;;  %v2561_v3 = vcvt.s32.f32 %v2554_v57  ;;  %v8859_v2 = vmin.u32 %v2753_v27, %v12130_v51  ;;  %v2801_v30 = vadd.s32 1, %v8862_v42 }
 0x320   : > { %v17122_v31 = vsel %vm11933_vm4, 0, %v11968_v14  ;;  %9581 = vcosq.f32 %v12071_v50  ;;  %v2568_v63 = vsel %vm12104_vm13, 0, %v2566_v35  ;;  %v2622_v39 = vsel %vm2616_vm6, %v2619_v11, %v2621_v16 }
 0x321   : > { %v12162_v44 = vadd.s32 3, %v17122_v31  ;;  %vm17124_vm10 = vcmp.lt.s32.totalorder %v11721_v33, 0  ;;  %v2562_v26 = vmul.f32 %v2561_v3, %v2559_v48  ;;  %v2755_v19 = vclz %v8859_v2 }
 0x322   : > { %v2044_v1 = vsel %vm17124_vm10, %v2043_v32, %v2042_v17  ;;  %vm2802_vm3 = vcmp.gt.s32.totalorder %v2801_v30, 0  ;;  %vm2640_vm2 = vc.u32 %v12149_v49, %v12152_v18  ;;  %v2641_v28 = vadd.s32 1, %v12153_v41 }
 0x323   : > { %17123 = vst [vmem:[#allocation91_spill] sm:$0xff] %v12162_v44  ;;  %v17125_v14 = vand.u32 2147483647, %v12005_v23  ;;  %v2803_v56 = vsel %vm2802_vm3, %v2801_v30, 0  ;;  %9583 = vsinq.f32 %v12071_v50  ;;  %v8860_v8 = vadd.s32 4294967294, %v2755_v19 }
 0x324   : > { %v2638_v45 = vmul.u32 %v12078_v34, %v2622_v39  ;;  %v2805_v17 = vand.u32 31, %v2803_v56  ;;  %v12183_v12 = vsel %vm12126_vm14, %v11721_v33, %v2044_v1  ;;  %v12185_v59 = vadd.s32 3, %v2568_v63 }
 0x325   : > { %v2798_v57 = vand.u32 8388607, %v17125_v14  ;;  %v2743_v4 = vadd.s32 %v12053_v7, %v12065_v24  ;;  %v2642_v32 = vsel %vm2640_vm2, %v2641_v28, %v12153_v41  ;;  %v2563_v35 = vxor.u32 2147483648, %v2562_v26 }
 0x326   : > { %17126 = vst [vmem:[#allocation92_spill] sm:$0xff] %v12185_v59  ;;  %vm8861_vm4 = vcmp.lt.s32.totalorder %v8860_v8, 0  ;;  %v2643_v15 = vadd.s32 %v2642_v32, %v2638_v45  ;;  %v2806_v50 = vsub.s32 32, %v2805_v17  ;;  %v12195_v27 = vadd.f32 %v10668_v58, %v11594_v0 }
 0x327   : > { %v12190_v42 = vsel %vm8861_vm4, 0, %v8860_v8  ;;  %v2799_v48 = vor.u32 8388608, %v2798_v57  ;;  %v2808_v7 = vshll.u32 %v16970_v53, %v2805_v17  ;;  %v2811_v24 = vshll.u32 %v16965_v22, %v2805_v17 }
 0x328   : > { %17127 = vst [vmem:[#allocation93_spill] sm:$0xff] %v12195_v27  ;;  %v2763_v11 = vsub.s32 4294967266, %v12190_v42  ;;  %v2644_v16 = vadd.s32 536870912, %v2643_v15  ;;  %v2809_v21 = vshrl.u32 %v16965_v22, %v2806_v50  ;;  %v2812_v41 = vshrl.u32 %v16966_v55, %v2806_v50 }
 0x329   : > { %v2814_v3 = vshll.u32 %v16966_v55, %v2805_v17  ;;  %v2815_v2 = vshrl.u32 %v16967_v43, %v2806_v50  ;;  %v12204_v30 = vpop.eup %9579  ;;  %v2804_v0 = vshrl.u32 %v2803_v56, 5  ;;  %v2817_v63 = vshll.u32 %v16967_v43, %v2805_v17 }
 0x32a   : > { %17128 = vst [vmem:[#allocation94_spill] sm:$0xff] %v12204_v30  ;;  %v12206_v31 = vshrl.u32 %v2644_v16, 30  ;;  %v2818_v39 = vshrl.u32 %v16968_v29, %v2806_v50  ;;  %v12210_v1 = vpop.eup %9581  ;;  %v2764_v19 = vadd.s32 127, %v2763_v11  ;;  %v2810_v28 = vor.u32 %v2809_v21, %v2808_v7 }
 0x32b   : > { %v2813_v14 = vor.u32 %v2812_v41, %v2811_v24  ;;  %v2816_v57 = vor.u32 %v2815_v2, %v2814_v3  ;;  %vm17129_vm6 = vcmp.lt.s32.totalorder %v11773_v54, 0  ;;  %v2839_v34 = vshll.u32 %v2799_v48, 8 }
 0x32c   : > { %v2564_v8 = vsel %vm17129_vm6, %v2563_v35, %v2562_v26  ;;  %v2646_v45 = vshll.u32 %v12206_v31, 30  ;;  %v2819_v32 = vor.u32 %v2818_v39, %v2817_v63  ;;  %v2759_v56 = vsub.s32 32, %v12190_v42 }
 0x32d   : > { %v2820_v16 = vshll.u32 %v16968_v29, %v2805_v17  ;;  %v2821_v37 = vshrl.u32 %v16969_v62, %v2806_v50  ;;  %v3314_v11 = vand.u32 2139095040, %v12195_v27  ;;  %v12220_v7 = vpop.eup %9583  ;;  %v2807_v26 = vshrl.u32 %v16970_v53, %v2806_v50 }
 0x32e   : > { %v12222_v24 = vsub.s32 %v2643_v15, %v2646_v45  ;;  %vm2823_vm3 = vcmp.lt.s32.totalorder %v2804_v0, 1  ;;  %vm2826_vm2 = vcmp.lt.s32.totalorder %v2804_v0, 4  ;;  %v2765_v35 = vshll.u32 %v2764_v19, 23 }
 0x32f   : > { %v2822_v48 = vor.u32 %v2821_v37, %v2820_v16  ;;  %v2828_v21 = vsel %vm2826_vm2, %v2816_v57, 2102212464  ;;  %v2831_v41 = vsel %vm2823_vm3, %v2810_v28, %v2813_v14  ;;  %vm2824_vm4 = vcmp.lt.s32.totalorder %v2804_v0, 2 }
 0x330   : > { %v2649_v3 = vsub.s32 0, %v12222_v24  ;;  %vm2825_vm6 = vcmp.lt.s32.totalorder %v2804_v0, 3  ;;  %v2832_v17 = vsel %vm2826_vm2, %v2819_v32, 920167782  ;;  %v2827_v2 = vsel %vm2823_vm3, %v2807_v26, %v2810_v28 }
 0x331   : > { %v2833_v63 = vsel %vm2825_vm6, %v2816_v57, %v2832_v17  ;;  %v2835_v39 = vsel %vm2823_vm3, %v2813_v14, %v2816_v57  ;;  %v2836_v30 = vsel %vm2826_vm2, %v2822_v48, 1326507024  ;;  %v2829_v45 = vsel %vm2825_vm6, %v2813_v14, %v2828_v21 }
 0x332   : > { %v8855_v15 = vmin.u32 %v2649_v3, %v12222_v24  ;;  %v2834_v50 = vsel %vm2824_vm4, %v2831_v41, %v2833_v63  ;;  %v2837_v44 = vsel %vm2825_vm6, %v2819_v32, %v2836_v30  ;;  %v2761_v59 = vshrl.u32 %v2743_v4, %v2759_v56  ;;  %v12243_v30 = vpop.f32.mrb[15].mxu1 }
 0x333   : > { %v2838_v37 = vsel %vm2824_vm4, %v2835_v39, %v2837_v44  ;;  %v12229_v19 = vmul.u32.u64.low %v2839_v34, %v2834_v50  ;;  %v12230_v16 = vmul.u32.u64.high %v2839_v34, %v2834_v50, %v12229_v19  ;;  %9585 = vcosq.f32 %v12183_v12 }
 0x334   : > { %v17130_v28 = vand.u32 2147483647, %v11898_v61  ;;  %v2651_v26 = vclz %v8855_v15  ;;  %v12240_v14 = vmul.u32.u64.low %v2839_v34, %v2838_v37  ;;  %v12241_v48 = vmul.u32.u64.high %v2839_v34, %v2838_v37, %v12240_v14 }
 0x335   : > { %v2760_v44 = vshll.u32 %v12130_v51, %v12190_v42  ;;  %v2830_v4 = vsel %vm2824_vm4, %v2827_v2, %v2829_v45  ;;  %v16717_v32 = vand.u32 2147483647, %v12195_v27  ;;  %v3315_v56 = vshrl.u32 %v3314_v11, 23 }
 0x336   : > { %vm12236_vm10 = vcmp.le.f32.partialorder %v17130_v28, 0.7853982  ;;  %v12252_v21 = vsel %vm12104_vm13, %v11773_v54, %v2564_v8  ;;  %v2766_v41 = vor.u32 4788187, %v2765_v35  ;;  %v17133_v3 = vsub.s32 4, %v12110_v5 }
 0x337   : > { %vm17134_vm3 = vcmp.lt.s32.totalorder %v11898_v61, 0  ;;  %v8856_v63 = vadd.s32 4294967294, %v2651_v26  ;;  %v2762_v51 = vor.u32 %v2761_v59, %v2760_v44  ;;  %v2849_v42 = vadd.s32 1, %v12230_v16 }
 0x338   : > { %v12259_v17 = vsel %vm17134_vm3, %v17133_v3, %v12110_v5  ;;  %v8882_v0 = vadd.s32 4294967169, %v3315_v56  ;;  %v12264_v11 = vadd.f32 %v10668_v58, %v11691_v6  ;;  %v2639_v60 = vadd.s32 %v12152_v18, %v12149_v49 }
 0x339   : > { %vm8857_vm13 = vcmp.lt.s32.totalorder %v8856_v63, 0  ;;  %v2846_v8 = vmul.u32 %v2839_v34, %v2830_v4  ;;  %vm2848_vm2 = vc.u32 %v12241_v48, %v12229_v19  ;;  %v3318_v59 = vand.u32 8388607, %v16717_v32 }
 0x33a   : > { %17135 = vst [vmem:[#allocation95_spill] sm:$0xff] %v12264_v11  ;;  %v2654_v35 = vsel %vm8857_vm13, 0, %v8856_v63  ;;  %v2850_v5 = vsel %vm2848_vm2, %v2849_v42, %v12230_v16  ;;  %v3321_v2 = vadd.s32 1, %v8882_v0  ;;  %v2767_v39 = vand.u32 2147483647, %v2766_v41 }
 0x33b   : > { %v2655_v15 = vsub.s32 32, %v2654_v35  ;;  %v2659_v45 = vsub.s32 4294967266, %v2654_v35  ;;  %v2851_v6 = vadd.s32 %v2850_v5, %v2846_v8  ;;  %9587 = vsinq.f32 %v12183_v12 }
 0x33c   : > { %v2769_v50 = vcvt.s32.f32 %v2762_v51  ;;  %vm3322_vm4 = vcmp.gt.s32.totalorder %v3321_v2, 0  ;;  %v3522_v49 = vand.u32 2139095040, %v12264_v11  ;;  %9589 = vcosq.f32 %v12252_v21 }
 0x33d   : > { %v2657_v18 = vshrl.u32 %v2639_v60, %v2655_v15  ;;  %v2660_v34 = vadd.s32 127, %v2659_v45  ;;  %v2852_v37 = vadd.s32 536870912, %v2851_v6  ;;  %v3323_v28 = vsel %vm3322_vm4, %v3321_v2, 0  ;;  %v12280_v44 = vpop.eup %9585 }
 0x33e   : > { %v2656_v26 = vshll.u32 %v12222_v24, %v2654_v35  ;;  %v3325_v14 = vand.u32 31, %v3323_v28  ;;  %17136 = vst [vmem:[#allocation96_spill] sm:$0xff] %v12280_v44  ;;  %v12282_v12 = vmul.f32 %v2769_v50, %v2767_v39  ;;  %v3319_v41 = vor.u32 8388608, %v3318_v59 }
 0x33f   : > { %v2661_v4 = vshll.u32 %v2660_v34, 23  ;;  %v12284_v56 = vshrl.u32 %v2852_v37, 30  ;;  %v3324_v63 = vshrl.u32 %v3323_v28, 5  ;;  %v3523_v42 = vshrl.u32 %v3522_v49, 23 }
 0x340   : > { %v2658_v3 = vor.u32 %v2657_v18, %v2656_v26  ;;  %v3326_v51 = vsub.s32 32, %v3325_v14  ;;  %v3328_v60 = vshll.u32 %v16970_v53, %v3325_v14  ;;  %v3331_v8 = vshll.u32 %v16965_v22, %v3325_v14 }
 0x341   : > { %17137 = vst [vmem:[#allocation97_spill] sm:$0xff] %v12284_v56  ;;  %v2854_v0 = vshll.u32 %v12284_v56, 30  ;;  %v3334_v24 = vshll.u32 %v16966_v55, %v3325_v14  ;;  %v2662_v35 = vor.u32 4788187, %v2661_v4  ;;  %v3337_v15 = vshll.u32 %v16967_v43, %v3325_v14 }
 0x342   : > { %v3329_v5 = vshrl.u32 %v16965_v22, %v3326_v51  ;;  %v3332_v2 = vshrl.u32 %v16966_v55, %v3326_v51  ;;  %v3335_v39 = vshrl.u32 %v16967_v43, %v3326_v51  ;;  %v3338_v45 = vshrl.u32 %v16968_v29, %v3326_v51 }
 0x343   : > { %v12293_v59 = vsub.s32 %v2851_v6, %v2854_v0  ;;  %v3340_v50 = vshll.u32 %v16968_v29, %v3325_v14  ;;  %v3341_v37 = vshrl.u32 %v16969_v62, %v3326_v51  ;;  %v3359_v4 = vshll.u32 %v3319_v41, 8 }
 0x344   : > { %v3330_v49 = vor.u32 %v3329_v5, %v3328_v60  ;;  %v3333_v18 = vor.u32 %v3332_v2, %v3331_v8  ;;  %v3336_v34 = vor.u32 %v3335_v39, %v3334_v24  ;;  %v3339_v26 = vor.u32 %v3338_v45, %v3337_v15 }
 0x345   : > { %v2857_v28 = vsub.s32 0, %v12293_v59  ;;  %v12301_v16 = vpop.eup %9587  ;;  %v2663_v6 = vand.u32 2147483647, %v2662_v35  ;;  %v2665_v0 = vcvt.s32.f32 %v2658_v3  ;;  %v3342_v54 = vor.u32 %v3341_v37, %v3340_v50 }
 0x346   : > { %17138 = vst [vmem:[#allocation98_spill] sm:$0xff] %v12301_v16  ;;  %v8890_v44 = vadd.s32 4294967169, %v3523_v42  ;;  %v3327_v14 = vshrl.u32 %v16970_v53, %v3326_v51  ;;  %vm3343_vm6 = vcmp.lt.s32.totalorder %v3324_v63, 1  ;;  %vm3346_vm3 = vcmp.lt.s32.totalorder %v3324_v63, 4  ;;  %v12305_v60 = vpop.eup %9589 }
 0x347   : > { %v8863_v56 = vmin.u32 %v2857_v28, %v12293_v59  ;;  %17139 = vst [vmem:[#allocation99_spill] sm:$0xff] %v12305_v60  ;;  %vm3345_vm13 = vcmp.lt.s32.totalorder %v3324_v63, 3  ;;  %v3348_v8 = vsel %vm3346_vm3, %v3336_v34, 2102212464  ;;  %v3351_v24 = vsel %vm3343_vm6, %v3330_v49, %v3333_v18 }
 0x348   : > { %v3352_v41 = vsel %vm3346_vm3, %v3339_v26, 920167782  ;;  %vm3344_vm2 = vcmp.lt.s32.totalorder %v3324_v63, 2  ;;  %v3355_v39 = vsel %vm3343_vm6, %v3333_v18, %v3336_v34  ;;  %v2666_v3 = vmul.f32 %v2665_v0, %v2663_v6 }
 0x349   : > { %v2859_v5 = vclz %v8863_v56  ;;  %v3353_v2 = vsel %vm3345_vm13, %v3336_v34, %v3352_v41  ;;  %v3347_v42 = vsel %vm3343_vm6, %v3327_v14, %v3330_v49  ;;  %v3356_v15 = vsel %vm3346_vm3, %v3342_v54, 1326507024 }
 0x34a   : > { %v3354_v35 = vsel %vm3344_vm2, %v3351_v24, %v3353_v2  ;;  %v3349_v45 = vsel %vm3345_vm13, %v3333_v18, %v3348_v8  ;;  %v3357_v50 = vsel %vm3345_vm13, %v3339_v26, %v3356_v15  ;;  %v3529_v37 = vadd.s32 1, %v8890_v44 }
 0x34b   : > { %v8864_v51 = vadd.s32 4294967294, %v2859_v5  ;;  %v3358_v28 = vsel %vm3344_vm2, %v3355_v39, %v3357_v50  ;;  %v12310_v32 = vmul.u32.u64.low %v3359_v4, %v3354_v35  ;;  %v12311_v60 = vmul.u32.u64.high %v3359_v4, %v3354_v35, %v12310_v32 }
 0x34c   : > { %v12316_v56 = vadd.f32 %v10668_v58, %v11790_v36  ;;  %v12318_v34 = vmul.u32.u64.low %v3359_v4, %v3358_v28  ;;  %v12319_v49 = vmul.u32.u64.high %v3359_v4, %v3358_v28, %v12318_v34  ;;  %vm3530_vm6 = vcmp.gt.s32.totalorder %v3529_v37, 0 }
 0x34d   : > { %vm8865_vm4 = vcmp.lt.s32.totalorder %v8864_v51, 0  ;;  %v2771_v54 = vxor.u32 2147483648, %v12282_v12  ;;  %v3350_v44 = vsel %vm3344_vm2, %v3347_v42, %v3349_v45  ;;  %v3531_v26 = vsel %vm3530_vm6, %v3529_v37, 0 }
 0x34e   : > { %v2862_v18 = vsel %vm8865_vm4, 0, %v8864_v51  ;;  %9591 = vsinq.f32 %v12252_v21  ;;  %v2667_v6 = vxor.u32 2147483648, %v2666_v3  ;;  %v17140_v14 = vand.u32 2147483647, %v12264_v11 }
 0x34f   : > { %v2867_v0 = vsub.s32 4294967266, %v2862_v18  ;;  %v17141_v36 = vsel %vm12236_vm10, 0, %v12259_v17  ;;  %v3369_v41 = vadd.s32 1, %v12311_v60  ;;  %v3533_v5 = vand.u32 31, %v3531_v26 }
 0x350   : > { %v3526_v8 = vand.u32 8388607, %v17140_v14  ;;  %v12330_v24 = vadd.s32 3, %v17141_v36  ;;  %v12335_v63 = vadd.f32 %v10668_v58, %v11883_v52  ;;  %v17143_v21 = vand.u32 2147483647, %v11960_v47 }
 0x351   : > { %v17144_v2 = vmov 0  ;;  %v2863_v39 = vsub.s32 32, %v2862_v18  ;;  %v2868_v42 = vadd.s32 127, %v2867_v0  ;;  %v3366_v35 = vmul.u32 %v3359_v4, %v3350_v44 }
 0x352   : > { %17142 = vst [vmem:[#allocation100_spill] sm:$0xff] %v12330_v24  ;;  %vm12339_vm3 = vcmp.le.f32.partialorder %v17143_v21, 0.7853982  ;;  %vm3368_vm13 = vc.u32 %v12319_v49, %v12310_v32  ;;  %vm17146_vm2 = vcmp.lt.s32.totalorder %v11898_v61, 0  ;;  %v3534_v58 = vsub.s32 32, %v3533_v5 }
 0x353   : > { %v17145_v2 = vsel %vm12339_vm3, 4294967295, %v17144_v2  ;;  %v2772_v17 = vsel %vm17146_vm2, %v2771_v54, %v12282_v12  ;;  %v3370_v15 = vsel %vm3368_vm13, %v3369_v41, %v12311_v60  ;;  %vm17147_vm4 = vcmp.lt.s32.totalorder %v11960_v47, 0 }
 0x354   : > { %v2668_v51 = vsel %vm17147_vm4, %v2667_v6, %v2666_v3  ;;  %v2847_v45 = vadd.s32 %v12229_v19, %v12241_v48  ;;  %v3371_v50 = vadd.s32 %v3370_v15, %v3366_v35  ;;  %v3527_v4 = vor.u32 8388608, %v3526_v8 }
 0x355   : > { %v2864_v37 = vshll.u32 %v12293_v59, %v2862_v18  ;;  %v3537_v28 = vshrl.u32 %v16965_v22, %v3534_v58  ;;  %v3540_v34 = vshrl.u32 %v16966_v55, %v3534_v58  ;;  %v3543_v12 = vshrl.u32 %v16967_v43, %v3534_v58 }
 0x356   : > { %v2865_v60 = vshrl.u32 %v2847_v45, %v2863_v39  ;;  %v2869_v54 = vshll.u32 %v2868_v42, 23  ;;  %v3372_v44 = vadd.s32 536870912, %v3371_v50  ;;  %v3536_v0 = vshll.u32 %v16970_v53, %v3533_v5 }
 0x357   : > { %v3539_v3 = vshll.u32 %v16965_v22, %v3533_v5  ;;  %v3542_v6 = vshll.u32 %v16966_v55, %v3533_v5  ;;  %v3545_v19 = vshll.u32 %v16967_v43, %v3533_v5  ;;  %v3546_v48 = vshrl.u32 %v16968_v29, %v3534_v58 }
 0x358   : > { %v12363_v59 = vshrl.u32 %v3372_v44, 30  ;;  %v3532_v18 = vshrl.u32 %v3531_v26, 5  ;;  %v3548_v14 = vshll.u32 %v16968_v29, %v3533_v5  ;;  %v3549_v8 = vshrl.u32 %v16969_v62, %v3534_v58  ;;  %v12367_v42 = vpop.eup %9591 }
 0x359   : > { %v3538_v36 = vor.u32 %v3537_v28, %v3536_v0  ;;  %v3541_v41 = vor.u32 %v3540_v34, %v3539_v3  ;;  %v3544_v21 = vor.u32 %v3543_v12, %v3542_v6  ;;  %v3547_v39 = vor.u32 %v3546_v48, %v3545_v19  ;;  %17148 = vst [vmem:[#allocation101_spill] sm:$0xff] %v12367_v42 }
 0x35a   : > { %v2775_v35 = vsel %vm12236_vm10, %v11898_v61, %v2772_v17  ;;  %v2870_v15 = vor.u32 4788187, %v2869_v54  ;;  %v3374_v45 = vshll.u32 %v12363_v59, 30  ;;  %v3550_v44 = vor.u32 %v3549_v8, %v3548_v14 }
 0x35b   : > { %v2671_v26 = vsel %vm12339_vm3, %v11960_v47, %v2668_v51  ;;  %v2866_v5 = vor.u32 %v2865_v60, %v2864_v37  ;;  %v3567_v52 = vshll.u32 %v3527_v4, 8  ;;  %v3418_v28 = vand.u32 2139095040, %v12316_v56 }
 0x35c   : > { %v12377_v34 = vsub.s32 %v3371_v50, %v3374_v45  ;;  %v3535_v12 = vshrl.u32 %v16970_v53, %v3534_v58  ;;  %vm3551_vm6 = vcmp.lt.s32.totalorder %v3532_v18, 1  ;;  %vm3554_vm13 = vcmp.lt.s32.totalorder %v3532_v18, 4 }
 0x35d   : > { %v3559_v57 = vsel %vm3551_vm6, %v3538_v36, %v3541_v41  ;;  %v3560_v17 = vsel %vm3554_vm13, %v3547_v39, 920167782  ;;  %v3563_v54 = vsel %vm3551_vm6, %v3541_v41, %v3544_v21  ;;  %v3564_v0 = vsel %vm3554_vm13, %v3550_v44, 1326507024 }
 0x35e   : > { %v2871_v3 = vand.u32 2147483647, %v2870_v15  ;;  %v3377_v6 = vsub.s32 0, %v12377_v34  ;;  %vm3553_vm10 = vcmp.lt.s32.totalorder %v3532_v18, 3  ;;  %v3556_v19 = vsel %vm3554_vm13, %v3544_v21, 2102212464 }
 0x35f   : > { %v2873_v51 = vcvt.s32.f32 %v2866_v5  ;;  %vm3552_vm2 = vcmp.lt.s32.totalorder %v3532_v18, 2  ;;  %v3561_v4 = vsel %vm3553_vm10, %v3544_v21, %v3560_v17  ;;  %v3565_v37 = vsel %vm3553_vm10, %v3547_v39, %v3564_v0 }
 0x360   : > { %v8883_v50 = vmin.u32 %v3377_v6, %v12377_v34  ;;  %v3555_v60 = vsel %vm3551_vm6, %v3535_v12, %v3538_v36  ;;  %v3562_v58 = vsel %vm3552_vm2, %v3559_v57, %v3561_v4  ;;  %v3566_v48 = vsel %vm3552_vm2, %v3563_v54, %v3565_v37  ;;  %v17150_v12 = vld [vmem:[#allocation45_spill] sm:$0xff] }
 0x361   : > { %v3557_v14 = vsel %vm3553_vm10, %v3541_v41, %v3556_v19  ;;  %v12384_v8 = vmul.u32.u64.low %v3567_v52, %v3566_v48  ;;  %v12385_v45 = vmul.u32.u64.high %v3567_v52, %v3566_v48, %v12384_v8  ;;  %v3419_v15 = vshrl.u32 %v3418_v28, 23 }
 0x362   : > { %v2874_v44 = vmul.f32 %v2873_v51, %v2871_v3  ;;  %v3379_v61 = vclz %v8883_v50  ;;  %v12388_v5 = vmul.u32.u64.low %v3567_v52, %v3562_v58  ;;  %v12389_v24 = vmul.u32.u64.high %v3567_v52, %v3562_v58, %v12388_v5 }
 0x363   : > { %9593 = vcosq.f32 %v2775_v35  ;;  %v8886_v21 = vadd.s32 4294967169, %v3419_v15  ;;  %v17149_v36 = vand.u32 2147483647, %v12316_v56  ;;  %v12395_v57 = vadd.f32 %v17150_v12, %v11977_v20 }
 0x364   : > { %9595 = vsinq.f32 %v2775_v35  ;;  %vm16733_vm6 = vcmp.lt.s32.totalorder %v12195_v27, 0  ;;  %v8884_v41 = vadd.s32 4294967294, %v3379_v61  ;;  %v3558_v28 = vsel %vm3552_vm2, %v3555_v60, %v3557_v14 }
 0x365   : > { %v3422_v39 = vand.u32 8388607, %v17149_v36  ;;  %17151 = vst [vmem:[#allocation45_spill] sm:$0xff] %v12395_v57  ;;  %9597 = vcosq.f32 %v2671_v26  ;;  %vm3576_vm13 = vc.u32 %v12385_v45, %v12388_v5  ;;  %v3425_v17 = vadd.s32 1, %v8886_v21 }
 0x366   : > { %v3626_v54 = vand.u32 2139095040, %v12335_v63  ;;  %v2875_v0 = vxor.u32 2147483648, %v2874_v44  ;;  %vm8885_vm10 = vcmp.lt.s32.totalorder %v8884_v41, 0  ;;  %v3397_v3 = vsub.s32 4, %v12363_v59 }
 0x367   : > { %v3577_v6 = vadd.s32 1, %v12389_v24  ;;  %v3382_v20 = vsel %vm8885_vm10, 0, %v8884_v41  ;;  %v3574_v19 = vmul.u32 %v3567_v52, %v3558_v28  ;;  %v3423_v35 = vor.u32 8388608, %v3422_v39 }
 0x368   : > { %vm3426_vm4 = vcmp.gt.s32.totalorder %v3425_v17, 0  ;;  %9599 = vsinq.f32 %v2671_v26  ;;  %v3387_v61 = vsub.s32 4294967266, %v3382_v20  ;;  %v16725_v51 = vand.u32 2147483647, %v12335_v63 }
 0x369   : > { %v3578_v18 = vsel %vm3576_vm13, %v3577_v6, %v12389_v24  ;;  %v3367_v4 = vadd.s32 %v12310_v32, %v12319_v49  ;;  %v3427_v50 = vsel %vm3426_vm4, %v3425_v17, 0  ;;  %v3627_v60 = vshrl.u32 %v3626_v54, 23 }
 0x36a   : > { %v3579_v37 = vadd.s32 %v3578_v18, %v3574_v19  ;;  %v3383_v58 = vsub.s32 32, %v3382_v20  ;;  %v3388_v48 = vadd.s32 127, %v3387_v61  ;;  %v12410_v52 = vsel %vm16733_vm6, %v3397_v3, %v12363_v59 }
 0x36b   : > { %v3429_v14 = vand.u32 31, %v3427_v50  ;;  %vm17152_vm2 = vcmp.lt.s32.totalorder %v12005_v23, 0  ;;  %v12416_v8 = vshll.u32 %v3423_v35, 8  ;;  %v12420_v15 = vadd.s32 %v12388_v5, %v12385_v45 }
 0x36c   : > { %v12414_v26 = vsel %vm17152_vm2, %v2875_v0, %v2874_v44  ;;  %v3580_v24 = vadd.s32 536870912, %v3579_v37  ;;  %v3389_v49 = vshll.u32 %v3388_v48, 23  ;;  %v3630_v36 = vand.u32 8388607, %v16725_v51 }
 0x36d   : > { %v3430_v21 = vsub.s32 32, %v3429_v14  ;;  %v12424_v59 = vpop.eup %9593  ;;  %v3384_v39 = vshll.u32 %v12377_v34, %v3382_v20  ;;  %v8894_v44 = vadd.s32 4294967169, %v3627_v60  ;;  %v4146_v28 = vand.u32 2139095040, %v12395_v57 }
 0x36e   : > { %17153 = vst [vmem:[#allocation102_spill] sm:$0xff] %v12424_v59  ;;  %v12427_v41 = vshrl.u32 %v3580_v24, 30  ;;  %v12430_v17 = vpop.eup %9595  ;;  %v3385_v54 = vshrl.u32 %v3367_v4, %v3383_v58  ;;  %v3432_v0 = vshll.u32 %v16970_v53, %v3429_v14  ;;  %v3435_v5 = vshll.u32 %v16965_v22, %v3429_v14 }
 0x36f   : > { %17154 = vst [vmem:[#allocation103_spill] sm:$0xff] %v12430_v17  ;;  %v3433_v45 = vshrl.u32 %v16965_v22, %v3430_v21  ;;  %v12435_v3 = vpop.eup %9597  ;;  %v3436_v34 = vshrl.u32 %v16966_v55, %v3430_v21  ;;  %v3438_v20 = vshll.u32 %v16966_v55, %v3429_v14  ;;  %v3439_v19 = vshrl.u32 %v16967_v43, %v3430_v21 }
 0x370   : > { %v3582_v6 = vshll.u32 %v12427_v41, 30  ;;  %v3390_v35 = vor.u32 4788187, %v3389_v49  ;;  %v3428_v61 = vshrl.u32 %v3427_v50, 5  ;;  %v3441_v18 = vshll.u32 %v16967_v43, %v3429_v14 }
 0x371   : > { %v3442_v4 = vshrl.u32 %v16968_v29, %v3430_v21  ;;  %v3434_v58 = vor.u32 %v3433_v45, %v3432_v0  ;;  %v3437_v48 = vor.u32 %v3436_v34, %v3435_v5  ;;  %v3440_v24 = vor.u32 %v3439_v19, %v3438_v20 }
 0x372   : > { %v12443_v60 = vsub.s32 %v3579_v37, %v3582_v6  ;;  %v12445_v51 = vpop.eup %9599  ;;  %v3386_v32 = vor.u32 %v3385_v54, %v3384_v39  ;;  %v3444_v17 = vshll.u32 %v16968_v29, %v3429_v14  ;;  %v3445_v42 = vshrl.u32 %v16969_v62, %v3430_v21 }
 0x373   : > { %v3443_v59 = vor.u32 %v3442_v4, %v3441_v18  ;;  %v3431_v50 = vshrl.u32 %v16970_v53, %v3430_v21  ;;  %v3631_v16 = vor.u32 8388608, %v3630_v36  ;;  %v3633_v40 = vadd.s32 1, %v8894_v44 }
 0x374   : > { %v3585_v49 = vsub.s32 0, %v12443_v60  ;;  %v3391_v33 = vand.u32 2147483647, %v3390_v35  ;;  %v3446_v37 = vor.u32 %v3445_v42, %v3444_v17  ;;  %vm3447_vm4 = vcmp.lt.s32.totalorder %v3428_v61, 1 }
 0x375   : > { %vm3450_vm13 = vcmp.lt.s32.totalorder %v3428_v61, 4  ;;  %vm3449_vm10 = vcmp.lt.s32.totalorder %v3428_v61, 3  ;;  %v3455_v39 = vsel %vm3447_vm4, %v3434_v58, %v3437_v48  ;;  %v3393_v54 = vcvt.s32.f32 %v3386_v32 }
 0x376   : > { %v8891_v0 = vmin.u32 %v3585_v49, %v12443_v60  ;;  %v3452_v45 = vsel %vm3450_vm13, %v3440_v24, 2102212464  ;;  %v3451_v5 = vsel %vm3447_vm4, %v3431_v50, %v3434_v58  ;;  %v3456_v6 = vsel %vm3450_vm13, %v3443_v59, 920167782 }
 0x377   : > { %v3453_v14 = vsel %vm3449_vm10, %v3437_v48, %v3452_v45  ;;  %vm3448_vm2 = vcmp.lt.s32.totalorder %v3428_v61, 2  ;;  %v3457_v21 = vsel %vm3449_vm10, %v3440_v24, %v3456_v6  ;;  %v3459_v36 = vsel %vm3447_vm4, %v3437_v48, %v3440_v24 }
 0x378   : > { %v3587_v34 = vclz %v8891_v0  ;;  %v12454_v44 = vmul.f32 %v3393_v54, %v3391_v33  ;;  %v3458_v42 = vsel %vm3448_vm2, %v3455_v39, %v3457_v21  ;;  %v3460_v17 = vsel %vm3450_vm13, %v3446_v37, 1326507024 }
 0x379   : > { %v4147_v20 = vshrl.u32 %v4146_v28, 23  ;;  %v3454_v35 = vsel %vm3448_vm2, %v3451_v5, %v3453_v14  ;;  %v3461_v18 = vsel %vm3449_vm10, %v3443_v59, %v3460_v17  ;;  %vm3634_vm6 = vcmp.gt.s32.totalorder %v3633_v40, 0 }
 0x37a   : > { %v8892_v19 = vadd.s32 4294967294, %v3587_v34  ;;  %v3462_v32 = vsel %vm3448_vm2, %v3459_v36, %v3461_v18  ;;  %v12458_v4 = vmul.u32.u64.low %v12416_v8, %v3458_v42  ;;  %v12459_v58 = vmul.u32.u64.high %v12416_v8, %v3458_v42, %v12458_v4 }
 0x37b   : > { %v3635_v49 = vsel %vm3634_vm6, %v3633_v40, 0  ;;  %v12463_v48 = vmul.u32.u64.low %v12416_v8, %v3462_v32  ;;  %v12464_v33 = vmul.u32.u64.high %v12416_v8, %v3462_v32, %v12463_v48  ;;  %v12466_v24 = vshll.u32 %v3631_v16, 8 }
 0x37c   : > { %vm8893_vm14 = vcmp.lt.s32.totalorder %v8892_v19, 0  ;;  %v3395_v28 = vxor.u32 2147483648, %v12454_v44  ;;  %v3637_v61 = vand.u32 31, %v3635_v49  ;;  %v3470_v45 = vmul.u32 %v12416_v8, %v3454_v35 }
 0x37d   : > { %v3590_v50 = vsel %vm8893_vm14, 0, %v8892_v19  ;;  %v12471_v39 = vshrl.u32 %v3635_v49, 5  ;;  %v3473_v54 = vadd.s32 1, %v12459_v58  ;;  %v8914_v14 = vadd.s32 4294967169, %v4147_v20 }
 0x37e   : > { %v3591_v37 = vsub.s32 32, %v3590_v50  ;;  %v3595_v0 = vsub.s32 4294967266, %v3590_v50  ;;  %v3592_v40 = vshll.u32 %v12443_v60, %v3590_v50  ;;  %v3638_v5 = vsub.s32 32, %v3637_v61 }
 0x37f   : > { %vm3472_vm14 = vc.u32 %v12464_v33, %v12458_v4  ;;  %v3640_v34 = vshll.u32 %v16970_v53, %v3637_v61  ;;  %v3643_v36 = vshll.u32 %v16965_v22, %v3637_v61  ;;  %vm3655_vm6 = vcmp.lt.s32.totalorder %v12471_v39, 1 }
 0x380   : > { %v3593_v16 = vshrl.u32 %v12420_v15, %v3591_v37  ;;  %v3596_v6 = vadd.s32 127, %v3595_v0  ;;  %v3474_v21 = vsel %vm3472_vm14, %v3473_v54, %v12459_v58  ;;  %v3641_v8 = vshrl.u32 %v16965_v22, %v3638_v5 }
 0x381   : > { %v3644_v60 = vshrl.u32 %v16966_v55, %v3638_v5  ;;  %v3475_v19 = vadd.s32 %v3474_v21, %v3470_v45  ;;  %v17155_v15 = vand.u32 2147483647, %v12005_v23  ;;  %v17156_v20 = vmov 0 }
 0x382   : > { %v3594_v42 = vor.u32 %v3593_v16, %v3592_v40  ;;  %v3597_v17 = vshll.u32 %v3596_v6, 23  ;;  %v3642_v35 = vor.u32 %v3641_v8, %v3640_v34  ;;  %v3646_v32 = vshll.u32 %v16966_v55, %v3637_v61 }
 0x383   : > { %vm12486_vm4 = vcmp.le.f32.partialorder %v17155_v15, 0.7853982  ;;  %v3645_v18 = vor.u32 %v3644_v60, %v3643_v36  ;;  %v3647_v58 = vshrl.u32 %v16967_v43, %v3638_v5  ;;  %v3476_v48 = vadd.s32 536870912, %v3475_v19 }
 0x384   : > { %v17157_v20 = vsel %vm12486_vm4, 4294967295, %v17156_v20  ;;  %v3598_v49 = vor.u32 4788187, %v3597_v17  ;;  %v3649_v50 = vshll.u32 %v16967_v43, %v3637_v61  ;;  %v3650_v37 = vshrl.u32 %v16968_v29, %v3638_v5 }
 0x385   : > { %17158 = vst [vmem:[#allocation104_spill] sm:$0xff] %v17157_v20  ;;  %v17159_v0 = vand.u32 2147483647, %v12195_v27  ;;  %v3639_v40 = vshrl.u32 %v16970_v53, %v3638_v5  ;;  %v3648_v54 = vor.u32 %v3647_v58, %v3646_v32  ;;  %v3652_v16 = vshll.u32 %v16968_v29, %v3637_v61 }
 0x386   : > { %v3653_v6 = vshrl.u32 %v16969_v62, %v3638_v5  ;;  %vm3521_vm10 = vcmp.lt.s32.totalorder %v12264_v11, 0  ;;  %v3599_v34 = vand.u32 2147483647, %v3598_v49  ;;  %v3601_v21 = vcvt.s32.f32 %v3594_v42 }
 0x387   : > { %vm12496_vm13 = vcmp.le.f32.partialorder %v17159_v0, 0.7853982  ;;  %v12504_v8 = vshrl.u32 %v3476_v48, 30  ;;  %v3651_v36 = vor.u32 %v3650_v37, %v3649_v50  ;;  %vm3656_vm2 = vcmp.lt.s32.totalorder %v12471_v39, 2 }
 0x388   : > { %v3654_v60 = vor.u32 %v3653_v6, %v3652_v16  ;;  %vm3658_vm14 = vcmp.lt.s32.totalorder %v12471_v39, 4  ;;  %v3663_v17 = vsel %vm3655_vm6, %v3642_v35, %v3645_v18  ;;  %vm3657_vm3 = vcmp.lt.s32.totalorder %v12471_v39, 3 }
 0x389   : > { %17162 = vst [vmem:[#allocation105_spill] sm:$0xff] %v12504_v8  ;;  %v3478_v15 = vshll.u32 %v12504_v8, 30  ;;  %v3660_v61 = vsel %vm3658_vm14, %v3648_v54, 2102212464  ;;  %v3664_v5 = vsel %vm3658_vm14, %v3651_v36, 920167782  ;;  %v3602_v32 = vmul.f32 %v3601_v21, %v3599_v34 }
 0x38a   : > { %v3665_v58 = vsel %vm3657_vm3, %v3648_v54, %v3664_v5  ;;  %v3667_v42 = vsel %vm3655_vm6, %v3645_v18, %v3648_v54  ;;  %v3668_v49 = vsel %vm3658_vm14, %v3654_v60, 1326507024  ;;  %v3659_v50 = vsel %vm3655_vm6, %v3639_v40, %v3642_v35 }
 0x38b   : > { %v12514_v48 = vsub.s32 %v3475_v19, %v3478_v15  ;;  %v3666_v37 = vsel %vm3656_vm2, %v3663_v17, %v3665_v58  ;;  %v17163_v0 = vand.u32 2147483647, %v12395_v57  ;;  %v3661_v6 = vsel %vm3657_vm3, %v3645_v18, %v3660_v61 }
 0x38c   : > { %v3669_v59 = vsel %vm3657_vm3, %v3651_v36, %v3668_v49  ;;  %v12523_v34 = vmul.u32.u64.low %v12466_v24, %v3666_v37  ;;  %v12524_v21 = vmul.u32.u64.high %v12466_v24, %v3666_v37, %v12523_v34  ;;  %v12531_v19 = vsel %vm12486_vm4, %v12005_v23, %v12414_v26 }
 0x38d   : > { %v4150_v16 = vand.u32 8388607, %v17163_v0  ;;  %vm17164_vm6 = vcmp.lt.s32.totalorder %v12195_v27, 0  ;;  %v3481_v18 = vsub.s32 0, %v12514_v48  ;;  %v3670_v40 = vsel %vm3656_vm2, %v3667_v42, %v3669_v59 }
 0x38e   : > { %v3396_v35 = vsel %vm17164_vm6, %v3395_v28, %v12454_v44  ;;  %v3603_v54 = vxor.u32 2147483648, %v3602_v32  ;;  %v12542_v36 = vmul.u32.u64.low %v12466_v24, %v3670_v40  ;;  %v12543_v60 = vmul.u32.u64.high %v12466_v24, %v3670_v40, %v12542_v36 }
 0x38f   : > { %v4153_v17 = vadd.s32 1, %v8914_v14  ;;  %v8887_v15 = vmin.u32 %v3481_v18, %v12514_v48  ;;  %v3662_v44 = vsel %vm3656_vm2, %v3659_v50, %v3661_v6  ;;  %v4151_v28 = vor.u32 8388608, %v4150_v16 }
 0x390   : > { %9601 = vcosq.f32 %v12531_v19  ;;  %v17165_v59 = vsub.s32 4, %v12427_v41  ;;  %v3681_v14 = vadd.s32 1, %v12524_v21  ;;  %v12563_v5 = vsel %vm12496_vm13, %v12195_v27, %v3396_v35 }
 0x391   : > { %vm4154_vm3 = vcmp.gt.s32.totalorder %v4153_v17, 0  ;;  %v3471_v39 = vadd.s32 %v12458_v4, %v12464_v33  ;;  %v3483_v58 = vclz %v8887_v15  ;;  %v12569_v49 = vsel %vm3521_vm10, %v3603_v54, %v3602_v32 }
 0x392   : > { %v12557_v61 = vsel %vm3521_vm10, %v17165_v59, %v12427_v41  ;;  %v4155_v42 = vsel %vm4154_vm3, %v4153_v17, 0  ;;  %v3678_v41 = vmul.u32 %v12466_v24, %v3662_v44  ;;  %vm3680_vm2 = vc.u32 %v12543_v60, %v12523_v34 }
 0x393   : > { %v4157_v50 = vand.u32 31, %v4155_v42  ;;  %v8888_v37 = vadd.s32 4294967294, %v3483_v58  ;;  %v3682_v0 = vsel %vm3680_vm2, %v3681_v14, %v12524_v21  ;;  %v12575_v16 = vshll.u32 %v4151_v28, 8 }
 0x394   : > { %v12579_v4 = vadd.f32 %v17150_v12, %v12049_v9  ;;  %v3683_v33 = vadd.s32 %v3682_v0, %v3678_v41  ;;  %v12581_v6 = vshrl.u32 %v4155_v42, 5  ;;  %9603 = vsinq.f32 %v12531_v19 }
 0x395   : > { %v4158_v32 = vsub.s32 32, %v4157_v50  ;;  %v4160_v35 = vshll.u32 %v16970_v53, %v4157_v50  ;;  %vm8889_vm10 = vcmp.lt.s32.totalorder %v8888_v37, 0  ;;  %v4163_v24 = vshll.u32 %v16965_v22, %v4157_v50 }
 0x396   : > { %v4166_v18 = vshll.u32 %v16966_v55, %v4157_v50  ;;  %v4169_v40 = vshll.u32 %v16967_v43, %v4157_v50  ;;  %v3486_v21 = vsel %vm8889_vm10, 0, %v8888_v37  ;;  %v3684_v54 = vadd.s32 536870912, %v3683_v33 }
 0x397   : > { %v4161_v36 = vshrl.u32 %v16965_v22, %v4158_v32  ;;  %v4172_v9 = vshll.u32 %v16968_v29, %v4157_v50  ;;  %v3487_v17 = vsub.s32 32, %v3486_v21  ;;  %v3488_v15 = vshll.u32 %v12514_v48, %v3486_v21 }
 0x398   : > { %v3491_v44 = vsub.s32 4294967266, %v3486_v21  ;;  %v4164_v28 = vshrl.u32 %v16966_v55, %v4158_v32  ;;  %v12591_v59 = vshrl.u32 %v3684_v54, 30  ;;  %v4167_v58 = vshrl.u32 %v16967_v43, %v4158_v32 }
 0x399   : > { %v4162_v14 = vor.u32 %v4161_v36, %v4160_v35  ;;  %v4170_v42 = vshrl.u32 %v16968_v29, %v4158_v32  ;;  %v3489_v41 = vshrl.u32 %v3471_v39, %v3487_v17  ;;  %v4173_v26 = vshrl.u32 %v16969_v62, %v4158_v32 }
 0x39a   : > { %17166 = vst [vmem:[#allocation106_spill] sm:$0xff] %v12591_v59  ;;  %v3492_v37 = vadd.s32 127, %v3491_v44  ;;  %v4165_v0 = vor.u32 %v4164_v28, %v4163_v24  ;;  %v12596_v27 = vpop.eup %9601  ;;  %v17168_v50 = vand.u32 2147483647, %v12264_v11  ;;  %v3686_v21 = vshll.u32 %v12591_v59, 30 }
 0x39b   : > { %17167 = vst [vmem:[#allocation107_spill] sm:$0xff] %v12596_v27  ;;  %v4168_v35 = vor.u32 %v4167_v58, %v4166_v18  ;;  %v4171_v54 = vor.u32 %v4170_v42, %v4169_v40  ;;  %v4354_v36 = vand.u32 2139095040, %v12579_v4  ;;  %v3490_v8 = vor.u32 %v3489_v41, %v3488_v15 }
 0x39c   : > { %vm12600_vm14 = vcmp.le.f32.partialorder %v17168_v50, 0.7853982  ;;  %v3493_v39 = vshll.u32 %v3492_v37, 23  ;;  %v4159_v24 = vshrl.u32 %v16970_v53, %v4158_v32  ;;  %v4174_v17 = vor.u32 %v4173_v26, %v4172_v9 }
 0x39d   : > { %v12607_v44 = vsub.s32 %v3683_v33, %v3686_v21  ;;  %vm4175_vm6 = vcmp.lt.s32.totalorder %v12581_v6, 1  ;;  %vm4176_vm3 = vcmp.lt.s32.totalorder %v12581_v6, 2  ;;  %vm4178_vm2 = vcmp.lt.s32.totalorder %v12581_v6, 4 }
 0x39e   : > { %v3494_v28 = vor.u32 4788187, %v3493_v39  ;;  %vm4177_vm10 = vcmp.lt.s32.totalorder %v12581_v6, 3  ;;  %v4180_v18 = vsel %vm4178_vm2, %v4168_v35, 2102212464  ;;  %v4183_v40 = vsel %vm4175_vm6, %v4162_v14, %v4165_v0 }
 0x39f   : > { %v3689_v58 = vsub.s32 0, %v12607_v44  ;;  %v4179_v15 = vsel %vm4175_vm6, %v4159_v24, %v4162_v14  ;;  %v4184_v42 = vsel %vm4178_vm2, %v4171_v54, 920167782  ;;  %v4187_v41 = vsel %vm4175_vm6, %v4165_v0, %v4168_v35 }
 0x3a0   : > { %v3495_v32 = vand.u32 2147483647, %v3494_v28  ;;  %v3497_v26 = vcvt.s32.f32 %v3490_v8  ;;  %v4185_v33 = vsel %vm4177_vm10, %v4168_v35, %v4184_v42  ;;  %v4188_v9 = vsel %vm4178_vm2, %v4174_v17, 1326507024 }
 0x3a1   : > { %v8895_v37 = vmin.u32 %v3689_v58, %v12607_v44  ;;  %v4181_v50 = vsel %vm4177_vm10, %v4165_v0, %v4180_v18  ;;  %v4186_v21 = vsel %vm4176_vm3, %v4183_v40, %v4185_v33  ;;  %v4189_v39 = vsel %vm4177_vm10, %v4171_v54, %v4188_v9 }
 0x3a2   : > { %v3498_v59 = vmul.f32 %v3497_v26, %v3495_v32  ;;  %v4190_v20 = vsel %vm4176_vm3, %v4187_v41, %v4189_v39  ;;  %v12620_v27 = vmul.u32.u64.low %v12575_v16, %v4186_v21  ;;  %v12621_v14 = vmul.u32.u64.high %v12575_v16, %v4186_v21, %v12620_v27 }
 0x3a3   : > { %v3691_v24 = vclz %v8895_v37  ;;  %v12624_v8 = vmul.u32.u64.low %v12575_v16, %v4190_v20  ;;  %v12625_v35 = vmul.u32.u64.high %v12575_v16, %v4190_v20, %v12624_v8  ;;  %v4355_v17 = vshrl.u32 %v4354_v36, 23 }
 0x3a4   : > { %v17171_v0 = vsel %vm12496_vm13, 0, %v12410_v52  ;;  %v3608_v28 = vsel %vm12600_vm14, 0, %v12557_v61  ;;  %vm16745_vm6 = vcmp.lt.s32.totalorder %v12316_v56, 0  ;;  %9605 = vcosq.f32 %v12563_v5 }
 0x3a5   : > { %v12632_v54 = vadd.s32 3, %v17171_v0  ;;  %v17173_v20 = vand.u32 2147483647, %v12316_v56  ;;  %v17174_v36 = vmov 0  ;;  %v8896_v19 = vadd.s32 4294967294, %v3691_v24 }
 0x3a6   : > { %v4182_v52 = vsel %vm4176_vm3, %v4179_v15, %v4181_v50  ;;  %v8922_v45 = vadd.s32 4294967169, %v4355_v17  ;;  %v3607_v61 = vsel %vm12600_vm14, %v12264_v11, %v12569_v49  ;;  %v4201_v18 = vadd.s32 1, %v12621_v14  ;;  %v12678_v17 = vpop.eup %9603 }
 0x3a7   : > { %17172 = vst [vmem:[#allocation108_spill] sm:$0xff] %v12632_v54  ;;  %vm12641_vm2 = vcmp.le.f32.partialorder %v17173_v20, 0.7853982  ;;  %v16744_v40 = vand.u32 2147483647, %v12579_v4  ;;  %v12655_v58 = vadd.f32 %v17150_v12, %v12176_v25  ;;  %9607 = vsinq.f32 %v12563_v5 }
 0x3a8   : > { %v17175_v36 = vsel %vm12641_vm2, 4294967295, %v17174_v36  ;;  %v3499_v42 = vxor.u32 2147483648, %v3498_v59  ;;  %vm8897_vm13 = vcmp.lt.s32.totalorder %v8896_v19, 0  ;;  %vm4200_vm3 = vc.u32 %v12625_v35, %v12620_v27 }
 0x3a9   : > { %v3694_v6 = vsel %vm8897_vm13, 0, %v8896_v19  ;;  %v4198_v15 = vmul.u32 %v12575_v16, %v4182_v52  ;;  %v4202_v48 = vsel %vm4200_vm3, %v4201_v18, %v12621_v14  ;;  %v4361_v49 = vadd.s32 1, %v8922_v45 }
 0x3aa   : > { %9609 = vcosq.f32 %v3607_v61  ;;  %v3679_v41 = vadd.s32 %v12523_v34, %v12543_v60  ;;  %v3695_v32 = vsub.s32 32, %v3694_v6  ;;  %v3699_v26 = vsub.s32 4294967266, %v3694_v6 }
 0x3ab   : > { %v4203_v25 = vadd.s32 %v4202_v48, %v4198_v15  ;;  %v12665_v5 = vand.u32 8388607, %v16744_v40  ;;  %vm4362_vm14 = vcmp.gt.s32.totalorder %v4361_v49, 0  ;;  %v4250_v33 = vand.u32 2139095040, %v12655_v58 }
 0x3ac   : > { %v3500_v16 = vsel %vm16745_vm6, %v3499_v42, %v3498_v59  ;;  %v3697_v9 = vshrl.u32 %v3679_v41, %v3695_v32  ;;  %v3700_v37 = vadd.s32 127, %v3699_v26  ;;  %v4363_v50 = vsel %vm4362_vm14, %v4361_v49, 0 }
 0x3ad   : > { %9611 = vsinq.f32 %v3607_v61  ;;  %v12670_v21 = vadd.s32 3, %v3608_v28  ;;  %v4204_v34 = vadd.s32 536870912, %v4203_v25  ;;  %v4365_v60 = vand.u32 31, %v4363_v50 }
 0x3ae   : > { %v3696_v39 = vshll.u32 %v12607_v44, %v3694_v6  ;;  %v3701_v14 = vshll.u32 %v3700_v37, 23  ;;  %v12676_v8 = vadd.f32 %v17150_v12, %v12243_v30  ;;  %v12683_v59 = vsel %vm12641_vm2, %v12316_v56, %v3500_v16  ;;  %v12688_v44 = vpop.eup %9605 }
 0x3af   : > { %17176 = vst [vmem:[#allocation109_spill] sm:$0xff] %v12670_v21  ;;  %v12685_v0 = vshrl.u32 %v4204_v34, 30  ;;  %v4359_v28 = vor.u32 8388608, %v12665_v5  ;;  %v4366_v20 = vsub.s32 32, %v4365_v60  ;;  %17177 = vst [vmem:[#allocation110_spill] sm:$0xff] %v12688_v44  ;;  %v12691_v45 = vadd.s32 %v12620_v27, %v12625_v35 }
 0x3b0   : > { %v3698_v19 = vor.u32 %v3697_v9, %v3696_v39  ;;  %v3702_v52 = vor.u32 4788187, %v3701_v14  ;;  %v4251_v30 = vshrl.u32 %v4250_v33, 23  ;;  %v4368_v61 = vshll.u32 %v16970_v53, %v4365_v60 }
 0x3b1   : > { %v4206_v12 = vshll.u32 %v12685_v0, 30  ;;  %v4369_v18 = vshrl.u32 %v16965_v22, %v4366_v20  ;;  %v4371_v42 = vshll.u32 %v16965_v22, %v4365_v60  ;;  %v12697_v6 = vpop.eup %9607  ;;  %v4372_v15 = vshrl.u32 %v16966_v55, %v4366_v20 }
 0x3b2   : > { %17178 = vst [vmem:[#allocation111_spill] sm:$0xff] %v12697_v6  ;;  %v4374_v48 = vshll.u32 %v16966_v55, %v4365_v60  ;;  %v4375_v49 = vshrl.u32 %v16967_v43, %v4366_v20  ;;  %v4378_v27 = vshrl.u32 %v16968_v29, %v4366_v20  ;;  %9613 = vcosq.f32 %v12683_v59 }
 0x3b3   : > { %v12704_v35 = vsub.s32 %v4203_v25, %v4206_v12  ;;  %v4364_v41 = vshrl.u32 %v4363_v50, 5  ;;  %v4377_v32 = vshll.u32 %v16967_v43, %v4365_v60  ;;  %v3703_v5 = vand.u32 2147483647, %v3702_v52 }
 0x3b4   : > { %v12707_v26 = vpop.eup %9609  ;;  %v4370_v33 = vor.u32 %v4369_v18, %v4368_v61  ;;  %v4373_v16 = vor.u32 %v4372_v15, %v4371_v42  ;;  %v4376_v9 = vor.u32 %v4375_v49, %v4374_v48  ;;  %v4380_v39 = vshll.u32 %v16968_v29, %v4365_v60 }
 0x3b5   : > { %17179 = vst [vmem:[#allocation112_spill] sm:$0xff] %v12707_v26  ;;  %v4209_v37 = vsub.s32 0, %v12704_v35  ;;  %v4379_v34 = vor.u32 %v4378_v27, %v4377_v32  ;;  %v4381_v14 = vshrl.u32 %v16969_v62, %v4366_v20  ;;  %v3705_v25 = vcvt.s32.f32 %v3698_v19 }
 0x3b6   : > { %v4229_v50 = vsub.s32 4, %v12685_v0  ;;  %v4367_v12 = vshrl.u32 %v16970_v53, %v4366_v20  ;;  %v8918_v40 = vadd.s32 4294967169, %v4251_v30  ;;  %vm4383_vm13 = vcmp.lt.s32.totalorder %v4364_v41, 1 }
 0x3b7   : > { %v12715_v24 = vpop.eup %9611  ;;  %v8915_v52 = vmin.u32 %v4209_v37, %v12704_v35  ;;  %v4382_v61 = vor.u32 %v4381_v14, %v4380_v39  ;;  %vm4386_vm3 = vcmp.lt.s32.totalorder %v4364_v41, 4  ;;  %vm4385_vm14 = vcmp.lt.s32.totalorder %v4364_v41, 3 }
 0x3b8   : > { %17180 = vst [vmem:[#allocation113_spill] sm:$0xff] %v12715_v24  ;;  %v4388_v18 = vsel %vm4386_vm3, %v4376_v9, 2102212464  ;;  %v4391_v60 = vsel %vm4383_vm13, %v4370_v33, %v4373_v16  ;;  %v4392_v42 = vsel %vm4386_vm3, %v4379_v34, 920167782  ;;  %v3706_v19 = vmul.f32 %v3705_v25, %v3703_v5 }
 0x3b9   : > { %v17181_v15 = vand.u32 2147483647, %v12395_v57  ;;  %v4211_v30 = vclz %v8915_v52  ;;  %vm16748_vm10 = vcmp.lt.s32.totalorder %v4364_v41, 2  ;;  %v4393_v48 = vsel %vm4385_vm14, %v4376_v9, %v4392_v42 }
 0x3ba   : > { %v4394_v49 = vsel %vm16748_vm10, %v4391_v60, %v4393_v48  ;;  %v4395_v27 = vsel %vm4383_vm13, %v4373_v16, %v4376_v9  ;;  %v4399_v32 = vshll.u32 %v4359_v28, 8  ;;  %v17184_v37 = vand.u32 2147483647, %v12655_v58 }
 0x3bb   : > { %vm12723_vm6 = vcmp.le.f32.partialorder %v17181_v15, 0.7853982  ;;  %v8916_v39 = vadd.s32 4294967294, %v4211_v30  ;;  %v4387_v14 = vsel %vm4383_vm13, %v4367_v12, %v4370_v33  ;;  %v4389_v25 = vsel %vm4385_vm14, %v4373_v16, %v4388_v18 }
 0x3bc   : > { %v12733_v5 = vand.u32 8388607, %v17184_v37  ;;  %v4396_v52 = vsel %vm4386_vm3, %v4382_v61, 1326507024  ;;  %v12739_v15 = vmul.u32.u64.low %v4399_v32, %v4394_v49  ;;  %v12740_v11 = vmul.u32.u64.high %v4399_v32, %v4394_v49, %v12739_v15  ;;  %v12743_v9 = vpop.eup %9613 }
 0x3bd   : > { %v4397_v42 = vsel %vm4385_vm14, %v4379_v34, %v4396_v52  ;;  %v4257_v60 = vadd.s32 1, %v8918_v40  ;;  %v3707_v28 = vxor.u32 2147483648, %v3706_v19  ;;  %vm8917_vm2 = vcmp.lt.s32.totalorder %v8916_v39, 0 }
 0x3be   : > { %vm17185_vm10 = vcmp.lt.s32.totalorder %v12395_v57, 0  ;;  %vm17186_vm13 = vcmp.lt.s32.totalorder %v4364_v41, 2  ;;  %v4214_v16 = vsel %vm8917_vm2, 0, %v8916_v39  ;;  %9615 = vsinq.f32 %v12683_v59 }
 0x3bf   : > { %v4230_v30 = vsel %vm17185_vm10, %v4229_v50, %v12685_v0  ;;  %v4398_v33 = vsel %vm17186_vm13, %v4395_v27, %v4397_v42  ;;  %vm4258_vm3 = vcmp.gt.s32.totalorder %v4257_v60, 0  ;;  %v4215_v34 = vsub.s32 32, %v4214_v16  ;;  %vm17187_vm14 = vmmov %vm17186_vm13 }
 0x3c0   : > { %v12749_v12 = vmul.u32.u64.low %v4399_v32, %v4398_v33  ;;  %v12750_v61 = vmul.u32.u64.high %v4399_v32, %v4398_v33, %v12749_v12  ;;  %v4219_v18 = vsub.s32 4294967266, %v4214_v16  ;;  %v4390_v48 = vsel %vm17187_vm14, %v4387_v14, %v4389_v25 }
 0x3c1   : > { %v4259_v40 = vsel %vm4258_vm3, %v4257_v60, 0  ;;  %v17188_v49 = vand.u32 2147483647, %v12335_v63  ;;  %v17189_v37 = vmov 0  ;;  %v4409_v0 = vadd.s32 1, %v12740_v11 }
 0x3c2   : > { %v4255_v50 = vor.u32 8388608, %v12733_v5  ;;  %v4261_v27 = vand.u32 31, %v4259_v40  ;;  %v4216_v39 = vshll.u32 %v12704_v35, %v4214_v16  ;;  %v4217_v52 = vshrl.u32 %v12691_v45, %v4215_v34 }
 0x3c3   : > { %vm12756_vm4 = vcmp.le.f32.partialorder %v17188_v49, 0.7853982  ;;  %v4220_v41 = vadd.s32 127, %v4219_v18  ;;  %v4232_v59 = vsel %vm12723_vm6, 0, %v4230_v30  ;;  %v4406_v25 = vmul.u32 %v4399_v32, %v4390_v48 }
 0x3c4   : > { %v17190_v37 = vsel %vm12756_vm4, 4294967295, %v17189_v37  ;;  %vm4408_vm2 = vc.u32 %v12750_v61, %v12739_v15  ;;  %v4262_v42 = vsub.s32 32, %v4261_v27  ;;  %vm17192_vm10 = vcmp.lt.s32.totalorder %v12335_v63, 0 }
 0x3c5   : > { %17191 = vst [vmem:[#allocation114_spill] sm:$0xff] %v17190_v37  ;;  %v3708_v60 = vsel %vm17192_vm10, %v3707_v28, %v3706_v19  ;;  %v4218_v5 = vor.u32 %v4217_v52, %v4216_v39  ;;  %v4221_v33 = vshll.u32 %v4220_v41, 23  ;;  %v4410_v35 = vsel %vm4408_vm2, %v4409_v0, %v12740_v11 }
 0x3c6   : > { %v4411_v16 = vadd.s32 %v4410_v35, %v4406_v25  ;;  %v4264_v45 = vshll.u32 %v16970_v53, %v4261_v27  ;;  %v4265_v12 = vshrl.u32 %v16965_v22, %v4262_v42  ;;  %v4268_v34 = vshrl.u32 %v16966_v55, %v4262_v42 }
 0x3c7   : > { %v4222_v30 = vor.u32 4788187, %v4221_v33  ;;  %v4260_v32 = vshrl.u32 %v4259_v40, 5  ;;  %v4267_v18 = vshll.u32 %v16965_v22, %v4261_v27  ;;  %v4271_v48 = vshrl.u32 %v16967_v43, %v4262_v42 }
 0x3c8   : > { %v4225_v49 = vcvt.s32.f32 %v4218_v5  ;;  %v4412_v19 = vadd.s32 536870912, %v4411_v16  ;;  %v4266_v28 = vor.u32 %v4265_v12, %v4264_v45  ;;  %v4270_v11 = vshll.u32 %v16966_v55, %v4261_v27 }
 0x3c9   : > { %v4223_v0 = vand.u32 2147483647, %v4222_v30  ;;  %v4269_v39 = vor.u32 %v4268_v34, %v4267_v18  ;;  %v4273_v52 = vshll.u32 %v16967_v43, %v4261_v27  ;;  %v4274_v41 = vshrl.u32 %v16968_v29, %v4262_v42 }
 0x3ca   : > { %v12781_v25 = vadd.s32 3, %v4232_v59  ;;  %v4413_v40 = vshrl.u32 %v4412_v19, 30  ;;  %v4272_v33 = vor.u32 %v4271_v48, %v4270_v11  ;;  %v4277_v35 = vshrl.u32 %v16969_v62, %v4262_v42  ;;  %v12794_v59 = vpop.eup %9615 }
 0x3cb   : > { %v3711_v5 = vsel %vm12756_vm4, %v12335_v63, %v3708_v60  ;;  %v4226_v14 = vmul.f32 %v4225_v49, %v4223_v0  ;;  %v17194_v45 = vand.u32 2147483647, %v12579_v4  ;;  %v4275_v34 = vor.u32 %v4274_v41, %v4273_v52 }
 0x3cc   : > { %17193 = vst [vmem:[#allocation115_spill] sm:$0xff] %v12781_v25  ;;  %v4276_v30 = vshll.u32 %v16968_v29, %v4261_v27  ;;  %v4414_v18 = vshll.u32 %v4413_v40, 30  ;;  %vm4279_vm14 = vcmp.lt.s32.totalorder %v4260_v32, 1  ;;  %vm4281_vm2 = vcmp.lt.s32.totalorder %v4260_v32, 3 }
 0x3cd   : > { %vm12789_vm3 = vcmp.le.f32.partialorder %v17194_v45, 0.7853982  ;;  %vm4282_vm10 = vcmp.lt.s32.totalorder %v4260_v32, 4  ;;  %v4437_v48 = vsub.s32 4, %v4413_v40  ;;  %v4287_v60 = vsel %vm4279_vm14, %v4266_v28, %v4269_v39 }
 0x3ce   : > { %v4278_v19 = vor.u32 %v4277_v35, %v4276_v30  ;;  %v4288_v49 = vsel %vm4282_vm10, %v4275_v34, 920167782  ;;  %v12798_v11 = vsub.s32 %v4411_v16, %v4414_v18  ;;  %vm16754_vm13 = vcmp.lt.s32.totalorder %v4260_v32, 2 }
 0x3cf   : > { %v4289_v0 = vsel %vm4281_vm2, %v4272_v33, %v4288_v49  ;;  %v4295_v52 = vshll.u32 %v4255_v50, 8  ;;  %v4227_v41 = vxor.u32 2147483648, %v4226_v14  ;;  %v4284_v27 = vsel %vm4282_vm10, %v4272_v33, 2102212464 }
 0x3d0   : > { %v4290_v45 = vsel %vm16754_vm13, %v4287_v60, %v4289_v0  ;;  %v4458_v26 = vand.u32 2139095040, %v12676_v8  ;;  %v4417_v24 = vsub.s32 0, %v12798_v11  ;;  %v4263_v35 = vshrl.u32 %v16970_v53, %v4262_v42 }
 0x3d1   : > { %v4291_v30 = vsel %vm4279_vm14, %v4269_v39, %v4272_v33  ;;  %v17197_v16 = vand.u32 2147483647, %v12676_v8  ;;  %vm17198_vm4 = vcmp.lt.s32.totalorder %v12579_v4, 0  ;;  %v4292_v50 = vsel %vm4282_vm10, %v4278_v19, 1326507024 }
 0x3d2   : > { %v4438_v49 = vsel %vm17198_vm4, %v4437_v48, %v4413_v40  ;;  %v12812_v21 = vmul.u32.u64.low %v4295_v52, %v4290_v45  ;;  %v12813_v25 = vmul.u32.u64.high %v4295_v52, %v4290_v45, %v12812_v21  ;;  %v8923_v60 = vmin.u32 %v4417_v24, %v12798_v11  ;;  %v17201_v40 = vld [vmem:[#allocation13_spill] sm:$0xff] }
 0x3d3   : > { %v4462_v18 = vand.u32 8388607, %v17197_v16  ;;  %v4283_v0 = vsel %vm4279_vm14, %v4263_v35, %v4266_v28  ;;  %v4285_v44 = vsel %vm4281_vm2, %v4269_v39, %v4284_v27  ;;  %v4293_v42 = vsel %vm4281_vm2, %v4275_v34, %v4292_v50  ;;  %v17203_v27 = vld [vmem:[#allocation11_spill] sm:$0xff] }
 0x3d4   : > { %vm17199_vm13 = vcmp.lt.s32.totalorder %v12395_v57, 0  ;;  %vm17200_vm11 = vcmp.lt.s32.totalorder %v4260_v32, 2  ;;  %v4459_v6 = vshrl.u32 %v4458_v26, 23  ;;  %v1421_v48 = vsub.s32 4, %v17201_v40 }
 0x3d5   : > { %v4228_v33 = vsel %vm17199_vm13, %v4227_v41, %v4226_v14  ;;  %v4294_v16 = vsel %vm17200_vm11, %v4291_v30, %v4293_v42  ;;  %v4419_v19 = vclz %v8923_v60  ;;  %v4440_v45 = vsel %vm12789_vm3, 0, %v4438_v49  ;;  %vm17202_vm4 = vmmov %vm17200_vm11 }
 0x3d6   : > { %v12825_v54 = vmul.u32.u64.low %v4295_v52, %v4294_v16  ;;  %v12826_v24 = vmul.u32.u64.high %v4295_v52, %v4294_v16, %v12825_v54  ;;  %v4286_v28 = vsel %vm17202_vm4, %v4283_v0, %v4285_v44  ;;  %v4305_v39 = vadd.s32 1, %v12813_v25  ;;  %v17207_v16 = vld [vmem:[#allocation34_spill] sm:$0xff] }
 0x3d7   : > { %v8926_v34 = vadd.s32 4294967169, %v4459_v6  ;;  %vm17204_vm13 = vcmp.lt.s32.totalorder %v17203_v27, 0  ;;  %9617 = vcosq.f32 %v3711_v5  ;;  %v8924_v26 = vadd.s32 4294967294, %v4419_v19 }
 0x3d8   : > { %v1422_v14 = vsel %vm17204_vm13, %v1421_v48, %v17201_v40  ;;  %v4463_v41 = vor.u32 8388608, %v4462_v18  ;;  %9619 = vsinq.f32 %v3711_v5  ;;  %v12838_v54 = vsel %vm12723_vm6, %v12395_v57, %v4228_v33  ;;  %v17209_v48 = vld [vmem:[#allocation24_spill] sm:$0xff] }
 0x3d9   : > { %v1424_v30 = vsel %vm10701_vm7, 0, %v1422_v14  ;;  %v4407_v44 = vadd.s32 %v12739_v15, %v12750_v61  ;;  %v4465_v6 = vadd.s32 1, %v8926_v34  ;;  %vm8925_vm11 = vcmp.lt.s32.totalorder %v8924_v26, 0  ;;  %v17208_v61 = vld [vmem:[#allocation33_spill] sm:$0xff] }
 0x3da   : > { %v12842_v32 = vadd.s32 3, %v4440_v45  ;;  %v4302_v49 = vmul.u32 %v4295_v52, %v4286_v28  ;;  %vm4304_vm14 = vc.u32 %v12826_v24, %v12812_v21  ;;  %v4422_v18 = vsel %vm8925_vm11, 0, %v8924_v26  ;;  %v17210_v26 = vld [vmem:[#allocation51_spill] sm:$0xff] }
 0x3db   : > { %v4306_v50 = vsel %vm4304_vm14, %v4305_v39, %v12813_v25  ;;  %vm4466_vm7 = vcmp.gt.s32.totalorder %v4465_v6, 0  ;;  %v1428_v5 = vadd.s32 3, %v1424_v30  ;;  %v4423_v60 = vsub.s32 32, %v4422_v18 }
 0x3dc   : > { %17206 = vst [vmem:[#allocation13_spill] sm:$0xff] %v12842_v32  ;;  %v4427_v0 = vsub.s32 4294967266, %v4422_v18  ;;  %v4307_v20 = vadd.s32 %v4306_v50, %v4302_v49  ;;  %v12846_v42 = vshll.u32 %v4463_v41, 8  ;;  %v4467_v33 = vsel %vm4466_vm7, %v4465_v6, 0 }
 0x3dd   : > { %v2253_v19 = vsub.s32 4, %v17209_v48  ;;  %v4424_v52 = vshll.u32 %v12798_v11, %v4422_v18  ;;  %v4425_v45 = vshrl.u32 %v4407_v44, %v4423_v60  ;;  %v12853_v25 = vadd.s32 %v12812_v21, %v12826_v24 }
 0x3de   : > { %v4428_v28 = vadd.s32 127, %v4427_v0  ;;  %v4308_v34 = vadd.s32 536870912, %v4307_v20  ;;  %v4469_v39 = vand.u32 31, %v4467_v33  ;;  %v12855_v14 = vand.u32 3, %v1428_v5 }
 0x3df   : > { %v4426_v35 = vor.u32 %v4425_v45, %v4424_v52  ;;  %v4468_v49 = vshrl.u32 %v4467_v33, 5  ;;  %9621 = vcosq.f32 %v12838_v54 }
 0x3e0   : > { %v4429_v30 = vshll.u32 %v4428_v28, 23  ;;  %v12858_v6 = vshrl.u32 %v4308_v34, 30  ;;  %v4470_v50 = vsub.s32 32, %v4469_v39  ;;  %v4472_v40 = vshll.u32 %v16970_v53, %v4469_v39 }
 0x3e1   : > { %v4475_v11 = vshll.u32 %v16965_v22, %v4469_v39  ;;  %v4478_v44 = vshll.u32 %v16966_v55, %v4469_v39  ;;  %v12863_v18 = vpop.eup %9617  ;;  %v4433_v24 = vcvt.s32.f32 %v4426_v35  ;;  %v4481_v60 = vshll.u32 %v16967_v43, %v4469_v39 }
 0x3e2   : > { %17211 = vst [vmem:[#allocation11_spill] sm:$0xff] %v12863_v18  ;;  %v4430_v21 = vor.u32 4788187, %v4429_v30  ;;  %v4310_v5 = vshll.u32 %v12858_v6, 30  ;;  %v12867_v0 = vpop.eup %9619  ;;  %v4471_v52 = vshrl.u32 %v16970_v53, %v4470_v50  ;;  %v4473_v33 = vshrl.u32 %v16965_v22, %v4470_v50 }
 0x3e3   : > { %v4476_v45 = vshrl.u32 %v16966_v55, %v4470_v50  ;;  %v4479_v28 = vshrl.u32 %v16967_v43, %v4470_v50  ;;  %v4482_v30 = vshrl.u32 %v16968_v29, %v4470_v50  ;;  %v4484_v35 = vshll.u32 %v16968_v29, %v4469_v39 }
 0x3e4   : > { %v4431_v34 = vand.u32 2147483647, %v4430_v21  ;;  %v12873_v41 = vsub.s32 %v4307_v20, %v4310_v5  ;;  %v4474_v15 = vor.u32 %v4473_v33, %v4472_v40  ;;  %v4485_v37 = vshrl.u32 %v16969_v62, %v4470_v50 }
 0x3e5   : > { %v4477_v32 = vor.u32 %v4476_v45, %v4475_v11  ;;  %v4480_v57 = vor.u32 %v4479_v28, %v4478_v44  ;;  %v4483_v22 = vor.u32 %v4482_v30, %v4481_v60  ;;  %vm4487_vm6 = vcmp.lt.s32.totalorder %v4468_v49, 1 }
 0x3e6   : > { %v4434_v18 = vmul.f32 %v4433_v24, %v4431_v34  ;;  %v4313_v53 = vsub.s32 0, %v12873_v41  ;;  %v4486_v55 = vor.u32 %v4485_v37, %v4484_v35  ;;  %vm4489_vm2 = vcmp.lt.s32.totalorder %v4468_v49, 3 }
 0x3e7   : > { %vm4490_vm10 = vcmp.lt.s32.totalorder %v4468_v49, 4  ;;  %v4491_v21 = vsel %vm4487_vm6, %v4471_v52, %v4474_v15  ;;  %vm1430_vm4 = vcmp.lt.s32.totalorder %v12855_v14, 2  ;;  %v4495_v40 = vsel %vm4487_vm6, %v4474_v15, %v4477_v32 }
 0x3e8   : > { %v4435_v20 = vxor.u32 2147483648, %v4434_v18  ;;  %v8919_v5 = vmin.u32 %v4313_v53, %v12873_v41  ;;  %v4492_v39 = vsel %vm4490_vm10, %v4480_v57, 2102212464  ;;  %v4496_v44 = vsel %vm4490_vm10, %v4483_v22, 920167782  ;;  %v17212_v53 = vld [vmem:[#allocation18_spill] sm:$0xff] }
 0x3e9   : > { %v4493_v11 = vsel %vm4489_vm2, %v4477_v32, %v4492_v39  ;;  %v4499_v50 = vsel %vm4487_vm6, %v4477_v32, %v4480_v57  ;;  %v4500_v24 = vsel %vm4490_vm10, %v4486_v55, 1326507024  ;;  %vm4488_vm13 = vcmp.lt.s32.totalorder %v4468_v49, 2 }
 0x3ea   : > { %v4315_v33 = vclz %v8919_v5  ;;  %v4497_v60 = vsel %vm4489_vm2, %v4480_v57, %v4496_v44  ;;  %vm1431_vm11 = vcmp.eq.s32.totalorder %v12855_v14, 0  ;;  %v4501_v52 = vsel %vm4489_vm2, %v4483_v22, %v4500_v24 }
 0x3eb   : > { %v4498_v37 = vsel %vm4488_vm13, %v4495_v40, %v4497_v60  ;;  %vm1434_vm14 = vcmp.eq.s32.totalorder %v12855_v14, 2  ;;  %vm17213_vm7 = vcmp.lt.s32.totalorder %v17212_v53, 0  ;;  %v4494_v28 = vsel %vm4488_vm13, %v4491_v21, %v4493_v11  ;;  %v17218_v40 = vld [vmem:[#allocation17_spill] sm:$0xff] }
 0x3ec   : > { %v2254_v15 = vsel %vm17213_vm7, %v2253_v19, %v17209_v48  ;;  %v8920_v45 = vadd.s32 4294967294, %v4315_v33  ;;  %v4502_v34 = vsel %vm4488_vm13, %v4499_v50, %v4501_v52  ;;  %v17214_v55 = vxor.u32 2147483648, %v17207_v16 }
 0x3ed   : > { %vm17215_vm6 = vcmp.lt.s32.totalorder %v12579_v4, 0  ;;  %v12895_v30 = vmul.u32.u64.low %v12846_v42, %v4502_v34  ;;  %v12896_v49 = vmul.u32.u64.high %v12846_v42, %v4502_v34, %v12895_v30  ;;  %vm1427_vm2 = vweird.f32 %v17203_v27 }
 0x3ee   : > { %v1433_v32 = vsel %vm1431_vm11, %v17208_v61, %v17214_v55  ;;  %v4436_v57 = vsel %vm17215_vm6, %v4435_v20, %v4434_v18  ;;  %v17216_v22 = vxor.u32 2147483648, %v17208_v61  ;;  %vm8921_vm10 = vcmp.lt.s32.totalorder %v8920_v45, 0  ;;  %v17219_v61 = vld [vmem:[#allocation48_spill] sm:$0xff] }
 0x3ef   : > { %v12903_v19 = vmul.u32.u64.low %v12846_v42, %v4498_v37  ;;  %v12904_v35 = vmul.u32.u64.high %v12846_v42, %v4498_v37, %v12903_v19  ;;  %v2256_v5 = vsel %vm10983_vm12, 0, %v2254_v15  ;;  %vm2259_vm13 = vweird.f32 %v17212_v53  ;;  %v17220_v37 = vld [vmem:[#allocation12_spill] sm:$0xff] }
 0x3f0   : > { %v1436_v48 = vsel %vm1434_vm14, %v17216_v22, %v17207_v16  ;;  %v4318_v18 = vsel %vm8921_vm10, 0, %v8920_v45  ;;  %v4510_v20 = vmul.u32 %v12846_v42, %v4494_v28  ;;  %v2260_v39 = vadd.s32 3, %v2256_v5  ;;  %v17224_v5 = vld [vmem:[#allocation39_spill] sm:$0xff]  ;;  %v17227_v28 = vld [vmem:[#allocation22_spill] sm:$0xff] }
 0x3f1   : > { %v1629_v11 = vsub.s32 4, %v17218_v40  ;;  %v4319_v44 = vsub.s32 32, %v4318_v18  ;;  %v4323_v50 = vsub.s32 4294967266, %v4318_v18  ;;  %v1437_v16 = vsel %vm1430_vm4, %v1433_v32, %v1436_v48 }
 0x3f2   : > { %v2267_v24 = vxor.u32 2147483648, %v17219_v61  ;;  %v4320_v33 = vshll.u32 %v12873_v41, %v4318_v18  ;;  %vm4512_vm11 = vc.u32 %v12896_v49, %v12903_v19  ;;  %v2261_v60 = vand.u32 3, %v2260_v39 }
 0x3f3   : > { %vm17221_vm12 = vcmp.lt.s32.totalorder %v17220_v37, 0  ;;  %v4321_v42 = vshrl.u32 %v12853_v25, %v4319_v44  ;;  %v4324_v15 = vadd.s32 127, %v4323_v50  ;;  %v4513_v45 = vadd.s32 1, %v12904_v35  ;;  %v17225_v44 = vld [vmem:[#allocation36_spill] sm:$0xff] }
 0x3f4   : > { %v1630_v52 = vsel %vm17221_vm12, %v1629_v11, %v17218_v40  ;;  %vm2262_vm4 = vcmp.lt.s32.totalorder %v2261_v60, 2  ;;  %vm2263_vm14 = vcmp.eq.s32.totalorder %v2261_v60, 0  ;;  %vm2266_vm7 = vcmp.eq.s32.totalorder %v2261_v60, 2 }
 0x3f5   : > { %v1632_v14 = vsel %vm10730_vm0, 0, %v1630_v52  ;;  %v4322_v41 = vor.u32 %v4321_v42, %v4320_v33  ;;  %v4325_v55 = vshll.u32 %v4324_v15, 23  ;;  %v4514_v32 = vsel %vm4512_vm11, %v4513_v45, %v12904_v35 }
 0x3f6   : > { %v1636_v34 = vadd.s32 3, %v1632_v14  ;;  %v17223_v30 = vxor.u32 2147483648, %v17210_v26  ;;  %v4515_v48 = vadd.s32 %v4514_v32, %v4510_v20  ;;  %v2268_v25 = vsel %vm2266_vm7, %v2267_v24, %v17210_v26  ;;  %v17226_v24 = vld [vmem:[#allocation31_spill] sm:$0xff] }
 0x3f7   : > { %v1640_v18 = vxor.u32 2147483648, %v17224_v5  ;;  %v4326_v39 = vor.u32 4788187, %v4325_v55  ;;  %v1438_v40 = vsel %vm1427_vm2, nan, %v1437_v16  ;;  %v1643_v50 = vxor.u32 2147483648, %v17225_v44  ;;  %v17231_v55 = vld [vmem:[#allocation26_spill] sm:$0xff] }
 0x3f8   : > { %v2265_v22 = vsel %vm2263_vm14, %v17219_v61, %v17223_v30  ;;  %v1637_v21 = vand.u32 3, %v1636_v34  ;;  %v4329_v33 = vcvt.s32.f32 %v4322_v41  ;;  %v4516_v60 = vadd.s32 536870912, %v4515_v48 }
 0x3f9   : > { %v2269_v11 = vsel %vm2262_vm4, %v2265_v22, %v2268_v25  ;;  %vm4249_vm6 = vcmp.lt.s32.totalorder %v12655_v58, 0  ;;  %v4327_v20 = vand.u32 2147483647, %v4326_v39  ;;  %v2461_v52 = vsub.s32 4, %v17226_v24 }
 0x3fa   : > { %v2270_v35 = vsel %vm2259_vm13, nan, %v2269_v11  ;;  %vm1639_vm0 = vcmp.eq.s32.totalorder %v1637_v21, 0  ;;  %vm1642_vm10 = vcmp.eq.s32.totalorder %v1637_v21, 2  ;;  %v12937_v27 = vshrl.u32 %v4516_v60, 30 }
 0x3fb   : > { %v9093_v26 = vpack.c.bf16 %v2270_v35, %v1438_v40  ;;  %v1641_v61 = vsel %vm1639_vm0, %v17225_v44, %v1640_v18  ;;  %v1644_v16 = vsel %vm1642_vm10, %v1643_v50, %v17224_v5  ;;  %9623 = vsinq.f32 %v12838_v54  ;;  %v17237_v40 = vld [vmem:[#allocation53_spill] sm:$0xff] }
 0x3fc   : > { %v12945_v53 = vsel %vm12789_vm3, %v12579_v4, %v4436_v57  ;;  %v4330_v42 = vmul.f32 %v4329_v33, %v4327_v20  ;;  %vm1638_vm2 = vcmp.lt.s32.totalorder %v1637_v21, 2  ;;  %v4518_v15 = vshll.u32 %v12937_v27, 30  ;;  %v17230_v57 = vld [vmem:[#allocation20_spill] sm:$0xff]  ;;  %v17238_v50 = vld [vmem:[#allocation9_spill] sm:$0xff] }
 0x3fd   : > { %9094 = vmatprep.subr.bf16.mxu0 %v9093_v26  ;;  %vm1635_vm13 = vweird.f32 %v17220_v37  ;;  %v1645_v45 = vsel %vm1638_vm2, %v1641_v61, %v1644_v16  ;;  %vm17228_vm11 = vcmp.lt.s32.totalorder %v17227_v28, 0  ;;  %v12953_v34 = vadd.s32 %v12903_v19, %v12896_v49  ;;  %v17232_v37 = vld [vmem:[#allocation25_spill] sm:$0xff]  ;;  %v17236_v19 = vld [vmem:[#allocation54_spill] sm:$0xff] }
 0x3fe   : > { %v2462_v14 = vsel %vm17228_vm11, %v2461_v52, %v17226_v24  ;;  %v1325_v41 = vand.u32 3, %v17230_v57  ;;  %v1328_v32 = vxor.u32 2147483648, %v17231_v55  ;;  %v4331_v30 = vxor.u32 2147483648, %v4330_v42  ;;  %v17239_v35 = vld [vmem:[#allocation37_spill] sm:$0xff]  ;;  %v17241_v52 = vld [vmem:[#allocation14_spill] sm:$0xff] }
 0x3ff   : > { %v2464_v12 = vsel %vm11152_vm1, 0, %v2462_v14  ;;  %v12959_v22 = vsub.s32 %v4515_v48, %v4518_v15  ;;  %v1331_v21 = vxor.u32 2147483648, %v17232_v37  ;;  %v17233_v5 = vand.u32 2147483647, %v12655_v58  ;;  %v17240_v26 = vld [vmem:[#allocation41_spill] sm:$0xff] }
 0x400   : > { %v2468_v25 = vadd.s32 3, %v2464_v12  ;;  %v1646_v49 = vsel %vm1635_vm13, nan, %v1645_v45  ;;  %vm2467_vm12 = vweird.f32 %v17227_v28  ;;  %v2472_v39 = vxor.u32 2147483648, %v17236_v19  ;;  %v12982_v45 = vpop.eup %9621 }
 0x401   : > { %vm12964_vm3 = vcmp.le.f32.partialorder %v17233_v5, 0.7853982  ;;  %v2475_v11 = vxor.u32 2147483648, %v17237_v40  ;;  %v4521_v44 = vsub.s32 0, %v12959_v22  ;;  %vm1323_vm1 = vweird.f32 %v17238_v50 }
 0x402   : > { %v2469_v48 = vand.u32 3, %v2468_v25  ;;  %vm1327_vm4 = vcmp.eq.s32.totalorder %v1325_v41, 0  ;;  %vm1330_vm14 = vcmp.eq.s32.totalorder %v1325_v41, 2  ;;  %v2157_v20 = vand.u32 3, %v17239_v35 }
 0x403   : > { %v1329_v33 = vsel %vm1327_vm4, %v17232_v37, %v1328_v32  ;;  %v1332_v60 = vsel %vm1330_vm14, %v1331_v21, %v17231_v55  ;;  %v2160_v61 = vxor.u32 2147483648, %v17240_v26  ;;  %v4332_v16 = vsel %vm4249_vm6, %v4331_v30, %v4330_v42  ;;  %v17242_v55 = vld [vmem:[#allocation40_spill] sm:$0xff] }
 0x404   : > { %v8927_v24 = vmin.u32 %v4521_v44, %v12959_v22  ;;  %vm2471_vm7 = vcmp.eq.s32.totalorder %v2469_v48, 0  ;;  %vm2155_vm0 = vweird.f32 %v17241_v52  ;;  %vm2470_vm10 = vcmp.lt.s32.totalorder %v2469_v48, 2  ;;  %v17248_v52 = vld [vmem:[#allocation43_spill] sm:$0xff] }
 0x405   : > { %v2473_v15 = vsel %vm2471_vm7, %v17237_v40, %v2472_v39  ;;  %vm2474_vm2 = vcmp.eq.s32.totalorder %v2469_v48, 2  ;;  %vm1326_vm13 = vcmp.lt.s32.totalorder %v1325_v41, 2  ;;  %vm2159_vm11 = vcmp.eq.s32.totalorder %v2157_v20, 0  ;;  %v12985_v57 = vpop.eup %9623  ;;  %v17243_v41 = vld [vmem:[#allocation21_spill] sm:$0xff]  ;;  %v17244_v39 = vld [vmem:[#allocation32_spill] sm:$0xff] }
 0x406   : > { %v4523_v14 = vclz %v8927_v24  ;;  %v2476_v54 = vsel %vm2474_vm2, %v2475_v11, %v17236_v19  ;;  %v1333_v12 = vsel %vm1326_vm13, %v1329_v33, %v1332_v60  ;;  %vm2158_vm4 = vcmp.lt.s32.totalorder %v2157_v20, 2  ;;  %v17245_v11 = vld [vmem:[#allocation28_spill] sm:$0xff]  ;;  %v17246_v24 = vld [vmem:[#allocation38_spill] sm:$0xff] }
 0x407   : > { %v2477_v42 = vsel %vm2470_vm10, %v2473_v15, %v2476_v54  ;;  %v2161_v32 = vsel %vm2159_vm11, %v17242_v55, %v2160_v61  ;;  %v2163_v30 = vxor.u32 2147483648, %v17242_v55  ;;  %vm2162_vm14 = vcmp.eq.s32.totalorder %v2157_v20, 2 }
 0x408   : > { %v8928_v25 = vadd.s32 4294967294, %v4523_v14  ;;  %v2478_v37 = vsel %vm2467_vm12, nan, %v2477_v42  ;;  %v1533_v21 = vand.u32 3, %v17243_v41  ;;  %v1536_v40 = vxor.u32 2147483648, %v17244_v39  ;;  %v17247_v14 = vld [vmem:[#allocation44_spill] sm:$0xff] }
 0x409   : > { %v9101_v5 = vpack.c.bf16 %v2478_v37, %v1646_v49  ;;  %v2164_v19 = vsel %vm2162_vm14, %v2163_v30, %v17240_v26  ;;  %v1539_v44 = vxor.u32 2147483648, %v17245_v11  ;;  %v4335_v48 = vsel %vm12964_vm3, %v12655_v58, %v4332_v16 }
 0x40a   : > { %vm8929_vm7 = vcmp.lt.s32.totalorder %v8928_v25, 0  ;;  %v2165_v33 = vsel %vm2158_vm4, %v2161_v32, %v2164_v19  ;;  %vm1535_vm10 = vcmp.eq.s32.totalorder %v1533_v21, 0  ;;  %v1334_v28 = vsel %vm1323_vm1, nan, %v1333_v12 }
 0x40b   : > { %v4526_v60 = vsel %vm8929_vm7, 0, %v8928_v25  ;;  %9102 = vmatprep.subr.bf16.mxu1 %v9101_v5  ;;  %v2166_v49 = vsel %vm2155_vm0, nan, %v2165_v33  ;;  %v1537_v35 = vsel %vm1535_vm10, %v17245_v11, %v1536_v40  ;;  %vm1538_vm12 = vcmp.eq.s32.totalorder %v1533_v21, 2  ;;  %v17251_v5 = vld [vmem:[#allocation47_spill] sm:$0xff] }
 0x40c   : > { %v4527_v20 = vsub.s32 32, %v4526_v60  ;;  %v4531_v26 = vsub.s32 4294967266, %v4526_v60  ;;  %v9095_v61 = vpack.c.bf16 %v2166_v49, %v1334_v28  ;;  %vm1534_vm2 = vcmp.lt.s32.totalorder %v1533_v21, 2  ;;  %v17249_v21 = vld [vmem:[#allocation10_spill] sm:$0xff]  ;;  %v17255_v28 = vld [vmem:[#allocation35_spill] sm:$0xff] }
 0x40d   : > { %v1540_v16 = vsel %vm1538_vm12, %v1539_v44, %v17244_v39  ;;  %v2365_v15 = vand.u32 3, %v17246_v24  ;;  %v2368_v54 = vxor.u32 2147483648, %v17247_v14  ;;  %v4528_v42 = vshll.u32 %v12959_v22, %v4526_v60  ;;  %v17250_v22 = vld [vmem:[#allocation16_spill] sm:$0xff] }
 0x40e   : > { %v4529_v50 = vshrl.u32 %v12953_v34, %v4527_v20  ;;  %v4532_v12 = vadd.s32 127, %v4531_v26  ;;  %9096 = vmatpush1.bf16.msra.mxu0 %v9095_v61  ;;  %v2371_v55 = vxor.u32 2147483648, %v17248_v52  ;;  %v1541_v32 = vsel %vm1534_vm2, %v1537_v35, %v1540_v16  ;;  %v17257_v35 = vld [vmem:[#allocation61_spill] sm:$0xff]  ;;  %v17269_v16 = vld [vmem:[#allocation67_spill] sm:$0xff] }
 0x40f   : > { %vm2366_vm1 = vcmp.lt.s32.totalorder %v2365_v15, 2  ;;  %vm2367_vm0 = vcmp.eq.s32.totalorder %v2365_v15, 0  ;;  %vm2370_vm13 = vcmp.eq.s32.totalorder %v2365_v15, 2  ;;  %vm4457_vm11 = vcmp.lt.s32.totalorder %v12676_v8, 0 }
 0x410   : > { %v4530_v30 = vor.u32 %v4529_v50, %v4528_v42  ;;  %v4533_v25 = vshll.u32 %v4532_v12, 23  ;;  %v2369_v37 = vsel %vm2367_vm0, %v17248_v52, %v2368_v54  ;;  %v2372_v41 = vsel %vm2370_vm13, %v2371_v55, %v17247_v14  ;;  %v17260_v42 = vld [vmem:[#allocation49_spill] sm:$0xff]  ;;  %v17261_v52 = vld [vmem:[#allocation62_spill] sm:$0xff] }
 0x411   : > { %vm1531_vm4 = vweird.f32 %v17249_v21  ;;  %vm2363_vm14 = vweird.f32 %v17250_v22  ;;  %v2373_v34 = vsel %vm2366_vm1, %v2369_v37, %v2372_v41  ;;  %v3085_v19 = vsub.s32 4, %v17251_v5  ;;  %v17263_v41 = vld [vmem:[#allocation15_spill] sm:$0xff] }
 0x412   : > { %9625 = vcosq.f32 %v12945_v53  ;;  %v4534_v39 = vor.u32 4788187, %v4533_v25  ;;  %v1542_v40 = vsel %vm1531_vm4, nan, %v1541_v32  ;;  %v2374_v11 = vsel %vm2363_vm14, nan, %v2373_v34  ;;  %v17262_v25 = vld [vmem:[#allocation80_spill] sm:$0xff]  ;;  %v17265_v34 = vld [vmem:[#allocation77_spill] sm:$0xff] }
 0x413   : > { %9627 = vcosq.f32 %v4335_v48  ;;  %v17252_v44 = vand.u32 2147483647, %v12676_v8  ;;  %v9103_v60 = vpack.c.bf16 %v2374_v11, %v1542_v40  ;;  %vm17256_vm10 = vcmp.lt.s32.totalorder %v17255_v28, 0  ;;  %v17267_v40 = vld [vmem:[#allocation64_spill] sm:$0xff] }
 0x414   : > { %v3086_v49 = vsel %vm17256_vm10, %v3085_v19, %v17251_v5  ;;  %v3917_v20 = vsub.s32 4, %v17257_v35  ;;  %9629 = vsinq.f32 %v4335_v48  ;;  %v4535_v26 = vand.u32 2147483647, %v4534_v39 }
 0x415   : > { %vm13018_vm7 = vcmp.le.f32.partialorder %v17252_v44, 0.7853982  ;;  %v4537_v61 = vcvt.s32.f32 %v4530_v30  ;;  %v3088_v24 = vsel %vm11281_vm15, 0, %v3086_v49  ;;  %9104 = vmatpush1.bf16.msra.mxu1 %v9103_v60  ;;  %vm3091_vm12 = vweird.f32 %v17255_v28 }
 0x416   : > { %v3092_v15 = vadd.s32 3, %v3088_v24  ;;  %v3096_v14 = vxor.u32 2147483648, %v11617_v13  ;;  %vm17259_vm2 = vcmp.lt.s32.totalorder %v11233_v38, 0  ;;  %v3293_v50 = vsub.s32 4, %v17260_v42 }
 0x417   : > { %v3918_v54 = vsel %vm17259_vm2, %v3917_v20, %v17257_v35  ;;  %v4538_v12 = vmul.f32 %v4537_v61, %v4535_v26  ;;  %v3099_v48 = vxor.u32 2147483648, %v17261_v52  ;;  %vm3923_vm15 = vweird.f32 %v11233_v38  ;;  %v17268_v26 = vld [vmem:[#allocation68_spill] sm:$0xff] }
 0x418   : > { %v3920_v55 = vsel %vm11638_vm9, 0, %v3918_v54  ;;  %v3093_v32 = vand.u32 3, %v3092_v15  ;;  %v3928_v37 = vxor.u32 2147483648, %v17262_v25  ;;  %vm17264_vm1 = vcmp.lt.s32.totalorder %v17263_v41, 0 }
 0x419   : > { %v3924_v30 = vadd.s32 3, %v3920_v55  ;;  %v3294_v21 = vsel %vm17264_vm1, %v3293_v50, %v17260_v42  ;;  %v4539_v22 = vxor.u32 2147483648, %v4538_v12  ;;  %v3931_v5 = vxor.u32 2147483648, %v17265_v34 }
 0x41a   : > { %v3296_v39 = vsel %vm11503_vm5, 0, %v3294_v21  ;;  %v4125_v11 = vsub.s32 4, %v17267_v40  ;;  %vm3094_vm0 = vcmp.lt.s32.totalorder %v3093_v32, 2  ;;  %vm3095_vm9 = vcmp.eq.s32.totalorder %v3093_v32, 0 }
 0x41b   : > { %vm3098_vm13 = vcmp.eq.s32.totalorder %v3093_v32, 2  ;;  %v3925_v46 = vand.u32 3, %v3924_v30  ;;  %v4540_v44 = vsel %vm4457_vm11, %v4539_v22, %v4538_v12  ;;  %v3097_v60 = vsel %vm3095_vm9, %v17261_v52, %v3096_v14  ;;  %v17270_v52 = vld [vmem:[#allocation56_spill] sm:$0xff]  ;;  %v17273_v22 = vld [vmem:[#allocation85_spill] sm:$0xff] }
 0x41c   : > { %v3100_v49 = vsel %vm3098_vm13, %v3099_v48, %v11617_v13  ;;  %vm3299_vm4 = vweird.f32 %v17263_v41  ;;  %v3300_v35 = vadd.s32 3, %v3296_v39  ;;  %v3304_v61 = vxor.u32 2147483648, %v17268_v26  ;;  %v13053_v15 = vpop.eup %9625  ;;  %v17280_v41 = vld [vmem:[#allocation19_spill] sm:$0xff] }
 0x41d   : > { %v3101_v20 = vsel %vm3094_vm0, %v3097_v60, %v3100_v49  ;;  %vm3927_vm14 = vcmp.eq.s32.totalorder %v3925_v46, 0  ;;  %v3307_v24 = vxor.u32 2147483648, %v17269_v16  ;;  %v13058_v54 = vsel %vm13018_vm7, %v12676_v8, %v4540_v44  ;;  %v13062_v42 = vpop.eup %9627  ;;  %v17275_v44 = vld [vmem:[#allocation58_spill] sm:$0xff]  ;;  %v17276_v49 = vld [vmem:[#allocation57_spill] sm:$0xff] }
 0x41e   : > { %v3929_v14 = vsel %vm3927_vm14, %v17265_v34, %v3928_v37  ;;  %vm3930_vm5 = vcmp.eq.s32.totalorder %v3925_v46, 2  ;;  %v4136_v13 = vxor.u32 2147483648, %v12029_v10  ;;  %vm3926_vm10 = vcmp.lt.s32.totalorder %v3925_v46, 2  ;;  %v13068_v55 = vpop.eup %9629 }
 0x41f   : > { %v3932_v50 = vsel %vm3930_vm5, %v3931_v5, %v17262_v25  ;;  %v3301_v12 = vand.u32 3, %v3300_v35  ;;  %vm17271_vm2 = vcmp.lt.s32.totalorder %v17270_v52, 0  ;;  %v3102_v32 = vsel %vm3091_vm12, nan, %v3101_v20  ;;  %v17277_v20 = vld [vmem:[#allocation72_spill] sm:$0xff] }
 0x420   : > { %v4126_v48 = vsel %vm17271_vm2, %v4125_v11, %v17267_v40  ;;  %v3933_v30 = vsel %vm3926_vm10, %v3929_v14, %v3932_v50  ;;  %v4139_v34 = vxor.u32 2147483648, %v17273_v22  ;;  %v17274_v11 = vld [vmem:[#allocation52_spill] sm:$0xff]  ;;  %v2992_v60 = vxor.u32 2147483648, %v17275_v44 }
 0x421   : > { %v4128_v21 = vsel %vm11918_vm8, 0, %v4126_v48  ;;  %v3934_v19 = vsel %vm3923_vm15, nan, %v3933_v30  ;;  %vm3302_vm1 = vcmp.lt.s32.totalorder %v3301_v12, 2  ;;  %vm3303_vm0 = vcmp.eq.s32.totalorder %v3301_v12, 0 }
 0x422   : > { %vm3306_vm9 = vcmp.eq.s32.totalorder %v3301_v12, 2  ;;  %v9097_v25 = vpack.c.bf16 %v3934_v19, %v3102_v32  ;;  %v3305_v5 = vsel %vm3303_vm0, %v17269_v16, %v3304_v61  ;;  %v4132_v40 = vadd.s32 3, %v4128_v21  ;;  %v17279_v16 = vld [vmem:[#allocation70_spill] sm:$0xff]  ;;  %v17281_v19 = vld [vmem:[#allocation69_spill] sm:$0xff] }
 0x423   : > { %v3308_v39 = vsel %vm3306_vm9, %v3307_v24, %v17268_v26  ;;  %v2989_v46 = vand.u32 3, %v17274_v11  ;;  %v2995_v35 = vxor.u32 2147483648, %v17276_v49  ;;  %9631 = vcosq.f32 %v13058_v54  ;;  %v17278_v26 = vld [vmem:[#allocation23_spill] sm:$0xff] }
 0x424   : > { %v3309_v28 = vsel %vm3302_vm1, %v3305_v5, %v3308_v39  ;;  %9098 = vmatprep.subr.bf16.mxu0 %v9097_v25  ;;  %vm4131_vm8 = vweird.f32 %v17270_v52  ;;  %v4133_v38 = vand.u32 3, %v4132_v40  ;;  %v3821_v14 = vand.u32 3, %v17277_v20 }
 0x425   : > { %v3310_v61 = vsel %vm3299_vm4, nan, %v3309_v28  ;;  %vm2987_vm12 = vweird.f32 %v17278_v26  ;;  %vm2991_vm15 = vcmp.eq.s32.totalorder %v2989_v46, 0  ;;  %v3824_v24 = vxor.u32 2147483648, %v17279_v16  ;;  %v17284_v28 = vld [vmem:[#allocation59_spill] sm:$0xff] }
 0x426   : > { %vm4135_vm13 = vcmp.eq.s32.totalorder %v4133_v38, 0  ;;  %vm4138_vm14 = vcmp.eq.s32.totalorder %v4133_v38, 2  ;;  %v2993_v50 = vsel %vm2991_vm15, %v17276_v49, %v2992_v60  ;;  %vm2994_vm5 = vcmp.eq.s32.totalorder %v2989_v46, 2 }
 0x427   : > { %vm4134_vm10 = vcmp.lt.s32.totalorder %v4133_v38, 2  ;;  %v4137_v12 = vsel %vm4135_vm13, %v17273_v22, %v4136_v13  ;;  %v4140_v48 = vsel %vm4138_vm14, %v4139_v34, %v12029_v10  ;;  %v2996_v32 = vsel %vm2994_vm5, %v2995_v35, %v17275_v44  ;;  %v17282_v13 = vld [vmem:[#allocation71_spill] sm:$0xff]  ;;  %v17283_v10 = vld [vmem:[#allocation60_spill] sm:$0xff] }
 0x428   : > { %v4141_v30 = vsel %vm4134_vm10, %v4137_v12, %v4140_v48  ;;  %vm2990_vm2 = vcmp.lt.s32.totalorder %v2989_v46, 2  ;;  %vm3819_vm4 = vweird.f32 %v17280_v41  ;;  %vm3823_vm1 = vcmp.eq.s32.totalorder %v3821_v14, 0  ;;  %v17285_v46 = vld [vmem:[#allocation73_spill] sm:$0xff]  ;;  %v17289_v12 = vld [vmem:[#allocation75_spill] sm:$0xff] }
 0x429   : > { %v4142_v37 = vsel %vm4131_vm8, nan, %v4141_v30  ;;  %v2997_v21 = vsel %vm2990_vm2, %v2993_v50, %v2996_v32  ;;  %v3825_v25 = vsel %vm3823_vm1, %v17281_v19, %v3824_v24  ;;  %v3827_v5 = vxor.u32 2147483648, %v17281_v19  ;;  %v17287_v24 = vld [vmem:[#allocation30_spill] sm:$0xff]  ;;  %v13120_v30 = vld [vmem:[%s16572_s5] sm:$0xff] }
 0x42a   : > { %v9105_v39 = vpack.c.bf16 %v4142_v37, %v3310_v61  ;;  %vm3826_vm0 = vcmp.eq.s32.totalorder %v3821_v14, 2  ;;  %v3197_v22 = vand.u32 3, %v17282_v13  ;;  %v3200_v34 = vxor.u32 2147483648, %v17283_v10  ;;  %v17288_v50 = vld [vmem:[#allocation46_spill] sm:$0xff] }
 0x42b   : > { %vm3822_vm9 = vcmp.lt.s32.totalorder %v3821_v14, 2  ;;  %v3828_v40 = vsel %vm3826_vm0, %v3827_v5, %v17279_v16  ;;  %v3203_v11 = vxor.u32 2147483648, %v17284_v28  ;;  %v4029_v44 = vand.u32 3, %v17285_v46  ;;  %v17286_v16 = vld [vmem:[#allocation76_spill] sm:$0xff]  ;;  %v17291_v5 = vld [vmem:[#allocation66_spill] sm:$0xff] }
 0x42c   : > { %9106 = vmatprep.subr.bf16.mxu1 %v9105_v39  ;;  %v2998_v52 = vsel %vm2987_vm12, nan, %v2997_v21  ;;  %v3829_v60 = vsel %vm3822_vm9, %v3825_v25, %v3828_v40  ;;  %vm3199_vm8 = vcmp.eq.s32.totalorder %v3197_v22, 0  ;;  %vm3202_vm15 = vcmp.eq.s32.totalorder %v3197_v22, 2 }
 0x42d   : > { %v3830_v49 = vsel %vm3819_vm4, nan, %v3829_v60  ;;  %vm3198_vm13 = vcmp.lt.s32.totalorder %v3197_v22, 2  ;;  %v3201_v35 = vsel %vm3199_vm8, %v17284_v28, %v3200_v34  ;;  %v3204_v38 = vsel %vm3202_vm15, %v3203_v11, %v17283_v10  ;;  %v13109_v20 = vpop.eup %9631  ;;  %v17293_v34 = vld [vmem:[#allocation86_spill] sm:$0xff]  ;;  %v13145_v60 = vld [vmem:[%s16572_s5 + $0x8] sm:$0xff] }
 0x42e   : > { %9633 = vsinq.f32 %v13058_v54  ;;  %v9099_v14 = vpack.c.bf16 %v3830_v49, %v2998_v52  ;;  %v3205_v61 = vsel %vm3198_vm13, %v3201_v35, %v3204_v38  ;;  %v4032_v26 = vxor.u32 2147483648, %v17286_v16  ;;  %v17290_v54 = vld [vmem:[#allocation79_spill] sm:$0xff]  ;;  %v17296_v11 = vld [vmem:[#allocation82_spill] sm:$0xff] }
 0x42f   : > { %vm3195_vm12 = vweird.f32 %v17287_v24  ;;  %vm4027_vm14 = vweird.f32 %v17288_v50  ;;  %vm4031_vm5 = vcmp.eq.s32.totalorder %v4029_v44, 0  ;;  %v4035_v48 = vxor.u32 2147483648, %v17289_v12  ;;  %v17301_v24 = vld [vmem:[#allocation90_spill] sm:$0xff] }
 0x430   : > { %9100 = vmatpush1.bf16.msra.mxu0 %v9099_v14  ;;  %v4033_v32 = vsel %vm4031_vm5, %v17289_v12, %v4032_v26  ;;  %vm4034_vm10 = vcmp.eq.s32.totalorder %v4029_v44, 2  ;;  %vm16830_vm2 = vcmask 261120   ;;  %v1837_v41 = vsub.s32 4, %v17290_v54  ;;  %v17303_v12 = vld [vmem:[#allocation98_spill] sm:$0xff] }
 0x431   : > { %v3206_v37 = vsel %vm3195_vm12, nan, %v3205_v61  ;;  %vm4030_vm4 = vcmp.lt.s32.totalorder %v4029_v44, 2  ;;  %v4036_v21 = vsel %vm4034_vm10, %v4035_v48, %v17286_v16  ;;  %v2669_v19 = vsub.s32 4, %v12206_v31  ;;  %v17299_v61 = vld [vmem:[#allocation74_spill] sm:$0xff] }
 0x432   : > { %v4037_v25 = vsel %vm4030_vm4, %v4033_v32, %v4036_v21  ;;  %vm17292_vm1 = vcmp.lt.s32.totalorder %v17291_v5, 0  ;;  %vm1843_vm0 = vweird.f32 %v17291_v5  ;;  %v1848_v13 = vxor.u32 2147483648, %v12220_v7 }
 0x433   : > { %v1838_v39 = vsel %vm17292_vm1, %v1837_v41, %v17290_v54  ;;  %v1851_v22 = vxor.u32 2147483648, %v12210_v1  ;;  %v4038_v10 = vsel %vm4027_vm14, nan, %v4037_v25  ;;  %8930 = vmatmul.mubr.msk.f32.vlgmr.msra.gmra.mrb[16].mxu0 %vm16830_vm2, %v13120_v30  ;;  %vm17294_vm9 = vnez %v17293_v34 }
 0x434   : > { %v1840_v40 = vsel %vm17294_vm9, 0, %v1838_v39  ;;  %vm17295_vm8 = vcmp.lt.s32.totalorder %v11960_v47, 0  ;;  %v2045_v46 = vsub.s32 4, %v17296_v11  ;;  %v9107_v44 = vpack.c.bf16 %v4038_v10, %v3206_v37  ;;  %v17305_v37 = vld [vmem:[#allocation96_spill] sm:$0xff]  ;;  %v17307_v10 = vld [vmem:[#allocation107_spill] sm:$0xff] }
 0x435   : > { %v2670_v28 = vsel %vm17295_vm8, %v2669_v19, %v12206_v31  ;;  %v17297_v52 = vmov 0.0   ;;  %v1844_v49 = vadd.s32 3, %v1840_v40  ;;  %vm17298_vm15 = vnez %v17145_v2  ;;  %v17304_v2 = vld [vmem:[#allocation97_spill] sm:$0xff]  ;;  %v13174_v40 = vld [vmem:[%s16572_s5 + $0x10] sm:$0xff] }
 0x436   : > { %4670 = vmatprep.mubr.f32.mxu0 %v17297_v52  ;;  %v2672_v35 = vsel %vm17298_vm15, 0, %v2670_v28  ;;  %vm2675_vm13 = vweird.f32 %v11960_v47  ;;  %v2680_v14 = vxor.u32 2147483648, %v12445_v51  ;;  %v2683_v31 = vxor.u32 2147483648, %v12435_v3  ;;  %9108 = vmatpush1.bf16.msra.mxu1 %v9107_v44  ;;  %v17313_v47 = vld [vmem:[#allocation87_spill] sm:$0xff] }
 0x437   : > { %v2676_v38 = vadd.s32 3, %v2672_v35  ;;  %vm17300_vm12 = vcmp.lt.s32.totalorder %v17299_v61, 0  ;;  %v1845_v26 = vand.u32 3, %v1844_v49  ;;  %vm17302_vm14 = vnez %v17301_v24  ;;  %8931 = vmatmul.mubr.msk.f32.gmra.mrb[18].mxu0 %vm16830_vm2, %v13145_v60 }
 0x438   : > { %v2046_v16 = vsel %vm17300_vm12, %v2045_v46, %v17296_v11  ;;  %v2056_v48 = vxor.u32 2147483648, %v17303_v12  ;;  %v2877_v32 = vsub.s32 4, %v17304_v2  ;;  %vm2051_vm5 = vweird.f32 %v17299_v61  ;;  %v13164_v25 = vpop.eup %9633  ;;  %4676 = vmatprep.mubr.f32.mxu0 %v17297_v52 }
 0x439   : > { %v2048_v50 = vsel %vm17302_vm14, 0, %v2046_v16  ;;  %v2677_v54 = vand.u32 3, %v2676_v38  ;;  %v2059_v21 = vxor.u32 2147483648, %v17305_v37  ;;  %v2888_v19 = vxor.u32 2147483648, %v12678_v17  ;;  %8934 = vmatmul.mubr.msk.f32.vlgmr.msra.gmra.mrb[16].mxu1 %vm16830_vm2, %v13120_v30  ;;  %v17308_v16 = vld [vmem:[#allocation104_spill] sm:$0xff] }
 0x43a   : > { %v2052_v41 = vadd.s32 3, %v2048_v50  ;;  %vm1847_vm10 = vcmp.eq.s32.totalorder %v1845_v26, 0  ;;  %vm1850_vm4 = vcmp.eq.s32.totalorder %v1845_v26, 2  ;;  %vm17306_vm1 = vcmp.lt.s32.totalorder %v12005_v23, 0  ;;  %4759 = vmatprep.mubr.f32.mxu1 %v17297_v52  ;;  %v17311_v50 = vld [vmem:[#allocation88_spill] sm:$0xff] }
 0x43b   : > { %v2878_v39 = vsel %vm17306_vm1, %v2877_v32, %v17304_v2  ;;  %v2891_v34 = vxor.u32 2147483648, %v17307_v10  ;;  %vm1846_vm9 = vcmp.lt.s32.totalorder %v1845_v26, 2  ;;  %v1849_v28 = vsel %vm1847_vm10, %v12210_v1, %v1848_v13  ;;  %8932 = vmatmul.mubr.msk.f32.gmra.mrb[20].mxu0 %vm16830_vm2, %v13174_v40 }
 0x43c   : > { %v1852_v11 = vsel %vm1850_vm4, %v1851_v22, %v12220_v7  ;;  %vm2679_vm8 = vcmp.eq.s32.totalorder %v2677_v54, 0  ;;  %vm2682_vm15 = vcmp.eq.s32.totalorder %v2677_v54, 2  ;;  %v2053_v49 = vand.u32 3, %v2052_v41  ;;  %4682 = vmatprep.mubr.f32.mxu0 %v17297_v52  ;;  %v13193_v7 = vld [vmem:[%s16572_s5 + $0x18] sm:$0xff] }
 0x43d   : > { %v1853_v46 = vsel %vm1846_vm9, %v1849_v28, %v1852_v11  ;;  %v2681_v44 = vsel %vm2679_vm8, %v12435_v3, %v2680_v14  ;;  %vm2678_vm12 = vcmp.lt.s32.totalorder %v2677_v54, 2  ;;  %v2684_v38 = vsel %vm2682_vm15, %v2683_v31, %v12445_v51  ;;  %8935 = vmatmul.mubr.msk.f32.gmra.mrb[18].mxu1 %vm16830_vm2, %v13145_v60  ;;  %v17310_v31 = vld [vmem:[#allocation84_spill] sm:$0xff] }
 0x43e   : > { %v1854_v35 = vsel %vm1843_vm0, nan, %v1853_v46  ;;  %vm17309_vm14 = vnez %v17308_v16  ;;  %v2685_v1 = vsel %vm2678_vm12, %v2681_v44, %v2684_v38  ;;  %vm2054_vm10 = vcmp.lt.s32.totalorder %v2053_v49, 2  ;;  %4765 = vmatprep.mubr.f32.mxu1 %v17297_v52  ;;  %v17312_v54 = vld [vmem:[#allocation8_spill] sm:$0xff]  ;;  %v17315_v44 = vld [vmem:[#allocation78_spill] sm:$0xff]  ;;  %v17317_v16 = vld [vmem:[#allocation99_spill] sm:$0xff] }
 0x43f   : > { %v2880_v26 = vsel %vm17309_vm14, 0, %v2878_v39  ;;  %vm2055_vm4 = vcmp.eq.s32.totalorder %v2053_v49, 0  ;;  %vm2058_vm1 = vcmp.eq.s32.totalorder %v2053_v49, 2  ;;  %v2686_v51 = vsel %vm2675_vm13, nan, %v2685_v1  ;;  %8933 = vmatmul.mubr.msk.f32.gmra.mrb[22].mxu0 %vm16830_vm2, %v13193_v7  ;;  %v17316_v49 = vld [vmem:[#allocation101_spill] sm:$0xff] }
 0x440   : > { %v2057_v3 = vsel %vm2055_vm4, %v17305_v37, %v2056_v48  ;;  %v2060_v5 = vsel %vm2058_vm1, %v2059_v21, %v17303_v12  ;;  %v2884_v13 = vadd.s32 3, %v2880_v26  ;;  %v9109_v22 = vpack.c.bf16 %v2686_v51, %v1854_v35  ;;  %v17314_v48 = vld [vmem:[#allocation92_spill] sm:$0xff]  ;;  %4842 = vmatprep.mubr.f32.mxu0 %v17297_v52 }
 0x441   : > { %v2061_v14 = vsel %vm2054_vm10, %v2057_v3, %v2060_v5  ;;  %v1741_v24 = vand.u32 3, %v17310_v31  ;;  %v1744_v2 = vxor.u32 2147483648, %v17311_v50  ;;  %vm2883_vm0 = vweird.f32 %v12005_v23  ;;  %8936 = vmatmul.mubr.msk.f32.gmra.mrb[20].mxu1 %vm16830_vm2, %v13174_v40  ;;  %v17319_v23 = vld [vmem:[#allocation94_spill] sm:$0xff]  ;;  %v17320_v5 = vld [vmem:[#allocation89_spill] sm:$0xff] }
 0x442   : > { %v2885_v32 = vand.u32 3, %v2884_v13  ;;  %vm1739_vm9 = vweird.f32 %v17312_v54  ;;  %v1747_v41 = vxor.u32 2147483648, %v17313_v47  ;;  %9110 = vmatprep.subr.bf16.mxu0 %v9109_v22  ;;  %v2062_v12 = vsel %vm2051_vm5, nan, %v2061_v14  ;;  %4771 = vmatprep.mubr.f32.mxu1 %v17297_v52 }
 0x443   : > { %vm1742_vm13 = vcmp.lt.s32.totalorder %v1741_v24, 2  ;;  %vm1743_vm8 = vcmp.eq.s32.totalorder %v1741_v24, 0  ;;  %v2573_v37 = vand.u32 3, %v17314_v48  ;;  %vm1746_vm14 = vcmp.eq.s32.totalorder %v1741_v24, 2 }
 0x444   : > { %vm2887_vm15 = vcmp.eq.s32.totalorder %v2885_v32, 0  ;;  %vm2890_vm12 = vcmp.eq.s32.totalorder %v2885_v32, 2  ;;  %v1745_v21 = vsel %vm1743_vm8, %v17313_v47, %v1744_v2  ;;  %vm2886_vm10 = vcmp.lt.s32.totalorder %v2885_v32, 2  ;;  %v17322_v47 = vld [vmem:[#allocation103_spill] sm:$0xff] }
 0x445   : > { %v2889_v39 = vsel %vm2887_vm15, %v17307_v10, %v2888_v19  ;;  %v2892_v61 = vsel %vm2890_vm12, %v2891_v34, %v12678_v17  ;;  %v1748_v28 = vsel %vm1746_vm14, %v1747_v41, %v17311_v50  ;;  %vm2571_vm5 = vweird.f32 %v17315_v44  ;;  %v17318_v10 = vld [vmem:[#allocation91_spill] sm:$0xff]  ;;  %8937 = vmatmul.mubr.msk.f32.gmra.mrb[22].mxu1 %vm16830_vm2, %v13193_v7  ;;  %v17321_v50 = vld [vmem:[#allocation100_spill] sm:$0xff] }
 0x446   : > { %v2893_v11 = vsel %vm2886_vm10, %v2889_v39, %v2892_v61  ;;  %v1749_v46 = vsel %vm1742_vm13, %v1745_v21, %v1748_v28  ;;  %v2576_v35 = vxor.u32 2147483648, %v17316_v49  ;;  %vm2574_vm4 = vcmp.lt.s32.totalorder %v2573_v37, 2  ;;  %4931 = vmatprep.mubr.f32.mxu1 %v17297_v52  ;;  %v17325_v61 = vld [vmem:[#allocation105_spill] sm:$0xff] }
 0x447   : > { %v2894_v38 = vsel %vm2883_vm0, nan, %v2893_v11  ;;  %vm2575_vm1 = vcmp.eq.s32.totalorder %v2573_v37, 0  ;;  %v2579_v26 = vxor.u32 2147483648, %v17317_v16  ;;  %vm2578_vm8 = vcmp.eq.s32.totalorder %v2573_v37, 2  ;;  %v17324_v37 = vld [vmem:[#allocation63_spill] sm:$0xff] }
 0x448   : > { %v9117_v19 = vpack.c.bf16 %v2894_v38, %v2062_v12  ;;  %v2577_v17 = vsel %vm2575_vm1, %v17317_v16, %v2576_v35  ;;  %v1949_v34 = vand.u32 3, %v17318_v10  ;;  %v1750_v1 = vsel %vm1739_vm9, nan, %v1749_v46  ;;  %v17323_v12 = vld [vmem:[#allocation102_spill] sm:$0xff]  ;;  %v17326_v46 = vld [vmem:[#allocation81_spill] sm:$0xff] }
 0x449   : > { %v2580_v51 = vsel %vm2578_vm8, %v2579_v26, %v17316_v49  ;;  %v1952_v3 = vxor.u32 2147483648, %v17319_v23  ;;  %v1955_v13 = vxor.u32 2147483648, %v17320_v5  ;;  %v2781_v2 = vand.u32 3, %v17321_v50 }
 0x44a   : > { %9118 = vmatprep.subr.bf16.mxu1 %v9117_v19  ;;  %v2581_v22 = vsel %vm2574_vm4, %v2577_v17, %v2580_v51  ;;  %vm1950_vm0 = vcmp.lt.s32.totalorder %v1949_v34, 2  ;;  %vm1951_vm13 = vcmp.eq.s32.totalorder %v1949_v34, 0  ;;  %vm1954_vm15 = vcmp.eq.s32.totalorder %v1949_v34, 2 }
 0x44b   : > { %v2582_v14 = vsel %vm2571_vm5, nan, %v2581_v22  ;;  %v1953_v31 = vsel %vm1951_vm13, %v17320_v5, %v1952_v3  ;;  %v1956_v24 = vsel %vm1954_vm15, %v1955_v13, %v17319_v23  ;;  %v2784_v41 = vxor.u32 2147483648, %v17322_v47  ;;  %v17331_v22 = vld [vmem:[#allocation11_spill] sm:$0xff] }
 0x44c   : > { %v9111_v32 = vpack.c.bf16 %v2582_v14, %v1750_v1  ;;  %v1957_v54 = vsel %vm1950_vm0, %v1953_v31, %v1956_v24  ;;  %v2787_v48 = vxor.u32 2147483648, %v17323_v12  ;;  %9635 = vsinq.f32 %v12945_v53  ;;  %v17329_v1 = vld [vmem:[#allocation106_spill] sm:$0xff] }
 0x44d   : > { %vm1947_vm9 = vweird.f32 %v17324_v37  ;;  %vm2783_vm12 = vcmp.eq.s32.totalorder %v2781_v2, 0  ;;  %vm2786_vm14 = vcmp.eq.s32.totalorder %v2781_v2, 2  ;;  %vm2782_vm10 = vcmp.lt.s32.totalorder %v2781_v2, 2  ;;  %v17332_v24 = vld [vmem:[#allocation114_spill] sm:$0xff] }
 0x44e   : > { %9112 = vmatpush1.bf16.msra.mxu0 %v9111_v32  ;;  %v2785_v21 = vsel %vm2783_vm12, %v17323_v12, %v2784_v41  ;;  %v2788_v39 = vsel %vm2786_vm14, %v2787_v48, %v17322_v47  ;;  %v3501_v28 = vsub.s32 4, %v17325_v61  ;;  %v1958_v11 = vsel %vm1947_vm9, nan, %v1957_v54 }
 0x44f   : > { %vm2779_vm5 = vweird.f32 %v17326_v46  ;;  %v2789_v44 = vsel %vm2782_vm10, %v2785_v21, %v2788_v39  ;;  %v4333_v49 = vsub.s32 4, %v12858_v6  ;;  %vm17327_vm4 = vcmp.lt.s32.totalorder %v12316_v56, 0 }
 0x450   : > { %v2790_v35 = vsel %vm2779_vm5, nan, %v2789_v44  ;;  %v3502_v53 = vsel %vm17327_vm4, %v3501_v28, %v17325_v61  ;;  %vm3507_vm1 = vweird.f32 %v12316_v56  ;;  %v3512_v38 = vxor.u32 2147483648, %v12794_v59 }
 0x451   : > { %v9119_v16 = vpack.c.bf16 %v2790_v35, %v1958_v11  ;;  %vm17328_vm8 = vnez %v17175_v36  ;;  %v3515_v19 = vxor.u32 2147483648, %v12743_v9  ;;  %v4334_v17 = vsel %vm4249_vm6, %v4333_v49, %v12858_v6  ;;  %v17334_v49 = vld [vmem:[#allocation108_spill] sm:$0xff] }
 0x452   : > { %v3504_v26 = vsel %vm17328_vm8, 0, %v3502_v53  ;;  %v4336_v34 = vsel %vm12964_vm3, 0, %v4334_v17  ;;  %vm4339_vm0 = vweird.f32 %v12655_v58  ;;  %v3709_v51 = vsub.s32 4, %v17329_v1 }
 0x453   : > { %v3508_v10 = vadd.s32 3, %v3504_v26  ;;  %9120 = vmatpush1.bf16.msra.mxu1 %v9119_v16  ;;  %v4340_v23 = vadd.s32 3, %v4336_v34  ;;  %v4344_v3 = vxor.u32 2147483648, %v13068_v55  ;;  %v4347_v36 = vxor.u32 2147483648, %v13062_v42  ;;  %v17337_v26 = vld [vmem:[#allocation93_spill] sm:$0xff] }
 0x454   : > { %v4541_v5 = vsub.s32 4, %v12937_v27  ;;  %vm17330_vm6 = vcmp.lt.s32.totalorder %v12335_v63, 0  ;;  %v3720_v18 = vxor.u32 2147483648, %v12867_v0  ;;  %v3723_v14 = vxor.u32 2147483648, %v17331_v22 }
 0x455   : > { %v3509_v13 = vand.u32 3, %v3508_v10  ;;  %v3710_v6 = vsel %vm17330_vm6, %v3709_v51, %v17329_v1  ;;  %v4341_v31 = vand.u32 3, %v4340_v23  ;;  %vm17333_vm3 = vnez %v17332_v24  ;;  %v17339_v51 = vld [vmem:[#allocation45_spill] sm:$0xff] }
 0x456   : > { %v3712_v50 = vsel %vm17333_vm3, 0, %v3710_v6  ;;  %v4542_v2 = vsel %vm4457_vm11, %v4541_v5, %v12937_v27  ;;  %v4552_v32 = vxor.u32 2147483648, %v13164_v25  ;;  %v4555_v47 = vxor.u32 2147483648, %v13109_v20  ;;  %v13279_v41 = vpop.eup %9635 }
 0x457   : > { %vm3511_vm13 = vcmp.eq.s32.totalorder %v3509_v13, 0  ;;  %vm3514_vm15 = vcmp.eq.s32.totalorder %v3509_v13, 2  ;;  %v3716_v54 = vadd.s32 3, %v3712_v50  ;;  %vm3510_vm9 = vcmp.lt.s32.totalorder %v3509_v13, 2 }
 0x458   : > { %v3513_v12 = vsel %vm3511_vm13, %v12743_v9, %v3512_v38  ;;  %v3516_v48 = vsel %vm3514_vm15, %v3515_v19, %v12794_v59  ;;  %vm4343_vm12 = vcmp.eq.s32.totalorder %v4341_v31, 0  ;;  %vm4346_vm14 = vcmp.eq.s32.totalorder %v4341_v31, 2  ;;  %v17336_v38 = vld [vmem:[#allocation110_spill] sm:$0xff] }
 0x459   : > { %v3517_v37 = vsel %vm3510_vm9, %v3513_v12, %v3516_v48  ;;  %v4345_v21 = vsel %vm4343_vm12, %v13062_v42, %v4344_v3  ;;  %v3717_v27 = vand.u32 3, %v3716_v54  ;;  %vm4342_vm11 = vcmp.lt.s32.totalorder %v4341_v31, 2  ;;  %v17342_v31 = vld [vmem:[#allocation112_spill] sm:$0xff]  ;;  %v17343_v54 = vld [vmem:[#allocation13_spill] sm:$0xff] }
 0x45a   : > { %v3518_v39 = vsel %vm3507_vm1, nan, %v3517_v37  ;;  %v4348_v61 = vsel %vm4346_vm14, %v4347_v36, %v13068_v55  ;;  %v4544_v28 = vsel %vm13018_vm7, 0, %v4542_v2  ;;  %v3405_v35 = vand.u32 3, %v17334_v49  ;;  %v17335_v55 = vld [vmem:[#allocation111_spill] sm:$0xff] }
 0x45b   : > { %v4349_v11 = vsel %vm4342_vm11, %v4345_v21, %v4348_v61  ;;  %vm3718_vm10 = vcmp.lt.s32.totalorder %v3717_v27, 2  ;;  %vm3719_vm5 = vcmp.eq.s32.totalorder %v3717_v27, 0  ;;  %vm3722_vm4 = vcmp.eq.s32.totalorder %v3717_v27, 2 }
 0x45c   : > { %v4350_v9 = vsel %vm4339_vm0, nan, %v4349_v11  ;;  %v3721_v59 = vsel %vm3719_vm5, %v17331_v22, %v3720_v18  ;;  %v3724_v42 = vsel %vm3722_vm4, %v3723_v14, %v12867_v0  ;;  %v4548_v46 = vadd.s32 3, %v4544_v28  ;;  %v17338_v0 = vld [vmem:[#allocation115_spill] sm:$0xff]  ;;  %v17341_v22 = vld [vmem:[#allocation113_spill] sm:$0xff] }
 0x45d   : > { %v9113_v56 = vpack.c.bf16 %v4350_v9, %v3518_v39  ;;  %v3725_v44 = vsel %vm3718_vm10, %v3721_v59, %v3724_v42  ;;  %v3408_v53 = vxor.u32 2147483648, %v17335_v55  ;;  %vm3715_vm7 = vweird.f32 %v12335_v63  ;;  %v17344_v39 = vld [vmem:[#allocation95_spill] sm:$0xff] }
 0x45e   : > { %vm4547_vm1 = vweird.f32 %v12676_v8  ;;  %v4549_v33 = vand.u32 3, %v4548_v46  ;;  %v3411_v16 = vxor.u32 2147483648, %v17336_v38  ;;  %v3726_v58 = vsel %vm3715_vm7, nan, %v3725_v44 }
 0x45f   : > { %9114 = vmatprep.subr.bf16.mxu0 %v9113_v56  ;;  %vm3403_vm8 = vweird.f32 %v17337_v26  ;;  %vm3407_vm0 = vcmp.eq.s32.totalorder %v3405_v35, 0  ;;  %v4237_v19 = vand.u32 3, %v17338_v0  ;;  %vm3410_vm13 = vcmp.eq.s32.totalorder %v3405_v35, 2 }
 0x460   : > { %vm4551_vm6 = vcmp.eq.s32.totalorder %v4549_v33, 0  ;;  %vm4554_vm3 = vcmp.eq.s32.totalorder %v4549_v33, 2  ;;  %v3409_v17 = vsel %vm3407_vm0, %v17336_v38, %v3408_v53  ;;  %vm4550_vm15 = vcmp.lt.s32.totalorder %v4549_v33, 2 }
 0x461   : > { %v4553_v63 = vsel %vm4551_vm6, %v13109_v20, %v4552_v32  ;;  %v4556_v10 = vsel %vm4554_vm3, %v4555_v47, %v13164_v25  ;;  %v3412_v34 = vsel %vm3410_vm13, %v3411_v16, %v17335_v55  ;;  %vm3406_vm9 = vcmp.lt.s32.totalorder %v3405_v35, 2  ;;  %v17340_v25 = vld [vmem:[#allocation109_spill] sm:$0xff] }
 0x462   : > { %v4557_v1 = vsel %vm4550_vm15, %v4553_v63, %v4556_v10  ;;  %vm4235_vm12 = vweird.f32 %v17339_v51  ;;  %v4240_v23 = vxor.u32 2147483648, %v12985_v57  ;;  %v3413_v36 = vsel %vm3406_vm9, %v3409_v17, %v3412_v34 }
 0x463   : > { %v4558_v3 = vsel %vm4547_vm1, nan, %v4557_v1  ;;  %vm4239_vm14 = vcmp.eq.s32.totalorder %v4237_v19, 0  ;;  %v4243_v5 = vxor.u32 2147483648, %v12982_v45  ;;  %vm4242_vm11 = vcmp.eq.s32.totalorder %v4237_v19, 2 }
 0x464   : > { %v9121_v13 = vpack.c.bf16 %v4558_v3, %v3726_v58  ;;  %v4241_v20 = vsel %vm4239_vm14, %v12982_v45, %v4240_v23  ;;  %v3613_v6 = vand.u32 3, %v17340_v25  ;;  %vm4238_vm10 = vcmp.lt.s32.totalorder %v4237_v19, 2 }
 0x465   : > { %v4244_v18 = vsel %vm4242_vm11, %v4243_v5, %v12985_v57  ;;  %v3616_v14 = vxor.u32 2147483648, %v17341_v22  ;;  %v3619_v24 = vxor.u32 2147483648, %v17342_v31  ;;  %v3414_v8 = vsel %vm3403_vm8, nan, %v3413_v36 }
 0x466   : > { %9122 = vmatprep.subr.bf16.mxu1 %v9121_v13  ;;  %v4245_v50 = vsel %vm4238_vm10, %v4241_v20, %v4244_v18  ;;  %vm3615_vm5 = vcmp.eq.s32.totalorder %v3613_v6, 0  ;;  %vm3618_vm4 = vcmp.eq.s32.totalorder %v3613_v6, 2  ;;  %v4445_v57 = vand.u32 3, %v17343_v54 }
 0x467   : > { %v4246_v45 = vsel %vm4235_vm12, nan, %v4245_v50  ;;  %v3617_v2 = vsel %vm3615_vm5, %v17342_v31, %v3616_v14  ;;  %v3620_v32 = vsel %vm3618_vm4, %v3619_v24, %v17341_v22  ;;  %vm3614_vm7 = vcmp.lt.s32.totalorder %v3613_v6, 2 }
 0x468   : > { %v9115_v47 = vpack.c.bf16 %v4246_v45, %v3414_v8  ;;  %v4448_v12 = vxor.u32 2147483648, %v13279_v41  ;;  %v4451_v48 = vxor.u32 2147483648, %v13053_v15  ;;  %v3621_v37 = vsel %vm3614_vm7, %v3617_v2, %v3620_v32 }
 0x469   : > { %vm4447_vm1 = vcmp.eq.s32.totalorder %v4445_v57, 0  ;;  %vm4450_vm8 = vcmp.eq.s32.totalorder %v4445_v57, 2  ;;  %vm4446_vm0 = vcmp.lt.s32.totalorder %v4445_v57, 2  ;;  %vm3611_vm6 = vweird.f32 %v17344_v39 }
 0x46a   : > { %9116 = vmatpush1.bf16.msra.mxu0 %v9115_v47  ;;  %v4449_v21 = vsel %vm4447_vm1, %v13053_v15, %v4448_v12  ;;  %v4452_v27 = vsel %vm4450_vm8, %v4451_v48, %v13279_v41  ;;  %vm4443_vm3 = vweird.f32 %v12579_v4  ;;  %v3622_v28 = vsel %vm3611_vm6, nan, %v3621_v37  ;;  %v13351_v4 = vpop.permute.xlu0 %4569 }
 0x46b   : > { %v4453_v61 = vsel %vm4446_vm0, %v4449_v21, %v4452_v27  ;;  %17345 = vst [vmem:[#allocation27_spill] sm:$0xff] %v13351_v4  ;;  %v17349_v22 = vmov 683565275   ;;  %v17350_v31 = vmov 2475754826  }
 0x46c   : > { %v4454_v11 = vsel %vm4443_vm3, nan, %v4453_v61  ;;  %v17351_v8 = vmov 2131351028  }
 0x46d   : > { %v9123_v9 = vpack.c.bf16 %v4454_v11, %v3622_v28  ;;  %8938 = vmatmul.mubr.msk.f32.vlgmr.msra.gmra.mrb[24].mxu0 %vm16830_vm2, %v13120_v30 }
 0x46e   : > { %4848 = vmatprep.mubr.f32.mxu0 %v17297_v52 }
 0x46f   : > { %9124 = vmatpush1.bf16.msra.mxu1 %v9123_v9 }
 0x471   : > { %8939 = vmatmul.mubr.msk.f32.gmra.mrb[26].mxu0 %vm16830_vm2, %v13145_v60 }
 0x472   : > { %8942 = vmatmul.mubr.msk.f32.vlgmr.msra.gmra.mrb[24].mxu1 %vm16830_vm2, %v13120_v30  ;;  %4854 = vmatprep.mubr.f32.mxu0 %v17297_v52 }
 0x473   : > { %4937 = vmatprep.mubr.f32.mxu1 %v17297_v52 }
 0x475   : > { %8940 = vmatmul.mubr.msk.f32.gmra.mrb[28].mxu0 %vm16830_vm2, %v13174_v40 }
 0x476   : > { %8943 = vmatmul.mubr.msk.f32.gmra.mrb[26].mxu1 %vm16830_vm2, %v13145_v60  ;;  %4860 = vmatprep.mubr.f32.mxu0 %v17297_v52 }
 0x477   : > { %4943 = vmatprep.mubr.f32.mxu1 %v17297_v52 }
 0x479   : > { %8941 = vmatmul.mubr.msk.f32.gmra.mrb[30].mxu0 %vm16830_vm2, %v13193_v7 }
 0x47a   : > { %8944 = vmatmul.mubr.msk.f32.gmra.mrb[28].mxu1 %vm16830_vm2, %v13174_v40  ;;  %8358 = vmatprep.mubr.f32.mxu0 %v17297_v52 }
 0x47b   : > { %4949 = vmatprep.mubr.f32.mxu1 %v17297_v52 }
 0x47e   : > { %8945 = vmatmul.mubr.msk.f32.gmra.mrb[30].mxu1 %vm16830_vm2, %v13193_v7 }
 0x47f   : > { %8429 = vmatprep.mubr.f32.mxu1 %v17297_v52 }
 0x506   : > { %v4666_v15 = vpop.f32.mrb[16].mxu0 }
 0x507   : > { %v13354_v30 = vadd.f32 %v4666_v15, %v13351_v4  ;;  %v4668_v60 = vpop.f32.mrb[17].mxu0 }
 0x508   : > { %v13357_v41 = vadd.f32 %v4668_v60, %v13351_v4 }
 0x509   : > { %17346 = vst [vmem:[#allocation34_spill] sm:$0xff] %v13354_v30  ;;  %v16767_v40 = vand.u32 2147483647, %v13354_v30  ;;  %v4959_v59 = vand.u32 2139095040, %v13354_v30 }
 0x50a   : > { %17347 = vst [vmem:[#allocation33_spill] sm:$0xff] %v13357_v41  ;;  %v5063_v42 = vand.u32 2139095040, %v13357_v41  ;;  %v13362_v46 = vpop.f32.mrb[18].mxu0  ;;  %v16765_v19 = vand.u32 2147483647, %v13357_v41 }
 0x50b   : > { %v4960_v7 = vshrl.u32 %v4959_v59, 23  ;;  %v13364_v56 = vpop.f32.mrb[19].mxu0  ;;  %v4963_v44 = vand.u32 8388607, %v16767_v40 }
 0x50c   : > { %v4755_v49 = vpop.f32.mrb[16].mxu1  ;;  %v5064_v35 = vshrl.u32 %v5063_v42, 23  ;;  %v13386_v13 = vand.u32 8388607, %v16765_v19 }
 0x50d   : > { %v8946_v55 = vadd.s32 4294967169, %v4960_v7  ;;  %v13369_v53 = vadd.f32 %v4755_v49, %v13351_v4  ;;  %v13371_v33 = vpop.f32.mrb[17].mxu1  ;;  %v4964_v26 = vor.u32 8388608, %v4963_v44 }
 0x50e   : > { %v8950_v38 = vadd.s32 4294967169, %v5064_v35  ;;  %v13401_v59 = vpop.f32.mrb[20].mxu0 }
 0x50f   : > { %17348 = vst [vmem:[#allocation24_spill] sm:$0xff] %v13369_v53  ;;  %v4966_v16 = vadd.s32 1, %v8946_v55  ;;  %v16766_v58 = vand.u32 2147483647, %v13369_v53  ;;  %v5167_v0 = vand.u32 2139095040, %v13369_v53  ;;  %v13382_v5 = vshll.u32 %v4964_v26, 8 }
 0x510   : > { %v5070_v17 = vadd.s32 1, %v8950_v38  ;;  %v13376_v63 = vpop.f32.mrb[18].mxu1 }
 0x511   : > { %vm4967_vm13 = vcmp.gt.s32.totalorder %v4966_v16, 0  ;;  %v5171_v10 = vand.u32 8388607, %v16766_v58  ;;  %v5168_v1 = vshrl.u32 %v5167_v0, 23  ;;  %v13380_v51 = vpop.f32.mrb[19].mxu1 }
 0x512   : > { %v4968_v34 = vsel %vm4967_vm13, %v4966_v16, 0  ;;  %vm5071_vm15 = vcmp.gt.s32.totalorder %v5070_v17, 0 }
 0x513   : > { %v4970_v23 = vand.u32 31, %v4968_v34  ;;  %v5072_v3 = vsel %vm5071_vm15, %v5070_v17, 0  ;;  %v4969_v36 = vshrl.u32 %v4968_v34, 5  ;;  %v8954_v25 = vadd.s32 4294967169, %v5168_v1 }
 0x514   : > { %v5172_v6 = vor.u32 8388608, %v5171_v10  ;;  %v13388_v18 = vand.u32 31, %v5072_v3 }
 0x515   : > { %v4971_v20 = vsub.s32 32, %v4970_v23  ;;  %v4973_v14 = vshll.u32 %v17349_v22, %v4970_v23  ;;  %v4976_v24 = vshll.u32 %v17350_v31, %v4970_v23  ;;  %v4979_v50 = vshll.u32 %v17351_v8, %v4970_v23 }
 0x516   : > { %v4982_v45 = vshll.u32 %v16967_v43, %v4970_v23  ;;  %v4985_v57 = vshll.u32 %v16968_v29, %v4970_v23  ;;  %vm4988_vm9 = vcmp.lt.s32.totalorder %v4969_v36, 1  ;;  %v5174_v39 = vadd.s32 1, %v8954_v25 }
 0x517   : > { %v4974_v2 = vshrl.u32 %v17350_v31, %v4971_v20  ;;  %v4977_v32 = vshrl.u32 %v17351_v8, %v4971_v20  ;;  %v4980_v54 = vshrl.u32 %v16967_v43, %v4971_v20  ;;  %v4972_v47 = vshrl.u32 %v17349_v22, %v4971_v20 }
 0x518   : > { %v4983_v12 = vshrl.u32 %v16968_v29, %v4971_v20  ;;  %v4986_v48 = vshrl.u32 %v16969_v62, %v4971_v20  ;;  %vm4990_vm12 = vcmp.lt.s32.totalorder %v4969_v36, 3  ;;  %vm4991_vm14 = vcmp.lt.s32.totalorder %v4969_v36, 4 }
 0x519   : > { %v4975_v37 = vor.u32 %v4974_v2, %v4973_v14  ;;  %v4978_v21 = vor.u32 %v4977_v32, %v4976_v24  ;;  %v4981_v27 = vor.u32 %v4980_v54, %v4979_v50  ;;  %vm5175_vm11 = vcmp.gt.s32.totalorder %v5174_v39, 0 }
 0x51a   : > { %v4984_v61 = vor.u32 %v4983_v12, %v4982_v45  ;;  %v4987_v28 = vor.u32 %v4986_v48, %v4985_v57  ;;  %vm4989_vm10 = vcmp.lt.s32.totalorder %v4969_v36, 2  ;;  %v5176_v55 = vsel %vm5175_vm11, %v5174_v39, 0 }
 0x51b   : > { %v4992_v11 = vsel %vm4988_vm9, %v4972_v47, %v4975_v37  ;;  %v4993_v9 = vsel %vm4991_vm14, %v4981_v27, 2102212464  ;;  %v4996_v15 = vsel %vm4988_vm9, %v4975_v37, %v4978_v21  ;;  %v5000_v60 = vsel %vm4988_vm9, %v4978_v21, %v4981_v27 }
 0x51c   : > { %v4994_v42 = vsel %vm4990_vm12, %v4978_v21, %v4993_v9  ;;  %v4997_v7 = vsel %vm4991_vm14, %v4984_v61, 920167782  ;;  %v5001_v44 = vsel %vm4991_vm14, %v4987_v28, 1326507024  ;;  %v5177_v0 = vshrl.u32 %v5176_v55, 5 }
 0x51d   : > { %v4998_v49 = vsel %vm4990_vm12, %v4981_v27, %v4997_v7  ;;  %v5002_v35 = vsel %vm4990_vm12, %v4984_v61, %v5001_v44  ;;  %v4995_v38 = vsel %vm4989_vm10, %v4992_v11, %v4994_v42  ;;  %v5178_v23 = vand.u32 31, %v5176_v55  ;;  %v13443_v44 = vpop.f32.mrb[20].mxu1 }
 0x51e   : > { %v4999_v16 = vsel %vm4989_vm10, %v4996_v15, %v4998_v49  ;;  %v5003_v26 = vsel %vm4989_vm10, %v5000_v60, %v5002_v35  ;;  %v5068_v20 = vor.u32 8388608, %v13386_v13  ;;  %v13413_v36 = vshrl.u32 %v5072_v3, 5 }
 0x51f   : > { %v13404_v17 = vmul.u32.u64.low %v13382_v5, %v5003_v26  ;;  %v13405_v10 = vmul.u32.u64.high %v13382_v5, %v5003_v26, %v13404_v17  ;;  %v13408_v34 = vmul.u32.u64.low %v13382_v5, %v4999_v16  ;;  %v13409_v1 = vmul.u32.u64.high %v13382_v5, %v4999_v16, %v13408_v34 }
 0x520   : > { %v13417_v25 = vadd.f32 %v13371_v33, %v13351_v4  ;;  %v5011_v14 = vmul.u32 %v13382_v5, %v4995_v38  ;;  %vm5196_vm5 = vcmp.lt.s32.totalorder %v5177_v0, 1  ;;  %v13420_v24 = vshll.u32 %v5172_v6, 8 }
 0x521   : > { %v13423_v50 = vsub.s32 32, %v13388_v18  ;;  %v5179_v45 = vsub.s32 32, %v5178_v23  ;;  %v5181_v2 = vshll.u32 %v17349_v22, %v5178_v23  ;;  %vm5197_vm4 = vcmp.lt.s32.totalorder %v5177_v0, 2 }
 0x522   : > { %17352 = vst [vmem:[#allocation51_spill] sm:$0xff] %v13417_v25  ;;  %vm5198_vm7 = vcmp.lt.s32.totalorder %v5177_v0, 3  ;;  %vm5013_vm1 = vc.u32 %v13405_v10, %v13408_v34  ;;  %v5014_v3 = vadd.s32 1, %v13409_v1  ;;  %v5184_v33 = vshll.u32 %v17350_v31, %v5178_v23 }
 0x523   : > { %v5187_v5 = vshll.u32 %v17351_v8, %v5178_v23  ;;  %v5182_v6 = vshrl.u32 %v17350_v31, %v5179_v45  ;;  %v5185_v32 = vshrl.u32 %v17351_v8, %v5179_v45  ;;  %v5188_v54 = vshrl.u32 %v16967_v43, %v5179_v45 }
 0x524   : > { %v5190_v57 = vshll.u32 %v16967_v43, %v5178_v23  ;;  %v5015_v47 = vsel %vm5013_vm1, %v5014_v3, %v13409_v1  ;;  %v5191_v12 = vshrl.u32 %v16968_v29, %v5179_v45  ;;  %v5193_v48 = vshll.u32 %v16968_v29, %v5178_v23 }
 0x525   : > { %v5194_v37 = vshrl.u32 %v16969_v62, %v5179_v45  ;;  %v5016_v21 = vadd.s32 %v5015_v47, %v5011_v14  ;;  %v5183_v27 = vor.u32 %v5182_v6, %v5181_v2  ;;  %v5186_v39 = vor.u32 %v5185_v32, %v5184_v33 }
 0x526   : > { %v5189_v61 = vor.u32 %v5188_v54, %v5187_v5  ;;  %v5180_v28 = vshrl.u32 %v17349_v22, %v5179_v45  ;;  %v5192_v11 = vor.u32 %v5191_v12, %v5190_v57  ;;  %vm5199_vm8 = vcmp.lt.s32.totalorder %v5177_v0, 4 }
 0x527   : > { %v5195_v9 = vor.u32 %v5194_v37, %v5193_v48  ;;  %v5017_v15 = vadd.s32 536870912, %v5016_v21  ;;  %v5204_v42 = vsel %vm5196_vm5, %v5183_v27, %v5186_v39  ;;  %v5078_v7 = vshrl.u32 %v17350_v31, %v13423_v50 }
 0x528   : > { %v5201_v60 = vsel %vm5199_vm8, %v5189_v61, 2102212464  ;;  %v5200_v49 = vsel %vm5196_vm5, %v5180_v28, %v5183_v27  ;;  %v5205_v35 = vsel %vm5199_vm8, %v5192_v11, 920167782  ;;  %v5208_v55 = vsel %vm5196_vm5, %v5186_v39, %v5189_v61 }
 0x529   : > { %v5209_v38 = vsel %vm5199_vm8, %v5195_v9, 1326507024  ;;  %v13447_v16 = vshrl.u32 %v5017_v15, 30  ;;  %v5202_v26 = vsel %vm5198_vm7, %v5186_v39, %v5201_v60  ;;  %v5206_v17 = vsel %vm5198_vm7, %v5189_v61, %v5205_v35 }
 0x52a   : > { %v5210_v1 = vsel %vm5198_vm7, %v5192_v11, %v5209_v38  ;;  %v5207_v23 = vsel %vm5197_vm4, %v5204_v42, %v5206_v17  ;;  %v5077_v45 = vshll.u32 %v17349_v22, %v13388_v18  ;;  %v5081_v2 = vshrl.u32 %v17351_v8, %v13423_v50 }
 0x52b   : > { %v5211_v14 = vsel %vm5197_vm4, %v5208_v55, %v5210_v1  ;;  %v5019_v3 = vshll.u32 %v13447_v16, 30  ;;  %v5080_v6 = vshll.u32 %v17350_v31, %v13388_v18  ;;  %v5203_v32 = vsel %vm5197_vm4, %v5200_v49, %v5202_v26 }
 0x52c   : > { %v13460_v33 = vmul.u32.u64.low %v13420_v24, %v5211_v14  ;;  %v13461_v5 = vmul.u32.u64.high %v13420_v24, %v5211_v14, %v13460_v33  ;;  %v13467_v54 = vmul.u32.u64.low %v13420_v24, %v5207_v23  ;;  %v13468_v57 = vmul.u32.u64.high %v13420_v24, %v5207_v23, %v13467_v54 }
 0x52d   : > { %v5079_v47 = vor.u32 %v5078_v7, %v5077_v45  ;;  %v13471_v12 = vsub.s32 %v5016_v21, %v5019_v3  ;;  %v5082_v48 = vor.u32 %v5081_v2, %v5080_v6  ;;  %v5083_v37 = vshll.u32 %v17351_v8, %v13388_v18 }
 0x52e   : > { %v5084_v27 = vshrl.u32 %v16967_v43, %v13423_v50  ;;  %v5086_v39 = vshll.u32 %v16967_v43, %v13388_v18  ;;  %v5087_v0 = vshrl.u32 %v16968_v29, %v13423_v50  ;;  %v5089_v61 = vshll.u32 %v16968_v29, %v13388_v18 }
 0x52f   : > { %v5090_v21 = vshrl.u32 %v16969_v62, %v13423_v50  ;;  %vm5221_vm0 = vc.u32 %v13461_v5, %v13467_v54  ;;  %v5108_v28 = vshll.u32 %v5068_v20, 8  ;;  %v5222_v11 = vadd.s32 1, %v13468_v57 }
 0x530   : > { %v5085_v9 = vor.u32 %v5084_v27, %v5083_v37  ;;  %v5088_v15 = vor.u32 %v5087_v0, %v5086_v39  ;;  %v5219_v42 = vmul.u32 %v13420_v24, %v5203_v32  ;;  %v5076_v7 = vshrl.u32 %v17349_v22, %v13423_v50 }
 0x531   : > { %v5091_v60 = vor.u32 %v5090_v21, %v5089_v61  ;;  %vm5092_vm6 = vcmp.lt.s32.totalorder %v13413_v36, 1  ;;  %v5271_v18 = vand.u32 2139095040, %v13417_v25  ;;  %v5022_v49 = vsub.s32 0, %v13471_v12 }
 0x532   : > { %v5223_v35 = vsel %vm5221_vm0, %v5222_v11, %v13468_v57  ;;  %vm5095_vm3 = vcmp.lt.s32.totalorder %v13413_v36, 4  ;;  %v5100_v13 = vsel %vm5092_vm6, %v5079_v47, %v5082_v48  ;;  %vm5093_vm13 = vcmp.lt.s32.totalorder %v13413_v36, 2 }
 0x533   : > { %v5224_v20 = vadd.s32 %v5223_v35, %v5219_v42  ;;  %vm5094_vm15 = vcmp.lt.s32.totalorder %v13413_v36, 3  ;;  %v5101_v24 = vsel %vm5095_vm3, %v5088_v15, 920167782  ;;  %v5097_v50 = vsel %vm5095_vm3, %v5085_v9, 2102212464 }
 0x534   : > { %v5102_v55 = vsel %vm5094_vm15, %v5085_v9, %v5101_v24  ;;  %v5104_v38 = vsel %vm5092_vm6, %v5082_v48, %v5085_v9  ;;  %v5105_v26 = vsel %vm5095_vm3, %v5091_v60, 1326507024  ;;  %v5096_v23 = vsel %vm5092_vm6, %v5076_v7, %v5079_v47  ;;  %v13528_v9 = vpop.f32.mrb[21].mxu0 }
 0x535   : > { %v5225_v17 = vadd.s32 536870912, %v5224_v20  ;;  %v5103_v1 = vsel %vm5093_vm13, %v5100_v13, %v5102_v55  ;;  %v5106_v14 = vsel %vm5094_vm15, %v5088_v15, %v5105_v26  ;;  %v5098_v33 = vsel %vm5094_vm15, %v5082_v48, %v5097_v50 }
 0x536   : > { %v13508_v45 = vmul.u32.u64.low %v5108_v28, %v5103_v1  ;;  %v13509_v2 = vmul.u32.u64.high %v5108_v28, %v5103_v1, %v13508_v45  ;;  %v5107_v6 = vsel %vm5093_vm13, %v5104_v38, %v5106_v14  ;;  %v5272_v32 = vshrl.u32 %v5271_v18, 23 }
 0x537   : > { %v13512_v3 = vshrl.u32 %v5225_v17, 30  ;;  %v8947_v57 = vmin.u32 %v5022_v49, %v13471_v12  ;;  %v13517_v37 = vmul.u32.u64.low %v5108_v28, %v5107_v6  ;;  %v13518_v27 = vmul.u32.u64.high %v5108_v28, %v5107_v6, %v13517_v37 }
 0x538   : > { %v5099_v47 = vsel %vm5093_vm13, %v5096_v23, %v5098_v33  ;;  %v5118_v0 = vadd.s32 1, %v13509_v2  ;;  %v8958_v61 = vadd.s32 4294967169, %v5272_v32  ;;  %v16764_v7 = vand.u32 2147483647, %v13417_v25 }
 0x539   : > { %v5227_v39 = vshll.u32 %v13512_v3, 30  ;;  %v5024_v48 = vclz %v8947_v57  ;;  %vm5117_vm9 = vc.u32 %v13518_v27, %v13508_v45  ;;  %v5115_v60 = vmul.u32 %v5108_v28, %v5099_v47 }
 0x53a   : > { %v5278_v11 = vadd.s32 1, %v8958_v61  ;;  %v5119_v42 = vsel %vm5117_vm9, %v5118_v0, %v13509_v2  ;;  %v5275_v55 = vand.u32 8388607, %v16764_v7 }
 0x53b   : > { %v13524_v21 = vsub.s32 %v5224_v20, %v5227_v39  ;;  %v5120_v36 = vadd.s32 %v5119_v42, %v5115_v60  ;;  %v8948_v18 = vadd.s32 4294967294, %v5024_v48  ;;  %v13534_v20 = vpop.permute.xlu1 %4574 }
 0x53c   : > { %vm5279_vm12 = vcmp.gt.s32.totalorder %v5278_v11, 0  ;;  %17353 = vst [vmem:[#allocation18_spill] sm:$0xff] %v13534_v20  ;;  %v13542_v28 = vadd.f32 %v13362_v46, %v13534_v20  ;;  %v5276_v2 = vor.u32 8388608, %v5275_v55 }
 0x53d   : > { %v5230_v15 = vsub.s32 0, %v13524_v21  ;;  %v5280_v49 = vsel %vm5279_vm12, %v5278_v11, 0  ;;  %v5121_v13 = vadd.s32 536870912, %v5120_v36  ;;  %vm8949_vm14 = vcmp.lt.s32.totalorder %v8948_v18, 0 }
 0x53e   : > { %v5282_v24 = vand.u32 31, %v5280_v49  ;;  %17355 = vst [vmem:[#allocation17_spill] sm:$0xff] %v13542_v28  ;;  %v13547_v14 = vsel %vm8949_vm14, 0, %v8948_v18  ;;  %v5791_v33 = vand.u32 2139095040, %v13542_v28  ;;  %v5281_v32 = vshrl.u32 %v5280_v49, 5 }
 0x53f   : > { %v8955_v35 = vmin.u32 %v5230_v15, %v13524_v21  ;;  %v13536_v50 = vshrl.u32 %v5121_v13, 30  ;;  %v5032_v18 = vsub.s32 4294967266, %v13547_v14  ;;  %vm4958_vm14 = vcmp.lt.s32.totalorder %v13354_v30, 0 }
 0x540   : > { %v5283_v38 = vsub.s32 32, %v5282_v24  ;;  %v5285_v46 = vshll.u32 %v17349_v22, %v5282_v24  ;;  %v5288_v57 = vshll.u32 %v17350_v31, %v5282_v24  ;;  %v5291_v39 = vshll.u32 %v17351_v8, %v5282_v24 }
 0x541   : > { %17354 = vst [vmem:[#allocation42_spill] sm:$0xff] %v13536_v50  ;;  %v5232_v26 = vclz %v8955_v35  ;;  %v5123_v17 = vshll.u32 %v13536_v50, 30  ;;  %v5294_v0 = vshll.u32 %v16967_v43, %v5282_v24  ;;  %v5297_v42 = vshll.u32 %v16968_v29, %v5282_v24 }
 0x542   : > { %v5286_v1 = vshrl.u32 %v17350_v31, %v5283_v38  ;;  %v5289_v23 = vshrl.u32 %v17351_v8, %v5283_v38  ;;  %v5292_v47 = vshrl.u32 %v16967_v43, %v5283_v38  ;;  %v5295_v15 = vshrl.u32 %v16968_v29, %v5283_v38 }
 0x543   : > { %v13550_v6 = vsub.s32 %v5120_v36, %v5123_v17  ;;  %v8956_v37 = vadd.s32 4294967294, %v5232_v26  ;;  %v5298_v36 = vshrl.u32 %v16969_v62, %v5283_v38  ;;  %v5316_v35 = vshll.u32 %v5276_v2, 8 }
 0x544   : > { %v5287_v48 = vor.u32 %v5286_v1, %v5285_v46  ;;  %v5290_v11 = vor.u32 %v5289_v23, %v5288_v57  ;;  %v5293_v60 = vor.u32 %v5292_v47, %v5291_v39  ;;  %v5296_v49 = vor.u32 %v5295_v15, %v5294_v0 }
 0x545   : > { %v5126_v61 = vsub.s32 0, %v13550_v6  ;;  %vm8957_vm11 = vcmp.lt.s32.totalorder %v8956_v37, 0  ;;  %v5299_v13 = vor.u32 %v5298_v36, %v5297_v42  ;;  %vm5300_vm10 = vcmp.lt.s32.totalorder %v5281_v32, 1 }
 0x546   : > { %vm5303_vm5 = vcmp.lt.s32.totalorder %v5281_v32, 4  ;;  %v5308_v17 = vsel %vm5300_vm10, %v5287_v48, %v5290_v11  ;;  %v5792_v1 = vshrl.u32 %v5791_v33, 23  ;;  %v5284_v23 = vshrl.u32 %v17349_v22, %v5283_v38 }
 0x547   : > { %v8951_v55 = vmin.u32 %v5126_v61, %v13550_v6  ;;  %v5305_v26 = vsel %vm5303_vm5, %v5293_v60, 2102212464  ;;  %vm5302_vm4 = vcmp.lt.s32.totalorder %v5281_v32, 3  ;;  %v5309_v46 = vsel %vm5303_vm5, %v5296_v49, 920167782 }
 0x548   : > { %v5312_v24 = vsel %vm5300_vm10, %v5290_v11, %v5293_v60  ;;  %v13564_v57 = vsel %vm8957_vm11, 0, %v8956_v37  ;;  %vm5301_vm7 = vcmp.lt.s32.totalorder %v5281_v32, 2  ;;  %v5310_v39 = vsel %vm5302_vm4, %v5293_v60, %v5309_v46 }
 0x549   : > { %v5313_v47 = vsel %vm5303_vm5, %v5299_v13, 1326507024  ;;  %v5304_v2 = vsel %vm5300_vm10, %v5284_v23, %v5287_v48  ;;  %v5306_v0 = vsel %vm5302_vm4, %v5290_v11, %v5305_v26  ;;  %v5311_v15 = vsel %vm5301_vm7, %v5308_v17, %v5310_v39  ;;  %v13578_v13 = vpop.f32.mrb[21].mxu1 }
 0x54a   : > { %v5314_v42 = vsel %vm5302_vm4, %v5296_v49, %v5313_v47  ;;  %v5128_v36 = vclz %v8951_v55  ;;  %v13566_v61 = vmul.u32.u64.low %v5316_v35, %v5311_v15  ;;  %v13567_v19 = vmul.u32.u64.high %v5316_v35, %v5311_v15, %v13566_v61 }
 0x54b   : > { %v5315_v7 = vsel %vm5301_vm7, %v5312_v24, %v5314_v42  ;;  %v5033_v58 = vadd.s32 127, %v5032_v18  ;;  %v5307_v40 = vsel %vm5301_vm7, %v5304_v2, %v5306_v0  ;;  %v16768_v37 = vand.u32 2147483647, %v13542_v28 }
 0x54c   : > { %v13570_v33 = vmul.u32.u64.low %v5316_v35, %v5315_v7  ;;  %v13571_v38 = vmul.u32.u64.high %v5316_v35, %v5315_v7, %v13570_v33  ;;  %v8978_v32 = vadd.s32 4294967169, %v5792_v1  ;;  %v5240_v60 = vsub.s32 4294967266, %v13564_v57 }
 0x54d   : > { %v5012_v48 = vadd.s32 %v13408_v34, %v13405_v10  ;;  %v8952_v11 = vadd.s32 4294967294, %v5128_v36  ;;  %v5326_v49 = vadd.s32 1, %v13567_v19  ;;  %v5028_v55 = vsub.s32 32, %v13547_v14 }
 0x54e   : > { %v5323_v26 = vmul.u32 %v5316_v35, %v5307_v40  ;;  %vm5325_vm1 = vc.u32 %v13571_v38, %v13566_v61  ;;  %v5798_v7 = vadd.s32 1, %v8978_v32  ;;  %v5034_v18 = vshll.u32 %v5033_v58, 23 }
 0x54f   : > { %v5236_v17 = vsub.s32 32, %v13564_v57  ;;  %v5327_v1 = vsel %vm5325_vm1, %v5326_v49, %v13567_v19  ;;  %v5795_v10 = vand.u32 8388607, %v16768_v37  ;;  %v5241_v34 = vadd.s32 127, %v5240_v60 }
 0x550   : > { %v5328_v23 = vadd.s32 %v5327_v1, %v5323_v26  ;;  %vm5799_vm8 = vcmp.gt.s32.totalorder %v5798_v7, 0  ;;  %v13589_v46 = vadd.f32 %v13376_v63, %v13534_v20  ;;  %v5220_v40 = vadd.s32 %v13467_v54, %v13461_v5 }
 0x551   : > { %vm8953_vm0 = vcmp.lt.s32.totalorder %v8952_v11, 0  ;;  %v5800_v35 = vsel %vm5799_vm8, %v5798_v7, 0  ;;  %v5029_v58 = vshll.u32 %v13471_v12, %v13547_v14  ;;  %v5030_v24 = vshrl.u32 %v5012_v48, %v5028_v55 }
 0x552   : > { %17356 = vst [vmem:[#allocation48_spill] sm:$0xff] %v13589_v46  ;;  %v5329_v19 = vadd.s32 536870912, %v5328_v23  ;;  %v5802_v39 = vand.u32 31, %v5800_v35  ;;  %v13595_v47 = vor.u32 4788187, %v5034_v18  ;;  %v5237_v2 = vshll.u32 %v13524_v21, %v13564_v57 }
 0x553   : > { %v5238_v0 = vshrl.u32 %v5220_v40, %v5236_v17  ;;  %v5796_v15 = vor.u32 8388608, %v5795_v10  ;;  %v5242_v63 = vshll.u32 %v5241_v34, 23  ;;  %v13599_v42 = vsel %vm8953_vm0, 0, %v8952_v11 }
 0x554   : > { %v5803_v36 = vsub.s32 32, %v5802_v39  ;;  %v5999_v5 = vand.u32 2139095040, %v13589_v46  ;;  %v13602_v54 = vshrl.u32 %v5329_v19, 30  ;;  %v5801_v33 = vshrl.u32 %v5800_v35, 5 }
 0x555   : > { %v5805_v12 = vshll.u32 %v17349_v22, %v5802_v39  ;;  %v5808_v14 = vshll.u32 %v17350_v31, %v5802_v39  ;;  %v5811_v21 = vshll.u32 %v17351_v8, %v5802_v39  ;;  %v5814_v57 = vshll.u32 %v16967_v43, %v5802_v39 }
 0x556   : > { %17357 = vst [vmem:[#allocation12_spill] sm:$0xff] %v13602_v54  ;;  %v5806_v32 = vshrl.u32 %v17350_v31, %v5803_v36  ;;  %v5809_v60 = vshrl.u32 %v17351_v8, %v5803_v36  ;;  %v5812_v48 = vshrl.u32 %v16967_v43, %v5803_v36  ;;  %v5815_v11 = vshrl.u32 %v16968_v29, %v5803_v36 }
 0x557   : > { %v5817_v49 = vshll.u32 %v16968_v29, %v5802_v39  ;;  %v5818_v55 = vshrl.u32 %v16969_v62, %v5803_v36  ;;  %v5031_v26 = vor.u32 %v5030_v24, %v5029_v58  ;;  %v5036_v7 = vand.u32 2147483647, %v13595_v47 }
 0x558   : > { %v5807_v18 = vor.u32 %v5806_v32, %v5805_v12  ;;  %v5810_v17 = vor.u32 %v5809_v60, %v5808_v14  ;;  %v5239_v1 = vor.u32 %v5238_v0, %v5237_v2  ;;  %v5813_v10 = vor.u32 %v5812_v48, %v5811_v21 }
 0x559   : > { %v5816_v34 = vor.u32 %v5815_v11, %v5814_v57  ;;  %v5819_v40 = vor.u32 %v5818_v55, %v5817_v49  ;;  %v5243_v35 = vor.u32 4788187, %v5242_v63  ;;  %v5136_v19 = vsub.s32 4294967266, %v13599_v42 }
 0x55a   : > { %v5331_v37 = vshll.u32 %v13602_v54, 30  ;;  %vm5820_vm6 = vcmp.lt.s32.totalorder %v5801_v33, 1  ;;  %vm5823_vm3 = vcmp.lt.s32.totalorder %v5801_v33, 4  ;;  %v5836_v39 = vshll.u32 %v5796_v15, 8 }
 0x55b   : > { %v5828_v52 = vsel %vm5820_vm6, %v5807_v18, %v5810_v17  ;;  %v6000_v50 = vshrl.u32 %v5999_v5, 23  ;;  %v5804_v58 = vshrl.u32 %v17349_v22, %v5803_v36  ;;  %vm5822_vm13 = vcmp.lt.s32.totalorder %v5801_v33, 3 }
 0x55c   : > { %v5825_v24 = vsel %vm5823_vm3, %v5813_v10, 2102212464  ;;  %v5829_v47 = vsel %vm5823_vm3, %v5816_v34, 920167782  ;;  %vm5821_vm15 = vcmp.lt.s32.totalorder %v5801_v33, 2  ;;  %v5832_v0 = vsel %vm5820_vm6, %v5810_v17, %v5813_v10 }
 0x55d   : > { %v5830_v2 = vsel %vm5822_vm13, %v5813_v10, %v5829_v47  ;;  %v5833_v12 = vsel %vm5823_vm3, %v5819_v40, 1326507024  ;;  %v13618_v14 = vsub.s32 %v5328_v23, %v5331_v37  ;;  %v5824_v63 = vsel %vm5820_vm6, %v5804_v58, %v5807_v18 }
 0x55e   : > { %v5831_v32 = vsel %vm5821_vm15, %v5828_v52, %v5830_v2  ;;  %v5834_v60 = vsel %vm5822_vm13, %v5816_v34, %v5833_v12  ;;  %v5826_v21 = vsel %vm5822_vm13, %v5810_v17, %v5825_v24  ;;  %v5132_v36 = vsub.s32 32, %v13599_v42  ;;  %v13638_v34 = vpop.f32.mrb[22].mxu0 }
 0x55f   : > { %v5835_v57 = vsel %vm5821_vm15, %v5832_v0, %v5834_v60  ;;  %v13622_v15 = vmul.u32.u64.low %v5836_v39, %v5831_v32  ;;  %v13623_v5 = vmul.u32.u64.high %v5836_v39, %v5831_v32, %v13622_v15  ;;  %v8986_v49 = vadd.s32 4294967169, %v6000_v50 }
 0x560   : > { %v13627_v48 = vmul.u32.u64.low %v5836_v39, %v5835_v57  ;;  %v13628_v11 = vmul.u32.u64.high %v5836_v39, %v5835_v57, %v13627_v48  ;;  %v5038_v55 = vcvt.s32.f32 %v5031_v26  ;;  %v5116_v37 = vadd.s32 %v13508_v45, %v13518_v27 }
 0x561   : > { %v13634_v52 = vadd.f32 %v13364_v56, %v13534_v20  ;;  %v5137_v23 = vadd.s32 127, %v5136_v19  ;;  %v5334_v18 = vsub.s32 0, %v13618_v14  ;;  %v5827_v17 = vsel %vm5821_vm15, %v5824_v63, %v5826_v21 }
 0x562   : > { %v6006_v10 = vadd.s32 1, %v8986_v49  ;;  %v5042_v40 = vsub.s32 4, %v13447_v16  ;;  %v5846_v50 = vadd.s32 1, %v13623_v5  ;;  %v16772_v26 = vand.u32 2147483647, %v13589_v46 }
 0x563   : > { %17358 = vst [vmem:[#allocation29_spill] sm:$0xff] %v13634_v52  ;;  %v13643_v58 = vmul.f32 %v5038_v55, %v5036_v7  ;;  %v5244_v45 = vand.u32 2147483647, %v5243_v35  ;;  %v5246_v27 = vcvt.s32.f32 %v5239_v1  ;;  %v5134_v56 = vshrl.u32 %v5116_v37, %v5132_v36 }
 0x564   : > { %v5843_v24 = vmul.u32 %v5836_v39, %v5827_v17  ;;  %vm5845_vm9 = vc.u32 %v13628_v11, %v13622_v15  ;;  %vm6007_vm12 = vcmp.gt.s32.totalorder %v6006_v10, 0  ;;  %v5895_v33 = vand.u32 2139095040, %v13634_v52 }
 0x565   : > { %v5138_v19 = vshll.u32 %v5137_v23, 23  ;;  %v8959_v47 = vmin.u32 %v5334_v18, %v13618_v14  ;;  %v5847_v2 = vsel %vm5845_vm9, %v5846_v50, %v13623_v5  ;;  %v6008_v0 = vsel %vm6007_vm12, %v6006_v10, 0 }
 0x566   : > { %v5133_v7 = vshll.u32 %v13550_v6, %v13599_v42  ;;  %v5848_v1 = vadd.s32 %v5847_v2, %v5843_v24  ;;  %v6010_v35 = vand.u32 31, %v6008_v0  ;;  %v5040_v39 = vxor.u32 2147483648, %v13643_v58 }
 0x567   : > { %v13657_v12 = vsel %vm4958_vm14, %v5042_v40, %v13447_v16  ;;  %v13659_v63 = vmul.f32 %v5246_v27, %v5244_v45  ;;  %v5896_v57 = vshrl.u32 %v5895_v33, 23  ;;  %v5139_v5 = vor.u32 4788187, %v5138_v19 }
 0x568   : > { %v5135_v32 = vor.u32 %v5134_v56, %v5133_v7  ;;  %v5849_v60 = vadd.s32 536870912, %v5848_v1  ;;  %v6011_v21 = vsub.s32 32, %v6010_v35  ;;  %v5336_v36 = vclz %v8959_v47 }
 0x569   : > { %v6003_v6 = vand.u32 8388607, %v16772_v26  ;;  %v6013_v42 = vshll.u32 %v17349_v22, %v6010_v35  ;;  %v6016_v16 = vshll.u32 %v17350_v31, %v6010_v35  ;;  %v6019_v37 = vshll.u32 %v17351_v8, %v6010_v35 }
 0x56a   : > { %v13664_v48 = vshrl.u32 %v5849_v60, 30  ;;  %v6014_v49 = vshrl.u32 %v17350_v31, %v6011_v21  ;;  %v6017_v55 = vshrl.u32 %v17351_v8, %v6011_v21  ;;  %v6020_v23 = vshrl.u32 %v16967_v43, %v6011_v21 }
 0x56b   : > { %v6022_v18 = vshll.u32 %v16967_v43, %v6010_v35  ;;  %v6023_v17 = vshrl.u32 %v16968_v29, %v6011_v21  ;;  %v6009_v40 = vshrl.u32 %v6008_v0, 5  ;;  %v8982_v45 = vadd.s32 4294967169, %v5896_v57 }
 0x56c   : > { %v5851_v10 = vshll.u32 %v13664_v48, 30  ;;  %v6015_v50 = vor.u32 %v6014_v49, %v6013_v42  ;;  %v6018_v27 = vor.u32 %v6017_v55, %v6016_v16  ;;  %v6021_v56 = vor.u32 %v6020_v23, %v6019_v37 }
 0x56d   : > { %v6024_v24 = vor.u32 %v6023_v17, %v6022_v18  ;;  %v6026_v33 = vshrl.u32 %v16969_v62, %v6011_v21  ;;  %v5248_v19 = vxor.u32 2147483648, %v13659_v63  ;;  %v5142_v47 = vcvt.s32.f32 %v5135_v32 }
 0x56e   : > { %v13676_v2 = vsub.s32 %v5848_v1, %v5851_v10  ;;  %v6025_v7 = vshll.u32 %v16968_v29, %v6010_v35  ;;  %v17359_v60 = vand.u32 2147483647, %v13354_v30  ;;  %v5140_v0 = vand.u32 2147483647, %v5139_v5 }
 0x56f   : > { %v8960_v57 = vadd.s32 4294967294, %v5336_v36  ;;  %v6004_v42 = vor.u32 8388608, %v6003_v6  ;;  %v16773_v49 = vand.u32 2147483647, %v13634_v52  ;;  %vm6028_vm10 = vcmp.lt.s32.totalorder %v6009_v40, 1 }
 0x570   : > { %vm13681_vm11 = vcmp.le.f32.partialorder %v17359_v60, 0.7853982  ;;  %v6027_v16 = vor.u32 %v6026_v33, %v6025_v7  ;;  %vm6031_vm5 = vcmp.lt.s32.totalorder %v6009_v40, 4  ;;  %v5902_v55 = vadd.s32 1, %v8982_v45 }
 0x571   : > { %vm6030_vm4 = vcmp.lt.s32.totalorder %v6009_v40, 3  ;;  %v6033_v1 = vsel %vm6031_vm5, %v6021_v56, 2102212464  ;;  %v6036_v35 = vsel %vm6028_vm10, %v6015_v50, %v6018_v27  ;;  %v6037_v32 = vsel %vm6031_vm5, %v6024_v24, 920167782 }
 0x572   : > { %v5854_v37 = vsub.s32 0, %v13676_v2  ;;  %v6012_v23 = vshrl.u32 %v17349_v22, %v6011_v21  ;;  %vm6029_vm7 = vcmp.lt.s32.totalorder %v6009_v40, 2  ;;  %v6038_v5 = vsel %vm6030_vm4, %v6021_v56, %v6037_v32  ;;  %v13704_v32 = vpop.f32.mrb[22].mxu1 }
 0x573   : > { %vm8961_vm1 = vcmp.lt.s32.totalorder %v8960_v57, 0  ;;  %v6039_v36 = vsel %vm6029_vm7, %v6036_v35, %v6038_v5  ;;  %v6040_v6 = vsel %vm6028_vm10, %v6018_v27, %v6021_v56  ;;  %v6044_v18 = vshll.u32 %v6004_v42, 8 }
 0x574   : > { %v13694_v17 = vmul.f32 %v5142_v47, %v5140_v0  ;;  %v6032_v10 = vsel %vm6028_vm10, %v6012_v23, %v6015_v50  ;;  %v6034_v45 = vsel %vm6030_vm4, %v6018_v27, %v6033_v1  ;;  %v6041_v33 = vsel %vm6031_vm5, %v6027_v16, 1326507024 }
 0x575   : > { %v6042_v7 = vsel %vm6030_vm4, %v6024_v24, %v6041_v33  ;;  %v13700_v21 = vmul.u32.u64.low %v6044_v18, %v6039_v36  ;;  %v13701_v60 = vmul.u32.u64.high %v6044_v18, %v6039_v36, %v13700_v21  ;;  %vm5903_vm8 = vcmp.gt.s32.totalorder %v5902_v55, 0 }
 0x576   : > { %v13706_v35 = vsel %vm8961_vm1, 0, %v8960_v57  ;;  %v8979_v56 = vmin.u32 %v5854_v37, %v13676_v2  ;;  %v6043_v47 = vsel %vm6029_vm7, %v6040_v6, %v6042_v7  ;;  %v5904_v50 = vsel %vm5903_vm8, %v5902_v55, 0 }
 0x577   : > { %v13710_v0 = vmul.u32.u64.low %v6044_v18, %v6043_v47  ;;  %v13711_v27 = vmul.u32.u64.high %v6044_v18, %v6043_v47, %v13710_v0  ;;  %v5899_v24 = vand.u32 8388607, %v16773_v49  ;;  %v5906_v42 = vand.u32 31, %v5904_v50 }
 0x578   : > { %vm5166_vm0 = vcmp.lt.s32.totalorder %v13369_v53, 0  ;;  %v6035_v1 = vsel %vm6029_vm7, %v6032_v10, %v6034_v45  ;;  %v13726_v55 = vsel %vm4958_vm14, %v5040_v39, %v13643_v58  ;;  %v5344_v37 = vsub.s32 4294967266, %v13706_v35 }
 0x579   : > { %v6054_v23 = vadd.s32 1, %v13701_v60  ;;  %v5907_v5 = vsub.s32 32, %v5906_v42  ;;  %v13733_v36 = vsel %vm5166_vm0, %v5248_v19, %v13659_v63  ;;  %v5324_v6 = vadd.s32 %v13566_v61, %v13571_v38 }
 0x57a   : > { %v5856_v10 = vclz %v8979_v56  ;;  %v6051_v45 = vmul.u32 %v6044_v18, %v6035_v1  ;;  %vm6053_vm6 = vc.u32 %v13711_v27, %v13700_v21  ;;  %v5900_v58 = vor.u32 8388608, %v5899_v24 }
 0x57b   : > { %v5910_v39 = vshrl.u32 %v17350_v31, %v5907_v5  ;;  %v5340_v33 = vsub.s32 32, %v13706_v35  ;;  %v6055_v7 = vsel %vm6053_vm6, %v6054_v23, %v13701_v60  ;;  %v5909_v63 = vshll.u32 %v17349_v22, %v5906_v42  ;;  %v13750_v23 = vpop.permute.xlu0 %4579 }
 0x57c   : > { %v5913_v19 = vshrl.u32 %v17351_v8, %v5907_v5  ;;  %v5345_v47 = vadd.s32 127, %v5344_v37  ;;  %v6056_v0 = vadd.s32 %v6055_v7, %v6051_v45  ;;  %v5912_v61 = vshll.u32 %v17350_v31, %v5906_v42 }
 0x57d   : > { %v5916_v38 = vshrl.u32 %v16967_v43, %v5907_v5  ;;  %v8980_v18 = vadd.s32 4294967294, %v5856_v10  ;;  %v5905_v56 = vshrl.u32 %v5904_v50, 5  ;;  %v5911_v1 = vor.u32 %v5910_v39, %v5909_v63 }
 0x57e   : > { %v5915_v24 = vshll.u32 %v17351_v8, %v5906_v42  ;;  %v6057_v49 = vadd.s32 536870912, %v6056_v0  ;;  %v5914_v40 = vor.u32 %v5913_v19, %v5912_v61  ;;  %v5918_v57 = vshll.u32 %v16967_v43, %v5906_v42 }
 0x57f   : > { %v5919_v60 = vshrl.u32 %v16968_v29, %v5907_v5  ;;  %v5921_v37 = vshll.u32 %v16968_v29, %v5906_v42  ;;  %v5922_v45 = vshrl.u32 %v16969_v62, %v5907_v5  ;;  %v13756_v10 = vadd.f32 %v13380_v51, %v13534_v20 }
 0x580   : > { %v5917_v16 = vor.u32 %v5916_v38, %v5915_v24  ;;  %v13758_v50 = vshrl.u32 %v6057_v49, 30  ;;  %v5940_v7 = vshll.u32 %v5900_v58, 8  ;;  %v13762_v63 = vadd.f32 %v13401_v59, %v13750_v23 }
 0x581   : > { %17362 = vst [vmem:[#allocation39_spill] sm:$0xff] %v13756_v10  ;;  %v5920_v39 = vor.u32 %v5919_v60, %v5918_v57  ;;  %v5342_v19 = vshrl.u32 %v5324_v6, %v5340_v33  ;;  %v5346_v61 = vshll.u32 %v5345_v47, 23  ;;  %v5923_v54 = vor.u32 %v5922_v45, %v5921_v37 }
 0x582   : > { %17363 = vst [vmem:[#allocation36_spill] sm:$0xff] %v13762_v63  ;;  %vm5924_vm3 = vcmp.lt.s32.totalorder %v5905_v56, 1  ;;  %v17364_v42 = vand.u32 2147483647, %v13369_v53  ;;  %vm8981_vm15 = vcmp.lt.s32.totalorder %v8980_v18, 0  ;;  %v6059_v51 = vshll.u32 %v13758_v50, 30 }
 0x583   : > { %vm5927_vm9 = vcmp.lt.s32.totalorder %v5905_v56, 4  ;;  %v5932_v49 = vsel %vm5924_vm3, %v5911_v1, %v5914_v40  ;;  %vm16868_vm12 = vcmp.lt.s32.totalorder %v13357_v41, 0  ;;  %v5908_v59 = vshrl.u32 %v17349_v22, %v5907_v5 }
 0x584   : > { %vm13766_vm13 = vcmp.le.f32.partialorder %v17364_v42, 0.7853982  ;;  %vm5926_vm14 = vcmp.lt.s32.totalorder %v5905_v56, 3  ;;  %v5929_v57 = vsel %vm5927_vm9, %v5917_v16, 2102212464  ;;  %v13774_v58 = vsub.s32 %v6056_v0, %v6059_v51 }
 0x585   : > { %v5933_v6 = vsel %vm5927_vm9, %v5920_v39, 920167782  ;;  %vm5925_vm10 = vcmp.lt.s32.totalorder %v5905_v56, 2  ;;  %v5936_v47 = vsel %vm5924_vm3, %v5914_v40, %v5917_v16  ;;  %v13777_v24 = vsel %vm8981_vm15, 0, %v8980_v18 }
 0x586   : > { %v5934_v33 = vsel %vm5926_vm14, %v5917_v16, %v5933_v6  ;;  %v5937_v37 = vsel %vm5927_vm9, %v5923_v54, 1326507024  ;;  %v6103_v45 = vand.u32 2139095040, %v13756_v10  ;;  %v6062_v42 = vsub.s32 0, %v13774_v58 }
 0x587   : > { %v5935_v60 = vsel %vm5925_vm10, %v5932_v49, %v5934_v33  ;;  %v5928_v5 = vsel %vm5924_vm3, %v5908_v59, %v5911_v1  ;;  %v5930_v20 = vsel %vm5926_vm14, %v5914_v40, %v5929_v57  ;;  %v5938_v4 = vsel %vm5926_vm14, %v5920_v39, %v5937_v37 }
 0x588   : > { %v17367_v0 = vand.u32 2147483647, %v13357_v41  ;;  %v17368_v51 = vmov 0  ;;  %v5341_v16 = vshll.u32 %v13618_v14, %v13706_v35  ;;  %v5939_v18 = vsel %vm5925_vm10, %v5936_v47, %v5938_v4 }
 0x589   : > { %v13792_v54 = vmul.u32.u64.low %v5940_v7, %v5935_v60  ;;  %v13793_v49 = vmul.u32.u64.high %v5940_v7, %v5935_v60, %v13792_v54  ;;  %v5347_v6 = vor.u32 4788187, %v5346_v61  ;;  %v8987_v1 = vmin.u32 %v6062_v42, %v13774_v58  ;;  %v13816_v42 = vpop.f32.mrb[23].mxu0 }
 0x58a   : > { %vm13785_vm5 = vcmp.le.f32.partialorder %v17367_v0, 0.7853982  ;;  %v13797_v40 = vmul.u32.u64.low %v5940_v7, %v5939_v18  ;;  %v13798_v39 = vmul.u32.u64.high %v5940_v7, %v5939_v18, %v13797_v40  ;;  %v17371_v59 = vsel %vm13681_vm11, 0, %v13657_v12 }
 0x58b   : > { %v17369_v51 = vsel %vm13785_vm5, 4294967295, %v17368_v51  ;;  %v13804_v57 = vadd.s32 3, %v17371_v59  ;;  %v5864_v14 = vsub.s32 4294967266, %v13777_v24  ;;  %v5931_v4 = vsel %vm5925_vm10, %v5928_v5, %v5930_v20 }
 0x58c   : > { %17370 = vst [vmem:[#allocation31_spill] sm:$0xff] %v17369_v51  ;;  %v6104_v35 = vshrl.u32 %v6103_v45, 23  ;;  %v17373_v33 = vsub.s32 4, %v13512_v3  ;;  %v5343_v47 = vor.u32 %v5342_v19, %v5341_v16  ;;  %v6064_v60 = vclz %v8987_v1 }
 0x58d   : > { %17372 = vst [vmem:[#allocation22_spill] sm:$0xff] %v13804_v57  ;;  %v6623_v37 = vand.u32 2139095040, %v13762_v63  ;;  %v5044_v12 = vsel %vm13681_vm11, %v13354_v30, %v13726_v55  ;;  %v5252_v20 = vsel %vm13766_vm13, %v13369_v53, %v13733_v36  ;;  %v5950_v56 = vadd.s32 1, %v13793_v49 }
 0x58e   : > { %v13813_v61 = vsel %vm5166_vm0, %v17373_v33, %v13512_v3  ;;  %v8990_v3 = vadd.s32 4294967169, %v6104_v35  ;;  %v17374_v19 = vxor.u32 2147483648, %v13694_v17  ;;  %v5348_v5 = vand.u32 2147483647, %v5347_v6 }
 0x58f   : > { %v5947_v0 = vmul.u32 %v5940_v7, %v5931_v4  ;;  %vm5949_vm4 = vc.u32 %v13798_v39, %v13792_v54  ;;  %v5860_v26 = vsub.s32 32, %v13777_v24  ;;  %v5865_v55 = vadd.s32 127, %v5864_v14 }
 0x590   : > { %v5145_v45 = vsel %vm16868_vm12, %v17374_v19, %v13694_v17  ;;  %v5951_v16 = vsel %vm5949_vm4, %v5950_v56, %v13793_v49  ;;  %v6110_v36 = vadd.s32 1, %v8990_v3  ;;  %v5350_v18 = vcvt.s32.f32 %v5343_v47 }
 0x591   : > { %v8988_v1 = vadd.s32 4294967294, %v6064_v60  ;;  %v13836_v40 = vadd.s32 %v5951_v16, %v5947_v0  ;;  %v6624_v59 = vshrl.u32 %v6623_v37, 23  ;;  %9637 = vcosq.f32 %v5044_v12 }
 0x592   : > { %v5844_v7 = vadd.s32 %v13622_v15, %v13628_v11  ;;  %vm6111_vm11 = vcmp.gt.s32.totalorder %v6110_v36, 0  ;;  %9639 = vsinq.f32 %v5044_v12  ;;  %v13846_v49 = vsel %vm13785_vm5, %v13357_v41, %v5145_v45 }
 0x593   : > { %v13848_v6 = vmul.f32 %v5350_v18, %v5348_v5  ;;  %v16780_v14 = vand.u32 2147483647, %v13756_v10  ;;  %9641 = vcosq.f32 %v5252_v20  ;;  %v5866_v35 = vshll.u32 %v5865_v55, 23 }
 0x594   : > { %v5862_v4 = vshrl.u32 %v5844_v7, %v5860_v26  ;;  %v6112_v33 = vsel %vm6111_vm11, %v6110_v36, 0  ;;  %9643 = vsinq.f32 %v5252_v20  ;;  %vm8989_vm7 = vcmp.lt.s32.totalorder %v8988_v1, 0 }
 0x595   : > { %v5953_v47 = vadd.s32 536870912, %v13836_v40  ;;  %v9010_v15 = vadd.s32 4294967169, %v6624_v59  ;;  %9645 = vcosq.f32 %v13846_v49  ;;  %v5861_v11 = vshll.u32 %v13676_v2, %v13777_v24 }
 0x596   : > { %v6114_v60 = vand.u32 31, %v6112_v33  ;;  %v13857_v37 = vadd.f32 %v13443_v44, %v13750_v23  ;;  %v6107_v20 = vand.u32 8388607, %v16780_v14  ;;  %v5867_v45 = vor.u32 4788187, %v5866_v35 }
 0x597   : > { %v5863_v19 = vor.u32 %v5862_v4, %v5861_v11  ;;  %v13864_v5 = vsel %vm8989_vm7, 0, %v8988_v1  ;;  %v13866_v2 = vshrl.u32 %v5953_v47, 30  ;;  %v6630_v26 = vadd.s32 1, %v9010_v15 }
 0x598   : > { %17375 = vst [vmem:[#allocation50_spill] sm:$0xff] %v13857_v37  ;;  %v6115_v0 = vsub.s32 32, %v6114_v60  ;;  %v6117_v24 = vshll.u32 %v17349_v22, %v6114_v60  ;;  %v6120_v44 = vshll.u32 %v17350_v31, %v6114_v60  ;;  %v6123_v36 = vshll.u32 %v17351_v8, %v6114_v60 }
 0x599   : > { %17376 = vst [vmem:[#allocation20_spill] sm:$0xff] %v13866_v2  ;;  %v6113_v59 = vshrl.u32 %v6112_v33, 5  ;;  %v6126_v1 = vshll.u32 %v16967_v43, %v6114_v60  ;;  %v6129_v4 = vshll.u32 %v16968_v29, %v6114_v60  ;;  %v5955_v56 = vshll.u32 %v13866_v2, 30 }
 0x59a   : > { %v6118_v55 = vshrl.u32 %v17350_v31, %v6115_v0  ;;  %v6121_v16 = vshrl.u32 %v17351_v8, %v6115_v0  ;;  %v6124_v18 = vshrl.u32 %v16967_v43, %v6115_v0  ;;  %v6127_v7 = vshrl.u32 %v16968_v29, %v6115_v0 }
 0x59b   : > { %v13877_v35 = vpop.eup %9637  ;;  %v6130_v14 = vshrl.u32 %v16969_v62, %v6115_v0  ;;  %v6108_v12 = vor.u32 8388608, %v6107_v20  ;;  %v17379_v33 = vand.u32 2147483647, %v13762_v63  ;;  %v5868_v57 = vand.u32 2147483647, %v5867_v45 }
 0x59c   : > { %17377 = vst [vmem:[#allocation26_spill] sm:$0xff] %v13877_v35  ;;  %v6119_v47 = vor.u32 %v6118_v55, %v6117_v24  ;;  %v6122_v11 = vor.u32 %v6121_v16, %v6120_v44  ;;  %v6125_v15 = vor.u32 %v6124_v18, %v6123_v36  ;;  %v13880_v17 = vpop.eup %9639  ;;  %v6128_v3 = vor.u32 %v6127_v7, %v6126_v1 }
 0x59d   : > { %17378 = vst [vmem:[#allocation25_spill] sm:$0xff] %v13880_v17  ;;  %v6627_v53 = vand.u32 8388607, %v17379_v33  ;;  %v13885_v30 = vpop.eup %9641  ;;  %v5870_v60 = vcvt.s32.f32 %v5863_v19  ;;  %v6072_v35 = vsub.s32 4294967266, %v13864_v5  ;;  %v6131_v24 = vor.u32 %v6130_v14, %v6129_v4 }
 0x59e   : > { %17380 = vst [vmem:[#allocation54_spill] sm:$0xff] %v13885_v30  ;;  %v13888_v44 = vpop.eup %9643  ;;  %vm6132_vm1 = vcmp.lt.s32.totalorder %v6113_v59, 1  ;;  %vm6134_vm8 = vcmp.lt.s32.totalorder %v6113_v59, 3  ;;  %vm6135_vm0 = vcmp.lt.s32.totalorder %v6113_v59, 4  ;;  %vm6631_vm6 = vcmp.gt.s32.totalorder %v6630_v26, 0  ;;  %v13900_v30 = vpop.f32.mrb[23].mxu1 }
 0x59f   : > { %17381 = vst [vmem:[#allocation53_spill] sm:$0xff] %v13888_v44  ;;  %v13890_v55 = vpop.eup %9645  ;;  %v6140_v20 = vsel %vm6132_vm1, %v6119_v47, %v6122_v11  ;;  %v6141_v16 = vsel %vm6135_vm0, %v6128_v3, 920167782  ;;  %v6144_v36 = vsel %vm6132_vm1, %v6122_v11, %v6125_v15  ;;  %v6145_v18 = vsel %vm6135_vm0, %v6131_v24, 1326507024  ;;  %17383 = vst [vmem:[#allocation37_spill] sm:$0xff] %v13900_v30 }
 0x5a0   : > { %17382 = vst [vmem:[#allocation9_spill] sm:$0xff] %v13890_v55  ;;  %v13895_v45 = vsub.s32 %v13836_v40, %v5955_v56  ;;  %v6142_v19 = vsel %vm6134_vm8, %v6125_v15, %v6141_v16  ;;  %v6148_v14 = vshll.u32 %v6108_v12, 8  ;;  %v6628_v1 = vor.u32 8388608, %v6627_v53 }
 0x5a1   : > { %v6068_v7 = vsub.s32 32, %v13864_v5  ;;  %vm6133_vm3 = vcmp.lt.s32.totalorder %v6113_v59, 2  ;;  %v6137_v4 = vsel %vm6135_vm0, %v6125_v15, 2102212464  ;;  %v6146_v33 = vsel %vm6134_vm8, %v6128_v3, %v6145_v18 }
 0x5a2   : > { %v6116_v44 = vshrl.u32 %v17349_v22, %v6115_v0  ;;  %v6143_v17 = vsel %vm6133_vm3, %v6140_v20, %v6142_v19  ;;  %v6147_v24 = vsel %vm6133_vm3, %v6144_v36, %v6146_v33  ;;  %v6632_v40 = vsel %vm6631_vm6, %v6630_v26, 0 }
 0x5a3   : > { %v13906_v56 = vadd.s32 127, %v6072_v35  ;;  %v13908_v12 = vmul.u32.u64.low %v6148_v14, %v6147_v24  ;;  %v13909_v53 = vmul.u32.u64.high %v6148_v14, %v6147_v24, %v13908_v12  ;;  %v6831_v16 = vand.u32 2139095040, %v13857_v37 }
 0x5a4   : > { %v6052_v3 = vadd.s32 %v13700_v21, %v13711_v27  ;;  %v5958_v15 = vsub.s32 0, %v13895_v45  ;;  %v6136_v0 = vsel %vm6132_vm1, %v6116_v44, %v6119_v47  ;;  %v6138_v20 = vsel %vm6134_vm8, %v6122_v11, %v6137_v4 }
 0x5a5   : > { %v13917_v18 = vmul.f32 %v5870_v60, %v5868_v57  ;;  %v13919_v36 = vmul.u32.u64.low %v6148_v14, %v6143_v17  ;;  %v13920_v26 = vmul.u32.u64.high %v6148_v14, %v6143_v17, %v13919_v36  ;;  %v6634_v35 = vand.u32 31, %v6632_v40 }
 0x5a6   : > { %v13925_v33 = vshrl.u32 %v6052_v3, %v6068_v7  ;;  %v13927_v24 = vshll.u32 %v6628_v1, 8  ;;  %v6074_v27 = vshll.u32 %v13906_v56, 23  ;;  %v6139_v47 = vsel %vm6133_vm3, %v6136_v0, %v6138_v20 }
 0x5a7   : > { %v6635_v57 = vsub.s32 32, %v6634_v35  ;;  %v6832_v11 = vshrl.u32 %v6831_v16, 23  ;;  %v8983_v17 = vmin.u32 %v5958_v15, %v13895_v45  ;;  %vm6157_vm15 = vc.u32 %v13909_v53, %v13919_v36 }
 0x5a8   : > { %v6633_v60 = vshrl.u32 %v6632_v40, 5  ;;  %v6637_v44 = vshll.u32 %v17349_v22, %v6634_v35  ;;  %v6158_v7 = vadd.s32 1, %v13920_v26  ;;  %v6640_v4 = vshll.u32 %v17350_v31, %v6634_v35 }
 0x5a9   : > { %v6638_v1 = vshrl.u32 %v17350_v31, %v6635_v57  ;;  %v6641_v56 = vshrl.u32 %v17351_v8, %v6635_v57  ;;  %v6155_v59 = vmul.u32 %v6148_v14, %v6139_v47  ;;  %v6643_v12 = vshll.u32 %v17351_v8, %v6634_v35 }
 0x5aa   : > { %v6644_v16 = vshrl.u32 %v16967_v43, %v6635_v57  ;;  %v6646_v3 = vshll.u32 %v16967_v43, %v6634_v35  ;;  %v6159_v15 = vsel %vm6157_vm15, %v6158_v7, %v13920_v26  ;;  %v6647_v20 = vshrl.u32 %v16968_v29, %v6635_v57 }
 0x5ab   : > { %v6639_v40 = vor.u32 %v6638_v1, %v6637_v44  ;;  %v6642_v0 = vor.u32 %v6641_v56, %v6640_v4  ;;  %vm16851_vm9 = vcmp.lt.s32.totalorder %v13417_v25, 0  ;;  %v5960_v21 = vclz %v8983_v17 }
 0x5ac   : > { %v6160_v19 = vadd.s32 %v6159_v15, %v6155_v59  ;;  %v6645_v55 = vor.u32 %v6644_v16, %v6643_v12  ;;  %v9018_v51 = vadd.s32 4294967169, %v6832_v11  ;;  %v6648_v2 = vor.u32 %v6647_v20, %v6646_v3 }
 0x5ad   : > { %v6649_v14 = vshll.u32 %v16968_v29, %v6634_v35  ;;  %v6650_v47 = vshrl.u32 %v16969_v62, %v6635_v57  ;;  %vm6652_vm14 = vcmp.lt.s32.totalorder %v6633_v60, 1  ;;  %v6636_v30 = vshrl.u32 %v17349_v22, %v6635_v57 }
 0x5ae   : > { %v6161_v41 = vadd.s32 536870912, %v6160_v19  ;;  %vm6654_vm10 = vcmp.lt.s32.totalorder %v6633_v60, 3  ;;  %vm6655_vm4 = vcmp.lt.s32.totalorder %v6633_v60, 4  ;;  %v6660_v7 = vsel %vm6652_vm14, %v6639_v40, %v6642_v0 }
 0x5af   : > { %v6651_v26 = vor.u32 %v6650_v47, %v6649_v14  ;;  %v6657_v44 = vsel %vm6655_vm4, %v6645_v55, 2102212464  ;;  %v6661_v1 = vsel %vm6655_vm4, %v6648_v2, 920167782  ;;  %vm5790_vm11 = vcmp.lt.s32.totalorder %v13542_v28, 0 }
 0x5b0   : > { %v8984_v17 = vadd.s32 4294967294, %v5960_v21  ;;  %v13951_v11 = vshrl.u32 %v6161_v41, 30  ;;  %vm6653_vm7 = vcmp.lt.s32.totalorder %v6633_v60, 2  ;;  %v6662_v35 = vsel %vm6654_vm10, %v6645_v55, %v6661_v1 }
 0x5b1   : > { %v17385_v4 = vand.u32 2147483647, %v13417_v25  ;;  %v17386_v56 = vmov 0  ;;  %v6656_v57 = vsel %vm6652_vm14, %v6636_v30, %v6639_v40  ;;  %v6663_v59 = vsel %vm6653_vm7, %v6660_v7, %v6662_v35 }
 0x5b2   : > { %17384 = vst [vmem:[#allocation41_spill] sm:$0xff] %v13951_v11  ;;  %v6664_v12 = vsel %vm6652_vm14, %v6642_v0, %v6645_v55  ;;  %v6665_v16 = vsel %vm6655_vm4, %v6651_v26, 1326507024  ;;  %v6163_v21 = vshll.u32 %v13951_v11, 30  ;;  %v6658_v41 = vsel %vm6654_vm10, %v6642_v0, %v6657_v44 }
 0x5b3   : > { %vm13956_vm1 = vcmp.le.f32.partialorder %v17385_v4, 0.7853982  ;;  %v6666_v3 = vsel %vm6654_vm10, %v6648_v2, %v6665_v16  ;;  %v6838_v15 = vadd.s32 1, %v9018_v51  ;;  %v6075_v20 = vor.u32 4788187, %v6074_v27 }
 0x5b4   : > { %v17387_v56 = vsel %vm13956_vm1, 4294967295, %v17386_v56  ;;  %v6667_v14 = vsel %vm6653_vm7, %v6664_v12, %v6666_v3  ;;  %v13968_v47 = vmul.u32.u64.low %v13927_v24, %v6663_v59  ;;  %v13969_v1 = vmul.u32.u64.high %v13927_v24, %v6663_v59, %v13968_v47 }
 0x5b5   : > { %17388 = vst [vmem:[#allocation14_spill] sm:$0xff] %v17387_v56  ;;  %vm8985_vm8 = vcmp.lt.s32.totalorder %v8984_v17, 0  ;;  %v13972_v30 = vsub.s32 %v6160_v19, %v6163_v21  ;;  %v13975_v55 = vmul.u32.u64.low %v13927_v24, %v6667_v14  ;;  %v13976_v40 = vmul.u32.u64.high %v13927_v24, %v6667_v14, %v13975_v55 }
 0x5b6   : > { %v17389_v0 = vxor.u32 2147483648, %v13848_v6  ;;  %v17390_v2 = vshll.u32 %v13774_v58, %v13864_v5  ;;  %v6659_v26 = vsel %vm6653_vm7, %v6656_v57, %v6658_v41  ;;  %vm6839_vm0 = vcmp.gt.s32.totalorder %v6838_v15, 0 }
 0x5b7   : > { %v5872_v19 = vxor.u32 2147483648, %v13917_v18  ;;  %v6166_v44 = vsub.s32 0, %v13972_v30  ;;  %v17391_v7 = vand.u32 2147483647, %v13857_v37  ;;  %v6840_v4 = vsel %vm6839_vm0, %v6838_v15, 0 }
 0x5b8   : > { %v5353_v51 = vsel %vm16851_vm9, %v17389_v0, %v13848_v6  ;;  %v6071_v27 = vor.u32 %v13925_v33, %v17390_v2  ;;  %v17392_v59 = vand.u32 2147483647, %v13542_v28  ;;  %v6076_v58 = vand.u32 2147483647, %v6075_v20 }
 0x5b9   : > { %v6835_v35 = vand.u32 8388607, %v17391_v7  ;;  %v13998_v5 = vsel %vm8985_vm8, 0, %v8984_v17  ;;  %v6678_v33 = vadd.s32 1, %v13969_v1  ;;  %v6842_v60 = vand.u32 31, %v6840_v4 }
 0x5ba   : > { %vm13994_vm6 = vcmp.le.f32.partialorder %v17392_v59, 0.7853982  ;;  %9647 = vsinq.f32 %v13846_v49  ;;  %v8991_v57 = vmin.u32 %v6166_v44, %v13972_v30  ;;  %v6675_v12 = vmul.u32 %v13927_v24, %v6659_v26  ;;  %v14029_v26 = vpop.f32.mrb[24].mxu0 }
 0x5bb   : > { %vm6677_vm3 = vc.u32 %v13976_v40, %v13968_v47  ;;  %v17395_v16 = vsub.s32 4, %v13664_v48  ;;  %v6078_v17 = vcvt.s32.f32 %v6071_v27  ;;  %v6843_v3 = vsub.s32 32, %v6842_v60  ;;  %17396 = vst [vmem:[#allocation40_spill] sm:$0xff] %v14029_v26 }
 0x5bc   : > { %v6679_v41 = vsel %vm6677_vm3, %v6678_v33, %v13969_v1  ;;  %v14017_v49 = vsel %vm13956_vm1, %v13417_v25, %v5353_v51  ;;  %v5873_v24 = vsel %vm5790_vm11, %v5872_v19, %v13917_v18  ;;  %v5968_v15 = vsub.s32 4294967266, %v13998_v5 }
 0x5bd   : > { %v14011_v21 = vsel %vm5790_vm11, %v17395_v16, %v13664_v48  ;;  %v6680_v20 = vadd.s32 %v6679_v41, %v6675_v12  ;;  %v14023_v14 = vmul.f32 %v6078_v17, %v6076_v58  ;;  %v6836_v48 = vor.u32 8388608, %v6835_v35 }
 0x5be   : > { %v6846_v55 = vshrl.u32 %v17350_v31, %v6843_v3  ;;  %v6849_v1 = vshrl.u32 %v17351_v8, %v6843_v3  ;;  %v6168_v0 = vclz %v8991_v57  ;;  %v6845_v27 = vshll.u32 %v17349_v22, %v6842_v60 }
 0x5bf   : > { %v6681_v2 = vadd.s32 536870912, %v6680_v20  ;;  %v6855_v51 = vshrl.u32 %v16968_v29, %v6843_v3  ;;  %v6848_v18 = vshll.u32 %v17350_v31, %v6842_v60  ;;  %v6852_v19 = vshrl.u32 %v16967_v43, %v6843_v3 }
 0x5c0   : > { %v6854_v44 = vshll.u32 %v16967_v43, %v6842_v60  ;;  %v6858_v7 = vshrl.u32 %v16969_v62, %v6843_v3  ;;  %v5969_v35 = vadd.s32 127, %v5968_v15  ;;  %v6841_v58 = vshrl.u32 %v6840_v4, 5 }
 0x5c1   : > { %v14035_v59 = vshrl.u32 %v6681_v2, 30  ;;  %v6851_v33 = vshll.u32 %v17351_v8, %v6842_v60  ;;  %v6847_v57 = vor.u32 %v6846_v55, %v6845_v27  ;;  %v6850_v12 = vor.u32 %v6849_v1, %v6848_v18 }
 0x5c2   : > { %v6856_v16 = vor.u32 %v6855_v51, %v6854_v44  ;;  %v6857_v17 = vshll.u32 %v16968_v29, %v6842_v60  ;;  %v14042_v41 = vsel %vm13994_vm6, %v13542_v28, %v5873_v24  ;;  %v6082_v11 = vsub.s32 4, %v13758_v50 }
 0x5c3   : > { %v8992_v56 = vadd.s32 4294967294, %v6168_v0  ;;  %v6683_v15 = vshll.u32 %v14035_v59, 30  ;;  %v6080_v2 = vxor.u32 2147483648, %v14023_v14  ;;  %v5948_v4 = vadd.s32 %v13792_v54, %v13798_v39 }
 0x5c4   : > { %v6853_v55 = vor.u32 %v6852_v19, %v6851_v33  ;;  %v6859_v1 = vor.u32 %v6858_v7, %v6857_v17  ;;  %v14049_v27 = vpop.eup %9647  ;;  %v5964_v60 = vsub.s32 32, %v13998_v5  ;;  %v5970_v51 = vshll.u32 %v5969_v35, 23 }
 0x5c5   : > { %17397 = vst [vmem:[#allocation21_spill] sm:$0xff] %v14049_v27  ;;  %vm6860_vm15 = vcmp.lt.s32.totalorder %v6841_v58, 1  ;;  %vm6863_vm14 = vcmp.lt.s32.totalorder %v6841_v58, 4  ;;  %v6876_v0 = vshll.u32 %v6836_v48, 8  ;;  %v14055_v44 = vadd.f32 %v13528_v9, %v13750_v23 }
 0x5c6   : > { %v6868_v24 = vsel %vm6860_vm15, %v6847_v57, %v6850_v12  ;;  %v6869_v18 = vsel %vm6863_vm14, %v6856_v16, 920167782  ;;  %vm8993_vm10 = vcmp.lt.s32.totalorder %v8992_v56, 0  ;;  %v14057_v28 = vsub.s32 %v6680_v20, %v6683_v15 }
 0x5c7   : > { %17398 = vst [vmem:[#allocation32_spill] sm:$0xff] %v14055_v44  ;;  %vm6861_vm4 = vcmp.lt.s32.totalorder %v6841_v58, 2  ;;  %vm6862_vm11 = vcmp.lt.s32.totalorder %v6841_v58, 3  ;;  %v6865_v54 = vsel %vm6863_vm14, %v6853_v55, 2102212464  ;;  %v6872_v19 = vsel %vm6860_vm15, %v6850_v12, %v6853_v55 }
 0x5c8   : > { %v6870_v39 = vsel %vm6862_vm11, %v6853_v55, %v6869_v18  ;;  %v6873_v7 = vsel %vm6863_vm14, %v6859_v1, 1326507024  ;;  %v17399_v35 = vand.u32 2147483647, %v13589_v46  ;;  %v5965_v9 = vshll.u32 %v13895_v45, %v13998_v5 }
 0x5c9   : > { %v5966_v48 = vshrl.u32 %v5948_v4, %v5964_v60  ;;  %v6844_v20 = vshrl.u32 %v17349_v22, %v6843_v3  ;;  %v6871_v17 = vsel %vm6861_vm4, %v6868_v24, %v6870_v39  ;;  %v14070_v15 = vsel %vm8993_vm10, 0, %v8992_v56  ;;  %v14086_v60 = vpop.f32.mrb[24].mxu1 }
 0x5ca   : > { %vm14062_vm7 = vcmp.le.f32.partialorder %v17399_v35, 0.7853982  ;;  %v6874_v18 = vsel %vm6862_vm11, %v6856_v16, %v6873_v7  ;;  %v14072_v25 = vmul.u32.u64.low %v6876_v0, %v6871_v17  ;;  %v14073_v55 = vmul.u32.u64.high %v6876_v0, %v6871_v17, %v14072_v25 }
 0x5cb   : > { %v5971_v1 = vor.u32 4788187, %v5970_v51  ;;  %v6864_v35 = vsel %vm6860_vm15, %v6844_v20, %v6847_v57  ;;  %v6866_v27 = vsel %vm6862_vm11, %v6850_v12, %v6865_v54  ;;  %v6875_v26 = vsel %vm6861_vm4, %v6872_v19, %v6874_v18 }
 0x5cc   : > { %v6686_v45 = vsub.s32 0, %v14057_v28  ;;  %v14079_v5 = vmul.u32.u64.low %v6876_v0, %v6875_v26  ;;  %v14080_v4 = vmul.u32.u64.high %v6876_v0, %v6875_v26, %v14079_v5  ;;  %v6727_v3 = vand.u32 2139095040, %v14055_v44 }
 0x5cd   : > { %9649 = vcosq.f32 %v14017_v49  ;;  %vm5998_vm8 = vcmp.lt.s32.totalorder %v13589_v46, 0  ;;  %v5967_v56 = vor.u32 %v5966_v48, %v5965_v9  ;;  %v6176_v16 = vsub.s32 4294967266, %v14070_v15 }
 0x5ce   : > { %9651 = vsinq.f32 %v14017_v49  ;;  %v6867_v57 = vsel %vm6861_vm4, %v6864_v35, %v6866_v27  ;;  %v6886_v12 = vadd.s32 1, %v14073_v55  ;;  %v6728_v51 = vshrl.u32 %v6727_v3, 23 }
 0x5cf   : > { %v5877_v26 = vsel %vm13994_vm6, 0, %v14011_v21  ;;  %9653 = vcosq.f32 %v14042_v41  ;;  %v6083_v24 = vsel %vm5998_vm8, %v6082_v11, %v13758_v50  ;;  %v5972_v54 = vand.u32 2147483647, %v5971_v1 }
 0x5d0   : > { %v6081_v39 = vsel %vm5998_vm8, %v6080_v2, %v14023_v14  ;;  %v9011_v19 = vmin.u32 %v6686_v45, %v14057_v28  ;;  %vm6885_vm0 = vc.u32 %v14080_v4, %v14072_v25  ;;  %v9014_v49 = vadd.s32 4294967169, %v6728_v51 }
 0x5d1   : > { %v5974_v58 = vcvt.s32.f32 %v5967_v56  ;;  %v6172_v27 = vsub.s32 32, %v14070_v15  ;;  %v6177_v7 = vadd.s32 127, %v6176_v16  ;;  %v6883_v9 = vmul.u32 %v6876_v0, %v6867_v57 }
 0x5d2   : > { %9655 = vsinq.f32 %v14042_v41  ;;  %v6085_v6 = vsel %vm14062_vm7, 0, %v6083_v24  ;;  %v6887_v50 = vsel %vm6885_vm0, %v6886_v12, %v14073_v55  ;;  %v6734_v11 = vadd.s32 1, %v9014_v49 }
 0x5d3   : > { %v6084_v21 = vsel %vm14062_vm7, %v13589_v46, %v6081_v39  ;;  %v14108_v14 = vmul.f32 %v5974_v58, %v5972_v54  ;;  %v6156_v2 = vadd.s32 %v13919_v36, %v13909_v53  ;;  %v6888_v48 = vadd.s32 %v6887_v50, %v6883_v9 }
 0x5d4   : > { %v6688_v20 = vclz %v9011_v19  ;;  %v16802_v0 = vand.u32 2147483647, %v14055_v44  ;;  %vm6735_vm6 = vcmp.gt.s32.totalorder %v6734_v11, 0  ;;  %v14115_v41 = vadd.f32 %v13578_v13, %v13750_v23 }
 0x5d5   : > { %v6174_v17 = vshrl.u32 %v6156_v2, %v6172_v27  ;;  %v6178_v18 = vshll.u32 %v6177_v7, 23  ;;  %v6889_v55 = vadd.s32 536870912, %v6888_v48  ;;  %v6736_v1 = vsel %vm6735_vm6, %v6734_v11, 0 }
 0x5d6   : > { %17402 = vst [vmem:[#allocation28_spill] sm:$0xff] %v14115_v41  ;;  %v17403_v33 = vsel %vm13766_vm13, 0, %v13813_v61  ;;  %v14123_v53 = vadd.s32 3, %v5877_v26  ;;  %9657 = vcosq.f32 %v6084_v21  ;;  %v6738_v36 = vand.u32 31, %v6736_v1 }
 0x5d7   : > { %v14121_v35 = vadd.s32 3, %v17403_v33  ;;  %v14125_v45 = vpop.eup %9649  ;;  %9659 = vsinq.f32 %v6084_v21  ;;  %v14127_v5 = vadd.s32 3, %v6085_v6  ;;  %v6173_v13 = vshll.u32 %v13972_v30, %v14070_v15 }
 0x5d8   : > { %17405 = vst [vmem:[#allocation44_spill] sm:$0xff] %v14123_v53  ;;  %17406 = vst [vmem:[#allocation43_spill] sm:$0xff] %v14125_v45  ;;  %v14131_v3 = vshrl.u32 %v6889_v55, 30  ;;  %v14133_v56 = vpop.eup %9651  ;;  %v9012_v61 = vadd.s32 4294967294, %v6688_v20  ;;  %v6739_v16 = vsub.s32 32, %v6738_v36  ;;  %v6935_v57 = vand.u32 2139095040, %v14115_v41 }
 0x5d9   : > { %17404 = vst [vmem:[#allocation38_spill] sm:$0xff] %v14121_v35  ;;  %17407 = vst [vmem:[#allocation10_spill] sm:$0xff] %v14127_v5  ;;  %v14137_v12 = vpop.eup %9653  ;;  %v14139_v51 = vor.u32 %v6174_v17, %v6173_v13  ;;  %v14141_v26 = vor.u32 4788187, %v6178_v18  ;;  %v6731_v30 = vand.u32 8388607, %v16802_v0  ;;  %v6741_v15 = vshll.u32 %v17349_v22, %v6738_v36 }
 0x5da   : > { %17408 = vst [vmem:[#allocation16_spill] sm:$0xff] %v14133_v56  ;;  %17409 = vst [vmem:[#allocation47_spill] sm:$0xff] %v14137_v12  ;;  %v6891_v24 = vshll.u32 %v14131_v3, 30  ;;  %v6742_v54 = vshrl.u32 %v17350_v31, %v6739_v16  ;;  %v6745_v39 = vshrl.u32 %v17351_v8, %v6739_v16  ;;  %v6748_v19 = vshrl.u32 %v16967_v43, %v6739_v16 }
 0x5db   : > { %v6744_v58 = vshll.u32 %v17350_v31, %v6738_v36  ;;  %v6747_v27 = vshll.u32 %v17351_v8, %v6738_v36  ;;  %v6751_v7 = vshrl.u32 %v16968_v29, %v6739_v16  ;;  %vm9013_vm13 = vcmp.lt.s32.totalorder %v9012_v61, 0 }
 0x5dc   : > { %v14150_v49 = vsub.s32 %v6888_v48, %v6891_v24  ;;  %v14155_v9 = vpop.eup %9655  ;;  %v6737_v6 = vshrl.u32 %v6736_v1, 5  ;;  %v6750_v50 = vshll.u32 %v16967_v43, %v6738_v36  ;;  %v6936_v11 = vshrl.u32 %v6935_v57, 23 }
 0x5dd   : > { %17410 = vst [vmem:[#allocation35_spill] sm:$0xff] %v14155_v9  ;;  %v6732_v21 = vor.u32 8388608, %v6731_v30  ;;  %v6743_v2 = vor.u32 %v6742_v54, %v6741_v15  ;;  %v6746_v20 = vor.u32 %v6745_v39, %v6744_v58  ;;  %v6749_v17 = vor.u32 %v6748_v19, %v6747_v27 }
 0x5de   : > { %v6894_v48 = vsub.s32 0, %v14150_v49  ;;  %v6752_v18 = vor.u32 %v6751_v7, %v6750_v50  ;;  %v6753_v55 = vshll.u32 %v16968_v29, %v6738_v36  ;;  %v6754_v33 = vshrl.u32 %v16969_v62, %v6739_v16 }
 0x5df   : > { %vm16864_vm3 = vcmp.lt.s32.totalorder %v13634_v52, 0  ;;  %v6180_v13 = vand.u32 2147483647, %v14141_v26  ;;  %v6182_v1 = vcvt.s32.f32 %v14139_v51  ;;  %v14164_v24 = vsel %vm9013_vm13, 0, %v9012_v61 }
 0x5e0   : > { %v14167_v30 = vpop.eup %9657  ;;  %v6755_v15 = vor.u32 %v6754_v33, %v6753_v55  ;;  %vm6756_vm15 = vcmp.lt.s32.totalorder %v6737_v6, 1  ;;  %vm6759_vm14 = vcmp.lt.s32.totalorder %v6737_v6, 4  ;;  %v9022_v54 = vadd.s32 4294967169, %v6936_v11 }
 0x5e1   : > { %17411 = vst [vmem:[#allocation61_spill] sm:$0xff] %v14167_v30  ;;  %v14169_v39 = vpop.eup %9659  ;;  %v6740_v36 = vshrl.u32 %v17349_v22, %v6739_v16  ;;  %v6761_v19 = vsel %vm6759_vm14, %v6749_v17, 2102212464  ;;  %v6764_v58 = vsel %vm6756_vm15, %v6743_v2, %v6746_v20  ;;  %v6772_v27 = vshll.u32 %v6732_v21, 8 }
 0x5e2   : > { %17412 = vst [vmem:[#allocation55_spill] sm:$0xff] %v14169_v39  ;;  %v9019_v26 = vmin.u32 %v6894_v48, %v14150_v49  ;;  %vm6758_vm10 = vcmp.lt.s32.totalorder %v6737_v6, 3  ;;  %v6765_v61 = vsel %vm6759_vm14, %v6752_v18, 920167782  ;;  %v6768_v51 = vsel %vm6756_vm15, %v6746_v20, %v6749_v17 }
 0x5e3   : > { %vm6757_vm4 = vcmp.lt.s32.totalorder %v6737_v6, 2  ;;  %v6760_v7 = vsel %vm6756_vm15, %v6740_v36, %v6743_v2  ;;  %v6766_v50 = vsel %vm6758_vm10, %v6749_v17, %v6765_v61  ;;  %v6769_v0 = vsel %vm6759_vm14, %v6755_v15, 1326507024  ;;  %v14183_v2 = vpop.f32.mrb[25].mxu0 }
 0x5e4   : > { %v6762_v55 = vsel %vm6758_vm10, %v6746_v20, %v6761_v19  ;;  %v6767_v33 = vsel %vm6757_vm4, %v6764_v58, %v6766_v50  ;;  %v6770_v11 = vsel %vm6758_vm10, %v6752_v18, %v6769_v0  ;;  %v6942_v38 = vadd.s32 1, %v9022_v54  ;;  %v14185_v20 = vpop.permute.xlu1 %4584 }
 0x5e5   : > { %v6696_v57 = vsub.s32 4294967266, %v14164_v24  ;;  %v6771_v16 = vsel %vm6757_vm4, %v6768_v51, %v6770_v11  ;;  %v14176_v46 = vmul.u32.u64.low %v6772_v27, %v6767_v33  ;;  %v14177_v21 = vmul.u32.u64.high %v6772_v27, %v6767_v33, %v14176_v46  ;;  %17413 = vst [vmem:[#allocation49_spill] sm:$0xff] %v14185_v20 }
 0x5e6   : > { %v6896_v48 = vclz %v9019_v26  ;;  %v14180_v30 = vmul.u32.u64.low %v6772_v27, %v6771_v16  ;;  %v14181_v39 = vmul.u32.u64.high %v6772_v27, %v6771_v16, %v14180_v30  ;;  %vm6943_vm11 = vcmp.gt.s32.totalorder %v6942_v38, 0 }
 0x5e7   : > { %v6692_v0 = vsub.s32 32, %v14164_v24  ;;  %v6763_v17 = vsel %vm6757_vm4, %v6760_v7, %v6762_v55  ;;  %v17414_v18 = vand.u32 2147483647, %v14115_v41  ;;  %v6944_v54 = vsel %vm6943_vm11, %v6942_v38, 0 }
 0x5e8   : > { %v17415_v36 = vxor.u32 2147483648, %v14108_v14  ;;  %v6676_v30 = vadd.s32 %v13968_v47, %v13976_v40  ;;  %v6946_v58 = vand.u32 31, %v6944_v54  ;;  %v14202_v26 = vadd.f32 %v13638_v34, %v14185_v20 }
 0x5e9   : > { %v6939_v15 = vand.u32 8388607, %v17414_v18  ;;  %v14204_v6 = vmul.f32 %v6182_v1, %v6180_v13  ;;  %v6697_v61 = vadd.s32 127, %v6696_v57  ;;  %v6782_v51 = vadd.s32 1, %v14177_v21 }
 0x5ea   : > { %v14196_v19 = vsel %vm16864_vm3, %v17415_v36, %v14108_v14  ;;  %17416 = vst [vmem:[#allocation62_spill] sm:$0xff] %v14202_v26  ;;  %v9020_v7 = vadd.s32 4294967294, %v6896_v48  ;;  %v6779_v50 = vmul.u32 %v6772_v27, %v6763_v17  ;;  %vm6781_vm7 = vc.u32 %v14181_v39, %v14176_v46 }
 0x5eb   : > { %v6947_v14 = vsub.s32 32, %v6946_v58  ;;  %v14212_v40 = vshrl.u32 %v6676_v30, %v6692_v0  ;;  %v6783_v34 = vsel %vm6781_vm7, %v6782_v51, %v14177_v21  ;;  %v6940_v13 = vor.u32 8388608, %v6939_v15 }
 0x5ec   : > { %v6784_v1 = vadd.s32 %v6783_v34, %v6779_v50  ;;  %v6949_v57 = vshll.u32 %v17349_v22, %v6946_v58  ;;  %v6698_v27 = vshll.u32 %v6697_v61, 23  ;;  %v6952_v11 = vshll.u32 %v17350_v31, %v6946_v58 }
 0x5ed   : > { %v6950_v55 = vshrl.u32 %v17350_v31, %v6947_v14  ;;  %v6953_v33 = vshrl.u32 %v17351_v8, %v6947_v14  ;;  %v6955_v16 = vshll.u32 %v17351_v8, %v6946_v58  ;;  %v6956_v48 = vshrl.u32 %v16967_v43, %v6947_v14 }
 0x5ee   : > { %vm9021_vm8 = vcmp.lt.s32.totalorder %v9020_v7, 0  ;;  %v6785_v0 = vadd.s32 536870912, %v6784_v1  ;;  %v6945_v17 = vshrl.u32 %v6944_v54, 5  ;;  %v6958_v36 = vshll.u32 %v16967_v43, %v6946_v58 }
 0x5ef   : > { %v6951_v18 = vor.u32 %v6950_v55, %v6949_v57  ;;  %v6954_v21 = vor.u32 %v6953_v33, %v6952_v11  ;;  %v6957_v15 = vor.u32 %v6956_v48, %v6955_v16  ;;  %v6959_v30 = vshrl.u32 %v16968_v29, %v6947_v14 }
 0x5f0   : > { %v17417_v51 = vand.u32 2147483647, %v13634_v52  ;;  %v17418_v61 = vmov 0  ;;  %v14229_v50 = vshrl.u32 %v6785_v0, 30  ;;  %v6961_v34 = vshll.u32 %v16968_v29, %v6946_v58 }
 0x5f1   : > { %v6962_v38 = vshrl.u32 %v16969_v62, %v6947_v14  ;;  %v6980_v54 = vshll.u32 %v6940_v13, 8  ;;  %vm6622_vm6 = vcmp.lt.s32.totalorder %v13762_v63, 0  ;;  %v14234_v57 = vsel %vm9021_vm8, 0, %v9020_v7 }
 0x5f2   : > { %vm14225_vm0 = vcmp.le.f32.partialorder %v17417_v51, 0.7853982  ;;  %17421 = vst [vmem:[#allocation15_spill] sm:$0xff] %v14229_v50  ;;  %v6948_v55 = vshrl.u32 %v17349_v22, %v6947_v14  ;;  %v6960_v33 = vor.u32 %v6959_v30, %v6958_v36  ;;  %v7455_v11 = vand.u32 2139095040, %v14202_v26 }
 0x5f3   : > { %v17419_v61 = vsel %vm14225_vm0, 4294967295, %v17418_v61  ;;  %v6787_v16 = vshll.u32 %v14229_v50, 30  ;;  %v6963_v48 = vor.u32 %v6962_v38, %v6961_v34  ;;  %vm6964_vm13 = vcmp.lt.s32.totalorder %v6945_v17, 1 }
 0x5f4   : > { %17420 = vst [vmem:[#allocation80_spill] sm:$0xff] %v17419_v61  ;;  %vm6967_vm15 = vcmp.lt.s32.totalorder %v6945_v17, 4  ;;  %vm6966_vm14 = vcmp.lt.s32.totalorder %v6945_v17, 3  ;;  %v6972_v58 = vsel %vm6964_vm13, %v6951_v18, %v6954_v21  ;;  %vm6965_vm10 = vcmp.lt.s32.totalorder %v6945_v17, 2 }
 0x5f5   : > { %v6969_v0 = vsel %vm6967_vm15, %v6957_v15, 2102212464  ;;  %v6973_v51 = vsel %vm6967_vm15, %v6960_v33, 920167782  ;;  %v14239_v47 = vsub.s32 %v6784_v1, %v6787_v16  ;;  %v6976_v13 = vsel %vm6964_vm13, %v6954_v21, %v6957_v15 }
 0x5f6   : > { %v6974_v7 = vsel %vm6966_vm14, %v6957_v15, %v6973_v51  ;;  %v6904_v14 = vsub.s32 4294967266, %v14234_v57  ;;  %v6968_v36 = vsel %vm6964_vm13, %v6948_v55, %v6951_v18  ;;  %v6977_v5 = vsel %vm6967_vm15, %v6963_v48, 1326507024 }
 0x5f7   : > { %v6975_v30 = vsel %vm6965_vm10, %v6972_v58, %v6974_v7  ;;  %vm16838_vm4 = vcmp.lt.s32.totalorder %v13756_v10, 0  ;;  %v17422_v38 = vand.u32 2147483647, %v13762_v63  ;;  %v6790_v1 = vsub.s32 0, %v14239_v47 }
 0x5f8   : > { %v6970_v16 = vsel %vm6966_vm14, %v6954_v21, %v6969_v0  ;;  %v6978_v15 = vsel %vm6966_vm14, %v6960_v33, %v6977_v5  ;;  %v7456_v51 = vshrl.u32 %v7455_v11, 23  ;;  %v6699_v50 = vor.u32 4788187, %v6698_v27  ;;  %v14271_v11 = vpop.f32.mrb[25].mxu1 }
 0x5f9   : > { %vm14247_vm11 = vcmp.le.f32.partialorder %v17422_v38, 0.7853982  ;;  %v6979_v18 = vsel %vm6965_vm10, %v6976_v13, %v6978_v15  ;;  %v14255_v55 = vmul.u32.u64.low %v6980_v54, %v6975_v30  ;;  %v14256_v48 = vmul.u32.u64.high %v6980_v54, %v6975_v30, %v14255_v55 }
 0x5fa   : > { %v6900_v58 = vsub.s32 32, %v14234_v57  ;;  %v9015_v7 = vmin.u32 %v6790_v1, %v14239_v47  ;;  %v14261_v38 = vmul.u32.u64.low %v6980_v54, %v6979_v18  ;;  %v14262_v35 = vmul.u32.u64.high %v6980_v54, %v6979_v18, %v14261_v38 }
 0x5fb   : > { %v14268_v5 = vsel %vm14225_vm0, %v13634_v52, %v14196_v19  ;;  %v6905_v27 = vadd.s32 127, %v6904_v14  ;;  %v6971_v21 = vsel %vm6965_vm10, %v6968_v36, %v6970_v16  ;;  %v9042_v33 = vadd.s32 4294967169, %v7456_v51 }
 0x5fc   : > { %v17425_v0 = vshll.u32 %v14057_v28, %v14164_v24  ;;  %v17426_v30 = vsub.s32 4, %v14035_v59  ;;  %v6884_v19 = vadd.s32 %v14072_v25, %v14080_v4  ;;  %v6792_v17 = vclz %v9015_v7 }
 0x5fd   : > { %v6184_v14 = vxor.u32 2147483648, %v14204_v6  ;;  %v6990_v36 = vadd.s32 1, %v14256_v48  ;;  %v16808_v16 = vand.u32 2147483647, %v14202_v26  ;;  %v7462_v28 = vadd.s32 1, %v9042_v33 }
 0x5fe   : > { %v6695_v13 = vor.u32 %v14212_v40, %v17425_v0  ;;  %v14282_v1 = vsel %vm6622_vm6, %v17426_v30, %v14035_v59  ;;  %v6700_v24 = vand.u32 2147483647, %v6699_v50  ;;  %v6902_v40 = vshrl.u32 %v6884_v19, %v6900_v58 }
 0x5ff   : > { %v6987_v15 = vmul.u32 %v6980_v54, %v6971_v21  ;;  %vm6989_vm7 = vc.u32 %v14262_v35, %v14255_v55  ;;  %v6906_v51 = vshll.u32 %v6905_v27, 23  ;;  %vm7463_vm8 = vcmp.gt.s32.totalorder %v7462_v28, 0 }
 0x600   : > { %v6991_v59 = vsel %vm6989_vm7, %v6990_v36, %v14256_v48  ;;  %v14294_v25 = vadd.f32 %v13704_v32, %v14185_v20  ;;  %v6702_v4 = vcvt.s32.f32 %v6695_v13  ;;  %v9016_v18 = vadd.s32 4294967294, %v6792_v17 }
 0x601   : > { %v6992_v7 = vadd.s32 %v6991_v59, %v6987_v15  ;;  %v7464_v38 = vsel %vm7463_vm8, %v7462_v28, 0  ;;  %v14299_v50 = vsel %vm16838_vm4, %v6184_v14, %v14204_v6  ;;  %v6901_v48 = vshll.u32 %v14150_v49, %v14234_v57 }
 0x602   : > { %17427 = vst [vmem:[#allocation77_spill] sm:$0xff] %v14294_v25  ;;  %v7466_v58 = vand.u32 31, %v7464_v38  ;;  %v14306_v27 = vmul.f32 %v6702_v4, %v6700_v24  ;;  %v7459_v33 = vand.u32 8388607, %v16808_v16  ;;  %v6907_v13 = vor.u32 4788187, %v6906_v51 }
 0x603   : > { %v6993_v21 = vadd.s32 536870912, %v6992_v7  ;;  %v6903_v0 = vor.u32 %v6902_v40, %v6901_v48  ;;  %v7663_v30 = vand.u32 2139095040, %v14294_v25  ;;  %vm9017_vm13 = vcmp.lt.s32.totalorder %v9016_v18, 0 }
 0x604   : > { %v7467_v6 = vsub.s32 32, %v7466_v58  ;;  %v7469_v17 = vshll.u32 %v17349_v22, %v7466_v58  ;;  %v7472_v49 = vshll.u32 %v17350_v31, %v7466_v58  ;;  %v7475_v36 = vshll.u32 %v17351_v8, %v7466_v58 }
 0x605   : > { %v14312_v19 = vshrl.u32 %v6993_v21, 30  ;;  %v7465_v40 = vshrl.u32 %v7464_v38, 5  ;;  %v7478_v15 = vshll.u32 %v16967_v43, %v7466_v58  ;;  %v6910_v59 = vcvt.s32.f32 %v6903_v0 }
 0x606   : > { %v7470_v57 = vshrl.u32 %v17350_v31, %v7467_v6  ;;  %v7473_v14 = vshrl.u32 %v17351_v8, %v7467_v6  ;;  %v7476_v28 = vshrl.u32 %v16967_v43, %v7467_v6  ;;  %v7479_v51 = vshrl.u32 %v16968_v29, %v7467_v6 }
 0x607   : > { %17428 = vst [vmem:[#allocation65_spill] sm:$0xff] %v14312_v19  ;;  %v6995_v24 = vshll.u32 %v14312_v19, 30  ;;  %v6908_v16 = vand.u32 2147483647, %v6907_v13  ;;  %v7460_v54 = vor.u32 8388608, %v7459_v33  ;;  %v14326_v9 = vsel %vm9017_vm13, 0, %v9016_v18 }
 0x608   : > { %v7471_v4 = vor.u32 %v7470_v57, %v7469_v17  ;;  %v7474_v48 = vor.u32 %v7473_v14, %v7472_v49  ;;  %v7477_v21 = vor.u32 %v7476_v28, %v7475_v36  ;;  %v7480_v12 = vor.u32 %v7479_v51, %v7478_v15 }
 0x609   : > { %v14323_v32 = vsub.s32 %v6992_v7, %v6995_v24  ;;  %v7481_v53 = vshll.u32 %v16968_v29, %v7466_v58  ;;  %v7482_v38 = vshrl.u32 %v16969_v62, %v7467_v6  ;;  %v7664_v19 = vshrl.u32 %v7663_v30, 23 }
 0x60a   : > { %v17429_v45 = vand.u32 2147483647, %v13756_v10  ;;  %v17430_v0 = vmov 0  ;;  %vm7484_vm14 = vcmp.lt.s32.totalorder %v7465_v40, 1  ;;  %vm7486_vm10 = vcmp.lt.s32.totalorder %v7465_v40, 3 }
 0x60b   : > { %v6998_v13 = vsub.s32 0, %v14323_v32  ;;  %vm7487_vm7 = vcmp.lt.s32.totalorder %v7465_v40, 4  ;;  %v7483_v7 = vor.u32 %v7482_v38, %v7481_v53  ;;  %v7492_v18 = vsel %vm7484_vm14, %v7471_v4, %v7474_v48 }
 0x60c   : > { %vm14332_vm15 = vcmp.le.f32.partialorder %v17429_v45, 0.7853982  ;;  %v7489_v33 = vsel %vm7487_vm7, %v7477_v21, 2102212464  ;;  %v7493_v17 = vsel %vm7487_vm7, %v7480_v12, 920167782  ;;  %v7468_v58 = vshrl.u32 %v17349_v22, %v7467_v6 }
 0x60d   : > { %v17431_v0 = vsel %vm14332_vm15, 4294967295, %v17430_v0  ;;  %vm7485_vm8 = vcmp.lt.s32.totalorder %v7465_v40, 2  ;;  %v7494_v30 = vsel %vm7486_vm10, %v7477_v21, %v7493_v17  ;;  %v7500_v49 = vshll.u32 %v7460_v54, 8 }
 0x60e   : > { %17432 = vst [vmem:[#allocation64_spill] sm:$0xff] %v17431_v0  ;;  %v6800_v45 = vsub.s32 4294967266, %v14326_v9  ;;  %v7495_v57 = vsel %vm7485_vm8, %v7492_v18, %v7494_v30  ;;  %v7496_v14 = vsel %vm7484_vm14, %v7474_v48, %v7477_v21  ;;  %v7497_v36 = vsel %vm7487_vm7, %v7483_v7, 1326507024 }
 0x60f   : > { %v9023_v28 = vmin.u32 %v6998_v13, %v14323_v32  ;;  %v7488_v53 = vsel %vm7484_vm14, %v7468_v58, %v7471_v4  ;;  %v7490_v24 = vsel %vm7486_vm10, %v7474_v48, %v7489_v33  ;;  %v7498_v15 = vsel %vm7486_vm10, %v7480_v12, %v7497_v36 }
 0x610   : > { %v7499_v6 = vsel %vm7485_vm8, %v7496_v14, %v7498_v15  ;;  %v14348_v51 = vmul.u32.u64.low %v7500_v49, %v7495_v57  ;;  %v14349_v38 = vmul.u32.u64.high %v7500_v49, %v7495_v57, %v14348_v51  ;;  %v9050_v54 = vadd.s32 4294967169, %v7664_v19  ;;  %v14398_v15 = vpop.f32.mrb[26].mxu0 }
 0x611   : > { %v6704_v18 = vxor.u32 2147483648, %v14306_v27  ;;  %v6911_v17 = vmul.f32 %v6910_v59, %v6908_v16  ;;  %v14353_v21 = vmul.u32.u64.low %v7500_v49, %v7499_v6  ;;  %v14354_v7 = vmul.u32.u64.high %v7500_v49, %v7499_v6, %v14353_v21 }
 0x612   : > { %9661 = vcosq.f32 %v14268_v5  ;;  %v17433_v4 = vand.u32 2147483647, %v13857_v37  ;;  %vm6830_vm14 = vcmp.lt.s32.totalorder %v13857_v37, 0  ;;  %v7670_v12 = vadd.s32 1, %v9050_v54 }
 0x613   : > { %9663 = vsinq.f32 %v14268_v5  ;;  %v6801_v19 = vadd.s32 127, %v6800_v45  ;;  %v7000_v13 = vclz %v9023_v28  ;;  %v7491_v16 = vsel %vm7485_vm8, %v7488_v53, %v7490_v24 }
 0x614   : > { %vm14359_vm13 = vcmp.le.f32.partialorder %v17433_v4, 0.7853982  ;;  %v14370_v59 = vsel %vm14332_vm15, %v13756_v10, %v14299_v50  ;;  %v17436_v33 = vsel %vm14247_vm11, 0, %v14282_v1  ;;  %v7510_v30 = vadd.s32 1, %v14349_v38 }
 0x615   : > { %v14376_v58 = vadd.s32 3, %v17436_v33  ;;  %vm7671_vm10 = vcmp.gt.s32.totalorder %v7670_v12, 0  ;;  %v6705_v5 = vsel %vm6622_vm6, %v6704_v18, %v14306_v27  ;;  %v6912_v40 = vxor.u32 2147483648, %v6911_v17 }
 0x616   : > { %v17438_v45 = vsub.s32 4, %v14131_v3  ;;  %v16814_v57 = vand.u32 2147483647, %v14294_v25  ;;  %v6796_v1 = vsub.s32 32, %v14326_v9  ;;  %v7507_v14 = vmul.u32 %v7500_v49, %v7491_v16 }
 0x617   : > { %17437 = vst [vmem:[#allocation68_spill] sm:$0xff] %v14376_v58  ;;  %vm7509_vm7 = vc.u32 %v14354_v7, %v14348_v51  ;;  %v7672_v36 = vsel %vm7671_vm10, %v7670_v12, 0  ;;  %v6802_v28 = vshll.u32 %v6801_v19, 23  ;;  %v9024_v53 = vadd.s32 4294967294, %v7000_v13 }
 0x618   : > { %v14387_v50 = vsel %vm6830_vm14, %v17438_v45, %v14131_v3  ;;  %v7511_v27 = vsel %vm7509_vm7, %v7510_v30, %v14349_v38  ;;  %v14396_v24 = vadd.f32 %v13816_v42, %v14185_v20  ;;  %9665 = vcosq.f32 %v14370_v59 }
 0x619   : > { %v6780_v3 = vadd.s32 %v14176_v46, %v14181_v39  ;;  %v7512_v49 = vadd.s32 %v7511_v27, %v7507_v14  ;;  %v7674_v6 = vand.u32 31, %v7672_v36  ;;  %v14406_v54 = vsel %vm14247_vm11, %v13762_v63, %v6705_v5 }
 0x61a   : > { %17439 = vst [vmem:[#allocation67_spill] sm:$0xff] %v14396_v24  ;;  %v14410_v38 = vsel %vm6830_vm14, %v6912_v40, %v6911_v17  ;;  %v7667_v18 = vand.u32 8388607, %v16814_v57  ;;  %v6797_v46 = vshll.u32 %v14239_v47, %v14326_v9  ;;  %v14419_v34 = vor.u32 4788187, %v6802_v28 }
 0x61b   : > { %v6798_v39 = vshrl.u32 %v6780_v3, %v6796_v1  ;;  %v7513_v21 = vadd.s32 536870912, %v7512_v49  ;;  %v7675_v4 = vsub.s32 32, %v7674_v6  ;;  %vm9025_vm6 = vcmp.lt.s32.totalorder %v9024_v53, 0 }
 0x61c   : > { %v7677_v12 = vshll.u32 %v17349_v22, %v7674_v6  ;;  %v7559_v17 = vand.u32 2139095040, %v14396_v24  ;;  %v14423_v19 = vpop.eup %9661  ;;  %v7680_v33 = vshll.u32 %v17350_v31, %v7674_v6  ;;  %v7673_v30 = vshrl.u32 %v7672_v36, 5 }
 0x61d   : > { %17440 = vst [vmem:[#allocation56_spill] sm:$0xff] %v14423_v19  ;;  %v14425_v13 = vshrl.u32 %v7513_v21, 30  ;;  %v7678_v16 = vshrl.u32 %v17350_v31, %v7675_v4  ;;  %v7681_v9 = vshrl.u32 %v17351_v8, %v7675_v4  ;;  %v14430_v47 = vpop.eup %9663  ;;  %v7684_v5 = vshrl.u32 %v16967_v43, %v7675_v4 }
 0x61e   : > { %17441 = vst [vmem:[#allocation83_spill] sm:$0xff] %v14430_v47  ;;  %v7686_v40 = vshll.u32 %v16967_v43, %v7674_v6  ;;  %v7687_v45 = vshrl.u32 %v16968_v29, %v7675_v4  ;;  %v7683_v27 = vshll.u32 %v17351_v8, %v7674_v6  ;;  %v6799_v3 = vor.u32 %v6798_v39, %v6797_v46 }
 0x61f   : > { %v7515_v1 = vshll.u32 %v14425_v13, 30  ;;  %v7679_v14 = vor.u32 %v7678_v16, %v7677_v12  ;;  %v7682_v28 = vor.u32 %v7681_v9, %v7680_v33  ;;  %v7689_v57 = vshll.u32 %v16968_v29, %v7674_v6 }
 0x620   : > { %v7688_v21 = vor.u32 %v7687_v45, %v7686_v40  ;;  %v7690_v42 = vshrl.u32 %v16969_v62, %v7675_v4  ;;  %v6804_v36 = vand.u32 2147483647, %v14419_v34  ;;  %v7668_v58 = vor.u32 8388608, %v7667_v18 }
 0x621   : > { %v14440_v63 = vsub.s32 %v7512_v49, %v7515_v1  ;;  %v7685_v0 = vor.u32 %v7684_v5, %v7683_v27  ;;  %v14443_v10 = vsel %vm9025_vm6, 0, %v9024_v53  ;;  %vm7692_vm11 = vcmp.lt.s32.totalorder %v7673_v30, 1  ;;  %v14456_v27 = vpop.f32.mrb[26].mxu1 }
 0x622   : > { %v7691_v56 = vor.u32 %v7690_v42, %v7689_v57  ;;  %v14446_v16 = vpop.eup %9665  ;;  %vm7695_vm8 = vcmp.lt.s32.totalorder %v7673_v30, 4  ;;  %v7700_v6 = vsel %vm7692_vm11, %v7679_v14, %v7682_v28  ;;  %v7560_v39 = vshrl.u32 %v7559_v17, 23 }
 0x623   : > { %17442 = vst [vmem:[#allocation85_spill] sm:$0xff] %v14446_v16  ;;  %v7518_v46 = vsub.s32 0, %v14440_v63  ;;  %v7676_v49 = vshrl.u32 %v17349_v22, %v7675_v4  ;;  %vm7693_vm14 = vcmp.lt.s32.totalorder %v7673_v30, 2  ;;  %vm7694_vm10 = vcmp.lt.s32.totalorder %v7673_v30, 3 }
 0x624   : > { %v7701_v18 = vsel %vm7695_vm8, %v7688_v21, 920167782  ;;  %v7697_v34 = vsel %vm7695_vm8, %v7685_v0, 2102212464  ;;  %v7704_v42 = vsel %vm7692_vm11, %v7682_v28, %v7685_v0  ;;  %v7008_v33 = vsub.s32 4294967266, %v14443_v10 }
 0x625   : > { %v9043_v53 = vmin.u32 %v7518_v46, %v14440_v63  ;;  %v7702_v57 = vsel %vm7694_vm10, %v7685_v0, %v7701_v18  ;;  %v7705_v5 = vsel %vm7695_vm8, %v7691_v56, 1326507024  ;;  %v7708_v40 = vshll.u32 %v7668_v58, 8 }
 0x626   : > { %v7703_v9 = vsel %vm7693_vm14, %v7700_v6, %v7702_v57  ;;  %v7696_v17 = vsel %vm7692_vm11, %v7676_v49, %v7679_v14  ;;  %v7706_v1 = vsel %vm7694_vm10, %v7688_v21, %v7705_v5  ;;  %v9046_v4 = vadd.s32 4294967169, %v7560_v39  ;;  %v17449_v57 = vld [vmem:[#allocation40_spill] sm:$0xff] }
 0x627   : > { %v7520_v45 = vclz %v9043_v53  ;;  %v7698_v12 = vsel %vm7694_vm10, %v7682_v28, %v7697_v34  ;;  %v7707_v46 = vsel %vm7693_vm14, %v7704_v42, %v7706_v1  ;;  %9667 = vsinq.f32 %v14370_v59  ;;  %v17448_v34 = vld [vmem:[#allocation27_spill] sm:$0xff] }
 0x628   : > { %v14459_v16 = vmul.u32.u64.low %v7708_v40, %v7703_v9  ;;  %v14460_v18 = vmul.u32.u64.high %v7708_v40, %v7703_v9, %v14459_v16  ;;  %v14463_v19 = vmul.u32.u64.low %v7708_v40, %v7707_v46  ;;  %v14464_v47 = vmul.u32.u64.high %v7708_v40, %v7707_v46, %v14463_v19 }
 0x629   : > { %v9044_v0 = vadd.s32 4294967294, %v7520_v45  ;;  %v7566_v56 = vadd.s32 1, %v9046_v4  ;;  %v6916_v58 = vsel %vm14359_vm13, %v13857_v37, %v14410_v38  ;;  %v17443_v14 = vsel %vm14359_vm13, 0, %v14387_v50 }
 0x62a   : > { %v14475_v28 = vadd.s32 3, %v17443_v14  ;;  %v6806_v21 = vcvt.s32.f32 %v6799_v3  ;;  %9669 = vcosq.f32 %v14406_v54  ;;  %v7699_v19 = vsel %vm7693_vm14, %v7696_v17, %v7698_v12  ;;  %v17446_v3 = vld [vmem:[#allocation37_spill] sm:$0xff] }
 0x62b   : > { %vm9045_vm7 = vcmp.lt.s32.totalorder %v9044_v0, 0  ;;  %vm7567_vm6 = vcmp.gt.s32.totalorder %v7566_v56, 0  ;;  %9671 = vsinq.f32 %v14406_v54  ;;  %v7718_v6 = vadd.s32 1, %v14460_v18 }
 0x62c   : > { %17444 = vst [vmem:[#allocation52_spill] sm:$0xff] %v14475_v28  ;;  %v6807_v59 = vmul.f32 %v6806_v21, %v6804_v36  ;;  %v7568_v39 = vsel %vm7567_vm6, %v7566_v56, 0  ;;  %9673 = vcosq.f32 %v6916_v58  ;;  %vm16833_vm11 = vcmp.lt.s32.totalorder %v14055_v44, 0 }
 0x62d   : > { %v7009_v48 = vadd.s32 127, %v7008_v33  ;;  %v17445_v50 = vand.u32 2147483647, %v14396_v24  ;;  %v14486_v49 = vadd.f32 %v17446_v3, %v14185_v20  ;;  %v14488_v30 = vsel %vm9045_vm7, 0, %v9044_v0 }
 0x62e   : > { %v7715_v12 = vmul.u32 %v7708_v40, %v7699_v19  ;;  %vm7717_vm13 = vc.u32 %v14464_v47, %v14459_v16  ;;  %v7570_v54 = vand.u32 31, %v7568_v39  ;;  %9675 = vsinq.f32 %v6916_v58 }
 0x62f   : > { %v7563_v38 = vand.u32 8388607, %v17445_v50  ;;  %17447 = vst [vmem:[#allocation58_spill] sm:$0xff] %v14486_v49  ;;  %v6988_v36 = vadd.s32 %v14255_v55, %v14262_v35  ;;  %v7719_v53 = vsel %vm7717_vm13, %v7718_v6, %v14460_v18  ;;  %v14497_v42 = vadd.f32 %v17449_v57, %v17448_v34 }
 0x630   : > { %v6808_v33 = vxor.u32 2147483648, %v6807_v59  ;;  %v7004_v9 = vsub.s32 32, %v14443_v10  ;;  %v7720_v5 = vadd.s32 %v7719_v53, %v7715_v12  ;;  %v7571_v45 = vsub.s32 32, %v7570_v54 }
 0x631   : > { %17450 = vst [vmem:[#allocation57_spill] sm:$0xff] %v14497_v42  ;;  %v7010_v40 = vshll.u32 %v7009_v48, 23  ;;  %v7528_v17 = vsub.s32 4294967266, %v14488_v30  ;;  %v7564_v1 = vor.u32 8388608, %v7563_v38  ;;  %v7767_v4 = vand.u32 2139095040, %v14486_v49  ;;  %v14509_v21 = vpop.eup %9667 }
 0x632   : > { %v7721_v46 = vadd.s32 536870912, %v7720_v5  ;;  %v7573_v35 = vshll.u32 %v17349_v22, %v7570_v54  ;;  %v7574_v55 = vshrl.u32 %v17350_v31, %v7571_v45  ;;  %v7577_v18 = vshrl.u32 %v17351_v8, %v7571_v45  ;;  %17451 = vst [vmem:[#allocation72_spill] sm:$0xff] %v14509_v21 }
 0x633   : > { %v7576_v0 = vshll.u32 %v17350_v31, %v7570_v54  ;;  %v7579_v56 = vshll.u32 %v17351_v8, %v7570_v54  ;;  %v7580_v58 = vshrl.u32 %v16967_v43, %v7571_v45  ;;  %v7583_v14 = vshrl.u32 %v16968_v29, %v7571_v45 }
 0x634   : > { %v14511_v19 = vshrl.u32 %v7721_v46, 30  ;;  %v7569_v6 = vshrl.u32 %v7568_v39, 5  ;;  %v7575_v48 = vor.u32 %v7574_v55, %v7573_v35  ;;  %v7582_v50 = vshll.u32 %v16967_v43, %v7570_v54  ;;  %v14514_v38 = vpop.eup %9669 }
 0x635   : > { %17452 = vst [vmem:[#allocation23_spill] sm:$0xff] %v14514_v38  ;;  %v7578_v3 = vor.u32 %v7577_v18, %v7576_v0  ;;  %v7581_v12 = vor.u32 %v7580_v58, %v7579_v56  ;;  %v7585_v53 = vshll.u32 %v16968_v29, %v7570_v54  ;;  %v7586_v57 = vshrl.u32 %v16969_v62, %v7571_v45  ;;  %v14518_v37 = vpop.eup %9671 }
 0x636   : > { %17453 = vst [vmem:[#allocation70_spill] sm:$0xff] %v14518_v37  ;;  %v6809_v28 = vsel %vm16833_vm11, %v6808_v33, %v6807_v59  ;;  %v7005_v46 = vshll.u32 %v14323_v32, %v14443_v10  ;;  %v7723_v39 = vshll.u32 %v14511_v19, 30  ;;  %v7584_v35 = vor.u32 %v7583_v14, %v7582_v50  ;;  %v14525_v55 = vpop.eup %9673 }
 0x637   : > { %17454 = vst [vmem:[#allocation19_spill] sm:$0xff] %v14525_v55  ;;  %v17455_v18 = vand.u32 2147483647, %v14055_v44  ;;  %v17456_v0 = vmov 0  ;;  %v7006_v54 = vshrl.u32 %v6988_v36, %v7004_v9  ;;  %v7011_v56 = vor.u32 4788187, %v7010_v40 }
 0x638   : > { %v7587_v58 = vor.u32 %v7586_v57, %v7585_v53  ;;  %v7604_v38 = vshll.u32 %v7564_v1, 8  ;;  %v14533_v37 = vsub.s32 %v7720_v5, %v7723_v39  ;;  %vm7588_vm14 = vcmp.lt.s32.totalorder %v7569_v6, 1  ;;  %v14535_v32 = vpop.eup %9675 }
 0x639   : > { %vm14529_vm8 = vcmp.le.f32.partialorder %v17455_v18, 0.7853982  ;;  %vm7591_vm10 = vcmp.lt.s32.totalorder %v7569_v6, 4  ;;  %v7768_v10 = vshrl.u32 %v7767_v4, 23  ;;  %17459 = vst [vmem:[#allocation71_spill] sm:$0xff] %v14535_v32  ;;  %v7529_v59 = vadd.s32 127, %v7528_v17 }
 0x63a   : > { %v17457_v0 = vsel %vm14529_vm8, 4294967295, %v17456_v0  ;;  %v7572_v33 = vshrl.u32 %v17349_v22, %v7571_v45  ;;  %v7593_v14 = vsel %vm7591_vm10, %v7581_v12, 2102212464  ;;  %v7596_v50 = vsel %vm7588_vm14, %v7575_v48, %v7578_v3 }
 0x63b   : > { %17458 = vst [vmem:[#allocation69_spill] sm:$0xff] %v17457_v0  ;;  %vm7454_vm7 = vcmp.lt.s32.totalorder %v14202_v26, 0  ;;  %v7726_v18 = vsub.s32 0, %v14533_v37  ;;  %vm7589_vm6 = vcmp.lt.s32.totalorder %v7569_v6, 2  ;;  %vm7590_vm13 = vcmp.lt.s32.totalorder %v7569_v6, 3 }
 0x63c   : > { %v7597_v36 = vsel %vm7591_vm10, %v7584_v35, 920167782  ;;  %v7592_v9 = vsel %vm7588_vm14, %v7572_v33, %v7575_v48  ;;  %v7600_v40 = vsel %vm7588_vm14, %v7578_v3, %v7581_v12  ;;  %v7601_v1 = vsel %vm7591_vm10, %v7587_v58, 1326507024 }
 0x63d   : > { %v7598_v5 = vsel %vm7590_vm13, %v7581_v12, %v7597_v36  ;;  %v9051_v4 = vmin.u32 %v7726_v18, %v14533_v37  ;;  %v7594_v53 = vsel %vm7590_vm13, %v7578_v3, %v7593_v14  ;;  %v7602_v57 = vsel %vm7590_vm13, %v7584_v35, %v7601_v1 }
 0x63e   : > { %v7599_v17 = vsel %vm7589_vm6, %v7596_v50, %v7598_v5  ;;  %v7007_v45 = vor.u32 %v7006_v54, %v7005_v46  ;;  %v7603_v39 = vsel %vm7589_vm6, %v7600_v40, %v7602_v57  ;;  %v17460_v21 = vand.u32 2147483647, %v14202_v26  ;;  %v14562_v50 = vpop.f32.mrb[27].mxu0 }
 0x63f   : > { %v14543_v55 = vmul.u32.u64.low %v7604_v38, %v7599_v17  ;;  %v14544_v32 = vmul.u32.u64.high %v7604_v38, %v7599_v17, %v14543_v55  ;;  %v7728_v12 = vclz %v9051_v4  ;;  %v14558_v3 = vadd.f32 %v14086_v60, %v17448_v34 }
 0x640   : > { %vm14549_vm2 = vcmp.le.f32.partialorder %v17460_v21, 0.7853982  ;;  %v14553_v58 = vmul.u32.u64.low %v7604_v38, %v7603_v39  ;;  %v14554_v33 = vmul.u32.u64.high %v7604_v38, %v7603_v39, %v14553_v58  ;;  %v7012_v46 = vand.u32 2147483647, %v7011_v56 }
 0x641   : > { %17463 = vst [vmem:[#allocation60_spill] sm:$0xff] %v14558_v3  ;;  %v7538_v35 = vsub.s32 4, %v14425_v13  ;;  %v7595_v54 = vsel %vm7589_vm6, %v7592_v9, %v7594_v53  ;;  %v9054_v14 = vadd.s32 4294967169, %v7768_v10  ;;  %v6812_v21 = vsel %vm14529_vm8, %v14055_v44, %v6809_v28 }
 0x642   : > { %v7524_v18 = vsub.s32 32, %v14488_v30  ;;  %v7530_v36 = vshll.u32 %v7529_v59, 23  ;;  %v16832_v5 = vand.u32 2147483647, %v14486_v49  ;;  %v7014_v40 = vcvt.s32.f32 %v7007_v45 }
 0x643   : > { %v7614_v60 = vadd.s32 1, %v14544_v32  ;;  %v7774_v56 = vadd.s32 1, %v9054_v14  ;;  %v5375_v1 = vand.u32 2139095040, %v14497_v42  ;;  %v7508_v6 = vadd.s32 %v14348_v51, %v14354_v7 }
 0x644   : > { %v9052_v10 = vadd.s32 4294967294, %v7728_v12  ;;  %v7611_v9 = vmul.u32 %v7604_v38, %v7595_v54  ;;  %vm7613_vm14 = vc.u32 %v14554_v33, %v14543_v55  ;;  %v14575_v28 = vmul.f32 %v7014_v40, %v7012_v46 }
 0x645   : > { %v14580_v59 = vsel %vm7454_vm7, %v7538_v35, %v14425_v13  ;;  %v7615_v4 = vsel %vm7613_vm14, %v7614_v60, %v14544_v32  ;;  %vm7775_vm10 = vcmp.gt.s32.totalorder %v7774_v56, 0  ;;  %v7526_v53 = vshrl.u32 %v7508_v6, %v7524_v18 }
 0x646   : > { %v14583_v17 = vor.u32 4788187, %v7530_v36  ;;  %v7616_v57 = vadd.s32 %v7615_v4, %v7611_v9  ;;  %v7771_v51 = vand.u32 8388607, %v16832_v5  ;;  %9677 = vcosq.f32 %v6812_v21 }
 0x647   : > { %v7776_v7 = vsel %vm7775_vm10, %v7774_v56, 0  ;;  %v16831_v38 = vand.u32 2147483647, %v14497_v42  ;;  %v5376_v45 = vshrl.u32 %v5375_v1, 23  ;;  %9679 = vsinq.f32 %v6812_v21 }
 0x648   : > { %v7525_v13 = vshll.u32 %v14440_v63, %v14488_v30  ;;  %vm9053_vm6 = vcmp.lt.s32.totalorder %v9052_v10, 0  ;;  %v7617_v39 = vadd.s32 536870912, %v7616_v57  ;;  %v7716_v58 = vadd.s32 %v14459_v16, %v14464_v47 }
 0x649   : > { %v7778_v46 = vand.u32 31, %v7776_v7  ;;  %v7772_v21 = vor.u32 8388608, %v7771_v51  ;;  %v14601_v63 = vsel %vm9053_vm6, 0, %v9052_v10  ;;  %v8962_v18 = vadd.s32 4294967169, %v5376_v45 }
 0x64a   : > { %v14596_v35 = vor.u32 %v7526_v53, %v7525_v13  ;;  %v14599_v14 = vshrl.u32 %v7617_v39, 30  ;;  %v14605_v36 = vand.u32 8388607, %v16831_v38  ;;  %v7777_v60 = vshrl.u32 %v7776_v7, 5 }
 0x64b   : > { %v7779_v30 = vsub.s32 32, %v7778_v46  ;;  %v7781_v47 = vshll.u32 %v17349_v22, %v7778_v46  ;;  %v7784_v16 = vshll.u32 %v17350_v31, %v7778_v46  ;;  %v7787_v6 = vshll.u32 %v17351_v8, %v7778_v46 }
 0x64c   : > { %17464 = vst [vmem:[#allocation59_spill] sm:$0xff] %v14599_v14  ;;  %v7619_v40 = vshll.u32 %v14599_v14, 30  ;;  %v7790_v4 = vshll.u32 %v16967_v43, %v7778_v46  ;;  %v7793_v51 = vshll.u32 %v16968_v29, %v7778_v46  ;;  %vm16850_vm13 = vcmp.lt.s32.totalorder %v14115_v41, 0 }
 0x64d   : > { %v7782_v56 = vshrl.u32 %v17350_v31, %v7779_v30  ;;  %v7785_v1 = vshrl.u32 %v17351_v8, %v7779_v30  ;;  %v7788_v10 = vshrl.u32 %v16967_v43, %v7779_v30  ;;  %v7791_v53 = vshrl.u32 %v16968_v29, %v7779_v30 }
 0x64e   : > { %v14614_v9 = vsub.s32 %v7616_v57, %v7619_v40  ;;  %v7794_v39 = vshrl.u32 %v16969_v62, %v7779_v30  ;;  %v7736_v38 = vsub.s32 4294967266, %v14601_v63  ;;  %v14623_v57 = vshll.u32 %v7772_v21, 8 }
 0x64f   : > { %v7783_v7 = vor.u32 %v7782_v56, %v7781_v47  ;;  %v7786_v45 = vor.u32 %v7785_v1, %v7784_v16  ;;  %v7789_v13 = vor.u32 %v7788_v10, %v7787_v6  ;;  %v7792_v12 = vor.u32 %v7791_v53, %v7790_v4 }
 0x650   : > { %v7622_v5 = vsub.s32 0, %v14614_v9  ;;  %v14625_v40 = vpop.eup %9677  ;;  %v7780_v54 = vshrl.u32 %v17349_v22, %v7779_v30  ;;  %v7795_v32 = vor.u32 %v7794_v39, %v7793_v51  ;;  %vm7796_vm14 = vcmp.lt.s32.totalorder %v7777_v60, 1 }
 0x651   : > { %17465 = vst [vmem:[#allocation73_spill] sm:$0xff] %v14625_v40  ;;  %v5382_v46 = vadd.s32 1, %v8962_v18  ;;  %v14628_v47 = vpop.eup %9679  ;;  %vm7798_vm10 = vcmp.lt.s32.totalorder %v7777_v60, 3  ;;  %vm7799_vm6 = vcmp.lt.s32.totalorder %v7777_v60, 4  ;;  %v7804_v56 = vsel %vm7796_vm14, %v7783_v7, %v7786_v45 }
 0x652   : > { %17466 = vst [vmem:[#allocation76_spill] sm:$0xff] %v14628_v47  ;;  %v9047_v16 = vmin.u32 %v7622_v5, %v14614_v9  ;;  %v7801_v1 = vsel %vm7799_vm6, %v7789_v13, 2102212464  ;;  %v7805_v6 = vsel %vm7799_vm6, %v7792_v12, 920167782  ;;  %v7808_v10 = vsel %vm7796_vm14, %v7786_v45, %v7789_v13 }
 0x653   : > { %v7809_v4 = vsel %vm7799_vm6, %v7795_v32, 1326507024  ;;  %v7732_v21 = vsub.s32 32, %v14601_v63  ;;  %vm7797_vm11 = vcmp.lt.s32.totalorder %v7777_v60, 2  ;;  %v7806_v30 = vsel %vm7798_vm10, %v7789_v13, %v7805_v6 }
 0x654   : > { %v7624_v53 = vclz %v9047_v16  ;;  %v7800_v51 = vsel %vm7796_vm14, %v7780_v54, %v7783_v7  ;;  %v7807_v18 = vsel %vm7797_vm11, %v7804_v56, %v7806_v30  ;;  %v7810_v39 = vsel %vm7798_vm10, %v7792_v12, %v7809_v4 }
 0x655   : > { %v5380_v5 = vor.u32 8388608, %v14605_v36  ;;  %v7802_v47 = vsel %vm7798_vm10, %v7786_v45, %v7801_v1  ;;  %v7811_v14 = vsel %vm7797_vm11, %v7808_v10, %v7810_v39  ;;  %vm5383_vm4 = vcmp.gt.s32.totalorder %v5382_v46, 0  ;;  %v14648_v36 = vpop.f32.mrb[27].mxu1 }
 0x656   : > { %v9048_v40 = vadd.s32 4294967294, %v7624_v53  ;;  %v7737_v32 = vadd.s32 127, %v7736_v38  ;;  %v14639_v0 = vmul.u32.u64.low %v14623_v57, %v7811_v14  ;;  %v14640_v16 = vmul.u32.u64.high %v14623_v57, %v7811_v14, %v14639_v0 }
 0x657   : > { %v5384_v44 = vsel %vm5383_vm4, %v5382_v46, 0  ;;  %v7534_v54 = vcvt.s32.f32 %v14596_v35  ;;  %v7734_v7 = vshrl.u32 %v7716_v58, %v7732_v21  ;;  %v17467_v45 = vxor.u32 2147483648, %v14575_v28 }
 0x658   : > { %v14644_v13 = vmul.u32.u64.low %v14623_v57, %v7807_v18  ;;  %v14645_v12 = vmul.u32.u64.high %v14623_v57, %v7807_v18, %v14644_v13  ;;  %vm9049_vm14 = vcmp.lt.s32.totalorder %v9048_v40, 0  ;;  %v7803_v0 = vsel %vm7797_vm11, %v7800_v51, %v7802_v47 }
 0x659   : > { %v14655_v38 = vsel %vm16850_vm13, %v17467_v45, %v14575_v28  ;;  %v5386_v14 = vand.u32 31, %v5384_v44  ;;  %v17468_v58 = vand.u32 2147483647, %v14583_v17  ;;  %v7733_v46 = vshll.u32 %v14533_v37, %v14601_v63 }
 0x65a   : > { %v14664_v56 = vshll.u32 %v5380_v5, 8  ;;  %v7738_v6 = vshll.u32 %v7737_v32, 23  ;;  %vm7821_vm4 = vc.u32 %v14640_v16, %v14644_v13  ;;  %v5583_v60 = vand.u32 2139095040, %v14558_v3 }
 0x65b   : > { %v14660_v35 = vmul.f32 %v7534_v54, %v17468_v58  ;;  %v5387_v28 = vsub.s32 32, %v5386_v14  ;;  %v14670_v47 = vor.u32 %v7734_v7, %v7733_v46  ;;  %v14672_v10 = vsel %vm9049_vm14, 0, %v9048_v40 }
 0x65c   : > { %v7819_v17 = vmul.u32 %v14623_v57, %v7803_v0  ;;  %v7822_v4 = vadd.s32 1, %v14645_v12  ;;  %v5385_v37 = vshrl.u32 %v5384_v44, 5  ;;  %v5389_v63 = vshll.u32 %v17349_v22, %v5386_v14 }
 0x65d   : > { %v5390_v21 = vshrl.u32 %v17350_v31, %v5387_v28  ;;  %v5393_v53 = vshrl.u32 %v17351_v8, %v5387_v28  ;;  %v5392_v51 = vshll.u32 %v17350_v31, %v5386_v14  ;;  %v5395_v18 = vshll.u32 %v17351_v8, %v5386_v14 }
 0x65e   : > { %v7823_v30 = vsel %vm7821_vm4, %v7822_v4, %v14645_v12  ;;  %v5396_v40 = vshrl.u32 %v16967_v43, %v5387_v28  ;;  %v7739_v39 = vor.u32 4788187, %v7738_v6  ;;  %v7632_v57 = vsub.s32 4294967266, %v14672_v10 }
 0x65f   : > { %v7824_v5 = vadd.s32 %v7823_v30, %v7819_v17  ;;  %v5391_v32 = vor.u32 %v5390_v21, %v5389_v63  ;;  %v5394_v44 = vor.u32 %v5393_v53, %v5392_v51  ;;  %v5398_v7 = vshll.u32 %v16967_v43, %v5386_v14 }
 0x660   : > { %v5397_v54 = vor.u32 %v5396_v40, %v5395_v18  ;;  %v5399_v45 = vshrl.u32 %v16968_v29, %v5387_v28  ;;  %v5401_v12 = vshll.u32 %v16968_v29, %v5386_v14  ;;  %v5402_v58 = vshrl.u32 %v16969_v62, %v5387_v28 }
 0x661   : > { %v7825_v0 = vadd.s32 536870912, %v7824_v5  ;;  %v5584_v46 = vshrl.u32 %v5583_v60, 23  ;;  %v17469_v4 = vand.u32 2147483647, %v14115_v41  ;;  %v17470_v6 = vmov 0 }
 0x662   : > { %v7628_v17 = vsub.s32 32, %v14672_v10  ;;  %v5400_v63 = vor.u32 %v5399_v45, %v5398_v7  ;;  %vm5404_vm10 = vcmp.lt.s32.totalorder %v5385_v37, 1  ;;  %vm5407_vm6 = vcmp.lt.s32.totalorder %v5385_v37, 4 }
 0x663   : > { %vm14690_vm11 = vcmp.le.f32.partialorder %v17469_v4, 0.7853982  ;;  %v7633_v21 = vadd.s32 127, %v7632_v57  ;;  %v14695_v53 = vshrl.u32 %v7825_v0, 30  ;;  %v5403_v30 = vor.u32 %v5402_v58, %v5401_v12 }
 0x664   : > { %v17471_v6 = vsel %vm14690_vm11, 4294967295, %v17470_v6  ;;  %v5409_v14 = vsel %vm5407_vm6, %v5397_v54, 2102212464  ;;  %v5388_v51 = vshrl.u32 %v17349_v22, %v5387_v28  ;;  %vm5406_vm14 = vcmp.lt.s32.totalorder %v5385_v37, 3 }
 0x665   : > { %17472 = vst [vmem:[#allocation30_spill] sm:$0xff] %v17471_v6  ;;  %17473 = vst [vmem:[#allocation46_spill] sm:$0xff] %v14695_v53  ;;  %v5412_v60 = vsel %vm5404_vm10, %v5391_v32, %v5394_v44  ;;  %v5413_v18 = vsel %vm5407_vm6, %v5400_v63, 920167782  ;;  %v7827_v40 = vshll.u32 %v14695_v53, 30  ;;  %vm5405_vm4 = vcmp.lt.s32.totalorder %v5385_v37, 2 }
 0x666   : > { %v5414_v4 = vsel %vm5406_vm14, %v5397_v54, %v5413_v18  ;;  %v5416_v1 = vsel %vm5404_vm10, %v5394_v44, %v5397_v54  ;;  %v5408_v7 = vsel %vm5404_vm10, %v5388_v51, %v5391_v32  ;;  %v5410_v45 = vsel %vm5406_vm14, %v5394_v44, %v5409_v14 }
 0x667   : > { %v5415_v57 = vsel %vm5405_vm4, %v5412_v60, %v5414_v4  ;;  %v5417_v0 = vsel %vm5407_vm6, %v5403_v30, 1326507024  ;;  %v14703_v12 = vsub.s32 %v7824_v5, %v7827_v40  ;;  %v7740_v52 = vand.u32 2147483647, %v7739_v39 }
 0x668   : > { %v5418_v58 = vsel %vm5406_vm14, %v5400_v63, %v5417_v0  ;;  %v14706_v28 = vmul.u32.u64.low %v14664_v56, %v5415_v57  ;;  %v14707_v61 = vmul.u32.u64.high %v14664_v56, %v5415_v57, %v14706_v28  ;;  %v7612_v53 = vadd.s32 %v14543_v55, %v14554_v33 }
 0x669   : > { %v5419_v54 = vsel %vm5405_vm4, %v5416_v1, %v5418_v58  ;;  %v8970_v32 = vadd.s32 4294967169, %v5584_v46  ;;  %v7742_v44 = vcvt.s32.f32 %v14670_v47  ;;  %v7830_v14 = vsub.s32 0, %v14703_v12 }
 0x66a   : > { %v14716_v5 = vmul.u32.u64.low %v14664_v56, %v5419_v54  ;;  %v14717_v30 = vmul.u32.u64.high %v14664_v56, %v5419_v54, %v14716_v5  ;;  %v7630_v63 = vshrl.u32 %v7612_v53, %v7628_v17  ;;  %v7634_v51 = vshll.u32 %v7633_v21, 23 }
 0x66b   : > { %v5411_v60 = vsel %vm5405_vm4, %v5408_v7, %v5410_v45  ;;  %v5590_v18 = vadd.s32 1, %v8970_v32  ;;  %v7020_v55 = vsel %vm14690_vm11, %v14115_v41, %v14655_v38  ;;  %v7536_v33 = vxor.u32 2147483648, %v14660_v35 }
 0x66c   : > { %v9055_v1 = vmin.u32 %v7830_v14, %v14703_v12  ;;  %v5430_v47 = vadd.s32 1, %v14707_v61  ;;  %v7743_v39 = vmul.f32 %v7742_v44, %v7740_v52  ;;  %v7629_v46 = vshll.u32 %v14614_v9, %v14672_v10  ;;  %v14735_v52 = vpop.f32.mrb[28].mxu0 }
 0x66d   : > { %v17474_v17 = vand.u32 2147483647, %v14558_v3  ;;  %vm5591_vm10 = vcmp.gt.s32.totalorder %v5590_v18, 0  ;;  %v5427_v53 = vmul.u32 %v14664_v56, %v5411_v60  ;;  %vm5429_vm6 = vc.u32 %v14717_v30, %v14706_v28 }
 0x66e   : > { %v7832_v21 = vclz %v9055_v1  ;;  %v5592_v38 = vsel %vm5591_vm10, %v5590_v18, 0  ;;  %v7631_v40 = vor.u32 %v7630_v63, %v7629_v46  ;;  %v7635_v4 = vor.u32 4788187, %v7634_v51 }
 0x66f   : > { %v5587_v37 = vand.u32 8388607, %v17474_v17  ;;  %v5431_v7 = vsel %vm5429_vm6, %v5430_v47, %v14707_v61  ;;  %v5594_v45 = vand.u32 31, %v5592_v38  ;;  %9681 = vcosq.f32 %v7020_v55 }
 0x670   : > { %vm7662_vm14 = vcmp.lt.s32.totalorder %v14294_v25, 0  ;;  %v9056_v9 = vadd.s32 4294967294, %v7832_v21  ;;  %v5432_v10 = vadd.s32 %v5431_v7, %v5427_v53  ;;  %v14740_v57 = vadd.f32 %v14183_v2, %v17448_v34 }
 0x671   : > { %9683 = vsinq.f32 %v7020_v55  ;;  %v7537_v56 = vsel %vm7454_vm7, %v7536_v33, %v14660_v35  ;;  %v17475_v61 = vsel %vm14549_vm2, 0, %v14580_v59  ;;  %v5595_v58 = vsub.s32 32, %v5594_v45 }
 0x672   : > { %v14749_v0 = vadd.s32 3, %v17475_v61  ;;  %v7744_v54 = vxor.u32 2147483648, %v7743_v39  ;;  %vm9057_vm4 = vcmp.lt.s32.totalorder %v9056_v9, 0  ;;  %v5433_v32 = vadd.s32 536870912, %v5432_v10 }
 0x673   : > { %v5588_v44 = vor.u32 8388608, %v5587_v37  ;;  %v7636_v14 = vand.u32 2147483647, %v7635_v4  ;;  %v7638_v5 = vcvt.s32.f32 %v7631_v40  ;;  %v5598_v2 = vshrl.u32 %v17350_v31, %v5595_v58 }
 0x674   : > { %17476 = vst [vmem:[#allocation75_spill] sm:$0xff] %v14749_v0  ;;  %v5601_v63 = vshrl.u32 %v17351_v8, %v5595_v58  ;;  %v14753_v51 = vsel %vm9057_vm4, 0, %v9056_v9  ;;  %v14755_v35 = vshrl.u32 %v5433_v32, 30  ;;  %v14757_v60 = vshrl.u32 %v5592_v38, 5 }
 0x675   : > { %v5479_v59 = vand.u32 2139095040, %v14740_v57  ;;  %v5597_v18 = vshll.u32 %v17349_v22, %v5594_v45  ;;  %v5600_v55 = vshll.u32 %v17350_v31, %v5594_v45  ;;  %v5604_v33 = vshrl.u32 %v16967_v43, %v5595_v58 }
 0x676   : > { %v5607_v1 = vshrl.u32 %v16968_v29, %v5595_v58  ;;  %v5435_v47 = vshll.u32 %v14755_v35, 30  ;;  %v5603_v46 = vshll.u32 %v17351_v8, %v5594_v45  ;;  %v5606_v17 = vshll.u32 %v16967_v43, %v5594_v45 }
 0x677   : > { %v5609_v37 = vshll.u32 %v16968_v29, %v5594_v45  ;;  %v7840_v21 = vsub.s32 4294967266, %v14753_v51  ;;  %v5599_v53 = vor.u32 %v5598_v2, %v5597_v18  ;;  %v5602_v38 = vor.u32 %v5601_v63, %v5600_v55 }
 0x678   : > { %v5610_v40 = vshrl.u32 %v16969_v62, %v5595_v58  ;;  %v7540_v4 = vsel %vm14549_vm2, %v14202_v26, %v7537_v56  ;;  %v14773_v7 = vsub.s32 %v5432_v10, %v5435_v47  ;;  %v5605_v9 = vor.u32 %v5604_v33, %v5603_v46 }
 0x679   : > { %v5608_v61 = vor.u32 %v5607_v1, %v5606_v17  ;;  %v7745_v32 = vsel %vm7662_vm14, %v7744_v54, %v7743_v39  ;;  %v7639_v0 = vmul.f32 %v7638_v5, %v7636_v14  ;;  %v5480_v45 = vshrl.u32 %v5479_v59, 23  ;;  %v14777_v41 = vpop.eup %9681 }
 0x67a   : > { %v5611_v6 = vor.u32 %v5610_v40, %v5609_v37  ;;  %17477 = vst [vmem:[#allocation79_spill] sm:$0xff] %v14777_v41  ;;  %v17478_v2 = vand.u32 2147483647, %v14294_v25  ;;  %v5438_v48 = vsub.s32 0, %v14773_v7  ;;  %v5596_v10 = vshrl.u32 %v17349_v22, %v5595_v58 }
 0x67b   : > { %vm5612_vm2 = vcmp.lt.s32.totalorder %v14757_v60, 1  ;;  %v5628_v56 = vshll.u32 %v5588_v44, 8  ;;  %v14788_v18 = vpop.eup %9683  ;;  %vm16863_vm10 = vcmp.lt.s32.totalorder %v14396_v24, 0  ;;  %v7841_v39 = vadd.s32 127, %v7840_v21 }
 0x67c   : > { %vm14781_vm7 = vcmp.le.f32.partialorder %v17478_v2, 0.7853982  ;;  %17481 = vst [vmem:[#allocation66_spill] sm:$0xff] %v14788_v18  ;;  %vm5613_vm6 = vcmp.lt.s32.totalorder %v14757_v60, 2  ;;  %vm5615_vm4 = vcmp.lt.s32.totalorder %v14757_v60, 4  ;;  %v5620_v54 = vsel %vm5612_vm2, %v5599_v53, %v5602_v38 }
 0x67d   : > { %v8963_v14 = vmin.u32 %v5438_v48, %v14773_v7  ;;  %vm5614_vm13 = vcmp.lt.s32.totalorder %v14757_v60, 3  ;;  %v5617_v58 = vsel %vm5615_vm4, %v5605_v9, 2102212464  ;;  %v5621_v5 = vsel %vm5615_vm4, %v5608_v61, 920167782 }
 0x67e   : > { %v5622_v59 = vsel %vm5614_vm13, %v5605_v9, %v5621_v5  ;;  %v5624_v44 = vsel %vm5612_vm2, %v5602_v38, %v5605_v9  ;;  %v5625_v55 = vsel %vm5615_vm4, %v5611_v6, 1326507024  ;;  %v8966_v33 = vadd.s32 4294967169, %v5480_v45 }
 0x67f   : > { %v7640_v1 = vxor.u32 2147483648, %v7639_v0  ;;  %v5440_v47 = vclz %v8963_v14  ;;  %v5616_v46 = vsel %vm5612_vm2, %v5596_v10, %v5599_v53  ;;  %v5623_v17 = vsel %vm5613_vm6, %v5620_v54, %v5622_v59 }
 0x680   : > { %v17482_v37 = vand.u32 2147483647, %v14396_v24  ;;  %v17483_v21 = vmov 0  ;;  %v5618_v40 = vsel %vm5614_vm13, %v5602_v38, %v5617_v58  ;;  %v5626_v2 = vsel %vm5614_vm13, %v5608_v61, %v5625_v55 }
 0x681   : > { %v14809_v48 = vmul.u32.u64.low %v5628_v56, %v5623_v17  ;;  %v14810_v9 = vmul.u32.u64.high %v5628_v56, %v5623_v17, %v14809_v48  ;;  %v7836_v6 = vsub.s32 32, %v14753_v51  ;;  %v8964_v45 = vadd.s32 4294967294, %v5440_v47 }
 0x682   : > { %vm14805_vm9 = vcmp.le.f32.partialorder %v17482_v37, 0.7853982  ;;  %v5627_v53 = vsel %vm5613_vm6, %v5624_v44, %v5626_v2  ;;  %v16852_v10 = vand.u32 2147483647, %v14740_v57  ;;  %v7842_v54 = vshll.u32 %v7841_v39, 23  ;;  %v14820_v37 = vpop.f32.mrb[28].mxu1 }
 0x683   : > { %v17484_v21 = vsel %vm14805_vm9, 4294967295, %v17483_v21  ;;  %v14817_v14 = vmul.u32.u64.low %v5628_v56, %v5627_v53  ;;  %v14818_v5 = vmul.u32.u64.high %v5628_v56, %v5627_v53, %v14817_v14  ;;  %v5486_v59 = vadd.s32 1, %v8966_v33 }
 0x684   : > { %17485 = vst [vmem:[#allocation86_spill] sm:$0xff] %v17484_v21  ;;  %9685 = vcosq.f32 %v7540_v4  ;;  %v7746_v38 = vsub.s32 4, %v14511_v19  ;;  %v7820_v61 = vadd.s32 %v14644_v13, %v14640_v16  ;;  %v5619_v58 = vsel %vm5613_vm6, %v5616_v46, %v5618_v40 }
 0x685   : > { %9687 = vsinq.f32 %v7540_v4  ;;  %v7748_v39 = vsel %vm14781_vm7, %v14294_v25, %v7745_v32  ;;  %v5638_v44 = vadd.s32 1, %v14810_v9  ;;  %vm5487_vm13 = vcmp.gt.s32.totalorder %v5486_v59, 0 }
 0x686   : > { %v7641_v55 = vsel %vm16863_vm10, %v7640_v1, %v7639_v0  ;;  %v7838_v33 = vshrl.u32 %v7820_v61, %v7836_v6  ;;  %vm8965_vm2 = vcmp.lt.s32.totalorder %v8964_v45, 0  ;;  %v5483_v47 = vand.u32 8388607, %v16852_v10 }
 0x687   : > { %v7843_v16 = vor.u32 4788187, %v7842_v54  ;;  %v5635_v13 = vmul.u32 %v5628_v56, %v5619_v58  ;;  %vm5637_vm6 = vc.u32 %v14818_v5, %v14809_v48  ;;  %v5488_v60 = vsel %vm5487_vm13, %v5486_v59, 0 }
 0x688   : > { %v14840_v4 = vsel %vm7662_vm14, %v7746_v38, %v14511_v19  ;;  %9689 = vcosq.f32 %v7748_v39  ;;  %v7837_v0 = vshll.u32 %v14703_v12, %v14753_v51  ;;  %v5639_v32 = vsel %vm5637_vm6, %v5638_v44, %v14810_v9 }
 0x689   : > { %9691 = vsinq.f32 %v7748_v39  ;;  %v14845_v1 = vsel %vm8965_vm2, 0, %v8964_v45  ;;  %v5640_v46 = vadd.s32 %v5639_v32, %v5635_v13  ;;  %v5490_v56 = vand.u32 31, %v5488_v60 }
 0x68a   : > { %v14850_v17 = vsel %vm14805_vm9, %v14396_v24, %v7641_v55  ;;  %v7839_v40 = vor.u32 %v7838_v33, %v7837_v0  ;;  %v5428_v19 = vadd.s32 %v14706_v28, %v14717_v30  ;;  %v14856_v2 = vadd.f32 %v14271_v11, %v17448_v34 }
 0x68b   : > { %v7844_v12 = vand.u32 2147483647, %v7843_v16  ;;  %v5641_v51 = vadd.s32 536870912, %v5640_v46  ;;  %v5484_v9 = vor.u32 8388608, %v5483_v47  ;;  %v5491_v6 = vsub.s32 32, %v5490_v56 }
 0x68c   : > { %17486 = vst [vmem:[#allocation82_spill] sm:$0xff] %v14856_v2  ;;  %v5444_v45 = vsub.s32 32, %v14845_v1  ;;  %v5448_v53 = vsub.s32 4294967266, %v14845_v1  ;;  %v14860_v54 = vshrl.u32 %v5488_v60, 5  ;;  %v5493_v14 = vshll.u32 %v17349_v22, %v5490_v56 }
 0x68d   : > { %v14863_v59 = vshrl.u32 %v5641_v51, 30  ;;  %v5494_v28 = vshrl.u32 %v17350_v31, %v5491_v6  ;;  %v5496_v30 = vshll.u32 %v17350_v31, %v5490_v56  ;;  %v5497_v11 = vshrl.u32 %v17351_v8, %v5491_v6 }
 0x68e   : > { %v14868_v34 = vpop.eup %9685  ;;  %v5499_v38 = vshll.u32 %v17351_v8, %v5490_v56  ;;  %v5500_v61 = vshrl.u32 %v16967_v43, %v5491_v6  ;;  %v5502_v58 = vshll.u32 %v16967_v43, %v5490_v56  ;;  %v5503_v39 = vshrl.u32 %v16968_v29, %v5491_v6 }
 0x68f   : > { %17487 = vst [vmem:[#allocation74_spill] sm:$0xff] %v14868_v34  ;;  %v14874_v44 = vpop.eup %9687  ;;  %v7846_v55 = vcvt.s32.f32 %v7839_v40  ;;  %v5643_v33 = vshll.u32 %v14863_v59, 30  ;;  %v5495_v47 = vor.u32 %v5494_v28, %v5493_v14  ;;  %v5498_v16 = vor.u32 %v5497_v11, %v5496_v30 }
 0x690   : > { %17488 = vst [vmem:[#allocation90_spill] sm:$0xff] %v14874_v44  ;;  %v5501_v13 = vor.u32 %v5500_v61, %v5499_v38  ;;  %v5504_v60 = vor.u32 %v5503_v39, %v5502_v58  ;;  %v5505_v0 = vshll.u32 %v16968_v29, %v5490_v56  ;;  %v5506_v32 = vshrl.u32 %v16969_v62, %v5491_v6 }
 0x691   : > { %v14879_v51 = vmul.f32 %v7846_v55, %v7844_v12  ;;  %v14881_v10 = vsub.s32 %v5640_v46, %v5643_v33  ;;  %v14883_v25 = vshll.u32 %v5484_v9, 8  ;;  %v5446_v40 = vshrl.u32 %v5428_v19, %v5444_v45 }
 0x692   : > { %v14886_v34 = vpop.eup %9689  ;;  %v5449_v44 = vadd.s32 127, %v5448_v53  ;;  %v5507_v14 = vor.u32 %v5506_v32, %v5505_v0  ;;  %vm5508_vm14 = vcmp.lt.s32.totalorder %v14860_v54, 1  ;;  %vm5511_vm4 = vcmp.lt.s32.totalorder %v14860_v54, 4 }
 0x693   : > { %17489 = vst [vmem:[#allocation98_spill] sm:$0xff] %v14886_v34  ;;  %v14889_v28 = vpop.eup %9691  ;;  %v5646_v56 = vsub.s32 0, %v14881_v10  ;;  %v5516_v12 = vsel %vm5508_vm14, %v5495_v47, %v5498_v16  ;;  %v5687_v46 = vand.u32 2139095040, %v14856_v2  ;;  %v5492_v9 = vshrl.u32 %v17349_v22, %v5491_v6 }
 0x694   : > { %17490 = vst [vmem:[#allocation97_spill] sm:$0xff] %v14889_v28  ;;  %vm5510_vm13 = vcmp.lt.s32.totalorder %v14860_v54, 3  ;;  %v5513_v30 = vsel %vm5511_vm4, %v5501_v13, 2102212464  ;;  %v5517_v11 = vsel %vm5511_vm4, %v5504_v60, 920167782  ;;  %v5520_v53 = vsel %vm5508_vm14, %v5498_v16, %v5501_v13 }
 0x695   : > { %v8971_v19 = vmin.u32 %v5646_v56, %v14881_v10  ;;  %vm5509_vm2 = vcmp.lt.s32.totalorder %v14860_v54, 2  ;;  %v5518_v45 = vsel %vm5510_vm13, %v5501_v13, %v5517_v11  ;;  %v5450_v38 = vshll.u32 %v5449_v44, 23 }
 0x696   : > { %v5512_v61 = vsel %vm5508_vm14, %v5492_v9, %v5495_v47  ;;  %v5519_v58 = vsel %vm5509_vm2, %v5516_v12, %v5518_v45  ;;  %v5521_v39 = vsel %vm5511_vm4, %v5507_v14, 1326507024  ;;  %v5514_v33 = vsel %vm5510_vm13, %v5498_v16, %v5513_v30  ;;  %v14922_v30 = vpop.f32.mrb[29].mxu0 }
 0x697   : > { %v5648_v55 = vclz %v8971_v19  ;;  %v5522_v0 = vsel %vm5510_vm13, %v5504_v60, %v5521_v39  ;;  %v5688_v6 = vshrl.u32 %v5687_v46, 23  ;;  %v17491_v13 = vand.u32 2147483647, %v14856_v2  ;;  %v17492_v60 = vld [vmem:[#allocation18_spill] sm:$0xff] }
 0x698   : > { %v5523_v32 = vsel %vm5509_vm2, %v5520_v53, %v5522_v0  ;;  %v14903_v26 = vmul.u32.u64.low %v14883_v25, %v5519_v58  ;;  %v14904_v56 = vmul.u32.u64.high %v14883_v25, %v5519_v58, %v14903_v26  ;;  %9693 = vcosq.f32 %v14850_v17 }
 0x699   : > { %v5691_v44 = vand.u32 8388607, %v17491_v13  ;;  %v8972_v47 = vadd.s32 4294967294, %v5648_v55  ;;  %v14910_v9 = vmul.u32.u64.low %v14883_v25, %v5523_v32  ;;  %v14911_v12 = vmul.u32.u64.high %v14883_v25, %v5523_v32, %v14910_v9 }
 0x69a   : > { %v8974_v14 = vadd.s32 4294967169, %v5688_v6  ;;  %vm16862_vm6 = vcmp.lt.s32.totalorder %v14486_v49, 0  ;;  %v14920_v46 = vadd.f32 %v14398_v15, %v17492_v60  ;;  %v5445_v11 = vshll.u32 %v14773_v7, %v14845_v1 }
 0x69b   : > { %vm8973_vm14 = vcmp.lt.s32.totalorder %v8972_v47, 0  ;;  %v5515_v19 = vsel %vm5509_vm2, %v5512_v61, %v5514_v33  ;;  %9695 = vsinq.f32 %v14850_v17  ;;  %v7848_v53 = vxor.u32 2147483648, %v14879_v51 }
 0x69c   : > { %17493 = vst [vmem:[#allocation96_spill] sm:$0xff] %v14920_v46  ;;  %v5694_v45 = vadd.s32 1, %v8974_v14  ;;  %v14930_v58 = vsel %vm8973_vm14, 0, %v8972_v47  ;;  %v5534_v39 = vadd.s32 1, %v14904_v56  ;;  %v14933_v15 = vor.u32 %v5446_v40, %v5445_v11 }
 0x69d   : > { %v14935_v55 = vor.u32 4788187, %v5450_v38  ;;  %v5656_v0 = vsub.s32 4294967266, %v14930_v58  ;;  %v5692_v7 = vor.u32 8388608, %v5691_v44  ;;  %v5531_v1 = vmul.u32 %v14883_v25, %v5515_v19 }
 0x69e   : > { %vm5533_vm4 = vc.u32 %v14911_v12, %v14903_v26  ;;  %vm5695_vm13 = vcmp.gt.s32.totalorder %v5694_v45, 0  ;;  %v6207_v17 = vand.u32 2139095040, %v14920_v46  ;;  %v14947_v38 = vsel %vm16862_vm6, %v7848_v53, %v14879_v51 }
 0x69f   : > { %v5657_v61 = vadd.s32 127, %v5656_v0  ;;  %v5535_v33 = vsel %vm5533_vm4, %v5534_v39, %v14904_v56  ;;  %v5696_v40 = vsel %vm5695_vm13, %v5694_v45, 0  ;;  %v5636_v25 = vadd.s32 %v14809_v48, %v14818_v5 }
 0x6a0   : > { %v5536_v6 = vadd.s32 %v5535_v33, %v5531_v1  ;;  %v5698_v32 = vand.u32 31, %v5696_v40  ;;  %v14953_v47 = vshll.u32 %v5692_v7, 8  ;;  %v5652_v56 = vsub.s32 32, %v14930_v58 }
 0x6a1   : > { %v6208_v19 = vshrl.u32 %v6207_v17, 23  ;;  %v5658_v51 = vshll.u32 %v5657_v61, 23  ;;  %v5697_v45 = vshrl.u32 %v5696_v40, 5  ;;  %vm5374_vm2 = vcmp.lt.s32.totalorder %v14497_v42, 0 }
 0x6a2   : > { %v5537_v14 = vadd.s32 536870912, %v5536_v6  ;;  %v5699_v11 = vsub.s32 32, %v5698_v32  ;;  %v5701_v53 = vshll.u32 %v17349_v22, %v5698_v32  ;;  %v5704_v48 = vshll.u32 %v17350_v31, %v5698_v32  ;;  %v14959_v5 = vpop.eup %9693 }
 0x6a3   : > { %17494 = vst [vmem:[#allocation107_spill] sm:$0xff] %v14959_v5  ;;  %v5707_v1 = vshll.u32 %v17351_v8, %v5698_v32  ;;  %v5710_v17 = vshll.u32 %v16967_v43, %v5698_v32  ;;  %v5713_v40 = vshll.u32 %v16968_v29, %v5698_v32  ;;  %v5653_v9 = vshll.u32 %v14881_v10, %v14930_v58 }
 0x6a4   : > { %v14961_v39 = vshrl.u32 %v5537_v14, 30  ;;  %v5702_v0 = vshrl.u32 %v17350_v31, %v5699_v11  ;;  %v5705_v7 = vshrl.u32 %v17351_v8, %v5699_v11  ;;  %v5708_v33 = vshrl.u32 %v16967_v43, %v5699_v11 }
 0x6a5   : > { %v5711_v61 = vshrl.u32 %v16968_v29, %v5699_v11  ;;  %v14970_v16 = vpop.eup %9695  ;;  %v5714_v54 = vshrl.u32 %v16969_v62, %v5699_v11  ;;  %v5654_v34 = vshrl.u32 %v5636_v25, %v5652_v56  ;;  %v17497_v18 = vand.u32 2147483647, %v14486_v49 }
 0x6a6   : > { %17495 = vst [vmem:[#allocation104_spill] sm:$0xff] %v14961_v39  ;;  %17496 = vst [vmem:[#allocation84_spill] sm:$0xff] %v14970_v16  ;;  %v5539_v44 = vshll.u32 %v14961_v39, 30  ;;  %v5703_v14 = vor.u32 %v5702_v0, %v5701_v53  ;;  %v5706_v13 = vor.u32 %v5705_v7, %v5704_v48  ;;  %v5709_v28 = vor.u32 %v5708_v33, %v5707_v1  ;;  %v15003_v39 = vpop.f32.mrb[29].mxu1 }
 0x6a7   : > { %v5712_v41 = vor.u32 %v5711_v61, %v5710_v17  ;;  %vm14979_vm14 = vcmp.le.f32.partialorder %v17497_v18, 0.7853982  ;;  %v17498_v32 = vmov 0  ;;  %v5715_v53 = vor.u32 %v5714_v54, %v5713_v40 }
 0x6a8   : > { %v17499_v32 = vsel %vm14979_vm14, 4294967295, %v17498_v32  ;;  %v14983_v5 = vsub.s32 %v5536_v6, %v5539_v44  ;;  %vm5716_vm4 = vcmp.lt.s32.totalorder %v5697_v45, 1  ;;  %v8994_v48 = vadd.s32 4294967169, %v6208_v19 }
 0x6a9   : > { %17500 = vst [vmem:[#allocation88_spill] sm:$0xff] %v17499_v32  ;;  %v5659_v0 = vor.u32 4788187, %v5658_v51  ;;  %v5700_v7 = vshrl.u32 %v17349_v22, %v5699_v11  ;;  %vm5719_vm13 = vcmp.lt.s32.totalorder %v5697_v45, 4  ;;  %v5724_v10 = vsel %vm5716_vm4, %v5703_v14, %v5706_v13 }
 0x6aa   : > { %v5542_v58 = vsub.s32 0, %v14983_v5  ;;  %vm5718_vm6 = vcmp.lt.s32.totalorder %v5697_v45, 3  ;;  %v5721_v25 = vsel %vm5719_vm13, %v5709_v28, 2102212464  ;;  %v5725_v56 = vsel %vm5719_vm13, %v5712_v41, 920167782 }
 0x6ab   : > { %v17501_v18 = vand.u32 2147483647, %v14497_v42  ;;  %vm5717_vm3 = vcmp.lt.s32.totalorder %v5697_v45, 2  ;;  %v5726_v54 = vsel %vm5718_vm6, %v5709_v28, %v5725_v56  ;;  %v5728_v6 = vsel %vm5716_vm4, %v5706_v13, %v5709_v28 }
 0x6ac   : > { %v5729_v44 = vsel %vm5719_vm13, %v5715_v53, 1326507024  ;;  %v5655_v11 = vor.u32 %v5654_v34, %v5653_v9  ;;  %v8967_v19 = vmin.u32 %v5542_v58, %v14983_v5  ;;  %v5720_v51 = vsel %vm5716_vm4, %v5700_v7, %v5703_v14 }
 0x6ad   : > { %vm14990_vm10 = vcmp.le.f32.partialorder %v17501_v18, 0.7853982  ;;  %v5727_v33 = vsel %vm5717_vm3, %v5724_v10, %v5726_v54  ;;  %v5722_v17 = vsel %vm5718_vm6, %v5706_v13, %v5721_v25  ;;  %v5730_v61 = vsel %vm5718_vm6, %v5712_v41, %v5729_v44 }
 0x6ae   : > { %v14999_v40 = vmul.u32.u64.low %v14953_v47, %v5727_v33  ;;  %v15000_v18 = vmul.u32.u64.high %v14953_v47, %v5727_v33, %v14999_v40  ;;  %v5660_v56 = vand.u32 2147483647, %v5659_v0  ;;  %v5544_v16 = vclz %v8967_v19 }
 0x6af   : > { %v5731_v28 = vsel %vm5717_vm3, %v5728_v6, %v5730_v61  ;;  %v17504_v34 = vand.u32 2147483647, %v14920_v46  ;;  %v6214_v13 = vadd.s32 1, %v8994_v48  ;;  %v15014_v41 = vadd.f32 %v14456_v27, %v17492_v60 }
 0x6b0   : > { %v15009_v14 = vmul.u32.u64.low %v14953_v47, %v5731_v28  ;;  %v15010_v53 = vmul.u32.u64.high %v14953_v47, %v5731_v28, %v15009_v14  ;;  %v17506_v7 = vsub.s32 4, %v14755_v35  ;;  %v5662_v10 = vcvt.s32.f32 %v5655_v11 }
 0x6b1   : > { %v6211_v9 = vand.u32 8388607, %v17504_v34  ;;  %17505 = vst [vmem:[#allocation8_spill] sm:$0xff] %v15014_v41  ;;  %v8968_v58 = vadd.s32 4294967294, %v5544_v16  ;;  %v5723_v25 = vsel %vm5717_vm3, %v5720_v51, %v5722_v17  ;;  %v15028_v48 = vsel %vm14979_vm14, %v14486_v49, %v14947_v38 }
 0x6b2   : > { %v15021_v0 = vsel %vm5374_vm2, %v17506_v7, %v14755_v35  ;;  %v17507_v27 = vand.u32 2147483647, %v14935_v55  ;;  %v17508_v54 = vcvt.s32.f32 %v14933_v15  ;;  %v5742_v44 = vadd.s32 1, %v15000_v18 }
 0x6b3   : > { %vm6215_vm6 = vcmp.gt.s32.totalorder %v6214_v13, 0  ;;  %v15037_v35 = vmul.f32 %v5662_v10, %v5660_v56  ;;  %vm8969_vm4 = vcmp.lt.s32.totalorder %v8968_v58, 0  ;;  %v6212_v16 = vor.u32 8388608, %v6211_v9 }
 0x6b4   : > { %v15034_v6 = vmul.f32 %v17508_v54, %v17507_v27  ;;  %v6216_v45 = vsel %vm6215_vm6, %v6214_v13, 0  ;;  %v15039_v11 = vsel %vm8969_vm4, 0, %v8968_v58  ;;  %v5739_v19 = vmul.u32 %v14953_v47, %v5723_v25 }
 0x6b5   : > { %vm5741_vm3 = vc.u32 %v15010_v53, %v14999_v40  ;;  %v6415_v55 = vand.u32 2139095040, %v15014_v41  ;;  %v5552_v38 = vsub.s32 4294967266, %v15039_v11  ;;  %v15050_v33 = vshrl.u32 %v6216_v45, 5 }
 0x6b6   : > { %v5743_v51 = vsel %vm5741_vm3, %v5742_v44, %v15000_v18  ;;  %9697 = vcosq.f32 %v15028_v48  ;;  %v5666_v17 = vsub.s32 4, %v14863_v59  ;;  %v6218_v61 = vand.u32 31, %v6216_v45 }
 0x6b7   : > { %v5744_v47 = vadd.s32 %v5743_v51, %v5739_v19  ;;  %v5456_v56 = vxor.u32 2147483648, %v15034_v6  ;;  %v5664_v28 = vxor.u32 2147483648, %v15037_v35  ;;  %v5532_v34 = vadd.s32 %v14903_v26, %v14911_v12 }
 0x6b8   : > { %v15058_v9 = vshll.u32 %v6212_v16, 8  ;;  %v5548_v14 = vsub.s32 32, %v15039_v11  ;;  %v6219_v13 = vsub.s32 32, %v6218_v61  ;;  %v6416_v7 = vshrl.u32 %v6415_v55, 23 }
 0x6b9   : > { %v5745_v18 = vadd.s32 536870912, %v5744_v47  ;;  %v5553_v10 = vadd.s32 127, %v5552_v38  ;;  %v6221_v58 = vshll.u32 %v17349_v22, %v6218_v61  ;;  %vm6236_vm13 = vcmp.lt.s32.totalorder %v15050_v33, 1 }
 0x6ba   : > { %vm6237_vm6 = vcmp.lt.s32.totalorder %v15050_v33, 2  ;;  %v6222_v26 = vshrl.u32 %v17350_v31, %v6219_v13  ;;  %v6224_v12 = vshll.u32 %v17350_v31, %v6218_v61  ;;  %v6225_v27 = vshrl.u32 %v17351_v8, %v6219_v13 }
 0x6bb   : > { %v15065_v25 = vshrl.u32 %v5745_v18, 30  ;;  %v6227_v54 = vshll.u32 %v17351_v8, %v6218_v61  ;;  %v6228_v44 = vshrl.u32 %v16967_v43, %v6219_v13  ;;  %v6230_v16 = vshll.u32 %v16967_v43, %v6218_v61 }
 0x6bc   : > { %v6231_v45 = vshrl.u32 %v16968_v29, %v6219_v13  ;;  %v6223_v55 = vor.u32 %v6222_v26, %v6221_v58  ;;  %v6226_v38 = vor.u32 %v6225_v27, %v6224_v12  ;;  %vm6238_vm3 = vcmp.lt.s32.totalorder %v15050_v33, 3 }
 0x6bd   : > { %17509 = vst [vmem:[#allocation87_spill] sm:$0xff] %v15065_v25  ;;  %v5747_v19 = vshll.u32 %v15065_v25, 30  ;;  %v17510_v51 = vand.u32 2147483647, %v14558_v3  ;;  %v6229_v15 = vor.u32 %v6228_v44, %v6227_v54  ;;  %v6233_v49 = vshll.u32 %v16968_v29, %v6218_v61 }
 0x6be   : > { %v6232_v32 = vor.u32 %v6231_v45, %v6230_v16  ;;  %v6234_v21 = vshrl.u32 %v16969_v62, %v6219_v13  ;;  %v6220_v25 = vshrl.u32 %v17349_v22, %v6219_v13  ;;  %vm6239_vm4 = vcmp.lt.s32.totalorder %v15050_v33, 4 }
 0x6bf   : > { %vm15078_vm12 = vcmp.le.f32.partialorder %v17510_v51, 0.7853982  ;;  %v15084_v24 = vsub.s32 %v5744_v47, %v5747_v19  ;;  %v6244_v58 = vsel %vm6236_vm13, %v6223_v55, %v6226_v38  ;;  %v5554_v26 = vshll.u32 %v5553_v10, 23 }
 0x6c0   : > { %v6235_v12 = vor.u32 %v6234_v21, %v6233_v49  ;;  %v6241_v27 = vsel %vm6239_vm4, %v6229_v15, 2102212464  ;;  %v6245_v51 = vsel %vm6239_vm4, %v6232_v32, 920167782  ;;  %v15090_v20 = vpop.eup %9697  ;;  %v6240_v61 = vsel %vm6236_vm13, %v6220_v25, %v6223_v55 }
 0x6c1   : > { %v5750_v54 = vsub.s32 0, %v15084_v24  ;;  %v6246_v47 = vsel %vm6238_vm3, %v6229_v15, %v6245_v51  ;;  %v6248_v13 = vsel %vm6236_vm13, %v6226_v38, %v6229_v15  ;;  %v6242_v44 = vsel %vm6238_vm3, %v6226_v38, %v6241_v27 }
 0x6c2   : > { %v6247_v49 = vsel %vm6237_vm6, %v6244_v58, %v6246_v47  ;;  %v6249_v21 = vsel %vm6239_vm4, %v6235_v12, 1326507024  ;;  %v9002_v10 = vadd.s32 4294967169, %v6416_v7  ;;  %v5457_v15 = vsel %vm5374_vm2, %v5456_v56, %v15034_v6 }
 0x6c3   : > { %v8975_v16 = vmin.u32 %v5750_v54, %v15084_v24  ;;  %v6250_v45 = vsel %vm6238_vm3, %v6232_v32, %v6249_v21  ;;  %v15107_v25 = vmul.u32.u64.low %v15058_v9, %v6247_v49  ;;  %v15108_v19 = vmul.u32.u64.high %v15058_v9, %v6247_v49, %v15107_v25 }
 0x6c4   : > { %vm17513_vm13 = vcmp.lt.s32.totalorder %v14558_v3, 0  ;;  %v5550_v38 = vshrl.u32 %v5532_v34, %v5548_v14  ;;  %v6251_v7 = vsel %vm6237_vm6, %v6248_v13, %v6250_v45  ;;  %v5549_v6 = vshll.u32 %v14983_v5, %v15039_v11 }
 0x6c5   : > { %v5667_v55 = vsel %vm17513_vm13, %v5666_v17, %v14863_v59  ;;  %vm17514_vm4 = vmmov %vm17513_vm13  ;;  %v5752_v58 = vclz %v8975_v16  ;;  %v15123_v12 = vmul.u32.u64.low %v15058_v9, %v6251_v7  ;;  %v15124_v27 = vmul.u32.u64.high %v15058_v9, %v6251_v7, %v15123_v12 }
 0x6c6   : > { %v5665_v32 = vsel %vm17514_vm4, %v5664_v28, %v15037_v35  ;;  %v5555_v56 = vor.u32 4788187, %v5554_v26  ;;  %v6243_v59 = vsel %vm6237_vm6, %v6240_v61, %v6242_v44  ;;  %v6422_v17 = vadd.s32 1, %v9002_v10  ;;  %v15146_v26 = vpop.f32.mrb[30].mxu0 }
 0x6c7   : > { %9699 = vsinq.f32 %v15028_v48  ;;  %v5669_v34 = vsel %vm15078_vm12, 0, %v5667_v55  ;;  %v8976_v14 = vadd.s32 4294967294, %v5752_v58  ;;  %v6262_v35 = vadd.s32 1, %v15108_v19 }
 0x6c8   : > { %v5460_v28 = vsel %vm14990_vm10, %v14497_v42, %v5457_v15  ;;  %v5551_v51 = vor.u32 %v5550_v38, %v5549_v6  ;;  %v16879_v5 = vand.u32 2147483647, %v15014_v41  ;;  %vm6423_vm2 = vcmp.gt.s32.totalorder %v6422_v17, 0 }
 0x6c9   : > { %v15141_v11 = vsel %vm15078_vm12, %v14558_v3, %v5665_v32  ;;  %v6259_v48 = vmul.u32 %v15058_v9, %v6243_v59  ;;  %vm6261_vm6 = vc.u32 %v15124_v27, %v15107_v25  ;;  %v6424_v33 = vsel %vm6423_vm2, %v6422_v17, 0 }
 0x6ca   : > { %v5556_v54 = vand.u32 2147483647, %v5555_v56  ;;  %vm8977_vm3 = vcmp.lt.s32.totalorder %v8976_v14, 0  ;;  %v6263_v61 = vsel %vm6261_vm6, %v6262_v35, %v15108_v19  ;;  %v6426_v47 = vand.u32 31, %v6424_v33 }
 0x6cb   : > { %v17515_v13 = vsel %vm14781_vm7, 0, %v14840_v4  ;;  %9701 = vcosq.f32 %v5460_v28  ;;  %v17516_v9 = vsel %vm14990_vm10, 0, %v15021_v0  ;;  %v6264_v49 = vadd.s32 %v6263_v61, %v6259_v48 }
 0x6cc   : > { %v15153_v18 = vadd.s32 3, %v17515_v13  ;;  %v15159_v44 = vadd.s32 3, %v17516_v9  ;;  %9703 = vsinq.f32 %v5460_v28  ;;  %v15161_v21 = vadd.s32 3, %v5669_v34 }
 0x6cd   : > { %v5558_v10 = vcvt.s32.f32 %v5551_v51  ;;  %v6427_v16 = vsub.s32 32, %v6426_v47  ;;  %9705 = vcosq.f32 %v15141_v11  ;;  %v15164_v63 = vsel %vm8977_vm3, 0, %v8976_v14 }
 0x6ce   : > { %17517 = vst [vmem:[#allocation92_spill] sm:$0xff] %v15159_v44  ;;  %17518 = vst [vmem:[#allocation78_spill] sm:$0xff] %v15161_v21  ;;  %v6265_v4 = vadd.s32 536870912, %v6264_v49  ;;  %v15168_v45 = vadd.f32 %v14562_v50, %v17492_v60  ;;  %v6419_v0 = vand.u32 8388607, %v16879_v5  ;;  %v6429_v38 = vshll.u32 %v17349_v22, %v6426_v47 }
 0x6cf   : > { %v15170_v1 = vmul.f32 %v5558_v10, %v5556_v54  ;;  %v6430_v19 = vshrl.u32 %v17350_v31, %v6427_v16  ;;  %v6433_v15 = vshrl.u32 %v17351_v8, %v6427_v16  ;;  %v6436_v7 = vshrl.u32 %v16967_v43, %v6427_v16 }
 0x6d0   : > { %v15176_v55 = vshrl.u32 %v6265_v4, 30  ;;  %v6439_v32 = vshrl.u32 %v16968_v29, %v6427_v16  ;;  %v5740_v50 = vadd.s32 %v14999_v40, %v15010_v53  ;;  %v5760_v58 = vsub.s32 4294967266, %v15164_v63 }
 0x6d1   : > { %v6432_v12 = vshll.u32 %v17350_v31, %v6426_v47  ;;  %v6438_v6 = vshll.u32 %v16967_v43, %v6426_v47  ;;  %v15186_v56 = vpop.eup %9699  ;;  %v6425_v17 = vshrl.u32 %v6424_v33, 5  ;;  %v6431_v34 = vor.u32 %v6430_v19, %v6429_v38 }
 0x6d2   : > { %v6267_v59 = vshll.u32 %v15176_v55, 30  ;;  %v6435_v14 = vshll.u32 %v17351_v8, %v6426_v47  ;;  %v6441_v51 = vshll.u32 %v16968_v29, %v6426_v47  ;;  %v6442_v40 = vshrl.u32 %v16969_v62, %v6427_v16 }
 0x6d3   : > { %v6434_v35 = vor.u32 %v6433_v15, %v6432_v12  ;;  %v6440_v28 = vor.u32 %v6439_v32, %v6438_v6  ;;  %vm16888_vm12 = vcmp.lt.s32.totalorder %v14740_v57, 0  ;;  %v5560_v53 = vxor.u32 2147483648, %v15170_v1 }
 0x6d4   : > { %v15194_v48 = vsub.s32 %v6264_v49, %v6267_v59  ;;  %v6420_v54 = vor.u32 8388608, %v6419_v0  ;;  %v6437_v61 = vor.u32 %v6436_v7, %v6435_v14  ;;  %v5756_v13 = vsub.s32 32, %v15164_v63 }
 0x6d5   : > { %v5761_v33 = vadd.s32 127, %v5760_v58  ;;  %v6443_v9 = vor.u32 %v6442_v40, %v6441_v51  ;;  %v6311_v10 = vand.u32 2139095040, %v15168_v45  ;;  %v15198_v4 = vpop.eup %9701  ;;  %v6428_v19 = vshrl.u32 %v17349_v22, %v6427_v16 }
 0x6d6   : > { %17519 = vst [vmem:[#allocation101_spill] sm:$0xff] %v15198_v4  ;;  %v6270_v47 = vsub.s32 0, %v15194_v48  ;;  %vm6444_vm7 = vcmp.lt.s32.totalorder %v6425_v17, 1  ;;  %vm6447_vm10 = vcmp.lt.s32.totalorder %v6425_v17, 4  ;;  %v15202_v15 = vpop.eup %9703  ;;  %v17521_v49 = vand.u32 2147483647, %v14740_v57 }
 0x6d7   : > { %17520 = vst [vmem:[#allocation99_spill] sm:$0xff] %v15202_v15  ;;  %v17522_v0 = vmov 0  ;;  %vm6445_vm4 = vcmp.lt.s32.totalorder %v6425_v17, 2  ;;  %vm6446_vm2 = vcmp.lt.s32.totalorder %v6425_v17, 3  ;;  %v6452_v38 = vsel %vm6444_vm7, %v6431_v34, %v6434_v35  ;;  %v15211_v32 = vpop.eup %9705 }
 0x6d8   : > { %vm15206_vm13 = vcmp.le.f32.partialorder %v17521_v49, 0.7853982  ;;  %v6453_v7 = vsel %vm6447_vm10, %v6440_v28, 920167782  ;;  %17524 = vst [vmem:[#allocation91_spill] sm:$0xff] %v15211_v32  ;;  %v8995_v58 = vmin.u32 %v6270_v47, %v15194_v48  ;;  %v6456_v6 = vsel %vm6444_vm7, %v6434_v35, %v6437_v61 }
 0x6d9   : > { %v17523_v0 = vsel %vm15206_vm13, 4294967295, %v17522_v0  ;;  %v6449_v16 = vsel %vm6447_vm10, %v6437_v61, 2102212464  ;;  %v6454_v12 = vsel %vm6446_vm2, %v6437_v61, %v6453_v7  ;;  %v6457_v14 = vsel %vm6447_vm10, %v6443_v9, 1326507024 }
 0x6da   : > { %v6455_v59 = vsel %vm6445_vm4, %v6452_v38, %v6454_v12  ;;  %v6460_v51 = vshll.u32 %v6420_v54, 8  ;;  %v6312_v40 = vshrl.u32 %v6311_v10, 23  ;;  %v5758_v49 = vshrl.u32 %v5740_v50, %v5756_v13  ;;  %v15228_v54 = vpop.f32.mrb[30].mxu1 }
 0x6db   : > { %v6272_v5 = vclz %v8995_v58  ;;  %v6448_v3 = vsel %vm6444_vm7, %v6428_v19, %v6431_v34  ;;  %v6458_v21 = vsel %vm6446_vm2, %v6440_v28, %v6457_v14  ;;  %v6450_v32 = vsel %vm6446_vm2, %v6434_v35, %v6449_v16 }
 0x6dc   : > { %v6459_v47 = vsel %vm6445_vm4, %v6456_v6, %v6458_v21  ;;  %v15221_v42 = vmul.u32.u64.low %v6460_v51, %v6455_v59  ;;  %v15222_v4 = vmul.u32.u64.high %v6460_v51, %v6455_v59, %v15221_v42  ;;  %v5762_v61 = vshll.u32 %v5761_v33, 23 }
 0x6dd   : > { %v8996_v7 = vadd.s32 4294967294, %v6272_v5  ;;  %v15225_v38 = vmul.u32.u64.low %v6460_v51, %v6459_v47  ;;  %v15226_v9 = vmul.u32.u64.high %v6460_v51, %v6459_v47, %v15225_v38  ;;  %9707 = vsinq.f32 %v15141_v11 }
 0x6de   : > { %v5561_v50 = vsel %vm16888_vm12, %v5560_v53, %v15170_v1  ;;  %vm16889_vm6 = vcmp.lt.s32.totalorder %v14920_v46, 0  ;;  %v8998_v21 = vadd.s32 4294967169, %v6312_v40  ;;  %v5757_v34 = vshll.u32 %v15084_v24, %v15164_v63 }
 0x6df   : > { %vm8997_vm3 = vcmp.lt.s32.totalorder %v8996_v7, 0  ;;  %v6451_v5 = vsel %vm6445_vm4, %v6448_v3, %v6450_v32  ;;  %v15240_v35 = vadd.f32 %v14648_v36, %v17492_v60  ;;  %v6470_v11 = vadd.s32 1, %v15222_v4 }
 0x6e0   : > { %v15242_v28 = vsel %vm8997_vm3, 0, %v8996_v7  ;;  %v16885_v13 = vand.u32 2147483647, %v15168_v45  ;;  %v6318_v1 = vadd.s32 1, %v8998_v21  ;;  %v15249_v53 = vsel %vm15206_vm13, %v14740_v57, %v5561_v50 }
 0x6e1   : > { %17525 = vst [vmem:[#allocation94_spill] sm:$0xff] %v15240_v35  ;;  %v5759_v24 = vor.u32 %v5758_v49, %v5757_v34  ;;  %v5763_v63 = vor.u32 4788187, %v5762_v61  ;;  %v6280_v3 = vsub.s32 4294967266, %v15242_v28  ;;  %v6290_v17 = vsub.s32 4, %v15176_v55 }
 0x6e2   : > { %v6467_v36 = vmul.u32 %v6460_v51, %v6451_v5  ;;  %vm6469_vm7 = vc.u32 %v15226_v9, %v15221_v42  ;;  %vm6319_vm10 = vcmp.gt.s32.totalorder %v6318_v1, 0  ;;  %v6519_v19 = vand.u32 2139095040, %v15240_v35 }
 0x6e3   : > { %v6281_v60 = vadd.s32 127, %v6280_v3  ;;  %v6471_v33 = vsel %vm6469_vm7, %v6470_v11, %v15222_v4  ;;  %v6320_v10 = vsel %vm6319_vm10, %v6318_v1, 0  ;;  %9709 = vcosq.f32 %v15249_v53 }
 0x6e4   : > { %v6472_v32 = vadd.s32 %v6471_v33, %v6467_v36  ;;  %v6315_v58 = vand.u32 8388607, %v16885_v13  ;;  %v6322_v16 = vand.u32 31, %v6320_v10  ;;  %v5764_v12 = vand.u32 2147483647, %v5763_v63 }
 0x6e5   : > { %v5766_v6 = vcvt.s32.f32 %v5759_v24  ;;  %v6260_v59 = vadd.s32 %v15107_v25, %v15124_v27  ;;  %v15264_v14 = vadd.f32 %v14735_v52, %v13750_v23  ;;  %v15269_v4 = vsel %vm16889_vm6, %v6290_v17, %v15176_v55 }
 0x6e6   : > { %v6473_v51 = vadd.s32 536870912, %v6472_v32  ;;  %v6323_v40 = vsub.s32 32, %v6322_v16  ;;  %v6276_v47 = vsub.s32 32, %v15242_v28  ;;  %v6282_v61 = vshll.u32 %v6281_v60, 23 }
 0x6e7   : > { %17526 = vst [vmem:[#allocation89_spill] sm:$0xff] %v15264_v14  ;;  %v6325_v7 = vshll.u32 %v17349_v22, %v6322_v16  ;;  %v6520_v38 = vshrl.u32 %v6519_v19, 23  ;;  %v15274_v25 = vpop.eup %9707  ;;  %v6328_v50 = vshll.u32 %v17350_v31, %v6322_v16  ;;  %v6331_v21 = vshll.u32 %v17351_v8, %v6322_v16 }
 0x6e8   : > { %17527 = vst [vmem:[#allocation100_spill] sm:$0xff] %v15274_v25  ;;  %v15276_v27 = vshrl.u32 %v6473_v51, 30  ;;  %v6326_v52 = vshrl.u32 %v17350_v31, %v6323_v40  ;;  %v6329_v55 = vshrl.u32 %v17351_v8, %v6323_v40  ;;  %v6332_v34 = vshrl.u32 %v16967_v43, %v6323_v40 }
 0x6e9   : > { %v6334_v5 = vshll.u32 %v16967_v43, %v6322_v16  ;;  %v6335_v11 = vshrl.u32 %v16968_v29, %v6323_v40  ;;  %v15285_v1 = vmul.f32 %v5766_v6, %v5764_v12  ;;  %v6321_v63 = vshrl.u32 %v6320_v10, 5 }
 0x6ea   : > { %v6475_v24 = vshll.u32 %v15276_v27, 30  ;;  %v6327_v3 = vor.u32 %v6326_v52, %v6325_v7  ;;  %v6330_v17 = vor.u32 %v6329_v55, %v6328_v50  ;;  %v6333_v36 = vor.u32 %v6332_v34, %v6331_v21 }
 0x6eb   : > { %v6336_v60 = vor.u32 %v6335_v11, %v6334_v5  ;;  %v6338_v33 = vshrl.u32 %v16969_v62, %v6323_v40  ;;  %v6277_v19 = vshll.u32 %v15194_v48, %v15242_v28  ;;  %v6316_v13 = vor.u32 8388608, %v6315_v58 }
 0x6ec   : > { %v15291_v51 = vsub.s32 %v6472_v32, %v6475_v24  ;;  %v6337_v49 = vshll.u32 %v16968_v29, %v6322_v16  ;;  %v6278_v25 = vshrl.u32 %v6260_v59, %v6276_v47  ;;  %v6283_v12 = vor.u32 4788187, %v6282_v61 }
 0x6ed   : > { %v9006_v6 = vadd.s32 4294967169, %v6520_v38  ;;  %v17528_v15 = vand.u32 2147483647, %v15240_v35  ;;  %v15296_v7 = vpop.eup %9709  ;;  %vm6340_vm4 = vcmp.lt.s32.totalorder %v6321_v63, 1  ;;  %vm6343_vm2 = vcmp.lt.s32.totalorder %v6321_v63, 4 }
 0x6ee   : > { %17529 = vst [vmem:[#allocation103_spill] sm:$0xff] %v15296_v7  ;;  %v6478_v52 = vsub.s32 0, %v15291_v51  ;;  %v6339_v50 = vor.u32 %v6338_v33, %v6337_v49  ;;  %vm6342_vm3 = vcmp.lt.s32.totalorder %v6321_v63, 3  ;;  %v6345_v48 = vsel %vm6343_vm2, %v6333_v36, 2102212464 }
 0x6ef   : > { %v6523_v10 = vand.u32 8388607, %v17528_v15  ;;  %v6348_v28 = vsel %vm6340_vm4, %v6327_v3, %v6330_v17  ;;  %v6349_v32 = vsel %vm6343_vm2, %v6336_v60, 920167782  ;;  %v6324_v16 = vshrl.u32 %v17349_v22, %v6323_v40 }
 0x6f0   : > { %v9003_v58 = vmin.u32 %v6478_v52, %v15291_v51  ;;  %vm6341_vm7 = vcmp.lt.s32.totalorder %v6321_v63, 2  ;;  %v6350_v15 = vsel %vm6342_vm3, %v6333_v36, %v6349_v32  ;;  %v6279_v59 = vor.u32 %v6278_v25, %v6277_v19  ;;  %v15321_v32 = vpop.f32.mrb[31].mxu0 }
 0x6f1   : > { %v6351_v47 = vsel %vm6341_vm7, %v6348_v28, %v6350_v15  ;;  %v6352_v61 = vsel %vm6340_vm4, %v6330_v17, %v6333_v36  ;;  %v6356_v49 = vshll.u32 %v6316_v13, 8  ;;  %v6344_v55 = vsel %vm6340_vm4, %v6324_v16, %v6327_v3 }
 0x6f2   : > { %v6480_v38 = vclz %v9003_v58  ;;  %v6346_v21 = vsel %vm6342_vm3, %v6330_v17, %v6345_v48  ;;  %v6353_v34 = vsel %vm6343_vm2, %v6339_v50, 1326507024  ;;  %v6526_v40 = vadd.s32 1, %v9006_v6 }
 0x6f3   : > { %v6354_v5 = vsel %vm6342_vm3, %v6336_v60, %v6353_v34  ;;  %v15308_v11 = vmul.u32.u64.low %v6356_v49, %v6351_v47  ;;  %v15309_v24 = vmul.u32.u64.high %v6356_v49, %v6351_v47, %v15308_v11  ;;  %v6284_v33 = vand.u32 2147483647, %v6283_v12 }
 0x6f4   : > { %v9004_v52 = vadd.s32 4294967294, %v6480_v38  ;;  %v6355_v25 = vsel %vm6341_vm7, %v6352_v61, %v6354_v5  ;;  %v6524_v19 = vor.u32 8388608, %v6523_v10  ;;  %v6347_v13 = vsel %vm6341_vm7, %v6344_v55, %v6346_v21 }
 0x6f5   : > { %v15314_v36 = vmul.u32.u64.low %v6356_v49, %v6355_v25  ;;  %v15315_v3 = vmul.u32.u64.high %v6356_v49, %v6355_v25, %v15314_v36  ;;  %vm6527_vm10 = vcmp.gt.s32.totalorder %v6526_v40, 0  ;;  %v5768_v17 = vxor.u32 2147483648, %v15285_v1 }
 0x6f6   : > { %v6286_v50 = vcvt.s32.f32 %v6279_v59  ;;  %vm9005_vm4 = vcmp.lt.s32.totalorder %v9004_v52, 0  ;;  %v6528_v60 = vsel %vm6527_vm10, %v6526_v40, 0  ;;  %v6468_v48 = vadd.s32 %v15221_v42, %v15226_v9 }
 0x6f7   : > { %v6483_v6 = vsel %vm9005_vm4, 0, %v9004_v52  ;;  %v6366_v12 = vadd.s32 1, %v15309_v24  ;;  %v6530_v28 = vand.u32 31, %v6528_v60  ;;  %v6363_v16 = vmul.u32 %v6356_v49, %v6347_v13 }
 0x6f8   : > { %v15323_v63 = vmul.f32 %v6286_v50, %v6284_v33  ;;  %v6484_v10 = vsub.s32 32, %v6483_v6  ;;  %v6488_v58 = vsub.s32 4294967266, %v6483_v6  ;;  %vm6365_vm2 = vc.u32 %v15315_v3, %v15308_v11 }
 0x6f9   : > { %v6531_v15 = vsub.s32 32, %v6530_v28  ;;  %v15327_v59 = vshll.u32 %v6524_v19, 8  ;;  %v7039_v47 = vand.u32 2139095040, %v15264_v14  ;;  %v6367_v9 = vsel %vm6365_vm2, %v6366_v12, %v15309_v24 }
 0x6fa   : > { %v6489_v42 = vadd.s32 127, %v6488_v58  ;;  %v6529_v61 = vshrl.u32 %v6528_v60, 5  ;;  %v6533_v38 = vshll.u32 %v17349_v22, %v6530_v28  ;;  %v6368_v55 = vadd.s32 %v6367_v9, %v6363_v16 }
 0x6fb   : > { %v6534_v21 = vshrl.u32 %v17350_v31, %v6531_v15  ;;  %v6536_v34 = vshll.u32 %v17350_v31, %v6530_v28  ;;  %v6537_v49 = vshrl.u32 %v17351_v8, %v6531_v15  ;;  %v6486_v5 = vshrl.u32 %v6468_v48, %v6484_v10 }
 0x6fc   : > { %v6490_v40 = vshll.u32 %v6489_v42, 23  ;;  %v6539_v33 = vshll.u32 %v17351_v8, %v6530_v28  ;;  %v6540_v52 = vshrl.u32 %v16967_v43, %v6531_v15  ;;  %vm16898_vm3 = vcmp.lt.s32.totalorder %v14856_v2, 0 }
 0x6fd   : > { %v6485_v24 = vshll.u32 %v15291_v51, %v6483_v6  ;;  %v6369_v25 = vadd.s32 536870912, %v6368_v55  ;;  %v6535_v19 = vor.u32 %v6534_v21, %v6533_v38  ;;  %v6538_v13 = vor.u32 %v6537_v49, %v6536_v34 }
 0x6fe   : > { %v6491_v36 = vor.u32 4788187, %v6490_v40  ;;  %v6541_v50 = vor.u32 %v6540_v52, %v6539_v33  ;;  %v6542_v60 = vshll.u32 %v16967_v43, %v6530_v28  ;;  %v6543_v12 = vshrl.u32 %v16968_v29, %v6531_v15 }
 0x6ff   : > { %v15341_v58 = vshrl.u32 %v6369_v25, 30  ;;  %v6545_v48 = vshll.u32 %v16968_v29, %v6530_v28  ;;  %v6546_v10 = vshrl.u32 %v16969_v62, %v6531_v15  ;;  %v7040_v16 = vshrl.u32 %v7039_v47, 23 }
 0x700   : > { %v17530_v42 = vand.u32 2147483647, %v14920_v46  ;;  %v6487_v6 = vor.u32 %v6486_v5, %v6485_v24  ;;  %v6532_v9 = vshrl.u32 %v17349_v22, %v6531_v15  ;;  %v6544_v38 = vor.u32 %v6543_v12, %v6542_v60 }
 0x701   : > { %vm6548_vm10 = vcmp.lt.s32.totalorder %v6529_v61, 1  ;;  %v17533_v21 = vand.u32 2147483647, %v14856_v2  ;;  %v17534_v34 = vmov 0  ;;  %v6492_v28 = vand.u32 2147483647, %v6491_v36 }
 0x702   : > { %vm15347_vm7 = vcmp.le.f32.partialorder %v17530_v42, 0.7853982  ;;  %v6371_v47 = vshll.u32 %v15341_v58, 30  ;;  %v6547_v49 = vor.u32 %v6546_v10, %v6545_v48  ;;  %vm6551_vm2 = vcmp.lt.s32.totalorder %v6529_v61, 4 }
 0x703   : > { %vm15354_vm4 = vcmp.le.f32.partialorder %v17533_v21, 0.7853982  ;;  %vm6550_vm12 = vcmp.lt.s32.totalorder %v6529_v61, 3  ;;  %v6553_v40 = vsel %vm6551_vm2, %v6541_v50, 2102212464  ;;  %v6556_v33 = vsel %vm6548_vm10, %v6535_v19, %v6538_v13 }
 0x704   : > { %v17535_v34 = vsel %vm15354_vm4, 4294967295, %v17534_v34  ;;  %v6557_v52 = vsel %vm6551_vm2, %v6544_v38, 920167782  ;;  %v15359_v5 = vsub.s32 %v6368_v55, %v6371_v47  ;;  %vm6549_vm6 = vcmp.lt.s32.totalorder %v6529_v61, 2 }
 0x705   : > { %17536 = vst [vmem:[#allocation102_spill] sm:$0xff] %v17535_v34  ;;  %v6558_v15 = vsel %vm6550_vm12, %v6541_v50, %v6557_v52  ;;  %v6560_v24 = vsel %vm6548_vm10, %v6538_v13, %v6541_v50  ;;  %v6552_v25 = vsel %vm6548_vm10, %v6532_v9, %v6535_v19  ;;  %v6554_v60 = vsel %vm6550_vm12, %v6538_v13, %v6553_v40  ;;  %v15380_v40 = vpop.f32.mrb[31].mxu1 }
 0x706   : > { %v6559_v12 = vsel %vm6549_vm6, %v6556_v33, %v6558_v15  ;;  %v6561_v42 = vsel %vm6551_vm2, %v6547_v49, 1326507024  ;;  %v6374_v36 = vsub.s32 0, %v15359_v5  ;;  %v5769_v55 = vsel %vm16898_vm3, %v5768_v17, %v15285_v1 }
 0x707   : > { %v6562_v21 = vsel %vm6550_vm12, %v6544_v38, %v6561_v42  ;;  %v15364_v48 = vmul.u32.u64.low %v15327_v59, %v6559_v12  ;;  %v15365_v10 = vmul.u32.u64.high %v15327_v59, %v6559_v12, %v15364_v48  ;;  %v16890_v13 = vand.u32 2147483647, %v15264_v14 }
 0x708   : > { %v6563_v19 = vsel %vm6549_vm6, %v6560_v24, %v6562_v21  ;;  %v9026_v50 = vadd.s32 4294967169, %v7040_v16  ;;  %v6494_v9 = vcvt.s32.f32 %v6487_v6  ;;  %v8999_v47 = vmin.u32 %v6374_v36, %v15359_v5 }
 0x709   : > { %v15377_v38 = vmul.u32.u64.low %v15327_v59, %v6563_v19  ;;  %v15378_v49 = vmul.u32.u64.high %v15327_v59, %v6563_v19, %v15377_v38  ;;  %9711 = vsinq.f32 %v15249_v53  ;;  %v6288_v33 = vxor.u32 2147483648, %v15323_v63 }
 0x70a   : > { %v6555_v1 = vsel %vm6549_vm6, %v6552_v25, %v6554_v60  ;;  %v7046_v17 = vadd.s32 1, %v9026_v50  ;;  %v15388_v6 = vmul.f32 %v6494_v9, %v6492_v28  ;;  %v6376_v52 = vclz %v8999_v47 }
 0x70b   : > { %v6574_v15 = vadd.s32 1, %v15365_v10  ;;  %v15394_v24 = vsel %vm15354_vm4, %v14856_v2, %v5769_v55  ;;  %v7043_v53 = vand.u32 8388607, %v16890_v13  ;;  %v15400_v61 = vadd.f32 %v14820_v37, %v13750_v23 }
 0x70c   : > { %vm7047_vm12 = vcmp.gt.s32.totalorder %v7046_v17, 0  ;;  %v9000_v25 = vadd.s32 4294967294, %v6376_v52  ;;  %v6571_v28 = vmul.u32 %v15327_v59, %v6555_v1  ;;  %vm6573_vm6 = vc.u32 %v15378_v49, %v15364_v48 }
 0x70d   : > { %17537 = vst [vmem:[#allocation63_spill] sm:$0xff] %v15400_v61  ;;  %v7048_v60 = vsel %vm7047_vm12, %v7046_v17, 0  ;;  %vm17538_vm10 = vcmp.lt.s32.totalorder %v14920_v46, 0  ;;  %v6575_v36 = vsel %vm6573_vm6, %v6574_v15, %v15365_v10  ;;  %v6364_v55 = vadd.s32 %v15308_v11, %v15315_v3 }
 0x70e   : > { %v15408_v12 = vsel %vm17538_vm10, %v6288_v33, %v15323_v63  ;;  %v7050_v21 = vand.u32 31, %v7048_v60  ;;  %vm9001_vm2 = vcmp.lt.s32.totalorder %v9000_v25, 0  ;;  %v6576_v59 = vadd.s32 %v6575_v36, %v6571_v28 }
 0x70f   : > { %v6379_v19 = vsel %vm9001_vm2, 0, %v9000_v25  ;;  %v7044_v50 = vor.u32 8388608, %v7043_v53  ;;  %v7247_v47 = vand.u32 2139095040, %v15400_v61  ;;  %v15416_v1 = vshrl.u32 %v7048_v60, 5 }
 0x710   : > { %v7051_v9 = vsub.s32 32, %v7050_v21  ;;  %v6380_v38 = vsub.s32 32, %v6379_v19  ;;  %v6384_v63 = vsub.s32 4294967266, %v6379_v19  ;;  %v6577_v33 = vadd.s32 536870912, %v6576_v59 }
 0x711   : > { %v7053_v10 = vshll.u32 %v17349_v22, %v7050_v21  ;;  %v7056_v52 = vshll.u32 %v17350_v31, %v7050_v21  ;;  %v6381_v36 = vshll.u32 %v15359_v5, %v6379_v19  ;;  %v7059_v60 = vshll.u32 %v17351_v8, %v7050_v21 }
 0x712   : > { %v7054_v17 = vshrl.u32 %v17350_v31, %v7051_v9  ;;  %v7057_v11 = vshrl.u32 %v17351_v8, %v7051_v9  ;;  %v6382_v3 = vshrl.u32 %v6364_v55, %v6380_v38  ;;  %v6385_v15 = vadd.s32 127, %v6384_v63 }
 0x713   : > { %v15422_v25 = vshrl.u32 %v6577_v33, 30  ;;  %v7060_v53 = vshrl.u32 %v16967_v43, %v7051_v9  ;;  %v15425_v28 = vpop.eup %9711  ;;  %v7062_v13 = vshll.u32 %v16967_v43, %v7050_v21  ;;  %v7063_v42 = vshrl.u32 %v16968_v29, %v7051_v9 }
 0x714   : > { %17540 = vst [vmem:[#allocation81_spill] sm:$0xff] %v15425_v28  ;;  %v6386_v37 = vshll.u32 %v6385_v15, 23  ;;  %v7055_v44 = vor.u32 %v7054_v17, %v7053_v10  ;;  %v7058_v55 = vor.u32 %v7057_v11, %v7056_v52  ;;  %v7065_v33 = vshll.u32 %v16968_v29, %v7050_v21 }
 0x715   : > { %17539 = vst [vmem:[#allocation105_spill] sm:$0xff] %v15422_v25  ;;  %v6579_v16 = vshll.u32 %v15422_v25, 30  ;;  %v7061_v38 = vor.u32 %v7060_v53, %v7059_v60  ;;  %v7064_v63 = vor.u32 %v7063_v42, %v7062_v13  ;;  %v7066_v34 = vshrl.u32 %v16969_v62, %v7051_v9 }
 0x716   : > { %v6383_v5 = vor.u32 %v6382_v3, %v6381_v36  ;;  %v15437_v2 = vshll.u32 %v7044_v50, 8  ;;  %v7248_v7 = vshrl.u32 %v7247_v47, 23  ;;  %v6387_v28 = vor.u32 4788187, %v6386_v37 }
 0x717   : > { %v15435_v19 = vsub.s32 %v6576_v59, %v6579_v16  ;;  %v7052_v15 = vshrl.u32 %v17349_v22, %v7051_v9  ;;  %v7067_v25 = vor.u32 %v7066_v34, %v7065_v33  ;;  %vm7068_vm6 = vcmp.lt.s32.totalorder %v15416_v1, 1 }
 0x718   : > { %vm7070_vm10 = vcmp.lt.s32.totalorder %v15416_v1, 3  ;;  %vm7071_vm2 = vcmp.lt.s32.totalorder %v15416_v1, 4  ;;  %v7076_v42 = vsel %vm7068_vm6, %v7055_v44, %v7058_v55  ;;  %v7080_v59 = vsel %vm7068_vm6, %v7058_v55, %v7061_v38 }
 0x719   : > { %v6582_v13 = vsub.s32 0, %v15435_v19  ;;  %v7073_v16 = vsel %vm7071_vm2, %v7061_v38, 2102212464  ;;  %v7077_v21 = vsel %vm7071_vm2, %v7064_v63, 920167782  ;;  %v6390_v9 = vcvt.s32.f32 %v6383_v5 }
 0x71a   : > { %v7081_v37 = vsel %vm7071_vm2, %v7067_v25, 1326507024  ;;  %v17541_v50 = vand.u32 2147483647, %v15014_v41  ;;  %vm7069_vm12 = vcmp.lt.s32.totalorder %v15416_v1, 2  ;;  %v7078_v10 = vsel %vm7070_vm10, %v7061_v38, %v7077_v21 }
 0x71b   : > { %v9007_v47 = vmin.u32 %v6582_v13, %v15435_v19  ;;  %v6388_v17 = vand.u32 2147483647, %v6387_v28  ;;  %v7079_v52 = vsel %vm7069_vm12, %v7076_v42, %v7078_v10  ;;  %v7082_v11 = vsel %vm7070_vm10, %v7064_v63, %v7081_v37 }
 0x71c   : > { %vm15450_vm3 = vcmp.le.f32.partialorder %v17541_v50, 0.7853982  ;;  %v9034_v3 = vadd.s32 4294967169, %v7248_v7  ;;  %v7072_v53 = vsel %vm7068_vm6, %v7052_v15, %v7055_v44  ;;  %v7074_v36 = vsel %vm7070_vm10, %v7058_v55, %v7073_v16 }
 0x71d   : > { %v6584_v25 = vclz %v9007_v47  ;;  %v7083_v60 = vsel %vm7069_vm12, %v7080_v59, %v7082_v11  ;;  %v15473_v33 = vmul.u32.u64.low %v15437_v2, %v7079_v52  ;;  %v15474_v5 = vmul.u32.u64.high %v15437_v2, %v7079_v52, %v15473_v33 }
 0x71e   : > { %v15469_v38 = vmul.u32.u64.low %v15437_v2, %v7083_v60  ;;  %v15470_v28 = vmul.u32.u64.high %v15437_v2, %v7083_v60, %v15469_v38  ;;  %v17544_v7 = vsel %vm15347_vm7, 0, %v15269_v4  ;;  %v16899_v63 = vand.u32 2147483647, %v15400_v61 }
 0x71f   : > { %v15481_v44 = vadd.s32 3, %v17544_v7  ;;  %v9008_v55 = vadd.s32 4294967294, %v6584_v25  ;;  %v7254_v15 = vadd.s32 1, %v9034_v3  ;;  %9713 = vcosq.f32 %v15394_v24 }
 0x720   : > { %v6292_v13 = vsel %vm15347_vm7, %v14920_v46, %v15408_v12  ;;  %v17546_v42 = vxor.u32 2147483648, %v15388_v6  ;;  %vm17547_vm10 = vcmp.lt.s32.totalorder %v15014_v41, 0  ;;  %v6391_v16 = vmul.f32 %v6390_v9, %v6388_v17 }
 0x721   : > { %17545 = vst [vmem:[#allocation106_spill] sm:$0xff] %v15481_v44  ;;  %vm9009_vm2 = vcmp.lt.s32.totalorder %v9008_v55, 0  ;;  %v7075_v21 = vsel %vm7069_vm12, %v7072_v53, %v7074_v36  ;;  %vm7255_vm6 = vcmp.gt.s32.totalorder %v7254_v15, 0  ;;  %v15499_v59 = vadd.f32 %v14922_v30, %v13750_v23  ;;  %vm17549_vm7 = vmmov %vm17547_vm10 }
 0x722   : > { %v6497_v4 = vsel %vm17547_vm10, %v17546_v42, %v15388_v6  ;;  %9715 = vsinq.f32 %v15394_v24  ;;  %v17548_v51 = vsub.s32 4, %v15276_v27  ;;  %v6587_v6 = vsel %vm9009_vm2, 0, %v9008_v55 }
 0x723   : > { %vm7093_vm10 = vc.u32 %v15470_v28, %v15473_v33  ;;  %9717 = vcosq.f32 %v6292_v13  ;;  %v6592_v1 = vsub.s32 4294967266, %v6587_v6  ;;  %v7094_v37 = vadd.s32 1, %v15474_v5 }
 0x724   : > { %v15507_v12 = vsel %vm17549_vm7, %v17548_v51, %v15276_v27  ;;  %v7251_v30 = vand.u32 8388607, %v16899_v63  ;;  %v15517_v24 = vsel %vm15450_vm3, %v15014_v41, %v6497_v4  ;;  %v6392_v50 = vxor.u32 2147483648, %v6391_v16 }
 0x725   : > { %v7091_v27 = vmul.u32 %v15437_v2, %v7075_v21  ;;  %v7256_v9 = vsel %vm7255_vm6, %v7254_v15, 0  ;;  %v6588_v47 = vsub.s32 32, %v6587_v6  ;;  %v6593_v10 = vadd.s32 127, %v6592_v1 }
 0x726   : > { %v7095_v17 = vsel %vm7093_vm10, %v7094_v37, %v15474_v5  ;;  %v7143_v52 = vand.u32 2139095040, %v15499_v59  ;;  %9719 = vsinq.f32 %v6292_v13  ;;  %v7258_v25 = vand.u32 31, %v7256_v9 }
 0x727   : > { %v7096_v3 = vadd.s32 %v7095_v17, %v7091_v27  ;;  %9721 = vcosq.f32 %v15517_v24  ;;  %v6572_v53 = vadd.s32 %v15364_v48, %v15378_v49  ;;  %v6594_v2 = vshll.u32 %v6593_v10, 23 }
 0x728   : > { %v7252_v36 = vor.u32 8388608, %v7251_v30  ;;  %vm17550_vm12 = vcmp.lt.s32.totalorder %v15168_v45, 0  ;;  %v6589_v38 = vshll.u32 %v15435_v19, %v6587_v6  ;;  %v7259_v7 = vsub.s32 32, %v7258_v25 }
 0x729   : > { %v15530_v60 = vsel %vm17550_vm12, %v6392_v50, %v6391_v16  ;;  %v7097_v5 = vadd.s32 536870912, %v7096_v3  ;;  %v6590_v55 = vshrl.u32 %v6572_v53, %v6588_v47  ;;  %v15533_v15 = vshrl.u32 %v7256_v9, 5  ;;  %v15536_v4 = vpop.eup %9713 }
 0x72a   : > { %v7261_v13 = vshll.u32 %v17349_v22, %v7258_v25  ;;  %v7144_v42 = vshrl.u32 %v7143_v52, 23  ;;  %17551 = vst [vmem:[#allocation11_spill] sm:$0xff] %v15536_v4  ;;  %v7262_v48 = vshrl.u32 %v17350_v31, %v7259_v7  ;;  %v7264_v49 = vshll.u32 %v17350_v31, %v7258_v25 }
 0x72b   : > { %v15538_v21 = vshrl.u32 %v7097_v5, 30  ;;  %v7265_v16 = vshrl.u32 %v17351_v8, %v7259_v7  ;;  %v6595_v51 = vor.u32 4788187, %v6594_v2  ;;  %v7268_v19 = vshrl.u32 %v16967_v43, %v7259_v7 }
 0x72c   : > { %v7270_v6 = vshll.u32 %v16967_v43, %v7258_v25  ;;  %v7271_v1 = vshrl.u32 %v16968_v29, %v7259_v7  ;;  %v15546_v37 = vpop.eup %9715  ;;  %v7263_v50 = vor.u32 %v7262_v48, %v7261_v13  ;;  %v7267_v9 = vshll.u32 %v17351_v8, %v7258_v25 }
 0x72d   : > { %17552 = vst [vmem:[#allocation114_spill] sm:$0xff] %v15546_v37  ;;  %v7099_v30 = vshll.u32 %v15538_v21, 30  ;;  %v7266_v27 = vor.u32 %v7265_v16, %v7264_v49  ;;  %v15550_v47 = vpop.eup %9717  ;;  %v6591_v10 = vor.u32 %v6590_v55, %v6589_v38  ;;  %v7273_v52 = vshll.u32 %v16968_v29, %v7258_v25 }
 0x72e   : > { %17553 = vst [vmem:[#allocation108_spill] sm:$0xff] %v15550_v47  ;;  %v7272_v17 = vor.u32 %v7271_v1, %v7270_v6  ;;  %v7274_v53 = vshrl.u32 %v16969_v62, %v7259_v7  ;;  %v17554_v2 = vand.u32 2147483647, %v15168_v45  ;;  %v17555_v5 = vmov 0 }
 0x72f   : > { %v15560_v63 = vsub.s32 %v7096_v3, %v7099_v30  ;;  %v7269_v13 = vor.u32 %v7268_v19, %v7267_v9  ;;  %v7292_v48 = vshll.u32 %v7252_v36, 8  ;;  %v16902_v49 = vand.u32 2147483647, %v15499_v59 }
 0x730   : > { %vm15556_vm6 = vcmp.le.f32.partialorder %v17554_v2, 0.7853982  ;;  %v6596_v16 = vand.u32 2147483647, %v6595_v51  ;;  %v7275_v11 = vor.u32 %v7274_v53, %v7273_v52  ;;  %vm7276_vm2 = vcmp.lt.s32.totalorder %v15533_v15, 1  ;;  %v15564_v25 = vpop.eup %9719 }
 0x731   : > { %v17556_v5 = vsel %vm15556_vm6, 4294967295, %v17555_v5  ;;  %v9030_v38 = vadd.s32 4294967169, %v7144_v42  ;;  %17557 = vst [vmem:[#allocation111_spill] sm:$0xff] %v15564_v25  ;;  %v7102_v55 = vsub.s32 0, %v15560_v63  ;;  %vm7277_vm7 = vcmp.lt.s32.totalorder %v15533_v15, 2  ;;  %v15571_v19 = vpop.eup %9721 }
 0x732   : > { %vm7279_vm10 = vcmp.lt.s32.totalorder %v15533_v15, 4  ;;  %v7284_v3 = vsel %vm7276_vm2, %v7263_v50, %v7266_v27  ;;  %17558 = vst [vmem:[#allocation110_spill] sm:$0xff] %v15571_v19  ;;  %v6598_v36 = vcvt.s32.f32 %v6591_v10  ;;  %v7260_v51 = vshrl.u32 %v17349_v22, %v7259_v7 }
 0x733   : > { %vm7278_vm12 = vcmp.lt.s32.totalorder %v15533_v15, 3  ;;  %v7285_v6 = vsel %vm7279_vm10, %v7272_v17, 920167782  ;;  %v9027_v42 = vmin.u32 %v7102_v55, %v15560_v63  ;;  %v7281_v1 = vsel %vm7279_vm10, %v7269_v13, 2102212464 }
 0x734   : > { %v7286_v30 = vsel %vm7278_vm12, %v7269_v13, %v7285_v6  ;;  %v7288_v9 = vsel %vm7276_vm2, %v7266_v27, %v7269_v13  ;;  %v15578_v52 = vmul.f32 %v6598_v36, %v6596_v16  ;;  %v7289_v2 = vsel %vm7279_vm10, %v7275_v11, 1326507024 }
 0x735   : > { %v7287_v53 = vsel %vm7277_vm7, %v7284_v3, %v7286_v30  ;;  %v15584_v10 = vand.u32 8388607, %v16902_v49  ;;  %v7104_v7 = vclz %v9027_v42  ;;  %v7280_v41 = vsel %vm7276_vm2, %v7260_v51, %v7263_v50 }
 0x736   : > { %v7290_v55 = vsel %vm7278_vm12, %v7272_v17, %v7289_v2  ;;  %v7150_v19 = vadd.s32 1, %v9030_v38  ;;  %v7282_v6 = vsel %vm7278_vm12, %v7266_v27, %v7281_v1  ;;  %9723 = vsinq.f32 %v15517_v24 }
 0x737   : > { %v7291_v13 = vsel %vm7277_vm7, %v7288_v9, %v7290_v55  ;;  %v15590_v16 = vmul.u32.u64.low %v7292_v48, %v7287_v53  ;;  %v15591_v36 = vmul.u32.u64.high %v7292_v48, %v7287_v53, %v15590_v16  ;;  %v9028_v3 = vadd.s32 4294967294, %v7104_v7 }
 0x738   : > { %v15594_v11 = vmul.u32.u64.low %v7292_v48, %v7291_v13  ;;  %v15595_v30 = vmul.u32.u64.high %v7292_v48, %v7291_v13, %v15594_v11  ;;  %vm7151_vm10 = vcmp.gt.s32.totalorder %v7150_v19, 0  ;;  %v17559_v50 = vsel %vm15450_vm3, 0, %v15507_v12 }
 0x739   : > { %v15602_v17 = vadd.s32 3, %v17559_v50  ;;  %v15608_v27 = vsel %vm15556_vm6, %v15168_v45, %v15530_v60  ;;  %v7152_v38 = vsel %vm7151_vm10, %v7150_v19, 0  ;;  %vm9029_vm2 = vcmp.lt.s32.totalorder %v9028_v3, 0 }
 0x73a   : > { %v7283_v51 = vsel %vm7277_vm7, %v7280_v41, %v7282_v6  ;;  %v7154_v42 = vand.u32 31, %v7152_v38  ;;  %v15614_v24 = vadd.f32 %v15003_v39, %v13750_v23  ;;  %vm16903_vm3 = vcmp.lt.s32.totalorder %v15240_v35, 0 }
 0x73b   : > { %17560 = vst [vmem:[#allocation93_spill] sm:$0xff] %v15602_v17  ;;  %v7092_v34 = vadd.s32 %v15473_v33, %v15470_v28  ;;  %v7107_v12 = vsel %vm9029_vm2, 0, %v9028_v3  ;;  %v7302_v1 = vadd.s32 1, %v15591_v36  ;;  %v7148_v60 = vor.u32 8388608, %v15584_v10 }
 0x73c   : > { %v6600_v19 = vxor.u32 2147483648, %v15578_v52  ;;  %v7108_v9 = vsub.s32 32, %v7107_v12  ;;  %v7112_v15 = vsub.s32 4294967266, %v7107_v12  ;;  %v7122_v41 = vsub.s32 4, %v15538_v21 }
 0x73d   : > { %v7299_v53 = vmul.u32 %v7292_v48, %v7283_v51  ;;  %vm7301_vm7 = vc.u32 %v15595_v30, %v15590_v16  ;;  %v15625_v23 = vshrl.u32 %v7152_v38, 5  ;;  %v7155_v39 = vsub.s32 32, %v7154_v42 }
 0x73e   : > { %v7109_v28 = vshll.u32 %v15560_v63, %v7107_v12  ;;  %v7110_v33 = vshrl.u32 %v7092_v34, %v7108_v9  ;;  %v7113_v2 = vadd.s32 127, %v7112_v15  ;;  %v7303_v7 = vsel %vm7301_vm7, %v7302_v1, %v15591_v36 }
 0x73f   : > { %v7304_v10 = vadd.s32 %v7303_v7, %v7299_v53  ;;  %v7157_v55 = vshll.u32 %v17349_v22, %v7154_v42  ;;  %v7158_v6 = vshrl.u32 %v17350_v31, %v7155_v39  ;;  %v7161_v13 = vshrl.u32 %v17351_v8, %v7155_v39 }
 0x740   : > { %v7114_v48 = vshll.u32 %v7113_v2, 23  ;;  %v7160_v3 = vshll.u32 %v17350_v31, %v7154_v42  ;;  %v7163_v11 = vshll.u32 %v17351_v8, %v7154_v42  ;;  %v7164_v50 = vshrl.u32 %v16967_v43, %v7155_v39  ;;  %v15637_v15 = vpop.eup %9723 }
 0x741   : > { %v7111_v38 = vor.u32 %v7110_v33, %v7109_v28  ;;  %v7305_v63 = vadd.s32 536870912, %v7304_v10  ;;  %v7166_v51 = vshll.u32 %v16967_v43, %v7154_v42  ;;  %v7167_v36 = vshrl.u32 %v16968_v29, %v7155_v39  ;;  %17561 = vst [vmem:[#allocation115_spill] sm:$0xff] %v15637_v15 }
 0x742   : > { %v7115_v34 = vor.u32 4788187, %v7114_v48  ;;  %v7159_v12 = vor.u32 %v7158_v6, %v7157_v55  ;;  %v7162_v1 = vor.u32 %v7161_v13, %v7160_v3  ;;  %v7165_v9 = vor.u32 %v7164_v50, %v7163_v11 }
 0x743   : > { %v15639_v53 = vshrl.u32 %v7305_v63, 30  ;;  %v7168_v2 = vor.u32 %v7167_v36, %v7166_v51  ;;  %v7169_v7 = vshll.u32 %v16968_v29, %v7154_v42  ;;  %v7170_v49 = vshrl.u32 %v16969_v62, %v7155_v39 }
 0x744   : > { %v6601_v28 = vsel %vm16903_vm3, %v6600_v19, %v15578_v52  ;;  %v7156_v33 = vshrl.u32 %v17349_v22, %v7155_v39  ;;  %vm7172_vm10 = vcmp.lt.s32.totalorder %v15625_v23, 1  ;;  %v7351_v55 = vand.u32 2139095040, %v15614_v24 }
 0x745   : > { %v17562_v6 = vand.u32 2147483647, %v15240_v35  ;;  %v17563_v13 = vmov 0  ;;  %v7116_v42 = vand.u32 2147483647, %v7115_v34  ;;  %v7307_v48 = vshll.u32 %v15639_v53, 30 }
 0x746   : > { %v7171_v3 = vor.u32 %v7170_v49, %v7169_v7  ;;  %vm7175_vm7 = vcmp.lt.s32.totalorder %v15625_v23, 4  ;;  %v7118_v52 = vcvt.s32.f32 %v7111_v38  ;;  %vm7174_vm3 = vcmp.lt.s32.totalorder %v15625_v23, 3 }
 0x747   : > { %vm15652_vm2 = vcmp.le.f32.partialorder %v17562_v6, 0.7853982  ;;  %v7180_v19 = vsel %vm7172_vm10, %v7159_v12, %v7162_v1  ;;  %v7181_v39 = vsel %vm7175_vm7, %v7168_v2, 920167782  ;;  %v15663_v11 = vsub.s32 %v7304_v10, %v7307_v48 }
 0x748   : > { %v17564_v13 = vsel %vm15652_vm2, 4294967295, %v17563_v13  ;;  %vm7173_vm12 = vcmp.lt.s32.totalorder %v15625_v23, 2  ;;  %v7177_v50 = vsel %vm7175_vm7, %v7165_v9, 2102212464  ;;  %v7182_v49 = vsel %vm7174_vm3, %v7165_v9, %v7181_v39 }
 0x749   : > { %17565 = vst [vmem:[#allocation45_spill] sm:$0xff] %v17564_v13  ;;  %v7176_v38 = vsel %vm7172_vm10, %v7156_v33, %v7159_v12  ;;  %v7183_v63 = vsel %vm7173_vm12, %v7180_v19, %v7182_v49  ;;  %v7188_v51 = vshll.u32 %v7148_v60, 8  ;;  %v7352_v36 = vshrl.u32 %v7351_v55, 23 }
 0x74a   : > { %v7119_v34 = vmul.f32 %v7118_v52, %v7116_v42  ;;  %v7310_v10 = vsub.s32 0, %v15663_v11  ;;  %v7184_v7 = vsel %vm7172_vm10, %v7162_v1, %v7165_v9  ;;  %v7185_v6 = vsel %vm7175_vm7, %v7171_v3, 1326507024  ;;  %v17566_v42 = vld [vmem:[#allocation49_spill] sm:$0xff] }
 0x74b   : > { %v7178_v48 = vsel %vm7174_vm3, %v7162_v1, %v7177_v50  ;;  %v7186_v12 = vsel %vm7174_vm3, %v7168_v2, %v7185_v6  ;;  %v15683_v33 = vmul.u32.u64.low %v7188_v51, %v7183_v63  ;;  %v15684_v39 = vmul.u32.u64.high %v7188_v51, %v7183_v63, %v15683_v33 }
 0x74c   : > { %v9035_v60 = vmin.u32 %v7310_v10, %v15663_v11  ;;  %v7187_v55 = vsel %vm7173_vm12, %v7184_v7, %v7186_v12  ;;  %v16904_v9 = vand.u32 2147483647, %v15614_v24  ;;  %v15693_v3 = vadd.f32 %v15146_v26, %v17566_v42 }
 0x74d   : > { %9725 = vcosq.f32 %v15608_v27  ;;  %v15696_v1 = vmul.u32.u64.low %v7188_v51, %v7187_v55  ;;  %v15697_v52 = vmul.u32.u64.high %v7188_v51, %v7187_v55, %v15696_v1  ;;  %v9038_v2 = vadd.s32 4294967169, %v7352_v36 }
 0x74e   : > { %17567 = vst [vmem:[#allocation109_spill] sm:$0xff] %v15693_v3  ;;  %9727 = vsinq.f32 %v15608_v27  ;;  %vm17568_vm3 = vcmp.lt.s32.totalorder %v15264_v14, 0  ;;  %v7312_v50 = vclz %v9035_v60  ;;  %v7179_v26 = vsel %vm7173_vm12, %v7176_v38, %v7178_v48 }
 0x74f   : > { %v15705_v19 = vsel %vm17568_vm3, %v7122_v41, %v15538_v21  ;;  %v15712_v49 = vsel %vm15652_vm2, %v15240_v35, %v6601_v28  ;;  %v7120_v63 = vxor.u32 2147483648, %v7119_v34  ;;  %v7198_v36 = vadd.s32 1, %v15684_v39 }
 0x750   : > { %v7358_v27 = vadd.s32 1, %v9038_v2  ;;  %v7300_v10 = vadd.s32 %v15590_v16, %v15595_v30  ;;  %v9036_v7 = vadd.s32 4294967294, %v7312_v50  ;;  %v7355_v21 = vand.u32 8388607, %v16904_v9 }
 0x751   : > { %v16905_v41 = vand.u32 2147483647, %v15693_v3  ;;  %v7195_v23 = vmul.u32 %v7188_v51, %v7179_v26  ;;  %vm7197_vm12 = vc.u32 %v15697_v52, %v15683_v33  ;;  %v7871_v28 = vand.u32 2139095040, %v15693_v3 }
 0x752   : > { %vm7359_vm10 = vcmp.gt.s32.totalorder %v7358_v27, 0  ;;  %vm9037_vm7 = vcmp.lt.s32.totalorder %v9036_v7, 0  ;;  %v7199_v6 = vsel %vm7197_vm12, %v7198_v36, %v15684_v39  ;;  %v15727_v16 = vsel %vm17568_vm3, %v7120_v63, %v7119_v34 }
 0x753   : > { %v7360_v48 = vsel %vm7359_vm10, %v7358_v27, 0  ;;  %v7315_v30 = vsel %vm9037_vm7, 0, %v9036_v7  ;;  %v7200_v12 = vadd.s32 %v7199_v6, %v7195_v23  ;;  %v7356_v1 = vor.u32 8388608, %v7355_v21 }
 0x754   : > { %v7362_v60 = vand.u32 31, %v7360_v48  ;;  %v7316_v51 = vsub.s32 32, %v7315_v30  ;;  %v7320_v55 = vsub.s32 4294967266, %v7315_v30  ;;  %v15731_v2 = vand.u32 8388607, %v16905_v41 }
 0x755   : > { %v7201_v50 = vadd.s32 536870912, %v7200_v12  ;;  %v7361_v26 = vshrl.u32 %v7360_v48, 5  ;;  %v7872_v38 = vshrl.u32 %v7871_v28, 23  ;;  %v7396_v47 = vshll.u32 %v7356_v1, 8 }
 0x756   : > { %v7363_v9 = vsub.s32 32, %v7362_v60  ;;  %v7318_v39 = vshrl.u32 %v7300_v10, %v7316_v51  ;;  %v7321_v36 = vadd.s32 127, %v7320_v55  ;;  %v7365_v27 = vshll.u32 %v17349_v22, %v7362_v60 }
 0x757   : > { %v7368_v34 = vshll.u32 %v17350_v31, %v7362_v60  ;;  %v15735_v63 = vpop.eup %9725  ;;  %v15737_v7 = vshrl.u32 %v7201_v50, 30  ;;  %v7371_v6 = vshll.u32 %v17351_v8, %v7362_v60  ;;  %v7374_v28 = vshll.u32 %v16967_v43, %v7362_v60 }
 0x758   : > { %17569 = vst [vmem:[#allocation113_spill] sm:$0xff] %v15735_v63  ;;  %v7366_v21 = vshrl.u32 %v17350_v31, %v7363_v9  ;;  %v7369_v23 = vshrl.u32 %v17351_v8, %v7363_v9  ;;  %v15742_v41 = vpop.eup %9727  ;;  %v7322_v48 = vshll.u32 %v7321_v36, 23  ;;  %v7372_v10 = vshrl.u32 %v16967_v43, %v7363_v9 }
 0x759   : > { %17570 = vst [vmem:[#allocation112_spill] sm:$0xff] %v15737_v7  ;;  %v7375_v51 = vshrl.u32 %v16968_v29, %v7363_v9  ;;  %v17571_v55 = vand.u32 2147483647, %v15264_v14  ;;  %v7203_v15 = vshll.u32 %v15737_v7, 30  ;;  %v7317_v25 = vshll.u32 %v15663_v11, %v7315_v30 }
 0x75a   : > { %v7367_v46 = vor.u32 %v7366_v21, %v7365_v27  ;;  %v7370_v17 = vor.u32 %v7369_v23, %v7368_v34  ;;  %v7373_v36 = vor.u32 %v7372_v10, %v7371_v6  ;;  %v9058_v13 = vadd.s32 4294967169, %v7872_v38 }
 0x75b   : > { %vm15749_vm12 = vcmp.le.f32.partialorder %v17571_v55, 0.7853982  ;;  %v7376_v44 = vor.u32 %v7375_v51, %v7374_v28  ;;  %vm16920_vm10 = vcmp.lt.s32.totalorder %v15400_v61, 0  ;;  %v7323_v4 = vor.u32 4788187, %v7322_v48 }
 0x75c   : > { %v15756_v35 = vsub.s32 %v7200_v12, %v7203_v15  ;;  %v7377_v55 = vshll.u32 %v16968_v29, %v7362_v60  ;;  %v7378_v37 = vshrl.u32 %v16969_v62, %v7363_v9  ;;  %v7319_v63 = vor.u32 %v7318_v39, %v7317_v25 }
 0x75d   : > { %v7364_v7 = vshrl.u32 %v17349_v22, %v7363_v9  ;;  %vm7380_vm7 = vcmp.lt.s32.totalorder %v7361_v26, 1  ;;  %vm7383_vm3 = vcmp.lt.s32.totalorder %v7361_v26, 4  ;;  %vm7381_vm2 = vcmp.lt.s32.totalorder %v7361_v26, 2 }
 0x75e   : > { %v7206_v1 = vsub.s32 0, %v15756_v35  ;;  %v7379_v11 = vor.u32 %v7378_v37, %v7377_v55  ;;  %v7385_v30 = vsel %vm7383_vm3, %v7373_v36, 2102212464  ;;  %v7388_v27 = vsel %vm7380_vm7, %v7367_v46, %v7370_v17 }
 0x75f   : > { %vm7382_vm4 = vcmp.lt.s32.totalorder %v7361_v26, 3  ;;  %v7389_v38 = vsel %vm7383_vm3, %v7376_v44, 920167782  ;;  %v7392_v34 = vsel %vm7380_vm7, %v7370_v17, %v7373_v36  ;;  %v7324_v15 = vand.u32 2147483647, %v7323_v4 }
 0x760   : > { %v9031_v12 = vmin.u32 %v7206_v1, %v15756_v35  ;;  %v7390_v60 = vsel %vm7382_vm4, %v7373_v36, %v7389_v38  ;;  %v7393_v21 = vsel %vm7383_vm3, %v7379_v11, 1326507024  ;;  %v7384_v23 = vsel %vm7380_vm7, %v7364_v7, %v7367_v46 }
 0x761   : > { %v7386_v25 = vsel %vm7382_vm4, %v7370_v17, %v7385_v30  ;;  %v7391_v9 = vsel %vm7381_vm2, %v7388_v27, %v7390_v60  ;;  %v7394_v39 = vsel %vm7382_vm4, %v7376_v44, %v7393_v21  ;;  %v7125_v4 = vsel %vm15749_vm12, 0, %v15705_v19 }
 0x762   : > { %v7208_v6 = vclz %v9031_v12  ;;  %v7395_v48 = vsel %vm7381_vm2, %v7392_v34, %v7394_v39  ;;  %v15765_v37 = vmul.u32.u64.low %v7396_v47, %v7391_v9  ;;  %v15766_v10 = vmul.u32.u64.high %v7396_v47, %v7391_v9, %v15765_v37 }
 0x763   : > { %v7326_v28 = vcvt.s32.f32 %v7319_v63  ;;  %v15772_v51 = vmul.u32.u64.low %v7396_v47, %v7395_v48  ;;  %v15773_v36 = vmul.u32.u64.high %v7396_v47, %v7395_v48, %v15772_v51  ;;  %9729 = vcosq.f32 %v15712_v49 }
 0x764   : > { %v9032_v46 = vadd.s32 4294967294, %v7208_v6  ;;  %v7387_v44 = vsel %vm7381_vm2, %v7384_v23, %v7386_v25  ;;  %v7878_v17 = vadd.s32 1, %v9058_v13  ;;  %9731 = vsinq.f32 %v15712_v49 }
 0x765   : > { %v15782_v7 = vsel %vm15749_vm12, %v15264_v14, %v15727_v16  ;;  %v15784_v55 = vmul.f32 %v7326_v28, %v7324_v15  ;;  %v17574_v63 = vsub.s32 4, %v15639_v53  ;;  %v7406_v13 = vadd.s32 1, %v15766_v10 }
 0x766   : > { %vm9033_vm4 = vcmp.lt.s32.totalorder %v9032_v46, 0  ;;  %v7876_v49 = vor.u32 8388608, %v15731_v2  ;;  %vm7879_vm2 = vcmp.gt.s32.totalorder %v7878_v17, 0  ;;  %v7403_v11 = vmul.u32 %v7396_v47, %v7387_v44 }
 0x767   : > { %v15791_v1 = vsel %vm16920_vm10, %v17574_v63, %v15639_v53  ;;  %v7211_v26 = vsel %vm9033_vm4, 0, %v9032_v46  ;;  %vm7405_vm7 = vc.u32 %v15773_v36, %v15765_v37  ;;  %v7880_v16 = vsel %vm7879_vm2, %v7878_v17, 0 }
 0x768   : > { %v7196_v30 = vadd.s32 %v15683_v33, %v15697_v52  ;;  %v7212_v27 = vsub.s32 32, %v7211_v26  ;;  %v7216_v38 = vsub.s32 4294967266, %v7211_v26  ;;  %v7407_v53 = vsel %vm7405_vm7, %v7406_v13, %v15766_v10 }
 0x769   : > { %v7328_v34 = vxor.u32 2147483648, %v15784_v55  ;;  %v7408_v15 = vadd.s32 %v7407_v53, %v7403_v11  ;;  %v7882_v12 = vand.u32 31, %v7880_v16  ;;  %v15803_v2 = vadd.f32 %v15228_v54, %v17566_v42 }
 0x76a   : > { %v7213_v47 = vshll.u32 %v15756_v35, %v7211_v26  ;;  %v7214_v60 = vshrl.u32 %v7196_v30, %v7212_v27  ;;  %v7217_v21 = vadd.s32 127, %v7216_v38  ;;  %v15806_v23 = vshll.u32 %v7876_v49, 8 }
 0x76b   : > { %v7409_v25 = vadd.s32 536870912, %v7408_v15  ;;  %v7881_v33 = vshrl.u32 %v7880_v16, 5  ;;  %v7883_v52 = vsub.s32 32, %v7882_v12  ;;  %v7885_v9 = vshll.u32 %v17349_v22, %v7882_v12 }
 0x76c   : > { %v7215_v39 = vor.u32 %v7214_v60, %v7213_v47  ;;  %v7218_v6 = vshll.u32 %v7217_v21, 23  ;;  %v7888_v48 = vshll.u32 %v17350_v31, %v7882_v12  ;;  %v7891_v10 = vshll.u32 %v17351_v8, %v7882_v12 }
 0x76d   : > { %v15811_v28 = vshrl.u32 %v7409_v25, 30  ;;  %v7886_v54 = vshrl.u32 %v17350_v31, %v7883_v52  ;;  %v7889_v35 = vshrl.u32 %v17351_v8, %v7883_v52  ;;  %v7894_v51 = vshll.u32 %v16967_v43, %v7882_v12  ;;  %v15816_v46 = vpop.eup %9729 }
 0x76e   : > { %v7219_v44 = vor.u32 4788187, %v7218_v6  ;;  %v7222_v17 = vcvt.s32.f32 %v7215_v39  ;;  %v7892_v63 = vshrl.u32 %v16967_v43, %v7883_v52  ;;  %v7895_v13 = vshrl.u32 %v16968_v29, %v7883_v52  ;;  %v15820_v49 = vpop.eup %9731 }
 0x76f   : > { %v7411_v26 = vshll.u32 %v15811_v28, 30  ;;  %v7887_v11 = vor.u32 %v7886_v54, %v7885_v9  ;;  %v7890_v16 = vor.u32 %v7889_v35, %v7888_v48  ;;  %v7897_v30 = vshll.u32 %v16968_v29, %v7882_v12 }
 0x770   : > { %v7220_v27 = vand.u32 2147483647, %v7219_v44  ;;  %v7893_v38 = vor.u32 %v7892_v63, %v7891_v10  ;;  %v7896_v53 = vor.u32 %v7895_v13, %v7894_v51  ;;  %v7898_v47 = vshrl.u32 %v16969_v62, %v7883_v52 }
 0x771   : > { %v17575_v60 = vand.u32 2147483647, %v15400_v61  ;;  %v15831_v25 = vsub.s32 %v7408_v15, %v7411_v26  ;;  %v7884_v39 = vshrl.u32 %v17349_v22, %v7883_v52  ;;  %vm7900_vm4 = vcmp.lt.s32.totalorder %v7881_v33, 1 }
 0x772   : > { %v8079_v9 = vand.u32 2139095040, %v15803_v2  ;;  %v7223_v12 = vmul.f32 %v7222_v17, %v7220_v27  ;;  %v7899_v6 = vor.u32 %v7898_v47, %v7897_v30  ;;  %vm7902_vm7 = vcmp.lt.s32.totalorder %v7881_v33, 3 }
 0x773   : > { %vm15827_vm3 = vcmp.le.f32.partialorder %v17575_v60, 0.7853982  ;;  %vm7903_vm10 = vcmp.lt.s32.totalorder %v7881_v33, 4  ;;  %v7414_v48 = vsub.s32 0, %v15831_v25  ;;  %v7908_v54 = vsel %vm7900_vm4, %v7887_v11, %v7890_v16 }
 0x774   : > { %v7905_v10 = vsel %vm7903_vm10, %v7893_v38, 2102212464  ;;  %v7909_v35 = vsel %vm7903_vm10, %v7896_v53, 920167782  ;;  %vm7901_vm6 = vcmp.lt.s32.totalorder %v7881_v33, 2  ;;  %v7904_v51 = vsel %vm7900_vm4, %v7884_v39, %v7887_v11 }
 0x775   : > { %v7910_v15 = vsel %vm7902_vm7, %v7893_v38, %v7909_v35  ;;  %v7912_v44 = vsel %vm7900_vm4, %v7890_v16, %v7893_v38  ;;  %v9039_v52 = vmin.u32 %v7414_v48, %v15831_v25  ;;  %v7906_v63 = vsel %vm7902_vm7, %v7890_v16, %v7905_v10 }
 0x776   : > { %v7911_v13 = vsel %vm7901_vm6, %v7908_v54, %v7910_v15  ;;  %v7913_v17 = vsel %vm7903_vm10, %v7899_v6, 1326507024  ;;  %vm17578_vm2 = vcmp.lt.s32.totalorder %v15400_v61, 0  ;;  %v17579_v30 = vand.u32 2147483647, %v15499_v59 }
 0x777   : > { %v7329_v26 = vsel %vm17578_vm2, %v7328_v34, %v15784_v55  ;;  %v17580_v27 = vmov 0  ;;  %v7914_v11 = vsel %vm7902_vm7, %v7896_v53, %v7913_v17  ;;  %v7224_v16 = vxor.u32 2147483648, %v7223_v12 }
 0x778   : > { %vm15846_vm13 = vcmp.le.f32.partialorder %v17579_v30, 0.7853982  ;;  %v15852_v38 = vmul.u32.u64.low %v15806_v23, %v7911_v13  ;;  %v15853_v47 = vmul.u32.u64.high %v15806_v23, %v7911_v13, %v15852_v38  ;;  %v7416_v60 = vclz %v9039_v52 }
 0x779   : > { %v17581_v27 = vsel %vm15846_vm13, 4294967295, %v17580_v27  ;;  %v7915_v39 = vsel %vm7901_vm6, %v7912_v44, %v7914_v11  ;;  %v15858_v6 = vadd.f32 %v15321_v32, %v17566_v42  ;;  %v7907_v55 = vsel %vm7901_vm6, %v7904_v51, %v7906_v63 }
 0x77a   : > { %v15862_v34 = vmul.u32.u64.low %v15806_v23, %v7915_v39  ;;  %v15863_v48 = vmul.u32.u64.high %v15806_v23, %v7915_v39, %v15862_v34  ;;  %v16924_v53 = vand.u32 2147483647, %v15803_v2  ;;  %9733 = vcosq.f32 %v15782_v7 }
 0x77b   : > { %v15871_v10 = vadd.s32 3, %v7125_v4  ;;  %v9040_v54 = vadd.s32 4294967294, %v7416_v60  ;;  %v8080_v35 = vshrl.u32 %v8079_v9, 23  ;;  %9735 = vsinq.f32 %v15782_v7 }
 0x77c   : > { %v7332_v32 = vsel %vm15827_vm3, %v15400_v61, %v7329_v26  ;;  %v7333_v33 = vsel %vm15827_vm3, 0, %v15791_v1  ;;  %v7926_v51 = vadd.s32 1, %v15853_v47  ;;  %vm17583_vm6 = vcmp.lt.s32.totalorder %v15499_v59, 0 }
 0x77d   : > { %17582 = vst [vmem:[#allocation13_spill] sm:$0xff] %v15871_v10  ;;  %v7225_v50 = vsel %vm17583_vm6, %v7224_v16, %v7223_v12  ;;  %vm9041_vm12 = vcmp.lt.s32.totalorder %v9040_v54, 0  ;;  %v7923_v19 = vmul.u32 %v15806_v23, %v7907_v55  ;;  %v9066_v4 = vadd.s32 4294967169, %v8080_v35 }
 0x77e   : > { %v7419_v9 = vsel %vm9041_vm12, 0, %v9040_v54  ;;  %vm7925_vm10 = vc.u32 %v15863_v48, %v15852_v38  ;;  %v8083_v7 = vand.u32 8388607, %v16924_v53  ;;  %v7975_v15 = vand.u32 2139095040, %v15858_v6 }
 0x77f   : > { %v7420_v44 = vsub.s32 32, %v7419_v9  ;;  %v7424_v21 = vsub.s32 4294967266, %v7419_v9  ;;  %v7927_v1 = vsel %vm7925_vm10, %v7926_v51, %v15853_v47  ;;  %v16923_v52 = vand.u32 2147483647, %v15858_v6 }
 0x780   : > { %9737 = vcosq.f32 %v7332_v32  ;;  %v7928_v12 = vadd.s32 %v7927_v1, %v7923_v19  ;;  %v8086_v63 = vadd.s32 1, %v9066_v4  ;;  %v15892_v23 = vadd.f32 %v15380_v40, %v17566_v42 }
 0x781   : > { %9739 = vsinq.f32 %v7332_v32  ;;  %v7228_v13 = vsel %vm15846_vm13, %v15499_v59, %v7225_v50  ;;  %v7404_v17 = vadd.s32 %v15765_v37, %v15773_v36  ;;  %v7425_v26 = vadd.s32 127, %v7424_v21 }
 0x782   : > { %v7929_v30 = vadd.s32 536870912, %v7928_v12  ;;  %v8084_v11 = vor.u32 8388608, %v8083_v7  ;;  %vm8087_vm3 = vcmp.gt.s32.totalorder %v8086_v63, 0  ;;  %v7976_v47 = vshrl.u32 %v7975_v15, 23 }
 0x783   : > { %v7422_v16 = vshrl.u32 %v7404_v17, %v7420_v44  ;;  %v7426_v60 = vshll.u32 %v7425_v26, 23  ;;  %v8088_v39 = vsel %vm8087_vm3, %v8086_v63, 0  ;;  %v7979_v40 = vand.u32 8388607, %v16923_v52 }
 0x784   : > { %v15901_v42 = vadd.s32 3, %v7333_v33  ;;  %9741 = vcosq.f32 %v7228_v13  ;;  %v15903_v55 = vshrl.u32 %v7929_v30, 30  ;;  %v8090_v34 = vand.u32 31, %v8088_v39  ;;  %v15905_v54 = vpop.eup %9733 }
 0x785   : > { %17585 = vst [vmem:[#allocation37_spill] sm:$0xff] %v15905_v54  ;;  %9743 = vsinq.f32 %v7228_v13  ;;  %v7421_v37 = vshll.u32 %v15831_v25, %v7419_v9  ;;  %v7427_v36 = vor.u32 4788187, %v7426_v60  ;;  %v15909_v32 = vpop.eup %9735  ;;  %v15912_v51 = vadd.s32 %v15852_v38, %v15863_v48 }
 0x786   : > { %17584 = vst [vmem:[#allocation95_spill] sm:$0xff] %v15901_v42  ;;  %17586 = vst [vmem:[#allocation27_spill] sm:$0xff] %v15909_v32  ;;  %v7931_v33 = vshll.u32 %v15903_v55, 30  ;;  %v8091_v50 = vsub.s32 32, %v8090_v34  ;;  %v9062_v19 = vadd.s32 4294967169, %v7976_v47  ;;  %v8089_v7 = vshrl.u32 %v8088_v39, 5 }
 0x787   : > { %v7423_v4 = vor.u32 %v7422_v16, %v7421_v37  ;;  %v15915_v15 = vshll.u32 %v8084_v11, 8  ;;  %v7980_v44 = vor.u32 8388608, %v7979_v40  ;;  %v7428_v21 = vand.u32 2147483647, %v7427_v36 }
 0x788   : > { %v15917_v1 = vsub.s32 %v7928_v12, %v7931_v33  ;;  %v8093_v25 = vshll.u32 %v17349_v22, %v8090_v34  ;;  %v8094_v9 = vshrl.u32 %v17350_v31, %v8091_v50  ;;  %v8096_v63 = vshll.u32 %v17350_v31, %v8090_v34 }
 0x789   : > { %v8097_v38 = vshrl.u32 %v17351_v8, %v8091_v50  ;;  %v8099_v48 = vshll.u32 %v17351_v8, %v8090_v34  ;;  %v8100_v13 = vshrl.u32 %v16967_v43, %v8091_v50  ;;  %v8102_v30 = vshll.u32 %v16967_v43, %v8090_v34 }
 0x78a   : > { %v15925_v17 = vpop.eup %9737  ;;  %v7934_v26 = vsub.s32 0, %v15917_v1  ;;  %v8103_v12 = vshrl.u32 %v16968_v29, %v8091_v50  ;;  %v7982_v11 = vadd.s32 1, %v9062_v19  ;;  %v7430_v16 = vcvt.s32.f32 %v7423_v4 }
 0x78b   : > { %17587 = vst [vmem:[#allocation40_spill] sm:$0xff] %v15925_v17  ;;  %v15930_v47 = vpop.eup %9739  ;;  %v8095_v60 = vor.u32 %v8094_v9, %v8093_v25  ;;  %v8098_v39 = vor.u32 %v8097_v38, %v8096_v63  ;;  %v8101_v40 = vor.u32 %v8100_v13, %v8099_v48  ;;  %v8105_v33 = vshll.u32 %v16968_v29, %v8090_v34 }
 0x78c   : > { %17588 = vst [vmem:[#allocation18_spill] sm:$0xff] %v15930_v47  ;;  %v9059_v37 = vmin.u32 %v7934_v26, %v15917_v1  ;;  %v8104_v36 = vor.u32 %v8103_v12, %v8102_v30  ;;  %v8106_v52 = vshrl.u32 %v16969_v62, %v8091_v50  ;;  %v7431_v53 = vmul.f32 %v7430_v16, %v7428_v21 }
 0x78d   : > { %v8092_v35 = vshrl.u32 %v17349_v22, %v8091_v50  ;;  %v15936_v61 = vshll.u32 %v7980_v44, 8  ;;  %vm8108_vm2 = vcmp.lt.s32.totalorder %v8089_v7, 1  ;;  %vm8111_vm7 = vcmp.lt.s32.totalorder %v8089_v7, 4 }
 0x78e   : > { %v15939_v17 = vpop.eup %9741  ;;  %v7936_v4 = vclz %v9059_v37  ;;  %v8107_v25 = vor.u32 %v8106_v52, %v8105_v33  ;;  %vm8110_vm6 = vcmp.lt.s32.totalorder %v8089_v7, 3  ;;  %v8113_v34 = vsel %vm8111_vm7, %v8101_v40, 2102212464 }
 0x78f   : > { %v15942_v9 = vpop.eup %9743  ;;  %v8116_v63 = vsel %vm8108_vm2, %v8095_v60, %v8098_v39  ;;  %v8117_v21 = vsel %vm8111_vm7, %v8104_v36, 920167782  ;;  %vm8109_vm12 = vcmp.lt.s32.totalorder %v8089_v7, 2  ;;  %v8112_v50 = vsel %vm8108_vm2, %v8092_v35, %v8095_v60 }
 0x790   : > { %v9060_v38 = vadd.s32 4294967294, %v7936_v4  ;;  %v8118_v44 = vsel %vm8110_vm6, %v8101_v40, %v8117_v21  ;;  %v8114_v48 = vsel %vm8110_vm6, %v8098_v39, %v8113_v34  ;;  %v8120_v26 = vsel %vm8108_vm2, %v8098_v39, %v8101_v40 }
 0x791   : > { %v8119_v13 = vsel %vm8109_vm12, %v8116_v63, %v8118_v44  ;;  %v8121_v30 = vsel %vm8111_vm7, %v8107_v25, 1326507024  ;;  %v7432_v37 = vxor.u32 2147483648, %v7431_v53  ;;  %vm7983_vm3 = vcmp.gt.s32.totalorder %v7982_v11, 0 }
 0x792   : > { %vm9061_vm10 = vcmp.lt.s32.totalorder %v9060_v38, 0  ;;  %v8122_v12 = vsel %vm8110_vm6, %v8104_v36, %v8121_v30  ;;  %v15946_v52 = vmul.u32.u64.low %v15915_v15, %v8119_v13  ;;  %v15947_v16 = vmul.u32.u64.high %v15915_v15, %v8119_v13, %v15946_v52 }
 0x793   : > { %v7939_v33 = vsel %vm9061_vm10, 0, %v9060_v38  ;;  %v8123_v19 = vsel %vm8109_vm12, %v8120_v26, %v8122_v12  ;;  %vm16930_vm4 = vcmp.lt.s32.totalorder %v15693_v3, 0  ;;  %v8115_v4 = vsel %vm8109_vm12, %v8112_v50, %v8114_v48 }
 0x794   : > { %v7940_v35 = vsub.s32 32, %v7939_v33  ;;  %v7944_v60 = vsub.s32 4294967266, %v7939_v33  ;;  %v7984_v39 = vsel %vm7983_vm3, %v7982_v11, 0  ;;  %v17589_v40 = vand.u32 2147483647, %v15614_v24 }
 0x795   : > { %v17590_v36 = vmov 0  ;;  %v7954_v25 = vsub.s32 4, %v15903_v55  ;;  %v15961_v34 = vmul.u32.u64.low %v15915_v15, %v8123_v19  ;;  %v15962_v63 = vmul.u32.u64.high %v15915_v15, %v8123_v19, %v15961_v34 }
 0x796   : > { %vm15955_vm2 = vcmp.le.f32.partialorder %v17589_v40, 0.7853982  ;;  %v7986_v21 = vand.u32 31, %v7984_v39  ;;  %v7941_v38 = vshll.u32 %v15917_v1, %v7939_v33  ;;  %v7942_v44 = vshrl.u32 %v15912_v51, %v7940_v35 }
 0x797   : > { %v17591_v36 = vsel %vm15955_vm2, 4294967295, %v17590_v36  ;;  %v7945_v7 = vadd.s32 127, %v7944_v60  ;;  %v8134_v11 = vadd.s32 1, %v15947_v16  ;;  %vm17593_vm7 = vcmp.lt.s32.totalorder %v15614_v24, 0 }
 0x798   : > { %17592 = vst [vmem:[#allocation49_spill] sm:$0xff] %v17591_v36  ;;  %v7433_v50 = vsel %vm17593_vm7, %v7432_v37, %v7431_v53  ;;  %v8131_v48 = vmul.u32 %v15915_v15, %v8115_v4  ;;  %v7985_v13 = vshrl.u32 %v7984_v39, 5  ;;  %v7987_v26 = vsub.s32 32, %v7986_v21 }
 0x799   : > { %v7943_v30 = vor.u32 %v7942_v44, %v7941_v38  ;;  %v7946_v12 = vshll.u32 %v7945_v7, 23  ;;  %v7989_v19 = vshll.u32 %v17349_v22, %v7986_v21  ;;  %v7992_v40 = vshll.u32 %v17350_v31, %v7986_v21 }
 0x79a   : > { %vm8133_vm6 = vc.u32 %v15962_v63, %v15946_v52  ;;  %v7990_v51 = vshrl.u32 %v17350_v31, %v7987_v26  ;;  %v7995_v1 = vshll.u32 %v17351_v8, %v7986_v21  ;;  %v7998_v33 = vshll.u32 %v16967_v43, %v7986_v21 }
 0x79b   : > { %v17594_v53 = vand.u32 2147483647, %v15693_v3  ;;  %v7947_v37 = vor.u32 4788187, %v7946_v12  ;;  %v8135_v35 = vsel %vm8133_vm6, %v8134_v11, %v15947_v16  ;;  %v7993_v60 = vshrl.u32 %v17351_v8, %v7987_v26 }
 0x79c   : > { %v8001_v4 = vshll.u32 %v16968_v29, %v7986_v21  ;;  %v7950_v39 = vcvt.s32.f32 %v7943_v30  ;;  %v8136_v34 = vadd.s32 %v8135_v35, %v8131_v48  ;;  %v7996_v38 = vshrl.u32 %v16967_v43, %v7987_v26 }
 0x79d   : > { %vm15979_vm12 = vcmp.le.f32.partialorder %v17594_v53, 0.7853982  ;;  %v7999_v44 = vshrl.u32 %v16968_v29, %v7987_v26  ;;  %v7948_v7 = vand.u32 2147483647, %v7947_v37  ;;  %v7991_v47 = vor.u32 %v7990_v51, %v7989_v19 }
 0x79e   : > { %v7994_v42 = vor.u32 %v7993_v60, %v7992_v40  ;;  %v8002_v53 = vshrl.u32 %v16969_v62, %v7987_v26  ;;  %v15992_v12 = vsel %vm16930_vm4, %v7954_v25, %v15903_v55  ;;  %v8137_v16 = vadd.s32 536870912, %v8136_v34 }
 0x79f   : > { %v7997_v11 = vor.u32 %v7996_v38, %v7995_v1  ;;  %v8000_v14 = vor.u32 %v7999_v44, %v7998_v33  ;;  %v7436_v21 = vsel %vm15955_vm2, %v15614_v24, %v7433_v50  ;;  %v7951_v48 = vmul.f32 %v7950_v39, %v7948_v7 }
 0x7a0   : > { %v8003_v30 = vor.u32 %v8002_v53, %v8001_v4  ;;  %vm8007_vm10 = vcmp.lt.s32.totalorder %v7985_v13, 4  ;;  %v8138_v37 = vshrl.u32 %v8137_v16, 30  ;;  %vm8004_vm3 = vcmp.lt.s32.totalorder %v7985_v13, 1 }
 0x7a1   : > { %v8009_v19 = vsel %vm8007_vm10, %v7997_v11, 2102212464  ;;  %v17597_v40 = vand.u32 2139095040, %v15892_v23  ;;  %v7988_v55 = vshrl.u32 %v17349_v22, %v7987_v26  ;;  %vm8006_vm7 = vcmp.lt.s32.totalorder %v7985_v13, 3 }
 0x7a2   : > { %v8012_v25 = vsel %vm8004_vm3, %v7991_v47, %v7994_v42  ;;  %v8013_v1 = vsel %vm8007_vm10, %v8000_v14, 920167782  ;;  %v7952_v33 = vxor.u32 2147483648, %v7951_v48  ;;  %v8139_v50 = vshll.u32 %v8138_v37, 30 }
 0x7a3   : > { %v8184_v51 = vshrl.u32 %v17597_v40, 23  ;;  %v8014_v35 = vsel %vm8006_vm7, %v7997_v11, %v8013_v1  ;;  %v8016_v60 = vsel %vm8004_vm3, %v7994_v42, %v7997_v11  ;;  %vm8005_vm4 = vcmp.lt.s32.totalorder %v7985_v13, 2 }
 0x7a4   : > { %v8008_v4 = vsel %vm8004_vm3, %v7988_v55, %v7991_v47  ;;  %v8010_v39 = vsel %vm8006_vm7, %v7994_v42, %v8009_v19  ;;  %v8017_v38 = vsel %vm8007_vm10, %v8003_v30, 1326507024  ;;  %v16007_v26 = vsub.s32 %v8136_v34, %v8139_v50 }
 0x7a5   : > { %v8015_v7 = vsel %vm8005_vm4, %v8012_v25, %v8014_v35  ;;  %v8018_v53 = vsel %vm8006_vm7, %v8000_v14, %v8017_v38  ;;  %9745 = vcosq.f32 %v7436_v21  ;;  %v8162_v16 = vsub.s32 4, %v8138_v37 }
 0x7a6   : > { %v8019_v40 = vsel %vm8005_vm4, %v8016_v60, %v8018_v53  ;;  %v9070_v54 = vadd.s32 4294967169, %v8184_v51  ;;  %vm17598_vm6 = vcmp.lt.s32.totalorder %v15693_v3, 0  ;;  %v8142_v47 = vsub.s32 0, %v16007_v26 }
 0x7a7   : > { %v7953_v11 = vsel %vm17598_vm6, %v7952_v33, %v7951_v48  ;;  %v8011_v42 = vsel %vm8005_vm4, %v8008_v4, %v8010_v39  ;;  %v17599_v13 = vand.u32 2147483647, %v15892_v23  ;;  %9747 = vsinq.f32 %v7436_v21  ;;  %v17600_v48 = vld [vmem:[#allocation42_spill] sm:$0xff]  ;;  %v17601_v21 = vld [vmem:[#allocation33_spill] sm:$0xff] }
 0x7a8   : > { %v16015_v19 = vmul.u32.u64.low %v15936_v61, %v8019_v40  ;;  %v16016_v55 = vmul.u32.u64.high %v15936_v61, %v8019_v40, %v16015_v19  ;;  %v16019_v34 = vmul.u32.u64.low %v15936_v61, %v8015_v7  ;;  %v16020_v14 = vmul.u32.u64.high %v15936_v61, %v8015_v7, %v16019_v34 }
 0x7a9   : > { %v8187_v30 = vand.u32 8388607, %v17599_v13  ;;  %v9067_v51 = vmin.u32 %v8142_v47, %v16007_v26  ;;  %v8190_v25 = vadd.s32 1, %v9070_v54  ;;  %v5146_v1 = vsub.s32 4, %v17600_v48  ;;  %v17603_v54 = vld [vmem:[#allocation20_spill] sm:$0xff]  ;;  %v17606_v19 = vld [vmem:[#allocation29_spill] sm:$0xff] }
 0x7aa   : > { %v16028_v33 = vsel %vm15979_vm12, %v15693_v3, %v7953_v11  ;;  %v8132_v50 = vadd.s32 %v15946_v52, %v15962_v63  ;;  %v8027_v35 = vmul.u32 %v15936_v61, %v8011_v42  ;;  %vm17602_vm10 = vcmp.lt.s32.totalorder %v17601_v21, 0 }
 0x7ab   : > { %v8188_v60 = vor.u32 8388608, %v8187_v30  ;;  %v8144_v4 = vclz %v9067_v51  ;;  %vm8191_vm4 = vcmp.gt.s32.totalorder %v8190_v25, 0  ;;  %v5147_v39 = vsel %vm17602_vm10, %v5146_v1, %v17600_v48 }
 0x7ac   : > { %v5978_v38 = vsub.s32 4, %v17603_v54  ;;  %vm17604_vm3 = vcmp.lt.s32.totalorder %v15803_v2, 0  ;;  %vm8029_vm7 = vc.u32 %v16016_v55, %v16019_v34  ;;  %v8030_v52 = vadd.s32 1, %v16020_v14 }
 0x7ad   : > { %v16039_v7 = vsel %vm17604_vm3, %v8162_v16, %v8138_v37  ;;  %v8192_v63 = vsel %vm8191_vm4, %v8190_v25, 0  ;;  %9749 = vcosq.f32 %v16028_v33  ;;  %v9068_v61 = vadd.s32 4294967294, %v8144_v4 }
 0x7ae   : > { %v8194_v53 = vand.u32 31, %v8192_v63  ;;  %v5149_v11 = vsel %vm13785_vm5, 0, %v5147_v39  ;;  %v8031_v47 = vsel %vm8029_vm7, %v8030_v52, %v16020_v14  ;;  %v8193_v42 = vshrl.u32 %v8192_v63, 5 }
 0x7af   : > { %v16048_v13 = vshll.u32 %v8188_v60, 8  ;;  %v16050_v37 = vadd.s32 3, %v5149_v11  ;;  %vm9069_vm6 = vcmp.lt.s32.totalorder %v9068_v61, 0  ;;  %v8032_v16 = vadd.s32 %v8031_v47, %v8027_v35  ;;  %v16057_v25 = vpop.eup %9745 }
 0x7b0   : > { %v8195_v30 = vsub.s32 32, %v8194_v53  ;;  %vm17607_vm4 = vcmp.lt.s32.totalorder %v17606_v19, 0  ;;  %17608 = vst [vmem:[#allocation42_spill] sm:$0xff] %v16057_v25  ;;  %v8147_v48 = vsel %vm9069_vm6, 0, %v9068_v61  ;;  %v8197_v1 = vshll.u32 %v17349_v22, %v8194_v53 }
 0x7b1   : > { %v16055_v51 = vsel %vm17607_vm4, %v5978_v38, %v17603_v54  ;;  %v8200_v14 = vshll.u32 %v17350_v31, %v8194_v53  ;;  %v8203_v60 = vshll.u32 %v17351_v8, %v8194_v53  ;;  %v8148_v4 = vsub.s32 32, %v8147_v48  ;;  %v16067_v61 = vpop.eup %9747 }
 0x7b2   : > { %v8152_v39 = vsub.s32 4294967266, %v8147_v48  ;;  %v8033_v52 = vadd.s32 536870912, %v8032_v16  ;;  %v8206_v35 = vshll.u32 %v16967_v43, %v8194_v53  ;;  %v8149_v63 = vshll.u32 %v16007_v26, %v8147_v48  ;;  %17609 = vst [vmem:[#allocation33_spill] sm:$0xff] %v16067_v61 }
 0x7b3   : > { %v8198_v40 = vshrl.u32 %v17350_v31, %v8195_v30  ;;  %v8201_v54 = vshrl.u32 %v17351_v8, %v8195_v30  ;;  %v8204_v38 = vshrl.u32 %v16967_v43, %v8195_v30  ;;  %v8150_v11 = vshrl.u32 %v8132_v50, %v8148_v4 }
 0x7b4   : > { %v8153_v47 = vadd.s32 127, %v8152_v39  ;;  %v16069_v44 = vshrl.u32 %v8033_v52, 30  ;;  %v8207_v3 = vshrl.u32 %v16968_v29, %v8195_v30  ;;  %v17610_v32 = vand.u32 2147483647, %v15803_v2 }
 0x7b5   : > { %v8196_v31 = vshrl.u32 %v17349_v22, %v8195_v30  ;;  %v8199_v26 = vor.u32 %v8198_v40, %v8197_v1  ;;  %v8202_v8 = vor.u32 %v8201_v54, %v8200_v14  ;;  %v8205_v48 = vor.u32 %v8204_v38, %v8203_v60 }
 0x7b6   : > { %vm16074_vm5 = vcmp.le.f32.partialorder %v17610_v32, 0.7853982  ;;  %v8154_v43 = vshll.u32 %v8153_v47, 23  ;;  %v8035_v25 = vshll.u32 %v16069_v44, 30  ;;  %v8208_v50 = vor.u32 %v8207_v3, %v8206_v35 }
 0x7b7   : > { %v8209_v4 = vshll.u32 %v16968_v29, %v8194_v53  ;;  %v8151_v39 = vor.u32 %v8150_v11, %v8149_v63  ;;  %v8210_v52 = vshrl.u32 %v16969_v62, %v8195_v30  ;;  %vm8212_vm10 = vcmp.lt.s32.totalorder %v8193_v42, 1  ;;  %v16082_v32 = vpop.eup %9749 }
 0x7b8   : > { %vm8213_vm3 = vcmp.lt.s32.totalorder %v8193_v42, 2  ;;  %v8155_v61 = vor.u32 4788187, %v8154_v43  ;;  %v16084_v36 = vsub.s32 %v8032_v16, %v8035_v25  ;;  %vm8214_vm7 = vcmp.lt.s32.totalorder %v8193_v42, 3 }
 0x7b9   : > { %vm8215_vm6 = vcmp.lt.s32.totalorder %v8193_v42, 4  ;;  %v8211_v22 = vor.u32 %v8210_v52, %v8209_v4  ;;  %v8216_v1 = vsel %vm8212_vm10, %v8196_v31, %v8199_v26  ;;  %v8220_v3 = vsel %vm8212_vm10, %v8199_v26, %v8202_v8  ;;  %v17613_v42 = vld [vmem:[#allocation21_spill] sm:$0xff] }
 0x7ba   : > { %v8217_v14 = vsel %vm8215_vm6, %v8205_v48, 2102212464  ;;  %v8156_v60 = vand.u32 2147483647, %v8155_v61  ;;  %v8038_v29 = vsub.s32 0, %v16084_v36  ;;  %v8158_v30 = vcvt.s32.f32 %v8151_v39 }
 0x7bb   : > { %v8218_v62 = vsel %vm8214_vm7, %v8202_v8, %v8217_v14  ;;  %v8221_v53 = vsel %vm8215_vm6, %v8208_v50, 920167782  ;;  %v8224_v16 = vsel %vm8212_vm10, %v8202_v8, %v8205_v48  ;;  %v8225_v25 = vsel %vm8215_vm6, %v8211_v22, 1326507024 }
 0x7bc   : > { %v8222_v35 = vsel %vm8214_vm7, %v8205_v48, %v8221_v53  ;;  %v9063_v63 = vmin.u32 %v8038_v29, %v16084_v36  ;;  %v8219_v40 = vsel %vm8213_vm3, %v8216_v1, %v8218_v62  ;;  %v8226_v38 = vsel %vm8214_vm7, %v8208_v50, %v8225_v25  ;;  %v17616_v62 = vld [vmem:[#allocation12_spill] sm:$0xff] }
 0x7bd   : > { %v8223_v54 = vsel %vm8213_vm3, %v8220_v3, %v8222_v35  ;;  %v8159_v61 = vmul.f32 %v8158_v30, %v8156_v60  ;;  %v8227_v11 = vsel %vm8213_vm3, %v8224_v16, %v8226_v38  ;;  %v8165_v26 = vsel %vm16074_vm5, 0, %v16039_v7  ;;  %v17615_v3 = vld [vmem:[#allocation9_spill] sm:$0xff] }
 0x7be   : > { %v16098_v47 = vmul.u32.u64.low %v16048_v13, %v8223_v54  ;;  %v16099_v31 = vmul.u32.u64.high %v16048_v13, %v8223_v54, %v16098_v47  ;;  %v8040_v8 = vclz %v9063_v63  ;;  %9751 = vsinq.f32 %v16028_v33 }
 0x7bf   : > { %v16106_v48 = vmul.u32.u64.low %v16048_v13, %v8227_v11  ;;  %v16107_v43 = vmul.u32.u64.high %v16048_v13, %v8227_v11, %v16106_v48  ;;  %v5154_v50 = vand.u32 3, %v16050_v37  ;;  %v5157_v4 = vxor.u32 2147483648, %v17613_v42  ;;  %v17619_v11 = vld [vmem:[#allocation51_spill] sm:$0xff] }
 0x7c0   : > { %v5981_v52 = vsel %vm14225_vm0, 0, %v16055_v51  ;;  %v8028_v22 = vadd.s32 %v16019_v34, %v16016_v55  ;;  %v9064_v1 = vadd.s32 4294967294, %v8040_v8  ;;  %v8235_v14 = vmul.u32 %v16048_v13, %v8219_v40  ;;  %v17617_v55 = vld [vmem:[#allocation83_spill] sm:$0xff]  ;;  %v17618_v51 = vld [vmem:[#allocation56_spill] sm:$0xff] }
 0x7c1   : > { %v5160_v60 = vxor.u32 2147483648, %v17615_v3  ;;  %v8160_v29 = vxor.u32 2147483648, %v8159_v61  ;;  %v8238_v33 = vadd.s32 1, %v16099_v31  ;;  %v5985_v37 = vadd.s32 3, %v5981_v52 }
 0x7c2   : > { %v5354_v53 = vsub.s32 4, %v17616_v62  ;;  %vm9065_vm10 = vcmp.lt.s32.totalorder %v9064_v1, 0  ;;  %vm8237_vm0 = vc.u32 %v16107_v43, %v16098_v47  ;;  %v5989_v34 = vxor.u32 2147483648, %v17617_v55 }
 0x7c3   : > { %v5992_v13 = vxor.u32 2147483648, %v17618_v51  ;;  %v8043_v30 = vsel %vm9065_vm10, 0, %v9064_v1  ;;  %v8239_v35 = vsel %vm8237_vm0, %v8238_v33, %v16099_v31  ;;  %vm5155_vm7 = vcmp.lt.s32.totalorder %v5154_v50, 2 }
 0x7c4   : > { %vm5156_vm6 = vcmp.eq.s32.totalorder %v5154_v50, 0  ;;  %v8044_v16 = vsub.s32 32, %v8043_v30  ;;  %v8048_v25 = vsub.s32 4294967266, %v8043_v30  ;;  %v8240_v63 = vadd.s32 %v8239_v35, %v8235_v14 }
 0x7c5   : > { %v5158_v40 = vsel %vm5156_vm6, %v17615_v3, %v5157_v4  ;;  %v8045_v54 = vshll.u32 %v16084_v36, %v8043_v30  ;;  %vm5159_vm4 = vcmp.eq.s32.totalorder %v5154_v50, 2  ;;  %v5986_v38 = vand.u32 3, %v5985_v37 }
 0x7c6   : > { %vm17620_vm3 = vcmp.lt.s32.totalorder %v17619_v11, 0  ;;  %v8046_v48 = vshrl.u32 %v8028_v22, %v8044_v16  ;;  %v8049_v39 = vadd.s32 127, %v8048_v25  ;;  %v8241_v52 = vadd.s32 536870912, %v8240_v63 }
 0x7c7   : > { %v5355_v8 = vsel %vm17620_vm3, %v5354_v53, %v17616_v62  ;;  %v5161_v31 = vsel %vm5159_vm4, %v5160_v60, %v17613_v42  ;;  %vm17621_vm10 = vcmp.lt.s32.totalorder %v15803_v2, 0  ;;  %vm5987_vm0 = vcmp.lt.s32.totalorder %v5986_v38, 2  ;;  %v17624_v53 = vld [vmem:[#allocation16_spill] sm:$0xff] }
 0x7c8   : > { %v8161_v1 = vsel %vm17621_vm10, %v8160_v29, %v8159_v61  ;;  %v5162_v33 = vsel %vm5155_vm7, %v5158_v40, %v5161_v31  ;;  %vm5988_vm2 = vcmp.eq.s32.totalorder %v5986_v38, 0  ;;  %v8047_v4 = vor.u32 %v8046_v48, %v8045_v54  ;;  %v16138_v50 = vpop.eup %9751 }
 0x7c9   : > { %v8050_v14 = vshll.u32 %v8049_v39, 23  ;;  %v16136_v36 = vshrl.u32 %v8241_v52, 30  ;;  %vm5991_vm6 = vcmp.eq.s32.totalorder %v5986_v38, 2  ;;  %vm16939_vm3 = vcmp.lt.s32.totalorder %v15858_v6, 0  ;;  %v17630_v38 = vld [vmem:[#allocation43_spill] sm:$0xff] }
 0x7ca   : > { %vm17622_vm13 = vweird.f32 %v17601_v21  ;;  %v5990_v42 = vsel %vm5988_vm2, %v17618_v51, %v5989_v34  ;;  %v5993_v3 = vsel %vm5991_vm6, %v5992_v13, %v17617_v55  ;;  %v5357_v60 = vsel %vm13956_vm1, 0, %v5355_v8  ;;  %v17626_v21 = vld [vmem:[#allocation41_spill] sm:$0xff]  ;;  %v17631_v52 = vld [vmem:[#allocation39_spill] sm:$0xff] }
 0x7cb   : > { %v5163_v22 = vsel %vm17622_vm13, nan, %v5162_v33  ;;  %v8051_v29 = vor.u32 4788187, %v8050_v14  ;;  %v8243_v37 = vshll.u32 %v16136_v36, 30  ;;  %v5994_v62 = vsel %vm5987_vm0, %v5990_v42, %v5993_v3  ;;  %v17635_v3 = vld [vmem:[#allocation85_spill] sm:$0xff] }
 0x7cc   : > { %v5365_v30 = vxor.u32 2147483648, %v17624_v53  ;;  %v8054_v35 = vcvt.s32.f32 %v8047_v4  ;;  %vm17625_vm4 = vweird.f32 %v17606_v19  ;;  %v5361_v25 = vadd.s32 3, %v5357_v60 }
 0x7cd   : > { %v5995_v16 = vsel %vm17625_vm4, nan, %v5994_v62  ;;  %v6186_v40 = vsub.s32 4, %v17626_v21  ;;  %v17627_v34 = vand.u32 2147483647, %v15858_v6  ;;  %v8052_v51 = vand.u32 2147483647, %v8051_v29 }
 0x7ce   : > { %v16158_v13 = vsub.s32 %v8240_v63, %v8243_v37  ;;  %v9125_v54 = vpack.c.bf16 %v5995_v16, %v5163_v22  ;;  %v5368_v8 = vxor.u32 2147483648, %v17630_v38  ;;  %v16164_v19 = vsel %vm16074_vm5, %v15803_v2, %v8161_v1  ;;  %v17634_v22 = vld [vmem:[#allocation72_spill] sm:$0xff] }
 0x7cf   : > { %vm16154_vm13 = vcmp.le.f32.partialorder %v17627_v34, 0.7853982  ;;  %v8236_v48 = vadd.s32 %v16098_v47, %v16107_v43  ;;  %v5362_v39 = vand.u32 3, %v5361_v25  ;;  %vm17632_vm1 = vcmp.lt.s32.totalorder %v17631_v52, 0  ;;  %v17636_v25 = vld [vmem:[#allocation22_spill] sm:$0xff] }
 0x7d0   : > { %v6187_v31 = vsel %vm17632_vm1, %v6186_v40, %v17626_v21  ;;  %v8055_v33 = vmul.f32 %v8054_v35, %v8052_v51  ;;  %v8246_v63 = vsub.s32 0, %v16158_v13  ;;  %9126 = vmatprep.subr.bf16.mxu0 %v9125_v54  ;;  %v6197_v42 = vxor.u32 2147483648, %v17634_v22  ;;  %v17637_v40 = vld [vmem:[#allocation25_spill] sm:$0xff] }
 0x7d1   : > { %v6189_v14 = vsel %vm14332_vm15, 0, %v6187_v31  ;;  %vm5364_vm2 = vcmp.eq.s32.totalorder %v5362_v39, 0  ;;  %vm5367_vm7 = vcmp.eq.s32.totalorder %v5362_v39, 2  ;;  %v6200_v61 = vxor.u32 2147483648, %v17635_v3 }
 0x7d2   : > { %v6193_v1 = vadd.s32 3, %v6189_v14  ;;  %v8056_v47 = vxor.u32 2147483648, %v8055_v33  ;;  %v9071_v43 = vmin.u32 %v8246_v63, %v16158_v13  ;;  %v5366_v60 = vsel %vm5364_vm2, %v17630_v38, %v5365_v30  ;;  %v17638_v30 = vld [vmem:[#allocation26_spill] sm:$0xff] }
 0x7d3   : > { %v5369_v29 = vsel %vm5367_vm7, %v5368_v8, %v17624_v53  ;;  %vm5360_vm10 = vweird.f32 %v17619_v11  ;;  %vm5363_vm0 = vcmp.lt.s32.totalorder %v5362_v39, 2  ;;  %vm6192_vm6 = vweird.f32 %v17631_v52  ;;  %v17640_v11 = vld [vmem:[#allocation17_spill] sm:$0xff]  ;;  %v17642_v52 = vld [vmem:[#allocation35_spill] sm:$0xff] }
 0x7d4   : > { %v6194_v37 = vand.u32 3, %v6193_v1  ;;  %v8057_v62 = vsel %vm16939_vm3, %v8056_v47, %v8055_v33  ;;  %v8248_v35 = vclz %v9071_v43  ;;  %v5370_v16 = vsel %vm5363_vm0, %v5366_v60, %v5369_v29  ;;  %v17639_v33 = vld [vmem:[#allocation34_spill] sm:$0xff]  ;;  %v17641_v47 = vld [vmem:[#allocation44_spill] sm:$0xff]  ;;  %v17643_v29 = vld [vmem:[#allocation47_spill] sm:$0xff] }
 0x7d5   : > { %v5050_v21 = vand.u32 3, %v17636_v25  ;;  %v5053_v34 = vxor.u32 2147483648, %v17637_v40  ;;  %v5056_v51 = vxor.u32 2147483648, %v17638_v30  ;;  %v16191_v8 = vsel %vm16154_vm13, %v15858_v6, %v8057_v62  ;;  %v17644_v25 = vld [vmem:[#allocation38_spill] sm:$0xff] }
 0x7d6   : > { %vm6196_vm15 = vcmp.eq.s32.totalorder %v6194_v37, 0  ;;  %vm6199_vm4 = vcmp.eq.s32.totalorder %v6194_v37, 2  ;;  %v9072_v53 = vadd.s32 4294967294, %v8248_v35  ;;  %vm6195_vm1 = vcmp.lt.s32.totalorder %v6194_v37, 2 }
 0x7d7   : > { %v6198_v54 = vsel %vm6196_vm15, %v17635_v3, %v6197_v42  ;;  %v6201_v38 = vsel %vm6199_vm4, %v6200_v61, %v17634_v22  ;;  %v5371_v39 = vsel %vm5360_vm10, nan, %v5370_v16  ;;  %vm5048_vm2 = vweird.f32 %v17639_v33 }
 0x7d8   : > { %v6202_v31 = vsel %vm6195_vm1, %v6198_v54, %v6201_v38  ;;  %vm9073_vm7 = vcmp.lt.s32.totalorder %v9072_v53, 0  ;;  %vm5052_vm0 = vcmp.eq.s32.totalorder %v5050_v21, 0  ;;  %vm5055_vm3 = vcmp.eq.s32.totalorder %v5050_v21, 2 }
 0x7d9   : > { %v6203_v63 = vsel %vm6192_vm6, nan, %v6202_v31  ;;  %v8251_v4 = vsel %vm9073_vm7, 0, %v9072_v53  ;;  %v5054_v22 = vsel %vm5052_vm0, %v17638_v30, %v5053_v34  ;;  %v5057_v42 = vsel %vm5055_vm3, %v5056_v51, %v17637_v40 }
 0x7da   : > { %v9133_v14 = vpack.c.bf16 %v6203_v63, %v5371_v39  ;;  %v8252_v1 = vsub.s32 32, %v8251_v4  ;;  %v8256_v3 = vsub.s32 4294967266, %v8251_v4  ;;  %vm5051_vm15 = vcmp.lt.s32.totalorder %v5050_v21, 2  ;;  %v17645_v21 = vld [vmem:[#allocation53_spill] sm:$0xff] }
 0x7db   : > { %vm5880_vm10 = vweird.f32 %v17640_v11  ;;  %v8253_v61 = vshll.u32 %v16158_v13, %v8251_v4  ;;  %v5882_v43 = vand.u32 3, %v17641_v47  ;;  %v5885_v60 = vxor.u32 2147483648, %v17642_v52  ;;  %v17646_v4 = vld [vmem:[#allocation54_spill] sm:$0xff]  ;;  %v17649_v47 = vld [vmem:[#allocation61_spill] sm:$0xff] }
 0x7dc   : > { %9134 = vmatprep.subr.bf16.mxu1 %v9133_v14  ;;  %v5888_v37 = vxor.u32 2147483648, %v17643_v29  ;;  %v8254_v62 = vshrl.u32 %v8236_v48, %v8252_v1  ;;  %v8257_v35 = vadd.s32 127, %v8256_v3  ;;  %v5058_v16 = vsel %vm5051_vm15, %v5054_v22, %v5057_v42  ;;  %v17647_v42 = vld [vmem:[#allocation10_spill] sm:$0xff]  ;;  %v17648_v3 = vld [vmem:[#allocation55_spill] sm:$0xff] }
 0x7dd   : > { %v5258_v34 = vand.u32 3, %v17644_v25  ;;  %vm5883_vm3 = vcmp.lt.s32.totalorder %v5882_v43, 2  ;;  %vm5884_vm6 = vcmp.eq.s32.totalorder %v5882_v43, 0  ;;  %vm5887_vm4 = vcmp.eq.s32.totalorder %v5882_v43, 2  ;;  %v17652_v25 = vld [vmem:[#allocation48_spill] sm:$0xff] }
 0x7de   : > { %v5261_v40 = vxor.u32 2147483648, %v17645_v21  ;;  %v8255_v30 = vor.u32 %v8254_v62, %v8253_v61  ;;  %v8258_v51 = vshll.u32 %v8257_v35, 23  ;;  %v5886_v13 = vsel %vm5884_vm6, %v17643_v29, %v5885_v60 }
 0x7df   : > { %v5889_v53 = vsel %vm5887_vm4, %v5888_v37, %v17642_v52  ;;  %v5059_v54 = vsel %vm5048_vm2, nan, %v5058_v16  ;;  %vm5259_vm1 = vcmp.lt.s32.totalorder %v5258_v34, 2  ;;  %vm5260_vm7 = vcmp.eq.s32.totalorder %v5258_v34, 0  ;;  %v17650_v52 = vld [vmem:[#allocation15_spill] sm:$0xff]  ;;  %v17651_v16 = vld [vmem:[#allocation24_spill] sm:$0xff] }
 0x7e0   : > { %v5890_v38 = vsel %vm5883_vm3, %v5886_v13, %v5889_v53  ;;  %v8259_v48 = vor.u32 4788187, %v8258_v51  ;;  %v8262_v39 = vcvt.s32.f32 %v8255_v30  ;;  %vm5263_vm0 = vcmp.eq.s32.totalorder %v5258_v34, 2  ;;  %v17653_v30 = vld [vmem:[#allocation32_spill] sm:$0xff] }
 0x7e1   : > { %v5891_v31 = vsel %vm5880_vm10, nan, %v5890_v38  ;;  %vm8182_vm15 = vcmp.lt.s32.totalorder %v15892_v23, 0  ;;  %v5262_v14 = vsel %vm5260_vm7, %v17646_v4, %v5261_v40  ;;  %v5264_v22 = vxor.u32 2147483648, %v17646_v4 }
 0x7e2   : > { %v9127_v63 = vpack.c.bf16 %v5891_v31, %v5059_v54  ;;  %v6090_v1 = vand.u32 3, %v17647_v42  ;;  %v8260_v33 = vand.u32 2147483647, %v8259_v48  ;;  %v6093_v61 = vxor.u32 2147483648, %v17648_v3  ;;  %v17661_v42 = vld [vmem:[#allocation76_spill] sm:$0xff] }
 0x7e3   : > { %v6096_v43 = vxor.u32 2147483648, %v17649_v47  ;;  %v6810_v60 = vsub.s32 4, %v17650_v52  ;;  %v5265_v11 = vsel %vm5263_vm0, %v5264_v22, %v17645_v21  ;;  %vm5256_vm6 = vweird.f32 %v17651_v16 }
 0x7e4   : > { %9128 = vmatpush1.bf16.msra.mxu0 %v9127_v63  ;;  %vm6091_vm2 = vcmp.lt.s32.totalorder %v6090_v1, 2  ;;  %vm6092_vm10 = vcmp.eq.s32.totalorder %v6090_v1, 0  ;;  %vm6095_vm3 = vcmp.eq.s32.totalorder %v6090_v1, 2  ;;  %v8263_v29 = vmul.f32 %v8262_v39, %v8260_v33  ;;  %v17659_v63 = vld [vmem:[#allocation59_spill] sm:$0xff]  ;;  %v17662_v33 = vld [vmem:[#allocation73_spill] sm:$0xff] }
 0x7e5   : > { %v5266_v37 = vsel %vm5259_vm1, %v5262_v14, %v5265_v11  ;;  %v6094_v62 = vsel %vm6092_vm10, %v17649_v47, %v6093_v61  ;;  %v6097_v35 = vsel %vm6095_vm3, %v6096_v43, %v17648_v3  ;;  %vm6088_vm4 = vweird.f32 %v17652_v25  ;;  %v17663_v47 = vld [vmem:[#allocation67_spill] sm:$0xff] }
 0x7e6   : > { %v6098_v40 = vsel %vm6091_vm2, %v6094_v62, %v6097_v35  ;;  %vm17654_vm7 = vcmp.lt.s32.totalorder %v17653_v30, 0  ;;  %v17655_v21 = vand.u32 2147483647, %v15892_v23  ;;  %v8264_v34 = vxor.u32 2147483648, %v8263_v29  ;;  %v17670_v25 = vld [vmem:[#allocation107_spill] sm:$0xff] }
 0x7e7   : > { %v6811_v51 = vsel %vm17654_vm7, %v6810_v60, %v17650_v52  ;;  %v5267_v53 = vsel %vm5256_vm6, nan, %v5266_v37  ;;  %v6099_v54 = vsel %vm6088_vm4, nan, %v6098_v40  ;;  %9753 = vcosq.f32 %v16164_v19  ;;  %v17665_v52 = vld [vmem:[#allocation65_spill] sm:$0xff]  ;;  %v17667_v37 = vld [vmem:[#allocation84_spill] sm:$0xff] }
 0x7e8   : > { %vm16231_vm0 = vcmp.le.f32.partialorder %v17655_v21, 0.7853982  ;;  %v6813_v48 = vsel %vm14529_vm8, 0, %v6811_v51  ;;  %v9135_v39 = vpack.c.bf16 %v6099_v54, %v5267_v53  ;;  %v7642_v4 = vsub.s32 4, %v17659_v63  ;;  %v17672_v21 = vld [vmem:[#allocation46_spill] sm:$0xff] }
 0x7e9   : > { %v6817_v31 = vadd.s32 3, %v6813_v48  ;;  %v17660_v14 = vsel %vm15979_vm12, 0, %v15992_v12  ;;  %9755 = vsinq.f32 %v16164_v19  ;;  %v6821_v1 = vxor.u32 2147483648, %v17661_v42  ;;  %v17673_v48 = vld [vmem:[#allocation66_spill] sm:$0xff] }
 0x7ea   : > { %v16243_v22 = vadd.s32 3, %v17660_v14  ;;  %v6824_v3 = vxor.u32 2147483648, %v17662_v33  ;;  %9757 = vcosq.f32 %v16191_v8  ;;  %9136 = vmatpush1.bf16.msra.mxu1 %v9135_v39  ;;  %vm17664_vm8 = vcmp.lt.s32.totalorder %v17663_v47, 0 }
 0x7eb   : > { %v6818_v61 = vand.u32 3, %v6817_v31  ;;  %v7643_v43 = vsel %vm17664_vm8, %v7642_v4, %v17659_v63  ;;  %v7018_v15 = vsub.s32 4, %v17665_v52  ;;  %v16257_v12 = vadd.s32 3, %v8165_v26  ;;  %v17668_v26 = vld [vmem:[#allocation28_spill] sm:$0xff]  ;;  %v17674_v31 = vld [vmem:[#allocation79_spill] sm:$0xff]  ;;  %v17675_v4 = vld [vmem:[#allocation58_spill] sm:$0xff] }
 0x7ec   : > { %9759 = vsinq.f32 %v16191_v8  ;;  %v8265_v19 = vsel %vm8182_vm15, %v8264_v34, %v8263_v29  ;;  %v7645_v11 = vsel %vm14805_vm9, 0, %v7643_v43  ;;  %v7653_v62 = vxor.u32 2147483648, %v17667_v37 }
 0x7ed   : > { %vm6819_vm12 = vcmp.lt.s32.totalorder %v6818_v61, 2  ;;  %vm6820_vm1 = vcmp.eq.s32.totalorder %v6818_v61, 0  ;;  %vm6823_vm2 = vcmp.eq.s32.totalorder %v6818_v61, 2  ;;  %v7649_v7 = vadd.s32 3, %v7645_v11 }
 0x7ee   : > { %v6822_v35 = vsel %vm6820_vm1, %v17662_v33, %v6821_v1  ;;  %v6825_v10 = vsel %vm6823_vm2, %v6824_v3, %v17661_v42  ;;  %vm17669_vm5 = vcmp.lt.s32.totalorder %v17668_v26, 0  ;;  %v7656_v29 = vxor.u32 2147483648, %v17670_v25 }
 0x7ef   : > { %v7019_v8 = vsel %vm17669_vm5, %v7018_v15, %v17665_v52  ;;  %v6826_v16 = vsel %vm6819_vm12, %v6822_v35, %v6825_v10  ;;  %v7850_v34 = vsub.s32 4, %v17672_v21  ;;  %vm6816_vm9 = vweird.f32 %v17653_v30 }
 0x7f0   : > { %v7021_v51 = vsel %vm14690_vm11, 0, %v7019_v8  ;;  %vm7648_vm10 = vweird.f32 %v17663_v47  ;;  %v7650_v53 = vand.u32 3, %v7649_v7  ;;  %v16279_v38 = vsel %vm16231_vm0, %v15892_v23, %v8265_v19  ;;  %v17678_v19 = vld [vmem:[#allocation68_spill] sm:$0xff] }
 0x7f1   : > { %v7025_v54 = vadd.s32 3, %v7021_v51  ;;  %v7029_v39 = vxor.u32 2147483648, %v17673_v48  ;;  %v7032_v63 = vxor.u32 2147483648, %v17674_v31  ;;  %vm17676_vm11 = vcmp.lt.s32.totalorder %v17675_v4, 0  ;;  %v16287_v1 = vpop.eup %9753  ;;  %v17679_v51 = vld [vmem:[#allocation36_spill] sm:$0xff] }
 0x7f2   : > { %v7851_v14 = vsel %vm17676_vm11, %v7850_v34, %v17672_v21  ;;  %v6827_v42 = vsel %vm6816_vm9, nan, %v6826_v16  ;;  %vm7652_vm3 = vcmp.eq.s32.totalorder %v7650_v53, 0  ;;  %vm7655_vm6 = vcmp.eq.s32.totalorder %v7650_v53, 2  ;;  %v17680_v21 = vld [vmem:[#allocation70_spill] sm:$0xff]  ;;  %v17681_v34 = vld [vmem:[#allocation23_spill] sm:$0xff] }
 0x7f3   : > { %vm7024_vm4 = vweird.f32 %v17668_v26  ;;  %v7026_v30 = vand.u32 3, %v7025_v54  ;;  %vm7651_vm7 = vcmp.lt.s32.totalorder %v7650_v53, 2  ;;  %v7654_v33 = vsel %vm7652_vm3, %v17670_v25, %v7653_v62  ;;  %v16294_v52 = vpop.eup %9755  ;;  %v17682_v54 = vld [vmem:[#allocation75_spill] sm:$0xff] }
 0x7f4   : > { %v7657_v3 = vsel %vm7655_vm6, %v7656_v29, %v17667_v37  ;;  %v7853_v43 = vsel %vm14979_vm14, 0, %v7851_v14  ;;  %vm7856_vm8 = vweird.f32 %v17675_v4  ;;  %v6714_v60 = vand.u32 3, %v17678_v19  ;;  %v16297_v11 = vpop.eup %9757  ;;  %v17688_v4 = vld [vmem:[#allocation62_spill] sm:$0xff] }
 0x7f5   : > { %v7658_v15 = vsel %vm7651_vm7, %v7654_v33, %v7657_v3  ;;  %vm7028_vm12 = vcmp.eq.s32.totalorder %v7026_v30, 0  ;;  %vm7031_vm1 = vcmp.eq.s32.totalorder %v7026_v30, 2  ;;  %v7857_v10 = vadd.s32 3, %v7853_v43 }
 0x7f6   : > { %v7659_v35 = vsel %vm7648_vm10, nan, %v7658_v15  ;;  %v7030_v62 = vsel %vm7028_vm12, %v17674_v31, %v7029_v39  ;;  %v7033_v37 = vsel %vm7031_vm1, %v7032_v63, %v17673_v48  ;;  %v16303_v7 = vpop.eup %9759  ;;  %vm7027_vm14 = vcmp.lt.s32.totalorder %v7026_v30, 2  ;;  %v17683_v39 = vld [vmem:[#allocation90_spill] sm:$0xff] }
 0x7f7   : > { %v9129_v8 = vpack.c.bf16 %v7659_v35, %v6827_v42  ;;  %v7861_v16 = vxor.u32 2147483648, %v15186_v56  ;;  %v7864_v25 = vxor.u32 2147483648, %v15090_v20  ;;  %v7034_v29 = vsel %vm7027_vm14, %v7030_v62, %v7033_v37  ;;  %v17684_v15 = vld [vmem:[#allocation74_spill] sm:$0xff]  ;;  %v17686_v37 = vld [vmem:[#allocation71_spill] sm:$0xff] }
 0x7f8   : > { %v7858_v40 = vand.u32 3, %v7857_v10  ;;  %vm6712_vm2 = vweird.f32 %v17679_v51  ;;  %v6717_v47 = vxor.u32 2147483648, %v17680_v21  ;;  %vm6716_vm5 = vcmp.eq.s32.totalorder %v6714_v60, 0  ;;  %v17692_v51 = vld [vmem:[#allocation50_spill] sm:$0xff] }
 0x7f9   : > { %9130 = vmatprep.subr.bf16.mxu0 %v9129_v8  ;;  %v6720_v53 = vxor.u32 2147483648, %v17681_v34  ;;  %v7546_v48 = vand.u32 3, %v17682_v54  ;;  %v7549_v31 = vxor.u32 2147483648, %v17683_v39  ;;  %vm6719_vm11 = vcmp.eq.s32.totalorder %v6714_v60, 2  ;;  %v17687_v8 = vld [vmem:[#allocation19_spill] sm:$0xff] }
 0x7fa   : > { %vm7860_vm9 = vcmp.eq.s32.totalorder %v7858_v40, 0  ;;  %vm7863_vm10 = vcmp.eq.s32.totalorder %v7858_v40, 2  ;;  %v6718_v63 = vsel %vm6716_vm5, %v17681_v34, %v6717_v47  ;;  %vm7859_vm3 = vcmp.lt.s32.totalorder %v7858_v40, 2 }
 0x7fb   : > { %v7862_v14 = vsel %vm7860_vm9, %v15090_v20, %v7861_v16  ;;  %v7865_v42 = vsel %vm7863_vm10, %v7864_v25, %v15186_v56  ;;  %v6721_v30 = vsel %vm6719_vm11, %v6720_v53, %v17680_v21  ;;  %v7035_v33 = vsel %vm7024_vm4, nan, %v7034_v29  ;;  %v17685_v20 = vld [vmem:[#allocation52_spill] sm:$0xff]  ;;  %v17689_v53 = vld [vmem:[#allocation97_spill] sm:$0xff] }
 0x7fc   : > { %v7866_v3 = vsel %vm7859_vm3, %v7862_v14, %v7865_v42  ;;  %vm6715_vm6 = vcmp.lt.s32.totalorder %v6714_v60, 2  ;;  %vm7548_vm7 = vcmp.eq.s32.totalorder %v7546_v48, 0  ;;  %v7552_v35 = vxor.u32 2147483648, %v17684_v15  ;;  %v17693_v14 = vld [vmem:[#allocation77_spill] sm:$0xff] }
 0x7fd   : > { %v7867_v61 = vsel %vm7856_vm8, nan, %v7866_v3  ;;  %v6722_v43 = vsel %vm6715_vm6, %v6718_v63, %v6721_v30  ;;  %v7550_v19 = vsel %vm7548_vm7, %v17684_v15, %v7549_v31  ;;  %vm7551_vm12 = vcmp.eq.s32.totalorder %v7546_v48, 2  ;;  %v17691_v31 = vld [vmem:[#allocation104_spill] sm:$0xff] }
 0x7fe   : > { %v9137_v62 = vpack.c.bf16 %v7867_v61, %v7035_v33  ;;  %v6922_v56 = vand.u32 3, %v17685_v20  ;;  %v6925_v10 = vxor.u32 2147483648, %v17686_v37  ;;  %vm7547_vm1 = vcmp.lt.s32.totalorder %v7546_v48, 2  ;;  %v17690_v48 = vld [vmem:[#allocation98_spill] sm:$0xff]  ;;  %v16342_v30 = vld [vmem:[%s16574_s7] sm:$0xf] }
 0x7ff   : > { %v7553_v26 = vsel %vm7551_vm12, %v7552_v35, %v17683_v39  ;;  %v6928_v60 = vxor.u32 2147483648, %v17687_v8  ;;  %v7754_v16 = vand.u32 3, %v15153_v18  ;;  %vm7544_vm4 = vweird.f32 %v17688_v4  ;;  %v17696_v35 = vld [vmem:[#allocation81_spill] sm:$0xff] }
 0x800   : > { %9138 = vmatprep.subr.bf16.mxu1 %v9137_v62  ;;  %v7554_v25 = vsel %vm7547_vm1, %v7550_v19, %v7553_v26  ;;  %vm6924_vm8 = vcmp.eq.s32.totalorder %v6922_v56, 0  ;;  %vm6927_vm14 = vcmp.eq.s32.totalorder %v6922_v56, 2  ;;  %v6723_v29 = vsel %vm6712_vm2, nan, %v6722_v43 }
 0x801   : > { %v7555_v40 = vsel %vm7544_vm4, nan, %v7554_v25  ;;  %v6926_v21 = vsel %vm6924_vm8, %v17687_v8, %v6925_v10  ;;  %v6929_v47 = vsel %vm6927_vm14, %v6928_v60, %v17686_v37  ;;  %9761 = vcosq.f32 %v16279_v38  ;;  %v17699_v10 = vld [vmem:[#allocation87_spill] sm:$0xff] }
 0x802   : > { %v9131_v34 = vpack.c.bf16 %v7555_v40, %v6723_v29  ;;  %vm6923_vm5 = vcmp.lt.s32.totalorder %v6922_v56, 2  ;;  %v7757_v18 = vxor.u32 2147483648, %v17689_v53  ;;  %vm7756_vm9 = vcmp.eq.s32.totalorder %v7754_v16, 0  ;;  %v17700_v60 = vld [vmem:[#allocation103_spill] sm:$0xff] }
 0x803   : > { %v6930_v54 = vsel %vm6923_vm5, %v6926_v21, %v6929_v47  ;;  %v7760_v39 = vxor.u32 2147483648, %v17690_v48  ;;  %v5562_v63 = vsub.s32 4, %v17691_v31  ;;  %vm6920_vm2 = vweird.f32 %v17692_v51  ;;  %v17703_v21 = vld [vmem:[#allocation82_spill] sm:$0xff]  ;;  %v17705_v47 = vld [vmem:[#allocation113_spill] sm:$0xff] }
 0x804   : > { %9132 = vmatpush1.bf16.msra.mxu0 %v9131_v34  ;;  %vm7752_vm10 = vweird.f32 %v17693_v14  ;;  %v7758_v42 = vsel %vm7756_vm9, %v17690_v48, %v7757_v18  ;;  %vm7759_vm11 = vcmp.eq.s32.totalorder %v7754_v16, 2  ;;  %vm7755_vm3 = vcmp.lt.s32.totalorder %v7754_v16, 2  ;;  %v17709_v48 = vld [vmem:[#allocation105_spill] sm:$0xff] }
 0x805   : > { %v7761_v33 = vsel %vm7759_vm11, %v7760_v39, %v17689_v53  ;;  %vm17694_vm6 = vcmp.lt.s32.totalorder %v14740_v57, 0  ;;  %v6394_v61 = vsub.s32 4, %v15341_v58  ;;  %v6931_v43 = vsel %vm6920_vm2, nan, %v6930_v54  ;;  %v17706_v53 = vld [vmem:[#allocation102_spill] sm:$0xff] }
 0x806   : > { %v5563_v3 = vsel %vm17694_vm6, %v5562_v63, %v17691_v31  ;;  %v7762_v15 = vsel %vm7755_vm3, %v7758_v42, %v7761_v33  ;;  %vm17695_vm7 = vnez %v17523_v0  ;;  %v5573_v62 = vxor.u32 2147483648, %v17696_v35  ;;  %v17710_v33 = vld [vmem:[#allocation94_spill] sm:$0xff] }
 0x807   : > { %v5565_v19 = vsel %vm17695_vm7, 0, %v5563_v3  ;;  %v7763_v20 = vsel %vm7752_vm10, nan, %v7762_v15  ;;  %vm17697_vm12 = vcmask 261120   ;;  %vm5568_vm1 = vweird.f32 %v14740_v57 }
 0x808   : > { %9074 = vmatmul.mubr.msk.f32.vlgmr.msra.gmra.mrb[32].mxu0 %vm17697_vm12, %v16342_v30  ;;  %v5569_v56 = vadd.s32 3, %v5565_v19  ;;  %vm17698_vm4 = vcmp.lt.s32.totalorder %v15168_v45, 0  ;;  %v5770_v26 = vsub.s32 4, %v17699_v10  ;;  %v9139_v8 = vpack.c.bf16 %v7763_v20, %v6931_v43  ;;  %vm17712_vm6 = vmmov %vm17697_vm12  ;;  %v17713_v43 = vld [vmem:[#allocation11_spill] sm:$0xff] }
 0x809   : > { %v6395_v37 = vsel %vm17698_vm4, %v6394_v61, %v15341_v58  ;;  %v5576_v16 = vxor.u32 2147483648, %v17700_v60  ;;  %vm17701_vm8 = vnez %v17556_v5  ;;  %vm6400_vm14 = vweird.f32 %v15168_v45  ;;  %v17708_v5 = vld [vmem:[#allocation114_spill] sm:$0xff] }
 0x80a   : > { %v6397_v0 = vsel %vm17701_vm8, 0, %v6395_v37  ;;  %v17702_v4 = vmov 0.0   ;;  %v5570_v25 = vand.u32 3, %v5569_v56  ;;  %v6405_v40 = vxor.u32 2147483648, %v15742_v41  ;;  %9140 = vmatpush1.bf16.msra.mxu1 %v9139_v8  ;;  %v17714_v56 = vld [vmem:[#allocation45_spill] sm:$0xff] }
 0x80b   : > { %8500 = vmatprep.mubr.f32.mxu0 %v17702_v4  ;;  %v6401_v29 = vadd.s32 3, %v6397_v0  ;;  %vm17704_vm5 = vcmp.lt.s32.totalorder %v17703_v21, 0  ;;  %v6408_v34 = vxor.u32 2147483648, %v17705_v47  ;;  %vm17707_vm9 = vnez %v17706_v53  ;;  %v16373_v63 = vpop.eup %9761 }
 0x80c   : > { %v5771_v58 = vsel %vm17704_vm5, %v5770_v26, %v17699_v10  ;;  %v5781_v54 = vxor.u32 2147483648, %v17708_v5  ;;  %v6602_v39 = vsub.s32 4, %v17709_v48  ;;  %vm5571_vm2 = vcmp.lt.s32.totalorder %v5570_v25, 2 }
 0x80d   : > { %v5773_v18 = vsel %vm17707_vm9, 0, %v5771_v58  ;;  %vm5572_vm10 = vcmp.eq.s32.totalorder %v5570_v25, 0  ;;  %vm5575_vm11 = vcmp.eq.s32.totalorder %v5570_v25, 2  ;;  %v6402_v31 = vand.u32 3, %v6401_v29  ;;  %9075 = vmatmul.mubr.msk.f32.vlgmr.msra.gmra.mrb[32].mxu1 %vm17712_vm6, %v16342_v30  ;;  %v17716_v25 = vld [vmem:[#allocation92_spill] sm:$0xff] }
 0x80e   : > { %v5574_v51 = vsel %vm5572_vm10, %v17700_v60, %v5573_v62  ;;  %v5577_v14 = vsel %vm5575_vm11, %v5576_v16, %v17696_v35  ;;  %v5777_v42 = vadd.s32 3, %v5773_v18  ;;  %vm17711_vm3 = vcmp.lt.s32.totalorder %v17710_v33, 0  ;;  %8571 = vmatprep.mubr.f32.mxu1 %v17702_v4 }
 0x80f   : > { %v6603_v3 = vsel %vm17711_vm3, %v6602_v39, %v17709_v48  ;;  %v5578_v61 = vsel %vm5571_vm2, %v5574_v51, %v5577_v14  ;;  %vm6404_vm7 = vcmp.eq.s32.totalorder %v6402_v31, 0  ;;  %vm6407_vm12 = vcmp.eq.s32.totalorder %v6402_v31, 2 }
 0x810   : > { %v5784_v15 = vxor.u32 2147483648, %v17713_v43  ;;  %vm6403_vm4 = vcmp.lt.s32.totalorder %v6402_v31, 2  ;;  %v6406_v19 = vsel %vm6404_vm7, %v17705_v47, %v6405_v40  ;;  %v6409_v62 = vsel %vm6407_vm12, %v6408_v34, %v15742_v41  ;;  %v17717_v40 = vld [vmem:[#allocation99_spill] sm:$0xff]  ;;  %v17718_v47 = vld [vmem:[#allocation101_spill] sm:$0xff]  ;;  %v17719_v34 = vld [vmem:[#allocation106_spill] sm:$0xff] }
 0x811   : > { %v5778_v20 = vand.u32 3, %v5777_v42  ;;  %v6410_v35 = vsel %vm6403_vm4, %v6406_v19, %v6409_v62  ;;  %vm5776_vm8 = vweird.f32 %v17703_v21  ;;  %vm17715_vm5 = vnez %v17714_v56 }
 0x812   : > { %v6605_v37 = vsel %vm17715_vm5, 0, %v6603_v3  ;;  %v6613_v10 = vxor.u32 2147483648, %v15820_v49  ;;  %v5579_v26 = vsel %vm5568_vm1, nan, %v5578_v61  ;;  %v6411_v8 = vsel %vm6400_vm14, nan, %v6410_v35  ;;  %v17724_v35 = vld [vmem:[#allocation100_spill] sm:$0xff] }
 0x813   : > { %vm5780_vm9 = vcmp.eq.s32.totalorder %v5778_v20, 0  ;;  %vm5783_vm2 = vcmp.eq.s32.totalorder %v5778_v20, 2  ;;  %v9141_v41 = vpack.c.bf16 %v6411_v8, %v5579_v26  ;;  %v6609_v0 = vadd.s32 3, %v6605_v37  ;;  %v17725_v37 = vld [vmem:[#allocation91_spill] sm:$0xff]  ;;  %v17726_v26 = vld [vmem:[#allocation93_spill] sm:$0xff] }
 0x814   : > { %v5782_v60 = vsel %vm5780_vm9, %v17713_v43, %v5781_v54  ;;  %v5785_v16 = vsel %vm5783_vm2, %v5784_v15, %v17708_v5  ;;  %v6616_v4 = vxor.u32 2147483648, %v15816_v46  ;;  %v5466_v29 = vand.u32 3, %v17716_v25  ;;  %v17720_v54 = vld [vmem:[#allocation57_spill] sm:$0xff]  ;;  %v17721_v5 = vld [vmem:[#allocation111_spill] sm:$0xff]  ;;  %v17722_v15 = vld [vmem:[#allocation108_spill] sm:$0xff] }
 0x815   : > { %v5469_v58 = vxor.u32 2147483648, %v17717_v40  ;;  %v5472_v57 = vxor.u32 2147483648, %v17718_v47  ;;  %9142 = vmatprep.subr.bf16.mxu0 %v9141_v41  ;;  %vm5779_vm1 = vcmp.lt.s32.totalorder %v5778_v20, 2  ;;  %vm6608_vm14 = vweird.f32 %v17710_v33  ;;  %v17727_v33 = vld [vmem:[#allocation96_spill] sm:$0xff] }
 0x816   : > { %v6610_v45 = vand.u32 3, %v6609_v0  ;;  %v6298_v53 = vand.u32 3, %v17719_v34  ;;  %v5786_v18 = vsel %vm5779_vm1, %v5782_v60, %v5785_v16  ;;  %vm5464_vm10 = vweird.f32 %v17720_v54 }
 0x817   : > { %vm5468_vm11 = vcmp.eq.s32.totalorder %v5466_v29, 0  ;;  %v6301_v48 = vxor.u32 2147483648, %v17721_v5  ;;  %vm5471_vm7 = vcmp.eq.s32.totalorder %v5466_v29, 2  ;;  %v5787_v42 = vsel %vm5776_vm8, nan, %v5786_v18  ;;  %v17732_v18 = vld [vmem:[#allocation8_spill] sm:$0xff] }
 0x818   : > { %vm6612_vm3 = vcmp.eq.s32.totalorder %v6610_v45, 0  ;;  %vm6615_vm6 = vcmp.eq.s32.totalorder %v6610_v45, 2  ;;  %v5470_v39 = vsel %vm5468_vm11, %v17718_v47, %v5469_v58  ;;  %vm6611_vm12 = vcmp.lt.s32.totalorder %v6610_v45, 2  ;;  %v17729_v47 = vld [vmem:[#allocation110_spill] sm:$0xff]  ;;  %v17730_v45 = vld [vmem:[#allocation112_spill] sm:$0xff] }
 0x819   : > { %v6614_v31 = vsel %vm6612_vm3, %v15816_v46, %v6613_v10  ;;  %v6617_v51 = vsel %vm6615_vm6, %v6616_v4, %v15820_v49  ;;  %v5473_v14 = vsel %vm5471_vm7, %v5472_v57, %v17717_v40  ;;  %vm5467_vm4 = vcmp.lt.s32.totalorder %v5466_v29, 2  ;;  %v17723_v46 = vld [vmem:[#allocation78_spill] sm:$0xff]  ;;  %v17728_v29 = vld [vmem:[#allocation115_spill] sm:$0xff] }
 0x81a   : > { %v6618_v3 = vsel %vm6611_vm12, %v6614_v31, %v6617_v51  ;;  %vm6300_vm5 = vcmp.eq.s32.totalorder %v6298_v53, 0  ;;  %v5474_v43 = vsel %vm5467_vm4, %v5470_v39, %v5473_v14  ;;  %v6304_v62 = vxor.u32 2147483648, %v17722_v15 }
 0x81b   : > { %v6619_v61 = vsel %vm6608_vm14, nan, %v6618_v3  ;;  %v6302_v19 = vsel %vm6300_vm5, %v17722_v15, %v6301_v48  ;;  %vm6303_vm9 = vcmp.eq.s32.totalorder %v6298_v53, 2  ;;  %v5674_v49 = vand.u32 3, %v17723_v46 }
 0x81c   : > { %v9149_v20 = vpack.c.bf16 %v6619_v61, %v5787_v42  ;;  %v5677_v56 = vxor.u32 2147483648, %v17724_v35  ;;  %vm6299_vm2 = vcmp.lt.s32.totalorder %v6298_v53, 2  ;;  %v6305_v21 = vsel %vm6303_vm9, %v6304_v62, %v17721_v5  ;;  %v17731_v53 = vld [vmem:[#allocation60_spill] sm:$0xff] }
 0x81d   : > { %v5680_v10 = vxor.u32 2147483648, %v17725_v37  ;;  %v6506_v8 = vand.u32 3, %v17726_v26  ;;  %vm6296_vm8 = vweird.f32 %v17727_v33  ;;  %v6306_v41 = vsel %vm6299_vm2, %v6302_v19, %v6305_v21  ;;  %v17739_v21 = vld [vmem:[#allocation33_spill] sm:$0xff] }
 0x81e   : > { %9150 = vmatprep.subr.bf16.mxu1 %v9149_v20  ;;  %vm5676_vm1 = vcmp.eq.s32.totalorder %v5674_v49, 0  ;;  %vm5679_vm14 = vcmp.eq.s32.totalorder %v5674_v49, 2  ;;  %v5475_v60 = vsel %vm5464_vm10, nan, %v5474_v43  ;;  %v6307_v16 = vsel %vm6296_vm8, nan, %v6306_v41 }
 0x81f   : > { %v5678_v0 = vsel %vm5676_vm1, %v17725_v37, %v5677_v56  ;;  %v5681_v4 = vsel %vm5679_vm14, %v5680_v10, %v17724_v35  ;;  %9763 = vsinq.f32 %v16279_v38  ;;  %v9143_v25 = vpack.c.bf16 %v6307_v16, %v5475_v60  ;;  %v17737_v35 = vld [vmem:[#allocation49_spill] sm:$0xff]  ;;  %v17740_v16 = vld [vmem:[#allocation42_spill] sm:$0xff] }
 0x820   : > { %vm5675_vm11 = vcmp.lt.s32.totalorder %v5674_v49, 2  ;;  %v6509_v40 = vxor.u32 2147483648, %v17728_v29  ;;  %vm6508_vm3 = vcmp.eq.s32.totalorder %v6506_v8, 0  ;;  %v6512_v57 = vxor.u32 2147483648, %v17729_v47 }
 0x821   : > { %v5682_v58 = vsel %vm5675_vm11, %v5678_v0, %v5681_v4  ;;  %v7226_v34 = vsub.s32 4, %v17730_v45  ;;  %9144 = vmatpush1.bf16.msra.mxu0 %v9143_v25  ;;  %vm5672_vm10 = vweird.f32 %v17731_v53  ;;  %vm6504_vm6 = vweird.f32 %v17732_v18  ;;  %v17742_v53 = vld [vmem:[#allocation27_spill] sm:$0xff] }
 0x822   : > { %v6510_v54 = vsel %vm6508_vm3, %v17729_v47, %v6509_v40  ;;  %vm6511_vm7 = vcmp.eq.s32.totalorder %v6506_v8, 2  ;;  %vm6507_vm12 = vcmp.lt.s32.totalorder %v6506_v8, 2  ;;  %vm17733_vm4 = vcmp.lt.s32.totalorder %v15499_v59, 0 }
 0x823   : > { %v6513_v38 = vsel %vm6511_vm7, %v6512_v57, %v17728_v29  ;;  %v7227_v5 = vsel %vm17733_vm4, %v7226_v34, %v17730_v45  ;;  %v8058_v48 = vsub.s32 4, %v16069_v44  ;;  %v5683_v39 = vsel %vm5672_vm10, nan, %v5682_v58  ;;  %v17741_v34 = vld [vmem:[#allocation13_spill] sm:$0xff] }
 0x824   : > { %v6514_v31 = vsel %vm6507_vm12, %v6510_v54, %v6513_v38  ;;  %vm17734_vm5 = vnez %v17581_v27  ;;  %v7237_v14 = vxor.u32 2147483648, %v15942_v9  ;;  %vm7232_vm9 = vweird.f32 %v15499_v59  ;;  %v17743_v54 = vld [vmem:[#allocation37_spill] sm:$0xff] }
 0x825   : > { %v7229_v51 = vsel %vm17734_vm5, 0, %v7227_v5  ;;  %v6515_v42 = vsel %vm6504_vm6, nan, %v6514_v31  ;;  %vm17735_vm2 = vcmp.lt.s32.totalorder %v15858_v6, 0  ;;  %v7434_v43 = vsub.s32 4, %v15811_v28 }
 0x826   : > { %v7233_v3 = vadd.s32 3, %v7229_v51  ;;  %v8059_v61 = vsel %vm17735_vm2, %v8058_v48, %v16069_v44  ;;  %v9151_v15 = vpack.c.bf16 %v6515_v42, %v5683_v39  ;;  %v7240_v19 = vxor.u32 2147483648, %v15939_v17  ;;  %v17744_v48 = vld [vmem:[#allocation89_spill] sm:$0xff] }
 0x827   : > { %v8061_v62 = vsel %vm16154_vm13, 0, %v8059_v61  ;;  %vm8064_vm8 = vweird.f32 %v15858_v6  ;;  %v8069_v46 = vxor.u32 2147483648, %v16303_v7  ;;  %vm17736_vm1 = vcmp.lt.s32.totalorder %v15614_v24, 0 }
 0x828   : > { %v7234_v27 = vand.u32 3, %v7233_v3  ;;  %v8065_v20 = vadd.s32 3, %v8061_v62  ;;  %v7435_v49 = vsel %vm17736_vm1, %v7434_v43, %v15811_v28  ;;  %9152 = vmatpush1.bf16.msra.mxu1 %v9151_v15  ;;  %v8072_v44 = vxor.u32 2147483648, %v16297_v11 }
 0x829   : > { %vm17738_vm14 = vnez %v17737_v35  ;;  %v7445_v37 = vxor.u32 2147483648, %v17739_v21  ;;  %v8266_v55 = vsub.s32 4, %v16136_v36  ;;  %v9764_v26 = vpop.eup %9763  ;;  %v7448_v0 = vxor.u32 2147483648, %v17740_v16 }
 0x82a   : > { %v7437_v56 = vsel %vm17738_vm14, 0, %v7435_v49  ;;  %vm7235_vm13 = vcmp.lt.s32.totalorder %v7234_v27, 2  ;;  %vm7236_vm11 = vcmp.eq.s32.totalorder %v7234_v27, 0  ;;  %vm7239_vm3 = vcmp.eq.s32.totalorder %v7234_v27, 2  ;;  %v17747_v49 = vld [vmem:[#allocation40_spill] sm:$0xff] }
 0x82b   : > { %v8066_v10 = vand.u32 3, %v8065_v20  ;;  %v7238_v8 = vsel %vm7236_vm11, %v15939_v17, %v7237_v14  ;;  %v7241_v33 = vsel %vm7239_vm3, %v7240_v19, %v15942_v9  ;;  %v7441_v28 = vadd.s32 3, %v7437_v56  ;;  %v17746_v20 = vld [vmem:[#allocation18_spill] sm:$0xff] }
 0x82c   : > { %v8267_v41 = vsel %vm8182_vm15, %v8266_v55, %v16136_v36  ;;  %v7242_v60 = vsel %vm7235_vm13, %v7238_v8, %v7241_v33  ;;  %vm7440_vm12 = vweird.f32 %v15614_v24  ;;  %v8277_v9 = vxor.u32 2147483648, %v9764_v26 }
 0x82d   : > { %vm8068_vm10 = vcmp.eq.s32.totalorder %v8066_v10, 0  ;;  %vm8071_vm6 = vcmp.eq.s32.totalorder %v8066_v10, 2  ;;  %vm8067_vm7 = vcmp.lt.s32.totalorder %v8066_v10, 2  ;;  %v7442_v29 = vand.u32 3, %v7441_v28  ;;  %v17749_v28 = vld [vmem:[#allocation63_spill] sm:$0xff] }
 0x82e   : > { %v8070_v4 = vsel %vm8068_vm10, %v16297_v11, %v8069_v46  ;;  %v8073_v25 = vsel %vm8071_vm6, %v8072_v44, %v16303_v7  ;;  %v8269_v17 = vsel %vm16231_vm0, 0, %v8267_v41  ;;  %v7243_v36 = vsel %vm7232_vm9, nan, %v7242_v60 }
 0x82f   : > { %v8074_v40 = vsel %vm8067_vm7, %v8070_v4, %v8073_v25  ;;  %vm7444_vm15 = vcmp.eq.s32.totalorder %v7442_v29, 0  ;;  %vm7447_vm4 = vcmp.eq.s32.totalorder %v7442_v29, 2  ;;  %v8273_v57 = vadd.s32 3, %v8269_v17 }
 0x830   : > { %v8075_v58 = vsel %vm8064_vm8, nan, %v8074_v40  ;;  %v7446_v11 = vsel %vm7444_vm15, %v17740_v16, %v7445_v37  ;;  %v7449_v7 = vsel %vm7447_vm4, %v7448_v0, %v17739_v21  ;;  %v8280_v45 = vxor.u32 2147483648, %v16373_v63 }
 0x831   : > { %v9145_v47 = vpack.c.bf16 %v8075_v58, %v7243_v36  ;;  %v7130_v13 = vand.u32 3, %v17741_v34  ;;  %v7133_v18 = vxor.u32 2147483648, %v17742_v53  ;;  %v7136_v59 = vxor.u32 2147483648, %v17743_v54 }
 0x832   : > { %vm7443_vm0 = vcmp.lt.s32.totalorder %v7442_v29, 2  ;;  %vm8272_vm5 = vweird.f32 %v15892_v23  ;;  %v8274_v6 = vand.u32 3, %v8273_v57  ;;  %v7962_v38 = vand.u32 3, %v16243_v22  ;;  %v17748_v23 = vld [vmem:[#allocation109_spill] sm:$0xff] }
 0x833   : > { %9146 = vmatprep.subr.bf16.mxu0 %v9145_v47  ;;  %v7450_v5 = vsel %vm7443_vm0, %v7446_v11, %v7449_v7  ;;  %vm7128_vm9 = vweird.f32 %v17744_v48  ;;  %vm7132_vm2 = vcmp.eq.s32.totalorder %v7130_v13, 0  ;;  %v7965_v39 = vxor.u32 2147483648, %v16138_v50 }
 0x834   : > { %vm8276_vm8 = vcmp.eq.s32.totalorder %v8274_v6, 0  ;;  %vm8279_vm1 = vcmp.eq.s32.totalorder %v8274_v6, 2  ;;  %v7134_v31 = vsel %vm7132_vm2, %v17743_v54, %v7133_v18  ;;  %vm7135_vm14 = vcmp.eq.s32.totalorder %v7130_v13, 2 }
 0x835   : > { %vm8275_vm13 = vcmp.lt.s32.totalorder %v8274_v6, 2  ;;  %v8278_v51 = vsel %vm8276_vm8, %v16373_v63, %v8277_v9  ;;  %v8281_v14 = vsel %vm8279_vm1, %v8280_v45, %v9764_v26  ;;  %v7137_v42 = vsel %vm7135_vm14, %v7136_v59, %v17742_v53  ;;  %v17745_v63 = vld [vmem:[#allocation95_spill] sm:$0xff] }
 0x836   : > { %v7451_v22 = vsel %vm7440_vm12, nan, %v7450_v5  ;;  %v8282_v3 = vsel %vm8275_vm13, %v8278_v51, %v8281_v14  ;;  %vm7131_vm11 = vcmp.lt.s32.totalorder %v7130_v13, 2  ;;  %vm7964_vm3 = vcmp.eq.s32.totalorder %v7962_v38, 0 }
 0x837   : > { %v8283_v61 = vsel %vm8272_vm5, nan, %v8282_v3  ;;  %v7138_v43 = vsel %vm7131_vm11, %v7134_v31, %v7137_v42  ;;  %v7966_v15 = vsel %vm7964_vm3, %v16082_v32, %v7965_v39  ;;  %v7968_v19 = vxor.u32 2147483648, %v16082_v32 }
 0x838   : > { %v9153_v62 = vpack.c.bf16 %v8283_v61, %v7451_v22  ;;  %vm7967_vm10 = vcmp.eq.s32.totalorder %v7962_v38, 2  ;;  %v7338_v27 = vand.u32 3, %v17745_v63  ;;  %v7341_v46 = vxor.u32 2147483648, %v17746_v20 }
 0x839   : > { %vm7963_vm6 = vcmp.lt.s32.totalorder %v7962_v38, 2  ;;  %v7969_v24 = vsel %vm7967_vm10, %v7968_v19, %v16138_v50  ;;  %v7344_v44 = vxor.u32 2147483648, %v17747_v49  ;;  %v8170_v35 = vand.u32 3, %v16257_v12 }
 0x83a   : > { %9154 = vmatprep.subr.bf16.mxu1 %v9153_v62  ;;  %vm7960_vm7 = vweird.f32 %v17748_v23  ;;  %v7970_v56 = vsel %vm7963_vm6, %v7966_v15, %v7969_v24  ;;  %vm7340_vm12 = vcmp.eq.s32.totalorder %v7338_v27, 0  ;;  %vm7343_vm15 = vcmp.eq.s32.totalorder %v7338_v27, 2 }
 0x83b   : > { %v7139_v32 = vsel %vm7128_vm9, nan, %v7138_v43  ;;  %v7971_v21 = vsel %vm7960_vm7, nan, %v7970_v56  ;;  %v7342_v37 = vsel %vm7340_vm12, %v17747_v49, %v7341_v46  ;;  %v7345_v55 = vsel %vm7343_vm15, %v7344_v44, %v17746_v20 }
 0x83c   : > { %v9147_v10 = vpack.c.bf16 %v7971_v21, %v7139_v32  ;;  %v8173_v50 = vxor.u32 2147483648, %v16294_v52  ;;  %vm7339_vm4 = vcmp.lt.s32.totalorder %v7338_v27, 2  ;;  %vm8172_vm0 = vcmp.eq.s32.totalorder %v8170_v35, 0 }
 0x83d   : > { %v8176_v12 = vxor.u32 2147483648, %v16287_v1  ;;  %v7346_v26 = vsel %vm7339_vm4, %v7342_v37, %v7345_v55  ;;  %vm8175_vm5 = vcmp.eq.s32.totalorder %v8170_v35, 2  ;;  %vm8171_vm2 = vcmp.lt.s32.totalorder %v8170_v35, 2 }
 0x83e   : > { %9148 = vmatpush1.bf16.msra.mxu0 %v9147_v10  ;;  %v8174_v8 = vsel %vm8172_vm0, %v16287_v1, %v8173_v50  ;;  %vm7336_vm9 = vweird.f32 %v17749_v28  ;;  %vm8168_vm8 = vweird.f32 %v15803_v2  ;;  %vm17750_vm1 = vcmask 261120   ;;  %v8289_v1 = vpop.permute.xlu0 %8288 }
 0x83f   : > { %v8177_v33 = vsel %vm8175_vm5, %v8176_v12, %v16294_v52  ;;  %v7347_v60 = vsel %vm7336_vm9, nan, %v7346_v26  ;;  %vm17751_vm14 = vmmov %vm17750_vm1 }
 0x840   : > { %v8178_v41 = vsel %vm8171_vm2, %v8174_v8, %v8177_v33 }
 0x841   : > { %v8179_v16 = vsel %vm8168_vm8, nan, %v8178_v41  ;;  %9076 = vmatmul.mubr.msk.f32.vlgmr.msra.gmra.mrb[34].mxu0 %vm17750_vm1, %v16342_v30 }
 0x842   : > { %v9155_v0 = vpack.c.bf16 %v8179_v16, %v7347_v60 }
 0x844   : > { %9156 = vmatpush1.bf16.msra.mxu1 %v9155_v0 }
 0x847   : > { %9077 = vmatmul.mubr.msk.f32.vlgmr.msra.gmra.mrb[34].mxu1 %vm17751_vm14, %v16342_v30 }
 0x8db   : > { %v8360_v4 = vpop.f32.mrb[32].mxu0 }
 0x8dc   : > { %v8361_v25 = vadd.f32 %v8360_v4, %v8289_v1  ;;  %v8362_v29 = vpop.f32.mrb[33].mxu0 }
 0x8dd   : > { %v8363_v52 = vadd.f32 %v8362_v29, %v8289_v1 }
 0x8de   : > { %v9078_v40 = vmul.f32 -1.442695, %v8361_v25 }
 0x8df   : > { %v9079_v17 = vmul.f32 -1.442695, %v8363_v52 }
 0x8e0   : > { %9765 = vpow2.f32 %v9078_v40  ;;  %v8431_v2 = vpop.f32.mrb[32].mxu1 }
 0x8e1   : > { %9767 = vpow2.f32 %v9079_v17  ;;  %v8432_v9 = vadd.f32 %v8431_v2, %v8289_v1  ;;  %v8433_v36 = vpop.f32.mrb[33].mxu1 }
 0x8e2   : > { %v8434_v58 = vadd.f32 %v8433_v36, %v8289_v1 }
 0x8e3   : > { %v9080_v47 = vmul.f32 -1.442695, %v8432_v9 }
 0x8e4   : > { %v9081_v11 = vmul.f32 -1.442695, %v8434_v58 }
 0x8e5   : > { %9769 = vpow2.f32 %v9080_v47 }
 0x8e6   : > { %9771 = vpow2.f32 %v9081_v11 }
 0x8ea   : > { %v9766_v7 = vpop.eup %9765 }
 0x8eb   : > { %v9768_v30 = vpop.eup %9767  ;;  %v8602_v57 = vadd.f32 1.0, %v9766_v7 }
 0x8ec   : > { %v8603_v45 = vadd.f32 1.0, %v9768_v30 }
 0x8ed   : > { %9773 = vrcp.f32 %v8602_v57 }
 0x8ee   : > { %9775 = vrcp.f32 %v8603_v45 }
 0x8ef   : > { %v9770_v34 = vpop.eup %9769 }
 0x8f0   : > { %v9772_v13 = vpop.eup %9771  ;;  %v8604_v53 = vadd.f32 1.0, %v9770_v34 }
 0x8f1   : > { %v8605_v18 = vadd.f32 1.0, %v9772_v13 }
 0x8f2   : > { %9777 = vrcp.f32 %v8604_v53 }
 0x8f3   : > { %9779 = vrcp.f32 %v8605_v18 }
 0x8f7   : > { %v9774_v54 = vpop.eup %9773 }
 0x8f8   : > { %v9776_v59 = vpop.eup %9775 }
 0x8f9   : > { %v8634_v6 = vcombine.low %v9774_v54, %v9776_v59 }
 0x8fb   : > { %8642 = vst [vmem:[%s16513_s28] sm:$0xff] %v8634_v6 }
 0x8fc   : > { %v9778_v38 = vpop.eup %9777 }
 0x8fd   : > { %v9780_v5 = vpop.eup %9779 }
 0x8fe   : > { %v8635_v48 = vcombine.low %v9778_v38, %v9780_v5 }
 0x900   : > { %8643 = vst [vmem:[%s16513_s28 + $0x8] sm:$0xff] %v8635_v48 }
 0x914   : > { %v8502_v39 = vpop.f32.mrb[34].mxu0 }
 0x915   : > { %v8503_v31 = vadd.f32 %v8502_v39, %v8289_v1  ;;  %v8504_v51 = vpop.f32.mrb[35].mxu0 }
 0x916   : > { %v8505_v14 = vadd.f32 %v8504_v51, %v8289_v1 }
 0x917   : > { %v9082_v42 = vmul.f32 -1.442695, %v8503_v31 }
 0x918   : > { %v9083_v22 = vmul.f32 -1.442695, %v8505_v14 }
 0x919   : > { %9781 = vpow2.f32 %v9082_v42 }
 0x91a   : > { %v8573_v3 = vpop.f32.mrb[34].mxu1  ;;  %9783 = vpow2.f32 %v9083_v22 }
 0x91b   : > { %v8574_v61 = vadd.f32 %v8573_v3, %v8289_v1  ;;  %v8575_v43 = vpop.f32.mrb[35].mxu1 }
 0x91c   : > { %v8576_v15 = vadd.f32 %v8575_v43, %v8289_v1 }
 0x91d   : > { %v9084_v19 = vmul.f32 -1.442695, %v8574_v61 }
 0x91e   : > { %v9085_v62 = vmul.f32 -1.442695, %v8576_v15 }
 0x91f   : > { %9785 = vpow2.f32 %v9084_v19 }
 0x920   : > { %9787 = vpow2.f32 %v9085_v62 }
 0x923   : > { %v9782_v63 = vpop.eup %9781 }
 0x924   : > { %v9784_v27 = vpop.eup %9783  ;;  %v8606_v20 = vadd.f32 1.0, %v9782_v63 }
 0x925   : > { %v8607_v46 = vadd.f32 1.0, %v9784_v27 }
 0x926   : > { %9789 = vrcp.f32 %v8606_v20 }
 0x927   : > { %9791 = vrcp.f32 %v8607_v46 }
 0x929   : > { %v9786_v24 = vpop.eup %9785 }
 0x92a   : > { %v9788_v49 = vpop.eup %9787  ;;  %v8608_v44 = vadd.f32 1.0, %v9786_v24 }
 0x92b   : > { %v8609_v35 = vadd.f32 1.0, %v9788_v49 }
 0x92c   : > { %9793 = vrcp.f32 %v8608_v44 }
 0x92d   : > { %9795 = vrcp.f32 %v8609_v35 }
 0x930   : > { %v9790_v23 = vpop.eup %9789 }
 0x931   : > { %v9792_v56 = vpop.eup %9791 }
 0x932   : > { %v8636_v32 = vcombine.low %v9790_v23, %v9792_v56 }
 0x934   : > { %8644 = vst [vmem:[%s16513_s28 + $0x10] sm:$0xff] %v8636_v32 }
 0x936   : > { %v9794_v21 = vpop.eup %9793 }
 0x937   : > { %v9796_v37 = vpop.eup %9795 }
 0x938   : > { %v8637_v55 = vcombine.low %v9794_v21, %v9796_v37 }
 0x93a   : > { %8645 = vst [vmem:[%s16513_s28 + $0x18] sm:$0xff] %v8637_v55 }
 0x93b   : > { %9840 = shalt.err (!%p9837_p5)
}
 0x93c   : > { %s9841_s24 = scalar_lea.hbm %s16523_s19, 512  ;;  %s9845_s26 = scalar_lea.hbm %s16576_s9, 2048 }
 0x93d   : > { %p9842_p7 = scmp.ne.s32.totalorder %s16523_s19, %s9841_s24  ;;  %p9846_p0 = scmp.lt.u32.totalorder %s16523_s19, %s16576_s9 }
 0x93e   : > { %p9847_p2 = scmp.lt.u32.totalorder %s9845_s26, %s9841_s24  ;;  %p9849_p6 = scmp.lt.u32.totalorder %s9841_s24, %s16523_s19 }
 0x93f   : > { %p9843_p8 = pnand %p9842_p7, %p17752_p11 }
 0x940   : > { %p9848_p10 = por %p9847_p2, %p9846_p0 }
 0x941   : > { %p9844_p13 = pneg %p9843_p8 }
 0x942   : > { %p9850_p12 = por %p9849_p6, %p9848_p10 }
 0x944   : > { %p9851_p4 = pnand %p9850_p12, %p9844_p13 }
 0x946   : > { %9854 = shalt.err (!%p9851_p4)
}
 0x947   : > { %9447 = dma.vmem_to_hbm [thread:$0]  (%p17752_p11), %s16525_s14, 512, %s16523_s19, %s8647_s25  }
 0x948 PF: > { %p9458_p9 = scmp.ge.s32.totalorder %s9893_s12, 2  ;;  %s8673_s23 = sand.u32 1, %s9881_s30  }
 0x949   : > { %p17753_p1 = scmp.ne.s32.totalorder %s16943_s22, 0  ;;  %s8674_s13 = scalar_lea.sflag [#allocation4], %s8673_s23 }
 0x94b   : > { %p9454_p3 = pnand %p9458_p9, %p17753_p1 }
 0x94d   : > { %9876 = dma.done.wait (!%p9454_p3), %s8674_s13, 512  }
 0x94e   : > { %9878 = vsyncadd (!%p9454_p3), %s8674_s13, 4294966784  ;;  %p22_p5 = scmp.ge.s32.totalorder %s9980_s15, 6   ;;  %s17754_s30 = smov %s9885_s10 }
 0x94f   : > { %s17755_s10 = smov %s9889_s11  ;;  %s17756_s11 = smov %s9992_s18 }
 0x950   : > { %s17757_s12 = smov %s9980_s15  ;;  %24 = sbr.rel (!%p22_p5) target bundleno = 5 (0x5), region = 104 }
 0x957   :  { %8679 = vsyncpa [#allocation3], 1 }
 0x958   :  { %8681 = vsyncpa [#allocation3 + $0x1], 1 }
 0x959   :  { %8682 = vsyncpa [#allocation4], 1 }
 0x95a   :  { %8684 = vsyncpa [#allocation4 + $0x1], 1 }

</bundles_post_ra>
